<compile_context>
chip_gen: v7x
topology: tpu7x:2x2x1
jax: 0.10.0
libtpu: 0.0.40
codegen_flags: <defaults>
</compile_context>

<pallas_src>
import numpy as np
import jax
import jax.numpy as jnp
from jax.experimental import pallas as pl
from jax.experimental.pallas import tpu as pltpu

# ----------------- config mirroring NRField.__init__ -----------------
WIDTH = 256            # hidden width
N_HIDDEN = 8           # number of hidden Linear(width,width)+ReLU blocks
BASE_RES = 16          # HashGrid base_resolution
N_LEVELS = 8           # HashGrid n_levels
N_FEATS = 4            # HashGrid n_features_per_level
LOG2_HASHMAP = 14      # (real module: 22) see TODO(synk) above
PER_LEVEL_SCALE = 2.0  # tcnn default growth factor
ENC_DIMS = N_LEVELS * N_FEATS      # 32
IN_SIZE = 3 * 4 + ENC_DIMS         # x, wi, n, f_d (3 each) + encoding = 44
IN_PAD = 64                        # padded K for the first matmul (lane-friendly)
OUT_DIM = 3                        # real output channels
OUT_PAD = 128                      # lane-dense padded output width
TM = 512                           # row tile (amortizes per-grid-step overhead)

HASH_PRIMES = (np.uint32(1), np.uint32(2654435761), np.uint32(805459861))


# ----------------- NGP hash-grid encoding (plain JAX glue) -----------------
def hash_grid_encode(x, tables):
    """x: [N,3] in [0,1], tables: [L, T, F] -> [N, L*F] float32."""
    L, T, F = tables.shape
    feats = []
    for lvl in range(L):
        res = int(np.floor(BASE_RES * (PER_LEVEL_SCALE ** lvl)))
        pos = x * res
        p0 = jnp.floor(pos).astype(jnp.int32)
        frac = (pos - p0).astype(jnp.float32)
        acc = jnp.zeros((x.shape[0], F), dtype=jnp.float32)
        for corner in range(8):
            offs = np.array([(corner >> d) & 1 for d in range(3)], dtype=np.int32)
            c = (p0 + offs[None, :]).astype(jnp.uint32)
            idx = (c[:, 0] * HASH_PRIMES[0]) ^ (c[:, 1] * HASH_PRIMES[1]) \
                  ^ (c[:, 2] * HASH_PRIMES[2])
            idx = (idx & jnp.uint32(T - 1)).astype(jnp.int32)
            w = jnp.prod(jnp.where(offs[None, :] == 1, frac, 1.0 - frac), axis=1)
            acc = acc + w[:, None] * tables[lvl][idx]
        feats.append(acc)
    return jnp.concatenate(feats, axis=1)


# ----------------- Pallas kernel: the MLP hot path -----------------
def nrfield_mlp_kernel(inp_ref, w_in_ref, b_in_ref, w_hid_ref, b_hid_ref,
                       w_out_ref, b_out_ref, out_ref):
    # input layer (bf16 operands, f32 MXU accumulation) + bias/ReLU in f32
    h = jnp.dot(inp_ref[...], w_in_ref[...], preferred_element_type=jnp.float32)
    h = jnp.maximum(h + b_in_ref[...], 0.0)
    # hidden layers (static unroll; bf16 weights resident in VMEM)
    for l in range(N_HIDDEN):
        h = jnp.dot(h.astype(jnp.bfloat16), w_hid_ref[l],
                    preferred_element_type=jnp.float32)
        h = jnp.maximum(h + b_hid_ref[l], 0.0)
    # output layer (lane-dense padded to 128), abs, float32
    o = jnp.dot(h.astype(jnp.bfloat16), w_out_ref[...],
                preferred_element_type=jnp.float32) + b_out_ref[...]
    out_ref[...] = jnp.abs(o)


def nrfield_mlp(inp, params):
    """inp: [N, IN_SIZE] float32 -> [N, 3] float32 (abs applied)."""
    N = inp.shape[0]
    n_pad = pl.cdiv(N, TM) * TM
    # pad rows to a TM multiple and features 44 -> 64 (zero rows of W_in),
    # then downcast the activation stream to bf16.
    inp_p = jnp.pad(inp, ((0, n_pad - N), (0, IN_PAD - IN_SIZE))).astype(jnp.bfloat16)

    # bf16 weights (matmul operands); biases stay f32 for the VPU epilogue.
    w_in = jnp.pad(params["w_in"], ((0, IN_PAD - IN_SIZE), (0, 0))).astype(jnp.bfloat16)
    b_in = params["b_in"]
    w_hid = params["w_hid"].astype(jnp.bfloat16)
    b_hid = params["b_hid"]
    w_out = jnp.pad(params["w_out"], ((0, 0), (0, OUT_PAD - OUT_DIM))).astype(jnp.bfloat16)
    b_out = jnp.pad(params["b_out"], ((0, 0), (0, OUT_PAD - OUT_DIM)))

    grid = (n_pad // TM,)
    flops = 2 * n_pad * (IN_PAD * WIDTH + N_HIDDEN * WIDTH * WIDTH + WIDTH * OUT_PAD)
    bytes_accessed = (inp_p.size * 2 + n_pad * OUT_PAD * 4
                      + (w_in.size + w_hid.size + w_out.size) * 2
                      + (b_in.size + b_hid.size + b_out.size) * 4)

    out = pl.pallas_call(
        nrfield_mlp_kernel,
        out_shape=jax.ShapeDtypeStruct((n_pad, OUT_PAD), jnp.float32),
        grid_spec=pltpu.PrefetchScalarGridSpec(
            num_scalar_prefetch=0,
            grid=grid,
            in_specs=[
                pl.BlockSpec((TM, IN_PAD), lambda i: (i, 0)),                  # activations tile
                pl.BlockSpec((IN_PAD, WIDTH), lambda i: (0, 0)),               # W_in (full)
                pl.BlockSpec((1, WIDTH), lambda i: (0, 0)),                    # b_in
                pl.BlockSpec((N_HIDDEN, WIDTH, WIDTH), lambda i: (0, 0, 0)),   # W_hid stack
                pl.BlockSpec((N_HIDDEN, 1, WIDTH), lambda i: (0, 0, 0)),       # b_hid stack
                pl.BlockSpec((WIDTH, OUT_PAD), lambda i: (0, 0)),              # W_out (padded)
                pl.BlockSpec((1, OUT_PAD), lambda i: (0, 0)),                  # b_out (padded)
            ],
            out_specs=pl.BlockSpec((TM, OUT_PAD), lambda i: (i, 0)),
        ),
        compiler_params=pltpu.CompilerParams(dimension_semantics=("parallel",)),
        cost_estimate=pl.CostEstimate(flops=flops, transcendentals=0,
                                      bytes_accessed=bytes_accessed),
    )(inp_p, w_in, b_in, w_hid, b_hid, w_out, b_out)
    return out[:N, :OUT_DIM]


# ----------------- full NRField.forward -----------------
def nrfield_forward(si_p, si_wi_world, si_n, si_fd, bbox_min, bbox_max, params):
    # with dr.suspend_grad(): normalized position, world wi, normal, diffuse refl.
    x = jnp.clip((si_p - bbox_min) / (bbox_max - bbox_min), 0.0, 1.0)
    z_x = hash_grid_encode(x, params["tables"])
    inp = jnp.concatenate([x, si_wi_world, si_n, si_fd, z_x], axis=1).astype(jnp.float32)
    return nrfield_mlp(inp, params)


# ----------------- pure-JAX f32 reference (for validation) -----------------
def nrfield_reference(si_p, si_wi_world, si_n, si_fd, bbox_min, bbox_max, params):
    x = jnp.clip((si_p - bbox_min) / (bbox_max - bbox_min), 0.0, 1.0)
    z_x = hash_grid_encode(x, params["tables"])
    h = jnp.concatenate([x, si_wi_world, si_n, si_fd, z_x], axis=1).astype(jnp.float32)
    h = jnp.maximum(h @ params["w_in"] + params["b_in"], 0.0)
    for l in range(N_HIDDEN):
        h = jnp.maximum(h @ params["w_hid"][l] + params["b_hid"][l], 0.0)
    return jnp.abs(h @ params["w_out"] + params["b_out"])


# ----------------- deterministic parameter init -----------------
def _linear_init(key, fan_in, fan_out):
    kw, kb = jax.random.split(key)
    bound = 1.0 / np.sqrt(fan_in)
    w = jax.random.uniform(kw, (fan_in, fan_out), jnp.float32, -bound, bound)
    b = jax.random.uniform(kb, (fan_out,), jnp.float32, -bound, bound)
    return w, b


def init_params(key):
    keys = jax.random.split(key, N_HIDDEN + 3)
    w_in, b_in = _linear_init(keys[0], IN_SIZE, WIDTH)
    w_hid, b_hid = [], []
    for l in range(N_HIDDEN):
        w, b = _linear_init(keys[1 + l], WIDTH, WIDTH)
        w_hid.append(w)
        b_hid.append(b)
    w_out, b_out = _linear_init(keys[1 + N_HIDDEN], WIDTH, OUT_DIM)
    T = 1 << LOG2_HASHMAP
    tables = jax.random.uniform(keys[2 + N_HIDDEN], (N_LEVELS, T, N_FEATS),
                                jnp.float32, -1e-4, 1e-4)  # tcnn hashgrid init
    return {
        "w_in": w_in, "b_in": b_in.reshape(1, WIDTH),
        "w_hid": jnp.stack(w_hid), "b_hid": jnp.stack(b_hid).reshape(N_HIDDEN, 1, WIDTH),
        "w_out": w_out, "b_out": b_out.reshape(1, OUT_DIM),
        "tables": tables,
    }


if __name__ == "__main__":
    key = jax.random.PRNGKey(0)
    kp, kw, kn, kf, kpar = jax.random.split(key, 5)

    N = 1000  # number of surface interactions (rays); ragged vs TM=512 on purpose
    bbox_min = jnp.array([-1.0, -1.0, -1.0], dtype=jnp.float32)
    bbox_max = jnp.array([1.0, 1.0, 1.0], dtype=jnp.float32)

    # synthetic SurfaceInteraction3f fields
    si_p = jax.random.uniform(kp, (N, 3), jnp.float32, -1.0, 1.0)       # si.p (inside bbox)
    wi = jax.random.normal(kw, (N, 3), jnp.float32)
    si_wi = wi / jnp.linalg.norm(wi, axis=1, keepdims=True)             # si.to_world(si.wi)
    nrm = jax.random.normal(kn, (N, 3), jnp.float32)
    si_n = nrm / jnp.linalg.norm(nrm, axis=1, keepdims=True)            # si.sh_frame.n
    si_fd = jax.random.uniform(kf, (N, 3), jnp.float32)                 # eval_diffuse_reflectance

    params = init_params(kpar)

    fwd = jax.jit(nrfield_forward)
    out = fwd(si_p, si_wi, si_n, si_fd, bbox_min, bbox_max, params)
    jax.block_until_ready(out)

    assert out.shape == (N, OUT_DIM) and out.dtype == jnp.float32
    assert bool(jnp.all(out >= 0.0))  # abs() applied in-kernel

    # validate bf16-matmul kernel against the f32 pure-JAX reference
    ref = jax.jit(nrfield_reference)(si_p, si_wi, si_n, si_fd, bbox_min, bbox_max, params)
    jax.block_until_ready(ref)
    rel_err = float(jnp.max(jnp.abs(out - ref)) / (jnp.max(jnp.abs(ref)) + 1e-12))
    assert rel_err < 0.1, f"bf16 kernel deviates from f32 reference: {rel_err}"

    print("KERNEL_OK")
</pallas_src>

<mosaic_0001>
module attributes {stable_mosaic.version = 11 : i64} {
  func.func @nrfield_mlp_kernel(%arg0: i32, %arg1: memref<512x64xbf16, #tpu.memory_space<vmem>>, %arg2: memref<64x256xbf16, #tpu.memory_space<vmem>>, %arg3: memref<1x256xf32, #tpu.memory_space<vmem>>, %arg4: memref<8x256x256xbf16, #tpu.memory_space<vmem>>, %arg5: memref<8x1x256xf32, #tpu.memory_space<vmem>>, %arg6: memref<256x128xbf16, #tpu.memory_space<vmem>>, %arg7: memref<1x128xf32, #tpu.memory_space<vmem>>, %arg8: memref<512x128xf32, #tpu.memory_space<vmem>>) attributes {dimension_semantics = [#tpu.dimension_semantics<parallel>], iteration_bounds = array<i64: 2>, scalar_prefetch = 0 : i64, scratch_operands = 0 : i64, tpu.core_type = #tpu.core_type<tc>, window_params = [{transform_indices = @transform_0, window_bounds = array<i64: 512, 64>}, {pipeline_mode = #tpu.pipeline_mode<synchronous>, transform_indices = @transform_1, window_bounds = array<i64: 64, 256>}, {pipeline_mode = #tpu.pipeline_mode<synchronous>, transform_indices = @transform_2, window_bounds = array<i64: 1, 256>}, {pipeline_mode = #tpu.pipeline_mode<synchronous>, transform_indices = @transform_3, window_bounds = array<i64: 8, 256, 256>}, {pipeline_mode = #tpu.pipeline_mode<synchronous>, transform_indices = @transform_4, window_bounds = array<i64: 8, 1, 256>}, {pipeline_mode = #tpu.pipeline_mode<synchronous>, transform_indices = @transform_5, window_bounds = array<i64: 256, 128>}, {pipeline_mode = #tpu.pipeline_mode<synchronous>, transform_indices = @transform_6, window_bounds = array<i64: 1, 128>}, {transform_indices = @transform_7, window_bounds = array<i64: 512, 128>}]} {
    %c0 = arith.constant 0 : index
    %c0_0 = arith.constant 0 : index
    %0 = vector.load %arg1[%c0, %c0_0] : memref<512x64xbf16, #tpu.memory_space<vmem>>, vector<512x64xbf16>
    %c0_1 = arith.constant 0 : index
    %c0_2 = arith.constant 0 : index
    %1 = vector.load %arg2[%c0_1, %c0_2] : memref<64x256xbf16, #tpu.memory_space<vmem>>, vector<64x256xbf16>
    %cst = arith.constant dense<0.000000e+00> : vector<512x256xf32>
    %2 = tpu.matmul %0, %1, %cst {dimension_numbers = #tpu.dot_dimension_numbers<[1], [0], [0], [1], [0, 0, 1, 1], [], []>} : vector<512x64xbf16>, vector<64x256xbf16>, vector<512x256xf32> -> vector<512x256xf32>
    %c0_3 = arith.constant 0 : index
    %c0_4 = arith.constant 0 : index
    %3 = vector.load %arg3[%c0_3, %c0_4] : memref<1x256xf32, #tpu.memory_space<vmem>>, vector<1x256xf32>
    %4 = vector.broadcast %3 : vector<1x256xf32> to vector<512x256xf32>
    %5 = arith.addf %2, %4 : vector<512x256xf32>
    %cst_5 = arith.constant 0.000000e+00 : f32
    %6 = vector.broadcast %cst_5 : f32 to vector<512x256xf32>
    %7 = arith.maximumf %5, %6 : vector<512x256xf32>
    %8 = arith.truncf %7 : vector<512x256xf32> to vector<512x256xbf16>
    %c0_6 = arith.constant 0 : index
    %c0_7 = arith.constant 0 : index
    %c0_8 = arith.constant 0 : index
    %9 = vector.load %arg4[%c0_6, %c0_7, %c0_8] : memref<8x256x256xbf16, #tpu.memory_space<vmem>>, vector<1x256x256xbf16>
    %10 = vector.shape_cast %9 : vector<1x256x256xbf16> to vector<256x256xbf16>
    %cst_9 = arith.constant dense<0.000000e+00> : vector<512x256xf32>
    %11 = tpu.matmul %8, %10, %cst_9 {dimension_numbers = #tpu.dot_dimension_numbers<[1], [0], [0], [1], [0, 0, 1, 1], [], []>} : vector<512x256xbf16>, vector<256x256xbf16>, vector<512x256xf32> -> vector<512x256xf32>
    %c0_10 = arith.constant 0 : index
    %c0_11 = arith.constant 0 : index
    %c0_12 = arith.constant 0 : index
    %12 = vector.load %arg5[%c0_10, %c0_11, %c0_12] : memref<8x1x256xf32, #tpu.memory_space<vmem>>, vector<1x1x256xf32>
    %13 = vector.shape_cast %12 : vector<1x1x256xf32> to vector<1x256xf32>
    %14 = vector.broadcast %13 : vector<1x256xf32> to vector<512x256xf32>
    %15 = arith.addf %11, %14 : vector<512x256xf32>
    %cst_13 = arith.constant 0.000000e+00 : f32
    %16 = vector.broadcast %cst_13 : f32 to vector<512x256xf32>
    %17 = arith.maximumf %15, %16 : vector<512x256xf32>
    %18 = arith.truncf %17 : vector<512x256xf32> to vector<512x256xbf16>
    %c1 = arith.constant 1 : index
    %c0_14 = arith.constant 0 : index
    %c0_15 = arith.constant 0 : index
    %19 = vector.load %arg4[%c1, %c0_14, %c0_15] : memref<8x256x256xbf16, #tpu.memory_space<vmem>>, vector<1x256x256xbf16>
    %20 = vector.shape_cast %19 : vector<1x256x256xbf16> to vector<256x256xbf16>
    %cst_16 = arith.constant dense<0.000000e+00> : vector<512x256xf32>
    %21 = tpu.matmul %18, %20, %cst_16 {dimension_numbers = #tpu.dot_dimension_numbers<[1], [0], [0], [1], [0, 0, 1, 1], [], []>} : vector<512x256xbf16>, vector<256x256xbf16>, vector<512x256xf32> -> vector<512x256xf32>
    %c1_17 = arith.constant 1 : index
    %c0_18 = arith.constant 0 : index
    %c0_19 = arith.constant 0 : index
    %22 = vector.load %arg5[%c1_17, %c0_18, %c0_19] : memref<8x1x256xf32, #tpu.memory_space<vmem>>, vector<1x1x256xf32>
    %23 = vector.shape_cast %22 : vector<1x1x256xf32> to vector<1x256xf32>
    %24 = vector.broadcast %23 : vector<1x256xf32> to vector<512x256xf32>
    %25 = arith.addf %21, %24 : vector<512x256xf32>
    %cst_20 = arith.constant 0.000000e+00 : f32
    %26 = vector.broadcast %cst_20 : f32 to vector<512x256xf32>
    %27 = arith.maximumf %25, %26 : vector<512x256xf32>
    %28 = arith.truncf %27 : vector<512x256xf32> to vector<512x256xbf16>
    %c2 = arith.constant 2 : index
    %c0_21 = arith.constant 0 : index
    %c0_22 = arith.constant 0 : index
    %29 = vector.load %arg4[%c2, %c0_21, %c0_22] : memref<8x256x256xbf16, #tpu.memory_space<vmem>>, vector<1x256x256xbf16>
    %30 = vector.shape_cast %29 : vector<1x256x256xbf16> to vector<256x256xbf16>
    %cst_23 = arith.constant dense<0.000000e+00> : vector<512x256xf32>
    %31 = tpu.matmul %28, %30, %cst_23 {dimension_numbers = #tpu.dot_dimension_numbers<[1], [0], [0], [1], [0, 0, 1, 1], [], []>} : vector<512x256xbf16>, vector<256x256xbf16>, vector<512x256xf32> -> vector<512x256xf32>
    %c2_24 = arith.constant 2 : index
    %c0_25 = arith.constant 0 : index
    %c0_26 = arith.constant 0 : index
    %32 = vector.load %arg5[%c2_24, %c0_25, %c0_26] : memref<8x1x256xf32, #tpu.memory_space<vmem>>, vector<1x1x256xf32>
    %33 = vector.shape_cast %32 : vector<1x1x256xf32> to vector<1x256xf32>
    %34 = vector.broadcast %33 : vector<1x256xf32> to vector<512x256xf32>
    %35 = arith.addf %31, %34 : vector<512x256xf32>
    %cst_27 = arith.constant 0.000000e+00 : f32
    %36 = vector.broadcast %cst_27 : f32 to vector<512x256xf32>
    %37 = arith.maximumf %35, %36 : vector<512x256xf32>
    %38 = arith.truncf %37 : vector<512x256xf32> to vector<512x256xbf16>
    %c3 = arith.constant 3 : index
    %c0_28 = arith.constant 0 : index
    %c0_29 = arith.constant 0 : index
    %39 = vector.load %arg4[%c3, %c0_28, %c0_29] : memref<8x256x256xbf16, #tpu.memory_space<vmem>>, vector<1x256x256xbf16>
    %40 = vector.shape_cast %39 : vector<1x256x256xbf16> to vector<256x256xbf16>
    %cst_30 = arith.constant dense<0.000000e+00> : vector<512x256xf32>
    %41 = tpu.matmul %38, %40, %cst_30 {dimension_numbers = #tpu.dot_dimension_numbers<[1], [0], [0], [1], [0, 0, 1, 1], [], []>} : vector<512x256xbf16>, vector<256x256xbf16>, vector<512x256xf32> -> vector<512x256xf32>
    %c3_31 = arith.constant 3 : index
    %c0_32 = arith.constant 0 : index
    %c0_33 = arith.constant 0 : index
    %42 = vector.load %arg5[%c3_31, %c0_32, %c0_33] : memref<8x1x256xf32, #tpu.memory_space<vmem>>, vector<1x1x256xf32>
    %43 = vector.shape_cast %42 : vector<1x1x256xf32> to vector<1x256xf32>
    %44 = vector.broadcast %43 : vector<1x256xf32> to vector<512x256xf32>
    %45 = arith.addf %41, %44 : vector<512x256xf32>
    %cst_34 = arith.constant 0.000000e+00 : f32
    %46 = vector.broadcast %cst_34 : f32 to vector<512x256xf32>
    %47 = arith.maximumf %45, %46 : vector<512x256xf32>
    %48 = arith.truncf %47 : vector<512x256xf32> to vector<512x256xbf16>
    %c4 = arith.constant 4 : index
    %c0_35 = arith.constant 0 : index
    %c0_36 = arith.constant 0 : index
    %49 = vector.load %arg4[%c4, %c0_35, %c0_36] : memref<8x256x256xbf16, #tpu.memory_space<vmem>>, vector<1x256x256xbf16>
    %50 = vector.shape_cast %49 : vector<1x256x256xbf16> to vector<256x256xbf16>
    %cst_37 = arith.constant dense<0.000000e+00> : vector<512x256xf32>
    %51 = tpu.matmul %48, %50, %cst_37 {dimension_numbers = #tpu.dot_dimension_numbers<[1], [0], [0], [1], [0, 0, 1, 1], [], []>} : vector<512x256xbf16>, vector<256x256xbf16>, vector<512x256xf32> -> vector<512x256xf32>
    %c4_38 = arith.constant 4 : index
    %c0_39 = arith.constant 0 : index
    %c0_40 = arith.constant 0 : index
    %52 = vector.load %arg5[%c4_38, %c0_39, %c0_40] : memref<8x1x256xf32, #tpu.memory_space<vmem>>, vector<1x1x256xf32>
    %53 = vector.shape_cast %52 : vector<1x1x256xf32> to vector<1x256xf32>
    %54 = vector.broadcast %53 : vector<1x256xf32> to vector<512x256xf32>
    %55 = arith.addf %51, %54 : vector<512x256xf32>
    %cst_41 = arith.constant 0.000000e+00 : f32
    %56 = vector.broadcast %cst_41 : f32 to vector<512x256xf32>
    %57 = arith.maximumf %55, %56 : vector<512x256xf32>
    %58 = arith.truncf %57 : vector<512x256xf32> to vector<512x256xbf16>
    %c5 = arith.constant 5 : index
    %c0_42 = arith.constant 0 : index
    %c0_43 = arith.constant 0 : index
    %59 = vector.load %arg4[%c5, %c0_42, %c0_43] : memref<8x256x256xbf16, #tpu.memory_space<vmem>>, vector<1x256x256xbf16>
    %60 = vector.shape_cast %59 : vector<1x256x256xbf16> to vector<256x256xbf16>
    %cst_44 = arith.constant dense<0.000000e+00> : vector<512x256xf32>
    %61 = tpu.matmul %58, %60, %cst_44 {dimension_numbers = #tpu.dot_dimension_numbers<[1], [0], [0], [1], [0, 0, 1, 1], [], []>} : vector<512x256xbf16>, vector<256x256xbf16>, vector<512x256xf32> -> vector<512x256xf32>
    %c5_45 = arith.constant 5 : index
    %c0_46 = arith.constant 0 : index
    %c0_47 = arith.constant 0 : index
    %62 = vector.load %arg5[%c5_45, %c0_46, %c0_47] : memref<8x1x256xf32, #tpu.memory_space<vmem>>, vector<1x1x256xf32>
    %63 = vector.shape_cast %62 : vector<1x1x256xf32> to vector<1x256xf32>
    %64 = vector.broadcast %63 : vector<1x256xf32> to vector<512x256xf32>
    %65 = arith.addf %61, %64 : vector<512x256xf32>
    %cst_48 = arith.constant 0.000000e+00 : f32
    %66 = vector.broadcast %cst_48 : f32 to vector<512x256xf32>
    %67 = arith.maximumf %65, %66 : vector<512x256xf32>
    %68 = arith.truncf %67 : vector<512x256xf32> to vector<512x256xbf16>
    %c6 = arith.constant 6 : index
    %c0_49 = arith.constant 0 : index
    %c0_50 = arith.constant 0 : index
    %69 = vector.load %arg4[%c6, %c0_49, %c0_50] : memref<8x256x256xbf16, #tpu.memory_space<vmem>>, vector<1x256x256xbf16>
    %70 = vector.shape_cast %69 : vector<1x256x256xbf16> to vector<256x256xbf16>
    %cst_51 = arith.constant dense<0.000000e+00> : vector<512x256xf32>
    %71 = tpu.matmul %68, %70, %cst_51 {dimension_numbers = #tpu.dot_dimension_numbers<[1], [0], [0], [1], [0, 0, 1, 1], [], []>} : vector<512x256xbf16>, vector<256x256xbf16>, vector<512x256xf32> -> vector<512x256xf32>
    %c6_52 = arith.constant 6 : index
    %c0_53 = arith.constant 0 : index
    %c0_54 = arith.constant 0 : index
    %72 = vector.load %arg5[%c6_52, %c0_53, %c0_54] : memref<8x1x256xf32, #tpu.memory_space<vmem>>, vector<1x1x256xf32>
    %73 = vector.shape_cast %72 : vector<1x1x256xf32> to vector<1x256xf32>
    %74 = vector.broadcast %73 : vector<1x256xf32> to vector<512x256xf32>
    %75 = arith.addf %71, %74 : vector<512x256xf32>
    %cst_55 = arith.constant 0.000000e+00 : f32
    %76 = vector.broadcast %cst_55 : f32 to vector<512x256xf32>
    %77 = arith.maximumf %75, %76 : vector<512x256xf32>
    %78 = arith.truncf %77 : vector<512x256xf32> to vector<512x256xbf16>
    %c7 = arith.constant 7 : index
    %c0_56 = arith.constant 0 : index
    %c0_57 = arith.constant 0 : index
    %79 = vector.load %arg4[%c7, %c0_56, %c0_57] : memref<8x256x256xbf16, #tpu.memory_space<vmem>>, vector<1x256x256xbf16>
    %80 = vector.shape_cast %79 : vector<1x256x256xbf16> to vector<256x256xbf16>
    %cst_58 = arith.constant dense<0.000000e+00> : vector<512x256xf32>
    %81 = tpu.matmul %78, %80, %cst_58 {dimension_numbers = #tpu.dot_dimension_numbers<[1], [0], [0], [1], [0, 0, 1, 1], [], []>} : vector<512x256xbf16>, vector<256x256xbf16>, vector<512x256xf32> -> vector<512x256xf32>
    %c7_59 = arith.constant 7 : index
    %c0_60 = arith.constant 0 : index
    %c0_61 = arith.constant 0 : index
    %82 = vector.load %arg5[%c7_59, %c0_60, %c0_61] : memref<8x1x256xf32, #tpu.memory_space<vmem>>, vector<1x1x256xf32>
    %83 = vector.shape_cast %82 : vector<1x1x256xf32> to vector<1x256xf32>
    %84 = vector.broadcast %83 : vector<1x256xf32> to vector<512x256xf32>
    %85 = arith.addf %81, %84 : vector<512x256xf32>
    %cst_62 = arith.constant 0.000000e+00 : f32
    %86 = vector.broadcast %cst_62 : f32 to vector<512x256xf32>
    %87 = arith.maximumf %85, %86 : vector<512x256xf32>
    %88 = arith.truncf %87 : vector<512x256xf32> to vector<512x256xbf16>
    %c0_63 = arith.constant 0 : index
    %c0_64 = arith.constant 0 : index
    %89 = vector.load %arg6[%c0_63, %c0_64] : memref<256x128xbf16, #tpu.memory_space<vmem>>, vector<256x128xbf16>
    %cst_65 = arith.constant dense<0.000000e+00> : vector<512x128xf32>
    %90 = tpu.matmul %88, %89, %cst_65 {dimension_numbers = #tpu.dot_dimension_numbers<[1], [0], [0], [1], [0, 0, 1, 1], [], []>} : vector<512x256xbf16>, vector<256x128xbf16>, vector<512x128xf32> -> vector<512x128xf32>
    %c0_66 = arith.constant 0 : index
    %c0_67 = arith.constant 0 : index
    %91 = vector.load %arg7[%c0_66, %c0_67] : memref<1x128xf32, #tpu.memory_space<vmem>>, vector<1x128xf32>
    %92 = vector.broadcast %91 : vector<1x128xf32> to vector<512x128xf32>
    %93 = arith.addf %90, %92 : vector<512x128xf32>
    %94 = math.absf %93 : vector<512x128xf32>
    %c0_68 = arith.constant 0 : index
    %c0_69 = arith.constant 0 : index
    %95 = vector.load %arg8[%c0_68, %c0_69] : memref<512x128xf32, #tpu.memory_space<vmem>>, vector<512x128xf32>
    tpu.vector_store %arg8[%c0_68, %c0_69], %94 {strides = array<i32>} : memref<512x128xf32, #tpu.memory_space<vmem>>, vector<512x128xf32>,
    return
  }
  func.func @transform_0(%arg0: i32) -> (i32, i32) {
    %c0_i32 = arith.constant 0 : i32
    %c0_i32_0 = arith.constant 0 : i32
    return %arg0, %c0_i32 : i32, i32
  }
  func.func @transform_1(%arg0: i32) -> (i32, i32) {
    %c0_i32 = arith.constant 0 : i32
    %c0_i32_0 = arith.constant 0 : i32
    %c0_i32_1 = arith.constant 0 : i32
    return %c0_i32, %c0_i32_0 : i32, i32
  }
  func.func @transform_2(%arg0: i32) -> (i32, i32) {
    %c0_i32 = arith.constant 0 : i32
    %c0_i32_0 = arith.constant 0 : i32
    %c0_i32_1 = arith.constant 0 : i32
    return %c0_i32, %c0_i32_0 : i32, i32
  }
  func.func @transform_3(%arg0: i32) -> (i32, i32, i32) {
    %c0_i32 = arith.constant 0 : i32
    %c0_i32_0 = arith.constant 0 : i32
    %c0_i32_1 = arith.constant 0 : i32
    %c0_i32_2 = arith.constant 0 : i32
    return %c0_i32, %c0_i32_0, %c0_i32_1 : i32, i32, i32
  }
  func.func @transform_4(%arg0: i32) -> (i32, i32, i32) {
    %c0_i32 = arith.constant 0 : i32
    %c0_i32_0 = arith.constant 0 : i32
    %c0_i32_1 = arith.constant 0 : i32
    %c0_i32_2 = arith.constant 0 : i32
    return %c0_i32, %c0_i32_0, %c0_i32_1 : i32, i32, i32
  }
  func.func @transform_5(%arg0: i32) -> (i32, i32) {
    %c0_i32 = arith.constant 0 : i32
    %c0_i32_0 = arith.constant 0 : i32
    %c0_i32_1 = arith.constant 0 : i32
    return %c0_i32, %c0_i32_0 : i32, i32
  }
  func.func @transform_6(%arg0: i32) -> (i32, i32) {
    %c0_i32 = arith.constant 0 : i32
    %c0_i32_0 = arith.constant 0 : i32
    %c0_i32_1 = arith.constant 0 : i32
    return %c0_i32, %c0_i32_0 : i32, i32
  }
  func.func @transform_7(%arg0: i32) -> (i32, i32) {
    %c0_i32 = arith.constant 0 : i32
    %c0_i32_0 = arith.constant 0 : i32
    return %arg0, %c0_i32 : i32, i32
  }
}

</mosaic_0001>

<bundles_post_ra>
// kernel: sub.81
= control target key start
LH: loop header
LB: loop body
LE: loop exit
PB: predicated region body
PF: predicated region fallthrough
CT: control target
= control target key end

     0   :  { %3 = vsyncpa [#allocation1], 0  ;;  %s126_s0 = inlined_call_operand.hbm [shape: f32[3], index: 0, kind: input, shape index: {}]   ;;  %s127_s1 = inlined_call_operand.hbm [shape: f32[3], index: 1, kind: input, shape index: {}]   ;;  %s128_s2 = inlined_call_operand.vmem [shape: f32[3], index: 2, kind: output, shape index: {}]  }
   0x1   :  { %4 = vsyncpa [#allocation3], 0  ;;  %s82_s9 = smov [#allocation0]   ;;  %s83_s11 = smov [#allocation2]  }
   0x2   :  { %s9_s10 = sshll.u32 %s82_s9, 4  ;;  %s17_s12 = sshll.u32 %s83_s11, 4  ;;  %s10_s10 = int_to_ptr.vmem [resolvable:$true] %s9_s10  ;;  %s18_s12 = int_to_ptr.vmem [resolvable:$true] %s17_s12 }
   0x3   :  { %s34_s15 = scalar_lea.hbm %s126_s0, 16 }
   0x4   :  { %p35_p0 = scmp.ne.s32.totalorder %s126_s0, %s34_s15  ;;  %p38_p1 = scmp.lt.u32.totalorder %s34_s15, %s126_s0 }
   0x6   :  { %p40_p2 = pnand %p38_p1, %p35_p0 }
   0x8   :  { %43 = shalt.err (!%p40_p2)
}
   0x9   :  { %s44_s20 = scalar_lea.vmem %s10_s10, 16  ;;  %s48_s21 = scalar_lea.vmem %s10_s10, 32 }
   0xa   :  { %p45_p3 = scmp.ne.s32.totalorder %s10_s10, %s44_s20  ;;  %p49_p4 = scmp.lt.s32.totalorder %s10_s10, %s10_s10 }
   0xb   :  { %p50_p5 = scmp.lt.s32.totalorder %s48_s21, %s44_s20 }
   0xd   :  { %p51_p6 = por %p50_p5, %p49_p4 }
   0xf   :  { %p52_p7 = pnand %p51_p6, %p45_p3 }
  0x11   :  { %55 = shalt.err (!%p52_p7)
}
  0x12   :  { %12 = dma.hbm_to_vmem [thread:$0]  %s126_s0, 16, %s10_s10, [#allocation1]  }
  0x13   :  { %s56_s25 = scalar_lea.hbm %s127_s1, 16 }
  0x14   :  { %p57_p8 = scmp.ne.s32.totalorder %s127_s1, %s56_s25  ;;  %p60_p9 = scmp.lt.u32.totalorder %s56_s25, %s127_s1 }
  0x16   :  { %p62_p10 = pnand %p60_p9, %p57_p8 }
  0x18   :  { %65 = shalt.err (!%p62_p10)
}
  0x19   :  { %s66_s30 = scalar_lea.vmem %s18_s12, 16  ;;  %s70_s3 = scalar_lea.vmem %s18_s12, 32 }
  0x1a   :  { %p67_p11 = scmp.ne.s32.totalorder %s18_s12, %s66_s30  ;;  %p71_p12 = scmp.lt.s32.totalorder %s18_s12, %s18_s12 }
  0x1b   :  { %p72_p13 = scmp.lt.s32.totalorder %s70_s3, %s66_s30 }
  0x1d   :  { %p73_p0 = por %p72_p13, %p71_p12 }
  0x1f   :  { %p74_p1 = pnand %p73_p0, %p67_p11 }
  0x21   :  { %77 = shalt.err (!%p74_p1)
}
  0x22   :  { %20 = dma.hbm_to_vmem [thread:$0]  %s127_s1, 16, %s18_s12, [#allocation3]  }
  0x23   :  { %78 = dma.done.wait [#allocation1], 16  }
  0x24   :  { %79 = vsyncadd [#allocation1], 4294967280 }
  0x25   :  { %80 = dma.done.wait [#allocation3], 16  }
  0x26   :  { %81 = vsyncadd [#allocation3], 4294967280  ;;  %v23_v0 = vld [vmem:[#allocation0] sm:$0x1]  ;;  %v24_v1 = vld [vmem:[#allocation2] sm:$0x1] }
  0x27   :  { %v27_v2 = vsub.f32 %v23_v0, %v24_v1 }
  0x29   :  { %29 = vst [vmem:[%s128_s2] sm:$0x1] %v27_v2 }
  0x2a   :  { %30 = vsyncpa [#allocation1], 1 }
  0x2b   :  { %31 = vsyncpa [#allocation3], 1 }

// kernel: nrfield_forward.1
= control target key start
LH: loop header
LB: loop body
LE: loop exit
PB: predicated region body
PF: predicated region fallthrough
CT: control target
= control target key end

     0   :  { %s8944_s24 = smov 0   ;;  %s11365_s0 = inlined_call_operand.vmem [shape: bf16[1024,64], index: 0, kind: input, shape index: {}]   ;;  %s11366_s1 = inlined_call_operand.vmem [shape: bf16[64,256], index: 1, kind: input, shape index: {}]   ;;  %s11367_s2 = inlined_call_operand.vmem [shape: f32[1,256], index: 2, kind: input, shape index: {}]   ;;  %s11368_s3 = inlined_call_operand.vmem [shape: bf16[8,256,256], index: 3, kind: input, shape index: {}]   ;;  %s11369_s4 = inlined_call_operand.vmem [shape: f32[8,1,256], index: 4, kind: input, shape index: {}]   ;;  %s11370_s5 = inlined_call_operand.vmem [shape: bf16[256,128], index: 5, kind: input, shape index: {}]   ;;  %s11371_s6 = inlined_call_operand.vmem [shape: f32[1,128], index: 6, kind: input, shape index: {}]   ;;  %s11372_s7 = inlined_call_operand.vmem [shape: f32[1024,128], index: 7, kind: output, shape index: {}]  }
   0x1 LB: > { %s7823_s25 = sadd.s32 4294967295, %s8901_s24   ;;  %p7827_p0 = scmp.ge.s32.totalorder %s8901_s24, 1  ;;  %s8901_s24 = sphi %s8944_s24, %s17_s24  }
   0x2   : > { %p238_p1 = scmp.lt.s32.totalorder %s8901_s24, 3 }
   0x4   : > { %p239_p2 = pnand %p7827_p0, %p238_p1 }
   0x5   : > { %v8451_v0 = vld [vmem:[%s11366_s1 + $0x4] ss:$8 sps:$4 sm:$0xff] (!%p239_p2)   ;;  %s7828_s28 = sshll.u32 (!%p239_p2), %s7823_s25, 6  ;;  %v8453_v1 = vld [vmem:[%s11366_s1] ss:$8 sps:$4 sm:$0xff] (!%p239_p2)   ;;  %v8903_v2 = vmov (!%p239_p2), 0  }
   0x6   : > { %242 = sbr.rel (%p239_p2) target bundleno = 2487 (0x9b7), region = 48  ;;  %696 = vmatprep.mubr.bf16.mxu0 (!%p239_p2), %v8903_v2  ;;  %p271_p3 = scmp.lt.s32.totalorder (!%p239_p2), %s7828_s28, 127  ;;  %664 = vmatprep.subr.bf16.mxu0 (!%p239_p2), %v8451_v0  ;;  %v8454_v3 = vld [vmem:[%s11366_s1 + $0x14] ss:$8 sps:$4 sm:$0xff] (!%p239_p2)   ;;  %v8456_v4 = vld [vmem:[%s11366_s1 + $0x10] ss:$8 sps:$4 sm:$0xff] (!%p239_p2)  }
   0x7   : > { %665 = vmatpush1.bf16.msra.mxu0 (!%p239_p2), %v8453_v1  ;;  %v8457_v5 = vld [vmem:[%s11366_s1 + $0x24] ss:$8 sps:$4 sm:$0xff] (!%p239_p2)   ;;  %v8459_v6 = vld [vmem:[%s11366_s1 + $0x20] ss:$8 sps:$4 sm:$0xff] (!%p239_p2)   ;;  %v8460_v7 = vld [vmem:[%s11366_s1 + $0x34] ss:$8 sps:$4 sm:$0xff] (!%p239_p2)  }
   0x8   : > { %666 = vmatprep.subr.bf16.mxu0 (!%p239_p2), %v8454_v3  ;;  %v8462_v8 = vld [vmem:[%s11366_s1 + $0x30] ss:$8 sps:$4 sm:$0xff] (!%p239_p2)   ;;  %vm567_vm0 = vcmask (!%p239_p2), 523264   ;;  %v8483_v13 = vld [vmem:[%s11368_s3 + $0x4] ss:$8 sps:$4 sm:$0xff] (!%p239_p2)  }
   0x9   : > { %v8485_v14 = vld [vmem:[%s11368_s3] ss:$8 sps:$4 sm:$0xff] (!%p239_p2)   ;;  %1413 = vmatprep.subr.bf16.mxu1 (!%p239_p2), %v8483_v13  ;;  %v8487_v16 = vld [vmem:[%s11368_s3 + $0x14] ss:$8 sps:$4 sm:$0xff] (!%p239_p2)   ;;  %v8489_v17 = vld [vmem:[%s11368_s3 + $0x10] ss:$8 sps:$4 sm:$0xff] (!%p239_p2)  }
   0xa   : > { %1414 = vmatpush1.bf16.msra.mxu1 (!%p239_p2), %v8485_v14  ;;  %v8490_v18 = vld [vmem:[%s11368_s3 + $0x24] ss:$8 sps:$4 sm:$0xff] (!%p239_p2)   ;;  %v8492_v19 = vld [vmem:[%s11368_s3 + $0x20] ss:$8 sps:$4 sm:$0xff] (!%p239_p2)   ;;  %v8494_v21 = vld [vmem:[%s11368_s3 + $0x34] ss:$8 sps:$4 sm:$0xff] (!%p239_p2)  }
   0xb   : > { %667 = vmatpush1.bf16.msra.mxu0 (!%p239_p2), %v8456_v4  ;;  %1415 = vmatprep.subr.bf16.mxu1 (!%p239_p2), %v8487_v16  ;;  %v8496_v22 = vld [vmem:[%s11368_s3 + $0x30] ss:$8 sps:$4 sm:$0xff] (!%p239_p2)   ;;  %v8497_v23 = vld [vmem:[%s11368_s3 + $0x44] ss:$8 sps:$4 sm:$0xff] (!%p239_p2)   ;;  %v8499_v24 = vld [vmem:[%s11368_s3 + $0x40] ss:$8 sps:$4 sm:$0xff] (!%p239_p2)  }
   0xc   : > { %668 = vmatprep.subr.bf16.mxu0 (!%p239_p2), %v8457_v5  ;;  %v8501_v26 = vld [vmem:[%s11368_s3 + $0x54] ss:$8 sps:$4 sm:$0xff] (!%p239_p2)   ;;  %v8503_v27 = vld [vmem:[%s11368_s3 + $0x50] ss:$8 sps:$4 sm:$0xff] (!%p239_p2)   ;;  %v8504_v28 = vld [vmem:[%s11368_s3 + $0x64] ss:$8 sps:$4 sm:$0xff] (!%p239_p2)  }
   0xd   : > { %s11374_s28 = smov (!%p271_p3, %s7828_s28), 127  ;;  %v8506_v29 = vld [vmem:[%s11368_s3 + $0x60] ss:$8 sps:$4 sm:$0xff]   ;;  %v8508_v31 = vld [vmem:[%s11368_s3 + $0x74] ss:$8 sps:$4 sm:$0xff]  }
   0xe   : > { %s7829_s14 = sshll.u32 %s11374_s28, 2  ;;  %1416 = vmatpush1.bf16.msra.mxu1 %v8489_v17  ;;  %v8510_v32 = vld [vmem:[%s11368_s3 + $0x70] ss:$8 sps:$4 sm:$0xff]   ;;  %v8511_v33 = vld [vmem:[%s11368_s3 + $0x100] ss:$8 sps:$4 sm:$0xff]   ;;  %s7831_s27 = sshll.u32 %s11374_s28, 3 }
   0xf   : > { %s8974_s17 = scalar_lea.vmem %s11365_s0, %s7829_s14  ;;  %669 = vmatpush1.bf16.msra.mxu0 %v8459_v6  ;;  %1417 = vmatprep.subr.bf16.mxu1 %v8490_v18  ;;  %v8513_v34 = vld [vmem:[%s11368_s3 + $0x104] ss:$8 sps:$4 sm:$0xff]   ;;  %v8516_v37 = vld [vmem:[%s11368_s3 + $0x80] ss:$8 sps:$4 sm:$0xff]   ;;  %v8518_v38 = vld [vmem:[%s11368_s3 + $0x94] ss:$8 sps:$4 sm:$0xff]   ;;  %s11229_s8 = scalar_lea.vmem %s11372_s7, %s7831_s27 }
  0x10   : > { %670 = vmatprep.subr.bf16.mxu0 %v8460_v7  ;;  %v8463_v9 = vld [vmem:[%s8974_s17] sm:$0xff]   ;;  %v8464_v10 = vld [vmem:[%s8974_s17 + $0x8] sm:$0xff]   ;;  %v8465_v11 = vld [vmem:[%s8974_s17 + $0x10] sm:$0xff]  }
  0x11   : > { %v8466_v12 = vld [vmem:[%s8974_s17 + $0x18] sm:$0xff]   ;;  %v8467_v15 = vld [vmem:[%s8974_s17 + $0x20] sm:$0xff]   ;;  %v8468_v20 = vld [vmem:[%s8974_s17 + $0x28] sm:$0xff]  }
  0x12   : > { %1418 = vmatpush1.bf16.msra.mxu1 %v8492_v19  ;;  %v8469_v25 = vld [vmem:[%s8974_s17 + $0x30] sm:$0xff]   ;;  %v8470_v30 = vld [vmem:[%s8974_s17 + $0x38] sm:$0xff]   ;;  %v8514_v35 = vld [vmem:[%s11368_s3 + $0x84] ss:$8 sps:$4 sm:$0xff]  }
  0x13   : > { %671 = vmatpush1.bf16.msra.mxu0 %v8462_v8  ;;  %1419 = vmatprep.subr.bf16.mxu1 %v8494_v21  ;;  %v8471_v36 = vld [vmem:[%s8974_s17 + $0x40] sm:$0xff]   ;;  %v8520_v39 = vld [vmem:[%s11368_s3 + $0x90] ss:$8 sps:$4 sm:$0xff]   ;;  %v8472_v42 = vld [vmem:[%s8974_s17 + $0x48] sm:$0xff]  }
  0x14   : > { %2164 = vmatprep.subr.bf16.mxu0 %v8513_v34  ;;  %v8521_v40 = vld [vmem:[%s11368_s3 + $0xa4] ss:$8 sps:$4 sm:$0xff]   ;;  %v8523_v41 = vld [vmem:[%s11368_s3 + $0xa0] ss:$8 sps:$4 sm:$0xff]   ;;  %v8525_v43 = vld [vmem:[%s11368_s3 + $0xb4] ss:$8 sps:$4 sm:$0xff]  }
  0x15   : > { %v8527_v44 = vld [vmem:[%s11368_s3 + $0xb0] ss:$8 sps:$4 sm:$0xff]   ;;  %v8530_v46 = vld [vmem:[%s11368_s3 + $0x114] ss:$8 sps:$4 sm:$0xff]   ;;  %v8531_v47 = vld [vmem:[%s11368_s3 + $0xc4] ss:$8 sps:$4 sm:$0xff]  }
  0x16   : > { %7872 = vmatmul.mubr.msk.bf16.vlgmr.msra.gmra.mrb[0].mxu0 %vm567_vm0, %v8463_v9  ;;  %1420 = vmatpush1.bf16.msra.mxu1 %v8496_v22  ;;  %v8528_v45 = vld [vmem:[%s11368_s3 + $0x110] ss:$8 sps:$4 sm:$0xff]   ;;  %v8533_v49 = vld [vmem:[%s11368_s3 + $0xc0] ss:$8 sps:$4 sm:$0xff]   ;;  %v8535_v50 = vld [vmem:[%s11368_s3 + $0xd4] ss:$8 sps:$4 sm:$0xff]   ;;  %v357_v22 = vlaneseq }
  0x17   : > { %706 = vmatprep.mubr.bf16.mxu0 %v8903_v2  ;;  %1421 = vmatprep.subr.bf16.mxu1 %v8497_v23  ;;  %v8473_v48 = vld [vmem:[%s8974_s17 + $0x50] sm:$0xff]   ;;  %v8474_v52 = vld [vmem:[%s8974_s17 + $0x58] sm:$0xff]   ;;  %v8538_v53 = vld [vmem:[%s11368_s3 + $0xe4] ss:$8 sps:$4 sm:$0xff]  }
  0x18   : > { %2165 = vmatpush1.bf16.msra.mxu0 %v8511_v33  ;;  %v8537_v51 = vld [vmem:[%s11368_s3 + $0xd0] ss:$8 sps:$4 sm:$0xff]   ;;  %v8540_v54 = vld [vmem:[%s11368_s3 + $0xe0] ss:$8 sps:$4 sm:$0xff]   ;;  %v8542_v55 = vld [vmem:[%s11368_s3 + $0xf4] ss:$8 sps:$4 sm:$0xff]  }
  0x19   : > { %2166 = vmatprep.subr.bf16.mxu0 %v8530_v46  ;;  %v8544_v56 = vld [vmem:[%s11368_s3 + $0xf0] ss:$8 sps:$4 sm:$0xff]   ;;  %v8475_v57 = vld [vmem:[%s8974_s17 + $0x60] sm:$0xff]   ;;  %v8476_v60 = vld [vmem:[%s8974_s17 + $0x68] sm:$0xff]   ;;  %v358_v23 = vshrl.u32 %v357_v22, 7 }
  0x1a   : > { %1422 = vmatpush1.bf16.msra.mxu1 %v8499_v24  ;;  %v8545_v58 = vld [vmem:[%s11368_s3 + $0x120] ss:$8 sps:$4 sm:$0xff]   ;;  %v8547_v59 = vld [vmem:[%s11368_s3 + $0x124] ss:$8 sps:$4 sm:$0xff]   ;;  %v8477_v61 = vld [vmem:[%s8974_s17 + $0x70] sm:$0xff]  }
  0x1b   : > { %1423 = vmatprep.subr.bf16.mxu1 %v8501_v26  ;;  %v8550_v62 = vld [vmem:[%s11368_s3 + $0x130] ss:$8 sps:$4 sm:$0xff]   ;;  %v8552_v63 = vld [vmem:[%s11368_s3 + $0x134] ss:$8 sps:$4 sm:$0xff]   ;;  %v8479_v1 = vld [vmem:[%s8974_s17 + $0x80] sm:$0xff]  }
  0x1c   : > { %2167 = vmatpush1.bf16.msra.mxu0 %v8528_v45  ;;  %v8478_v0 = vld [vmem:[%s8974_s17 + $0x78] sm:$0xff]   ;;  %v8555_v3 = vld [vmem:[%s11368_s3 + $0x140] ss:$8 sps:$4 sm:$0xff]   ;;  %v8557_v4 = vld [vmem:[%s11368_s3 + $0x144] ss:$8 sps:$4 sm:$0xff]  }
  0x1d   : > { %2168 = vmatprep.subr.bf16.mxu0 %v8547_v59  ;;  %v8480_v5 = vld [vmem:[%s8974_s17 + $0x88] sm:$0xff]   ;;  %v8481_v6 = vld [vmem:[%s8974_s17 + $0x90] sm:$0xff]   ;;  %v8482_v9 = vld [vmem:[%s8974_s17 + $0x98] sm:$0xff]  }
  0x1e   : > { %7873 = vmatmul.mubr.msk.bf16.gmra.mrb[4].mxu0 %vm567_vm0, %v8464_v10  ;;  %1424 = vmatpush1.bf16.msra.mxu1 %v8503_v27  ;;  %v8558_v7 = vld [vmem:[%s11368_s3 + $0x150] ss:$8 sps:$4 sm:$0xff]   ;;  %v8560_v8 = vld [vmem:[%s11368_s3 + $0x154] ss:$8 sps:$4 sm:$0xff]   ;;  %v8486_v10 = vld [vmem:[%s8974_s17 + $0xa0] sm:$0xff]   ;;  %v9219_v27 = vsub.s32 1, %v358_v23 }
  0x1f   : > { %716 = vmatprep.mubr.bf16.mxu0 %v8903_v2  ;;  %1425 = vmatprep.subr.bf16.mxu1 %v8504_v28  ;;  %v8493_v13 = vld [vmem:[%s8974_s17 + $0xa8] sm:$0xff]   ;;  %v8500_v14 = vld [vmem:[%s8974_s17 + $0xb0] sm:$0xff]   ;;  %v8507_v17 = vld [vmem:[%s8974_s17 + $0xb8] sm:$0xff]  }
  0x20   : > { %2169 = vmatpush1.bf16.msra.mxu0 %v8545_v58  ;;  %v8566_v16 = vld [vmem:[%s11368_s3 + $0x174] ss:$8 sps:$4 sm:$0xff]   ;;  %v8517_v18 = vld [vmem:[%s8974_s17 + $0xc0] sm:$0xff]   ;;  %v8524_v21 = vld [vmem:[%s8974_s17 + $0xc8] sm:$0xff]  }
  0x21   : > { %2170 = vmatprep.subr.bf16.mxu0 %v8552_v63  ;;  %v8567_v19 = vld [vmem:[%s11368_s3 + $0x180] ss:$8 sps:$4 sm:$0xff]   ;;  %v8534_v24 = vld [vmem:[%s8974_s17 + $0xd0] sm:$0xff]  }
  0x22   : > { %1426 = vmatpush1.bf16.msra.mxu1 %v8506_v29  ;;  %v355_v26 = vld [vmem:[%s11367_s2] sm:$0x3]  ;;  %v8570_v28 = vld [vmem:[%s11368_s3 + $0x190] ss:$8 sps:$4 sm:$0xff]   ;;  %v8572_v29 = vld [vmem:[%s11368_s3 + $0x194] ss:$8 sps:$4 sm:$0xff]  }
  0x23   : > { %1427 = vmatprep.subr.bf16.mxu1 %v8508_v31  ;;  %v9233_v31 = vrot.slane %v355_v26, %v9219_v27 }
  0x24   : > { %2171 = vmatpush1.bf16.msra.mxu0 %v8550_v62 }
  0x25   : > { %2172 = vmatprep.subr.bf16.mxu0 %v8557_v4  ;;  %v8549_v4 = vld [vmem:[%s8974_s17 + $0xe8] sm:$0xff]  }
  0x26   : > { %7874 = vmatmul.mubr.msk.bf16.gmra.mrb[8].mxu0 %vm567_vm0, %v8465_v11  ;;  %1428 = vmatpush1.bf16.msra.mxu1 %v8510_v32  ;;  %v8561_v11 = vld [vmem:[%s11368_s3 + $0x160] ss:$8 sps:$4 sm:$0xff]  }
  0x27   : > { %726 = vmatprep.mubr.bf16.mxu0 %v8903_v2  ;;  %1429 = vmatprep.subr.bf16.mxu1 %v8514_v35  ;;  %v8541_v35 = vld [vmem:[%s8974_s17 + $0xd8] sm:$0xff]  }
  0x28   : > { %2173 = vmatpush1.bf16.msra.mxu0 %v8555_v3 }
  0x29   : > { %2174 = vmatprep.subr.bf16.mxu0 %v8560_v8 }
  0x2a   : > { %1430 = vmatpush1.bf16.msra.mxu1 %v8516_v37 }
  0x2b   : > { %1431 = vmatprep.subr.bf16.mxu1 %v8518_v38 }
  0x2c   : > { %2175 = vmatpush1.bf16.msra.mxu0 %v8558_v7 }
  0x2e   : > { %7875 = vmatmul.mubr.msk.bf16.gmra.mrb[12].mxu0 %vm567_vm0, %v8466_v12  ;;  %1432 = vmatpush1.bf16.msra.mxu1 %v8520_v39  ;;  %v8563_v12 = vld [vmem:[%s11368_s3 + $0x164] ss:$8 sps:$4 sm:$0xff]  }
  0x2f   : > { %736 = vmatprep.mubr.bf16.mxu0 %v8903_v2  ;;  %1433 = vmatprep.subr.bf16.mxu1 %v8521_v40 }
  0x30   : > { %2176 = vmatprep.subr.bf16.mxu0 %v8563_v12 }
  0x31   : > { %2177 = vmatpush1.bf16.msra.mxu0 %v8561_v11 }
  0x32   : > { %1434 = vmatpush1.bf16.msra.mxu1 %v8523_v41  ;;  %2178 = vmatprep.subr.bf16.mxu0 %v8566_v16 }
  0x33   : > { %1435 = vmatprep.subr.bf16.mxu1 %v8525_v43 }
  0x36   : > { %7876 = vmatmul.mubr.msk.bf16.gmra.mrb[16].mxu0 %vm567_vm0, %v8467_v15  ;;  %1436 = vmatpush1.bf16.msra.mxu1 %v8527_v44  ;;  %v8564_v15 = vld [vmem:[%s11368_s3 + $0x170] ss:$8 sps:$4 sm:$0xff]  }
  0x37   : > { %746 = vmatprep.mubr.bf16.mxu0 %v8903_v2  ;;  %1437 = vmatprep.subr.bf16.mxu1 %v8531_v47 }
  0x38   : > { %2179 = vmatpush1.bf16.msra.mxu0 %v8564_v15 }
  0x3a   : > { %1438 = vmatpush1.bf16.msra.mxu1 %v8533_v49 }
  0x3b   : > { %1439 = vmatprep.subr.bf16.mxu1 %v8535_v50  ;;  %v8548_v50 = vld [vmem:[%s8974_s17 + $0xe0] sm:$0xff]  }
  0x3e   : > { %7877 = vmatmul.mubr.msk.bf16.gmra.mrb[20].mxu0 %vm567_vm0, %v8468_v20  ;;  %1440 = vmatpush1.bf16.msra.mxu1 %v8537_v51  ;;  %v8569_v20 = vld [vmem:[%s11368_s3 + $0x184] ss:$8 sps:$4 sm:$0xff]  }
  0x3f   : > { %756 = vmatprep.mubr.bf16.mxu0 %v8903_v2  ;;  %1441 = vmatprep.subr.bf16.mxu1 %v8538_v53 }
  0x40   : > { %2180 = vmatprep.subr.bf16.mxu0 %v8569_v20 }
  0x41   : > { %2181 = vmatpush1.bf16.msra.mxu0 %v8567_v19  ;;  %v8553_v19 = vld [vmem:[%s8974_s17 + $0xf0] sm:$0xff]  }
  0x42   : > { %1442 = vmatpush1.bf16.msra.mxu1 %v8540_v54  ;;  %2182 = vmatprep.subr.bf16.mxu0 %v8572_v29 }
  0x43   : > { %1443 = vmatprep.subr.bf16.mxu1 %v8542_v55  ;;  %v8573_v55 = vld [vmem:[%s11368_s3 + $0x1a0] ss:$8 sps:$4 sm:$0xff]  }
  0x45   : > { %2183 = vmatpush1.bf16.msra.mxu0 %v8570_v28 }
  0x46   : > { %7878 = vmatmul.mubr.msk.bf16.gmra.mrb[24].mxu0 %vm567_vm0, %v8469_v25  ;;  %1444 = vmatpush1.bf16.msra.mxu1 %v8544_v56  ;;  %v9214_v25 = vsub.s32 0, %v358_v23  ;;  %v8575_v56 = vld [vmem:[%s11368_s3 + $0x1a4] ss:$8 sps:$4 sm:$0xff]  }
  0x47   : > { %766 = vmatprep.mubr.bf16.mxu0 %v8903_v2  ;;  %2184 = vmatprep.subr.bf16.mxu0 %v8575_v56 }
  0x49   : > { %2185 = vmatpush1.bf16.msra.mxu0 %v8573_v55 }
  0x4e   : > { %7879 = vmatmul.mubr.msk.bf16.gmra.mrb[28].mxu0 %vm567_vm0, %v8470_v30  ;;  %v9229_v30 = vrot.slane %v355_v26, %v9214_v25  ;;  %v8578_v26 = vld [vmem:[%s11368_s3 + $0x1b4] ss:$8 sps:$4 sm:$0xff]  }
  0x4f   : > { %776 = vmatprep.mubr.bf16.mxu0 %v8903_v2  ;;  %2186 = vmatprep.subr.bf16.mxu0 %v8578_v26 }
  0x56   : > { %7880 = vmatmul.mubr.msk.bf16.gmra.mrb[32].mxu0 %vm567_vm0, %v8471_v36 }
  0x57   : > { %786 = vmatprep.mubr.bf16.mxu0 %v8903_v2 }
  0x5e   : > { %7881 = vmatmul.mubr.msk.bf16.gmra.mrb[36].mxu0 %vm567_vm0, %v8472_v42 }
  0x5f   : > { %796 = vmatprep.mubr.bf16.mxu0 %v8903_v2 }
  0x66   : > { %7882 = vmatmul.mubr.msk.bf16.gmra.mrb[40].mxu0 %vm567_vm0, %v8473_v48 }
  0x67   : > { %806 = vmatprep.mubr.bf16.mxu0 %v8903_v2 }
  0x6e   : > { %7883 = vmatmul.mubr.msk.bf16.gmra.mrb[44].mxu0 %vm567_vm0, %v8474_v52 }
  0x6f   : > { %816 = vmatprep.mubr.bf16.mxu0 %v8903_v2 }
  0x76   : > { %7884 = vmatmul.mubr.msk.bf16.gmra.mrb[48].mxu0 %vm567_vm0, %v8475_v57 }
  0x77   : > { %826 = vmatprep.mubr.bf16.mxu0 %v8903_v2 }
  0x7e   : > { %7885 = vmatmul.mubr.msk.bf16.gmra.mrb[52].mxu0 %vm567_vm0, %v8476_v60 }
  0x7f   : > { %836 = vmatprep.mubr.bf16.mxu0 %v8903_v2 }
  0x86   : > { %7886 = vmatmul.mubr.msk.bf16.gmra.mrb[56].mxu0 %vm567_vm0, %v8477_v61 }
  0x87   : > { %846 = vmatprep.mubr.bf16.mxu0 %v8903_v2 }
  0x8e   : > { %7887 = vmatmul.mubr.msk.bf16.gmra.mrb[60].mxu0 %vm567_vm0, %v8478_v0 }
  0x8f   : > { %856 = vmatprep.mubr.bf16.mxu0 %v8903_v2 }
  0x96   : > { %7888 = vmatmul.mubr.msk.bf16.gmra.mrb[64].mxu0 %vm567_vm0, %v8479_v1 }
  0x97   : > { %866 = vmatprep.mubr.bf16.mxu0 %v8903_v2 }
  0x9e   : > { %7889 = vmatmul.mubr.msk.bf16.gmra.mrb[68].mxu0 %vm567_vm0, %v8480_v5 }
  0x9f   : > { %876 = vmatprep.mubr.bf16.mxu0 %v8903_v2 }
  0xa6   : > { %7890 = vmatmul.mubr.msk.bf16.gmra.mrb[72].mxu0 %vm567_vm0, %v8481_v6 }
  0xa7   : > { %886 = vmatprep.mubr.bf16.mxu0 %v8903_v2 }
  0xae   : > { %7891 = vmatmul.mubr.msk.bf16.gmra.mrb[76].mxu0 %vm567_vm0, %v8482_v9 }
  0xaf   : > { %896 = vmatprep.mubr.bf16.mxu0 %v8903_v2 }
  0xb6   : > { %7892 = vmatmul.mubr.msk.bf16.gmra.mrb[80].mxu0 %vm567_vm0, %v8486_v10 }
  0xb7   : > { %906 = vmatprep.mubr.bf16.mxu0 %v8903_v2 }
  0xbe   : > { %7893 = vmatmul.mubr.msk.bf16.gmra.mrb[84].mxu0 %vm567_vm0, %v8493_v13 }
  0xbf   : > { %916 = vmatprep.mubr.bf16.mxu0 %v8903_v2 }
  0xc6   : > { %7894 = vmatmul.mubr.msk.bf16.gmra.mrb[88].mxu0 %vm567_vm0, %v8500_v14 }
  0xc7   : > { %926 = vmatprep.mubr.bf16.mxu0 %v8903_v2 }
  0xce   : > { %7895 = vmatmul.mubr.msk.bf16.gmra.mrb[92].mxu0 %vm567_vm0, %v8507_v17 }
  0xcf   : > { %936 = vmatprep.mubr.bf16.mxu0 %v8903_v2 }
  0xd6   : > { %7896 = vmatmul.mubr.msk.bf16.gmra.mrb[96].mxu0 %vm567_vm0, %v8517_v18 }
  0xd7   : > { %946 = vmatprep.mubr.bf16.mxu0 %v8903_v2 }
  0xde   : > { %7897 = vmatmul.mubr.msk.bf16.gmra.mrb[100].mxu0 %vm567_vm0, %v8524_v21 }
  0xdf   : > { %956 = vmatprep.mubr.bf16.mxu0 %v8903_v2 }
  0xe6   : > { %7898 = vmatmul.mubr.msk.bf16.gmra.mrb[104].mxu0 %vm567_vm0, %v8534_v24  ;;  %v8576_v24 = vld [vmem:[%s11368_s3 + $0x1b0] ss:$8 sps:$4 sm:$0xff]  }
  0xe7   : > { %966 = vmatprep.mubr.bf16.mxu0 %v8903_v2  ;;  %2187 = vmatpush1.bf16.msra.mxu0 %v8576_v24 }
  0xe9   : > { %v698_v32 = vpop.f32.mrb[0].mxu0 }
  0xea   : > { %v699_v33 = vadd.f32 %v698_v32, %v9229_v30  ;;  %v700_v34 = vpop.f32.mrb[1].mxu0 }
  0xeb   : > { %v702_v36 = vpop.f32.mrb[2].mxu0  ;;  %v701_v37 = vadd.f32 %v700_v34, %v9233_v31 }
  0xec   : > { %v703_v38 = vadd.f32 %v702_v36, %v9229_v30  ;;  %v704_v39 = vpop.f32.mrb[3].mxu0  ;;  %v1017_v41 = vmax.f32 %v699_v33, 0.0 }
  0xed   : > { %v705_v40 = vadd.f32 %v704_v39, %v9233_v31  ;;  %v1018_v43 = vmax.f32 %v701_v37, 0.0 }
  0xee   : > { %v1019_v42 = vmax.f32 %v703_v38, 0.0  ;;  %7899 = vmatmul.mubr.msk.bf16.gmra.mrb[108].mxu0 %vm567_vm0, %v8541_v35 }
  0xef   : > { %v1020_v44 = vmax.f32 %v705_v40, 0.0  ;;  %976 = vmatprep.mubr.bf16.mxu0 %v8903_v2  ;;  %v8554_v40 = vld [vmem:[%s8974_s17 + $0xf8] sm:$0xff]  }
  0xf0   : > { %v1145_v45 = vpack.c.bf16 %v1019_v42, %v1017_v41 }
  0xf1   : > { %v708_v46 = vpop.f32.mrb[4].mxu0  ;;  %v1146_v47 = vpack.c.bf16 %v1020_v44, %v1018_v43 }
  0xf2   : > { %v709_v48 = vadd.f32 %v708_v46, %v9229_v30  ;;  %v710_v49 = vpop.f32.mrb[5].mxu0 }
  0xf3   : > { %v711_v51 = vadd.f32 %v710_v49, %v9233_v31  ;;  %v712_v52 = vpop.f32.mrb[6].mxu0  ;;  %1445 = vmatprep.mubr.bf16.mxu1 %v1146_v47 }
  0xf4   : > { %v713_v53 = vadd.f32 %v712_v52, %v9229_v30  ;;  %v714_v54 = vpop.f32.mrb[7].mxu0  ;;  %1446 = vmatmul.mubr.bf16.vlgmr.msra.gmra.mrb[0].mxu1 %v1145_v45  ;;  %v1021_v58 = vmax.f32 %v709_v48, 0.0 }
  0xf5   : > { %v715_v57 = vadd.f32 %v714_v54, %v9233_v31  ;;  %v1022_v60 = vmax.f32 %v711_v51, 0.0 }
  0xf6   : > { %v1023_v59 = vmax.f32 %v713_v53, 0.0  ;;  %7900 = vmatmul.mubr.msk.bf16.gmra.mrb[112].mxu0 %vm567_vm0, %v8548_v50 }
  0xf7   : > { %v1024_v61 = vmax.f32 %v715_v57, 0.0  ;;  %986 = vmatprep.mubr.bf16.mxu0 %v8903_v2 }
  0xf8   : > { %v1147_v62 = vpack.c.bf16 %v1023_v59, %v1021_v58  ;;  %v8579_v59 = vld [vmem:[%s11368_s3 + $0x1c0] ss:$8 sps:$4 sm:$0xff]  }
  0xf9   : > { %v718_v63 = vpop.f32.mrb[8].mxu0  ;;  %v1148_v0 = vpack.c.bf16 %v1024_v61, %v1022_v60  ;;  %v8581_v60 = vld [vmem:[%s11368_s3 + $0x1c4] ss:$8 sps:$4 sm:$0xff]  }
  0xfa   : > { %v719_v1 = vadd.f32 %v718_v63, %v9229_v30  ;;  %v720_v3 = vpop.f32.mrb[9].mxu0  ;;  %2188 = vmatprep.subr.bf16.mxu0 %v8581_v60 }
  0xfb   : > { %v721_v5 = vadd.f32 %v720_v3, %v9233_v31  ;;  %v722_v6 = vpop.f32.mrb[10].mxu0  ;;  %1455 = vmatprep.mubr.bf16.mxu1 %v1148_v0  ;;  %2189 = vmatpush1.bf16.msra.mxu0 %v8579_v59 }
  0xfc   : > { %v723_v7 = vadd.f32 %v722_v6, %v9229_v30  ;;  %v724_v8 = vpop.f32.mrb[11].mxu0  ;;  %1456 = vmatmul.mubr.bf16.gmra.mrb[4].mxu1 %v1147_v62  ;;  %v1025_v10 = vmax.f32 %v719_v1, 0.0 }
  0xfd   : > { %v725_v9 = vadd.f32 %v724_v8, %v9233_v31  ;;  %v1026_v12 = vmax.f32 %v721_v5, 0.0 }
  0xfe   : > { %v1027_v11 = vmax.f32 %v723_v7, 0.0  ;;  %7901 = vmatmul.mubr.msk.bf16.gmra.mrb[116].mxu0 %vm567_vm0, %v8549_v4 }
  0xff   : > { %v1028_v13 = vmax.f32 %v725_v9, 0.0  ;;  %996 = vmatprep.mubr.bf16.mxu0 %v8903_v2 }
 0x100   : > { %v1149_v14 = vpack.c.bf16 %v1027_v11, %v1025_v10 }
 0x101   : > { %v728_v15 = vpop.f32.mrb[12].mxu0  ;;  %v1150_v16 = vpack.c.bf16 %v1028_v13, %v1026_v12 }
 0x102   : > { %v729_v17 = vadd.f32 %v728_v15, %v9229_v30  ;;  %v730_v18 = vpop.f32.mrb[13].mxu0 }
 0x103   : > { %v731_v20 = vadd.f32 %v730_v18, %v9233_v31  ;;  %v732_v21 = vpop.f32.mrb[14].mxu0  ;;  %1465 = vmatprep.mubr.bf16.mxu1 %v1150_v16 }
 0x104   : > { %v733_v22 = vadd.f32 %v732_v21, %v9229_v30  ;;  %v734_v23 = vpop.f32.mrb[15].mxu0  ;;  %1466 = vmatmul.mubr.bf16.gmra.mrb[8].mxu1 %v1149_v14  ;;  %v1029_v29 = vmax.f32 %v729_v17, 0.0 }
 0x105   : > { %v735_v28 = vadd.f32 %v734_v23, %v9233_v31  ;;  %v1030_v33 = vmax.f32 %v731_v20, 0.0 }
 0x106   : > { %v1031_v32 = vmax.f32 %v733_v22, 0.0  ;;  %7902 = vmatmul.mubr.msk.bf16.gmra.mrb[120].mxu0 %vm567_vm0, %v8553_v19 }
 0x107   : > { %v1032_v34 = vmax.f32 %v735_v28, 0.0  ;;  %1006 = vmatprep.mubr.bf16.mxu0 %v8903_v2  ;;  %v8582_v28 = vld [vmem:[%s11368_s3 + $0x1d0] ss:$8 sps:$4 sm:$0xff]  }
 0x108   : > { %v1151_v35 = vpack.c.bf16 %v1031_v32, %v1029_v29  ;;  %v8584_v29 = vld [vmem:[%s11368_s3 + $0x1d4] ss:$8 sps:$4 sm:$0xff]  }
 0x109   : > { %v738_v36 = vpop.f32.mrb[16].mxu0  ;;  %v1152_v37 = vpack.c.bf16 %v1032_v34, %v1030_v33  ;;  %2190 = vmatprep.subr.bf16.mxu0 %v8584_v29 }
 0x10a   : > { %v739_v38 = vadd.f32 %v738_v36, %v9229_v30  ;;  %v740_v39 = vpop.f32.mrb[17].mxu0  ;;  %2191 = vmatpush1.bf16.msra.mxu0 %v8582_v28 }
 0x10b   : > { %v741_v41 = vadd.f32 %v740_v39, %v9233_v31  ;;  %v742_v42 = vpop.f32.mrb[18].mxu0  ;;  %1475 = vmatprep.mubr.bf16.mxu1 %v1152_v37 }
 0x10c   : > { %v743_v43 = vadd.f32 %v742_v42, %v9229_v30  ;;  %v744_v44 = vpop.f32.mrb[19].mxu0  ;;  %1476 = vmatmul.mubr.bf16.gmra.mrb[12].mxu1 %v1151_v35  ;;  %v1033_v46 = vmax.f32 %v739_v38, 0.0 }
 0x10d   : > { %v745_v45 = vadd.f32 %v744_v44, %v9233_v31  ;;  %v1034_v48 = vmax.f32 %v741_v41, 0.0 }
 0x10e   : > { %v1035_v47 = vmax.f32 %v743_v43, 0.0  ;;  %7903 = vmatmul.mubr.msk.bf16.gmra.mrb[124].mxu0 %vm567_vm0, %v8554_v40 }
 0x10f   : > { %v1036_v49 = vmax.f32 %v745_v45, 0.0 }
 0x110   : > { %v1153_v50 = vpack.c.bf16 %v1035_v47, %v1033_v46 }
 0x111   : > { %v748_v51 = vpop.f32.mrb[20].mxu0  ;;  %v1154_v52 = vpack.c.bf16 %v1036_v49, %v1034_v48 }
 0x112   : > { %v749_v53 = vadd.f32 %v748_v51, %v9229_v30  ;;  %v750_v54 = vpop.f32.mrb[21].mxu0  ;;  %v8585_v51 = vld [vmem:[%s11368_s3 + $0x200] ss:$8 sps:$4 sm:$0xff]  }
 0x113   : > { %v751_v55 = vadd.f32 %v750_v54, %v9233_v31  ;;  %v752_v56 = vpop.f32.mrb[22].mxu0  ;;  %1485 = vmatprep.mubr.bf16.mxu1 %v1154_v52  ;;  %v8587_v52 = vld [vmem:[%s11368_s3 + $0x204] ss:$8 sps:$4 sm:$0xff]  }
 0x114   : > { %v753_v57 = vadd.f32 %v752_v56, %v9229_v30  ;;  %v754_v58 = vpop.f32.mrb[23].mxu0  ;;  %1486 = vmatmul.mubr.bf16.gmra.mrb[16].mxu1 %v1153_v50  ;;  %v1037_v62 = vmax.f32 %v749_v53, 0.0  ;;  %2915 = vmatprep.subr.bf16.mxu1 %v8587_v52 }
 0x115   : > { %v755_v61 = vadd.f32 %v754_v58, %v9233_v31  ;;  %v1038_v0 = vmax.f32 %v751_v55, 0.0  ;;  %2916 = vmatpush1.bf16.msra.mxu1 %v8585_v51 }
 0x116   : > { %v1039_v63 = vmax.f32 %v753_v57, 0.0 }
 0x117   : > { %v1040_v1 = vmax.f32 %v755_v61, 0.0 }
 0x118   : > { %v1155_v3 = vpack.c.bf16 %v1039_v63, %v1037_v62  ;;  %v8588_v62 = vld [vmem:[%s11368_s3 + $0x1e0] ss:$8 sps:$4 sm:$0xff]   ;;  %v8590_v63 = vld [vmem:[%s11368_s3 + $0x1e4] ss:$8 sps:$4 sm:$0xff]  }
 0x119   : > { %v758_v4 = vpop.f32.mrb[24].mxu0  ;;  %v1156_v5 = vpack.c.bf16 %v1040_v1, %v1038_v0  ;;  %2192 = vmatprep.subr.bf16.mxu0 %v8590_v63 }
 0x11a   : > { %v759_v6 = vadd.f32 %v758_v4, %v9229_v30  ;;  %v760_v7 = vpop.f32.mrb[25].mxu0  ;;  %2193 = vmatpush1.bf16.msra.mxu0 %v8588_v62  ;;  %v8599_v62 = vld [vmem:[%s11368_s3 + $0x224] ss:$8 sps:$4 sm:$0xff]  }
 0x11b   : > { %v761_v8 = vadd.f32 %v760_v7, %v9233_v31  ;;  %v762_v9 = vpop.f32.mrb[26].mxu0  ;;  %1495 = vmatprep.mubr.bf16.mxu1 %v1156_v5 }
 0x11c   : > { %v763_v10 = vadd.f32 %v762_v9, %v9229_v30  ;;  %v764_v11 = vpop.f32.mrb[27].mxu0  ;;  %1496 = vmatmul.mubr.bf16.gmra.mrb[20].mxu1 %v1155_v3  ;;  %v1041_v13 = vmax.f32 %v759_v6, 0.0 }
 0x11d   : > { %v765_v12 = vadd.f32 %v764_v11, %v9233_v31  ;;  %v1042_v15 = vmax.f32 %v761_v8, 0.0 }
 0x11e   : > { %v1043_v14 = vmax.f32 %v763_v10, 0.0 }
 0x11f   : > { %v1044_v16 = vmax.f32 %v765_v12, 0.0 }
 0x120   : > { %v1157_v17 = vpack.c.bf16 %v1043_v14, %v1041_v13 }
 0x121   : > { %v768_v18 = vpop.f32.mrb[28].mxu0  ;;  %v1158_v19 = vpack.c.bf16 %v1044_v16, %v1042_v15 }
 0x122   : > { %v769_v20 = vadd.f32 %v768_v18, %v9229_v30  ;;  %v770_v21 = vpop.f32.mrb[29].mxu0 }
 0x123   : > { %v771_v22 = vadd.f32 %v770_v21, %v9233_v31  ;;  %v772_v23 = vpop.f32.mrb[30].mxu0  ;;  %1505 = vmatprep.mubr.bf16.mxu1 %v1158_v19  ;;  %v8593_v21 = vld [vmem:[%s11368_s3 + $0x214] ss:$8 sps:$4 sm:$0xff]  }
 0x124   : > { %v773_v24 = vadd.f32 %v772_v23, %v9229_v30  ;;  %v774_v26 = vpop.f32.mrb[31].mxu0  ;;  %1506 = vmatmul.mubr.bf16.gmra.mrb[24].mxu1 %v1157_v17  ;;  %v1045_v33 = vmax.f32 %v769_v20, 0.0  ;;  %v8591_v20 = vld [vmem:[%s11368_s3 + $0x210] ss:$8 sps:$4 sm:$0xff]   ;;  %2917 = vmatprep.subr.bf16.mxu1 %v8593_v21 }
 0x125   : > { %v775_v32 = vadd.f32 %v774_v26, %v9233_v31  ;;  %v1046_v35 = vmax.f32 %v771_v22, 0.0  ;;  %2918 = vmatpush1.bf16.msra.mxu1 %v8591_v20 }
 0x126   : > { %v1047_v34 = vmax.f32 %v773_v24, 0.0  ;;  %2919 = vmatprep.subr.bf16.mxu1 %v8599_v62  ;;  %v8603_v62 = vld [vmem:[%s11368_s3 + $0x240] ss:$8 sps:$4 sm:$0xff]  }
 0x127   : > { %v1048_v36 = vmax.f32 %v775_v32, 0.0 }
 0x128   : > { %v1159_v37 = vpack.c.bf16 %v1047_v34, %v1045_v33 }
 0x129   : > { %v778_v38 = vpop.f32.mrb[32].mxu0  ;;  %v1160_v39 = vpack.c.bf16 %v1048_v36, %v1046_v35  ;;  %v8594_v35 = vld [vmem:[%s11368_s3 + $0x1f0] ss:$8 sps:$4 sm:$0xff]   ;;  %v8596_v36 = vld [vmem:[%s11368_s3 + $0x1f4] ss:$8 sps:$4 sm:$0xff]  }
 0x12a   : > { %v779_v40 = vadd.f32 %v778_v38, %v9229_v30  ;;  %v780_v41 = vpop.f32.mrb[33].mxu0  ;;  %2194 = vmatprep.subr.bf16.mxu0 %v8596_v36 }
 0x12b   : > { %v781_v42 = vadd.f32 %v780_v41, %v9233_v31  ;;  %v782_v43 = vpop.f32.mrb[34].mxu0  ;;  %1515 = vmatprep.mubr.bf16.mxu1 %v1160_v39  ;;  %2195 = vmatpush1.bf16.msra.mxu0 %v8594_v35 }
 0x12c   : > { %v783_v44 = vadd.f32 %v782_v43, %v9229_v30  ;;  %v784_v45 = vpop.f32.mrb[35].mxu0  ;;  %1516 = vmatmul.mubr.bf16.gmra.mrb[28].mxu1 %v1159_v37  ;;  %v1049_v47 = vmax.f32 %v779_v40, 0.0 }
 0x12d   : > { %v785_v46 = vadd.f32 %v784_v45, %v9233_v31  ;;  %v1050_v49 = vmax.f32 %v781_v42, 0.0 }
 0x12e   : > { %v1051_v48 = vmax.f32 %v783_v44, 0.0 }
 0x12f   : > { %v1052_v50 = vmax.f32 %v785_v46, 0.0 }
 0x130   : > { %v1161_v53 = vpack.c.bf16 %v1051_v48, %v1049_v47 }
 0x131   : > { %v788_v54 = vpop.f32.mrb[36].mxu0  ;;  %v1162_v55 = vpack.c.bf16 %v1052_v50, %v1050_v49 }
 0x132   : > { %v789_v56 = vadd.f32 %v788_v54, %v9229_v30  ;;  %v790_v57 = vpop.f32.mrb[37].mxu0 }
 0x133   : > { %v791_v58 = vadd.f32 %v790_v57, %v9233_v31  ;;  %v792_v59 = vpop.f32.mrb[38].mxu0  ;;  %1525 = vmatprep.mubr.bf16.mxu1 %v1162_v55 }
 0x134   : > { %v793_v60 = vadd.f32 %v792_v59, %v9229_v30  ;;  %v794_v61 = vpop.f32.mrb[39].mxu0  ;;  %1526 = vmatmul.mubr.bf16.gmra.mrb[32].mxu1 %v1161_v53  ;;  %v1053_v1 = vmax.f32 %v789_v56, 0.0 }
 0x135   : > { %v795_v0 = vadd.f32 %v794_v61, %v9233_v31  ;;  %v1054_v4 = vmax.f32 %v791_v58, 0.0  ;;  %v8597_v61 = vld [vmem:[%s11368_s3 + $0x220] ss:$8 sps:$4 sm:$0xff]  }
 0x136   : > { %v1055_v3 = vmax.f32 %v793_v60, 0.0  ;;  %2920 = vmatpush1.bf16.msra.mxu1 %v8597_v61 }
 0x137   : > { %v1056_v5 = vmax.f32 %v795_v0, 0.0 }
 0x138   : > { %v1163_v6 = vpack.c.bf16 %v1055_v3, %v1053_v1 }
 0x139   : > { %v798_v7 = vpop.f32.mrb[40].mxu0  ;;  %v1164_v8 = vpack.c.bf16 %v1056_v5, %v1054_v4 }
 0x13a   : > { %v799_v9 = vadd.f32 %v798_v7, %v9229_v30  ;;  %v800_v10 = vpop.f32.mrb[41].mxu0 }
 0x13b   : > { %v801_v11 = vadd.f32 %v800_v10, %v9233_v31  ;;  %v802_v12 = vpop.f32.mrb[42].mxu0  ;;  %1535 = vmatprep.mubr.bf16.mxu1 %v1164_v8 }
 0x13c   : > { %v803_v13 = vadd.f32 %v802_v12, %v9229_v30  ;;  %v804_v14 = vpop.f32.mrb[43].mxu0  ;;  %1536 = vmatmul.mubr.bf16.gmra.mrb[36].mxu1 %v1163_v6  ;;  %v1057_v16 = vmax.f32 %v799_v9, 0.0 }
 0x13d   : > { %v805_v15 = vadd.f32 %v804_v14, %v9233_v31  ;;  %v1058_v18 = vmax.f32 %v801_v11, 0.0 }
 0x13e   : > { %v1059_v17 = vmax.f32 %v803_v13, 0.0 }
 0x13f   : > { %v1060_v19 = vmax.f32 %v805_v15, 0.0 }
 0x140   : > { %v1165_v22 = vpack.c.bf16 %v1059_v17, %v1057_v16 }
 0x141   : > { %v808_v23 = vpop.f32.mrb[44].mxu0  ;;  %v1166_v24 = vpack.c.bf16 %v1060_v19, %v1058_v18 }
 0x142   : > { %v809_v26 = vadd.f32 %v808_v23, %v9229_v30  ;;  %v810_v28 = vpop.f32.mrb[45].mxu0 }
 0x143   : > { %v811_v29 = vadd.f32 %v810_v28, %v9233_v31  ;;  %v812_v32 = vpop.f32.mrb[46].mxu0  ;;  %1545 = vmatprep.mubr.bf16.mxu1 %v1166_v24 }
 0x144   : > { %v813_v33 = vadd.f32 %v812_v32, %v9229_v30  ;;  %v814_v34 = vpop.f32.mrb[47].mxu0  ;;  %1546 = vmatmul.mubr.bf16.gmra.mrb[40].mxu1 %v1165_v22  ;;  %v1061_v38 = vmax.f32 %v809_v26, 0.0  ;;  %v8600_v32 = vld [vmem:[%s11368_s3 + $0x230] ss:$8 sps:$4 sm:$0xff]  }
 0x145   : > { %v815_v37 = vadd.f32 %v814_v34, %v9233_v31  ;;  %v1062_v40 = vmax.f32 %v811_v29, 0.0 }
 0x146   : > { %v1063_v39 = vmax.f32 %v813_v33, 0.0  ;;  %v8602_v33 = vld [vmem:[%s11368_s3 + $0x234] ss:$8 sps:$4 sm:$0xff]  }
 0x147   : > { %v1064_v41 = vmax.f32 %v815_v37, 0.0  ;;  %2921 = vmatprep.subr.bf16.mxu1 %v8602_v33  ;;  %v8606_v33 = vld [vmem:[%s11368_s3 + $0x250] ss:$8 sps:$4 sm:$0xff]  }
 0x148   : > { %v1167_v42 = vpack.c.bf16 %v1063_v39, %v1061_v38  ;;  %2922 = vmatpush1.bf16.msra.mxu1 %v8600_v32 }
 0x149   : > { %v818_v43 = vpop.f32.mrb[48].mxu0  ;;  %v1168_v44 = vpack.c.bf16 %v1064_v41, %v1062_v40 }
 0x14a   : > { %v819_v45 = vadd.f32 %v818_v43, %v9229_v30  ;;  %v820_v46 = vpop.f32.mrb[49].mxu0 }
 0x14b   : > { %v821_v47 = vadd.f32 %v820_v46, %v9233_v31  ;;  %v822_v48 = vpop.f32.mrb[50].mxu0  ;;  %1555 = vmatprep.mubr.bf16.mxu1 %v1168_v44 }
 0x14c   : > { %v823_v49 = vadd.f32 %v822_v48, %v9229_v30  ;;  %v824_v50 = vpop.f32.mrb[51].mxu0  ;;  %1556 = vmatmul.mubr.bf16.gmra.mrb[44].mxu1 %v1167_v42  ;;  %v1065_v52 = vmax.f32 %v819_v45, 0.0 }
 0x14d   : > { %v825_v51 = vadd.f32 %v824_v50, %v9233_v31  ;;  %v1066_v54 = vmax.f32 %v821_v47, 0.0 }
 0x14e   : > { %v1067_v53 = vmax.f32 %v823_v49, 0.0 }
 0x14f   : > { %v1068_v55 = vmax.f32 %v825_v51, 0.0 }
 0x150   : > { %v1169_v56 = vpack.c.bf16 %v1067_v53, %v1065_v52 }
 0x151   : > { %v828_v57 = vpop.f32.mrb[52].mxu0  ;;  %v1170_v58 = vpack.c.bf16 %v1068_v55, %v1066_v54 }
 0x152   : > { %v829_v59 = vadd.f32 %v828_v57, %v9229_v30  ;;  %v830_v60 = vpop.f32.mrb[53].mxu0 }
 0x153   : > { %v831_v63 = vadd.f32 %v830_v60, %v9233_v31  ;;  %v832_v0 = vpop.f32.mrb[54].mxu0  ;;  %1565 = vmatprep.mubr.bf16.mxu1 %v1170_v58 }
 0x154   : > { %v833_v1 = vadd.f32 %v832_v0, %v9229_v30  ;;  %v834_v3 = vpop.f32.mrb[55].mxu0  ;;  %1566 = vmatmul.mubr.bf16.gmra.mrb[48].mxu1 %v1169_v56  ;;  %v1069_v5 = vmax.f32 %v829_v59, 0.0 }
 0x155   : > { %v835_v4 = vadd.f32 %v834_v3, %v9233_v31  ;;  %v1070_v7 = vmax.f32 %v831_v63, 0.0  ;;  %v8605_v63 = vld [vmem:[%s11368_s3 + $0x244] ss:$8 sps:$4 sm:$0xff]  }
 0x156   : > { %v1071_v6 = vmax.f32 %v833_v1, 0.0  ;;  %2923 = vmatprep.subr.bf16.mxu1 %v8605_v63  ;;  %v8609_v63 = vld [vmem:[%s11368_s3 + $0x260] ss:$8 sps:$4 sm:$0xff]  }
 0x157   : > { %v1072_v8 = vmax.f32 %v835_v4, 0.0  ;;  %2924 = vmatpush1.bf16.msra.mxu1 %v8603_v62 }
 0x158   : > { %v1171_v9 = vpack.c.bf16 %v1071_v6, %v1069_v5 }
 0x159   : > { %v838_v10 = vpop.f32.mrb[56].mxu0  ;;  %v1172_v11 = vpack.c.bf16 %v1072_v8, %v1070_v7 }
 0x15a   : > { %v839_v12 = vadd.f32 %v838_v10, %v9229_v30  ;;  %v840_v13 = vpop.f32.mrb[57].mxu0 }
 0x15b   : > { %v841_v14 = vadd.f32 %v840_v13, %v9233_v31  ;;  %v842_v15 = vpop.f32.mrb[58].mxu0  ;;  %1575 = vmatprep.mubr.bf16.mxu1 %v1172_v11 }
 0x15c   : > { %v843_v16 = vadd.f32 %v842_v15, %v9229_v30  ;;  %v844_v17 = vpop.f32.mrb[59].mxu0  ;;  %1576 = vmatmul.mubr.bf16.gmra.mrb[52].mxu1 %v1171_v9  ;;  %v1073_v19 = vmax.f32 %v839_v12, 0.0 }
 0x15d   : > { %v845_v18 = vadd.f32 %v844_v17, %v9233_v31  ;;  %v1074_v21 = vmax.f32 %v841_v14, 0.0 }
 0x15e   : > { %v1075_v20 = vmax.f32 %v843_v16, 0.0 }
 0x15f   : > { %v1076_v22 = vmax.f32 %v845_v18, 0.0 }
 0x160   : > { %v1173_v23 = vpack.c.bf16 %v1075_v20, %v1073_v19 }
 0x161   : > { %v848_v24 = vpop.f32.mrb[60].mxu0  ;;  %v1174_v26 = vpack.c.bf16 %v1076_v22, %v1074_v21 }
 0x162   : > { %v849_v28 = vadd.f32 %v848_v24, %v9229_v30  ;;  %v850_v29 = vpop.f32.mrb[61].mxu0 }
 0x163   : > { %v851_v34 = vadd.f32 %v850_v29, %v9233_v31  ;;  %v852_v35 = vpop.f32.mrb[62].mxu0  ;;  %1585 = vmatprep.mubr.bf16.mxu1 %v1174_v26 }
 0x164   : > { %v853_v36 = vadd.f32 %v852_v35, %v9229_v30  ;;  %v854_v37 = vpop.f32.mrb[63].mxu0  ;;  %1586 = vmatmul.mubr.bf16.gmra.mrb[56].mxu1 %v1173_v23  ;;  %v1077_v39 = vmax.f32 %v849_v28, 0.0 }
 0x165   : > { %v855_v38 = vadd.f32 %v854_v37, %v9233_v31  ;;  %v1078_v41 = vmax.f32 %v851_v34, 0.0  ;;  %v8608_v34 = vld [vmem:[%s11368_s3 + $0x254] ss:$8 sps:$4 sm:$0xff]  }
 0x166   : > { %v1079_v40 = vmax.f32 %v853_v36, 0.0  ;;  %2925 = vmatprep.subr.bf16.mxu1 %v8608_v34  ;;  %v8612_v34 = vld [vmem:[%s11368_s3 + $0x270] ss:$8 sps:$4 sm:$0xff]  }
 0x167   : > { %v1080_v42 = vmax.f32 %v855_v38, 0.0  ;;  %2926 = vmatpush1.bf16.msra.mxu1 %v8606_v33 }
 0x168   : > { %v1175_v43 = vpack.c.bf16 %v1079_v40, %v1077_v39 }
 0x169   : > { %v858_v44 = vpop.f32.mrb[64].mxu0  ;;  %v1176_v45 = vpack.c.bf16 %v1080_v42, %v1078_v41 }
 0x16a   : > { %v859_v46 = vadd.f32 %v858_v44, %v9229_v30  ;;  %v860_v47 = vpop.f32.mrb[65].mxu0 }
 0x16b   : > { %v861_v48 = vadd.f32 %v860_v47, %v9233_v31  ;;  %v862_v49 = vpop.f32.mrb[66].mxu0  ;;  %1595 = vmatprep.mubr.bf16.mxu1 %v1176_v45 }
 0x16c   : > { %v863_v50 = vadd.f32 %v862_v49, %v9229_v30  ;;  %v864_v51 = vpop.f32.mrb[67].mxu0  ;;  %1596 = vmatmul.mubr.bf16.gmra.mrb[60].mxu1 %v1175_v43  ;;  %v1081_v53 = vmax.f32 %v859_v46, 0.0 }
 0x16d   : > { %v865_v52 = vadd.f32 %v864_v51, %v9233_v31  ;;  %v1082_v55 = vmax.f32 %v861_v48, 0.0 }
 0x16e   : > { %v1083_v54 = vmax.f32 %v863_v50, 0.0 }
 0x16f   : > { %v1084_v56 = vmax.f32 %v865_v52, 0.0 }
 0x170   : > { %v1177_v57 = vpack.c.bf16 %v1083_v54, %v1081_v53 }
 0x171   : > { %v868_v58 = vpop.f32.mrb[68].mxu0  ;;  %v1178_v59 = vpack.c.bf16 %v1084_v56, %v1082_v55 }
 0x172   : > { %v869_v60 = vadd.f32 %v868_v58, %v9229_v30  ;;  %v870_v61 = vpop.f32.mrb[69].mxu0 }
 0x173   : > { %v871_v0 = vadd.f32 %v870_v61, %v9233_v31  ;;  %v872_v1 = vpop.f32.mrb[70].mxu0  ;;  %1605 = vmatprep.mubr.bf16.mxu1 %v1178_v59 }
 0x174   : > { %v873_v3 = vadd.f32 %v872_v1, %v9229_v30  ;;  %v874_v4 = vpop.f32.mrb[71].mxu0  ;;  %1606 = vmatmul.mubr.bf16.gmra.mrb[64].mxu1 %v1177_v57  ;;  %v1085_v6 = vmax.f32 %v869_v60, 0.0 }
 0x175   : > { %v875_v5 = vadd.f32 %v874_v4, %v9233_v31  ;;  %v1086_v8 = vmax.f32 %v871_v0, 0.0  ;;  %v8611_v0 = vld [vmem:[%s11368_s3 + $0x264] ss:$8 sps:$4 sm:$0xff]  }
 0x176   : > { %v1087_v7 = vmax.f32 %v873_v3, 0.0  ;;  %2927 = vmatprep.subr.bf16.mxu1 %v8611_v0  ;;  %v8615_v0 = vld [vmem:[%s11368_s3 + $0x280] ss:$8 sps:$4 sm:$0xff]  }
 0x177   : > { %v1088_v9 = vmax.f32 %v875_v5, 0.0  ;;  %2928 = vmatpush1.bf16.msra.mxu1 %v8609_v63 }
 0x178   : > { %v1179_v10 = vpack.c.bf16 %v1087_v7, %v1085_v6 }
 0x179   : > { %v878_v11 = vpop.f32.mrb[72].mxu0  ;;  %v1180_v12 = vpack.c.bf16 %v1088_v9, %v1086_v8 }
 0x17a   : > { %v879_v13 = vadd.f32 %v878_v11, %v9229_v30  ;;  %v880_v14 = vpop.f32.mrb[73].mxu0 }
 0x17b   : > { %v881_v15 = vadd.f32 %v880_v14, %v9233_v31  ;;  %v882_v16 = vpop.f32.mrb[74].mxu0  ;;  %1615 = vmatprep.mubr.bf16.mxu1 %v1180_v12 }
 0x17c   : > { %v883_v17 = vadd.f32 %v882_v16, %v9229_v30  ;;  %v884_v18 = vpop.f32.mrb[75].mxu0  ;;  %1616 = vmatmul.mubr.bf16.gmra.mrb[68].mxu1 %v1179_v10  ;;  %v1089_v20 = vmax.f32 %v879_v13, 0.0 }
 0x17d   : > { %v885_v19 = vadd.f32 %v884_v18, %v9233_v31  ;;  %v1090_v22 = vmax.f32 %v881_v15, 0.0 }
 0x17e   : > { %v1091_v21 = vmax.f32 %v883_v17, 0.0 }
 0x17f   : > { %v1092_v23 = vmax.f32 %v885_v19, 0.0 }
 0x180   : > { %v1181_v24 = vpack.c.bf16 %v1091_v21, %v1089_v20 }
 0x181   : > { %v888_v26 = vpop.f32.mrb[76].mxu0  ;;  %v1182_v28 = vpack.c.bf16 %v1092_v23, %v1090_v22 }
 0x182   : > { %v889_v29 = vadd.f32 %v888_v26, %v9229_v30  ;;  %v890_v32 = vpop.f32.mrb[77].mxu0 }
 0x183   : > { %v891_v35 = vadd.f32 %v890_v32, %v9233_v31  ;;  %v892_v36 = vpop.f32.mrb[78].mxu0  ;;  %1625 = vmatprep.mubr.bf16.mxu1 %v1182_v28 }
 0x184   : > { %v893_v37 = vadd.f32 %v892_v36, %v9229_v30  ;;  %v894_v38 = vpop.f32.mrb[79].mxu0  ;;  %1626 = vmatmul.mubr.bf16.gmra.mrb[72].mxu1 %v1181_v24  ;;  %v1093_v40 = vmax.f32 %v889_v29, 0.0 }
 0x185   : > { %v895_v39 = vadd.f32 %v894_v38, %v9233_v31  ;;  %v1094_v42 = vmax.f32 %v891_v35, 0.0  ;;  %v8614_v35 = vld [vmem:[%s11368_s3 + $0x274] ss:$8 sps:$4 sm:$0xff]  }
 0x186   : > { %v1095_v41 = vmax.f32 %v893_v37, 0.0  ;;  %2929 = vmatprep.subr.bf16.mxu1 %v8614_v35 }
 0x187   : > { %v1096_v43 = vmax.f32 %v895_v39, 0.0  ;;  %2930 = vmatpush1.bf16.msra.mxu1 %v8612_v34 }
 0x188   : > { %v1183_v44 = vpack.c.bf16 %v1095_v41, %v1093_v40 }
 0x189   : > { %v898_v45 = vpop.f32.mrb[80].mxu0  ;;  %v1184_v46 = vpack.c.bf16 %v1096_v43, %v1094_v42 }
 0x18a   : > { %v899_v47 = vadd.f32 %v898_v45, %v9229_v30  ;;  %v900_v48 = vpop.f32.mrb[81].mxu0 }
 0x18b   : > { %v901_v49 = vadd.f32 %v900_v48, %v9233_v31  ;;  %v902_v50 = vpop.f32.mrb[82].mxu0  ;;  %1635 = vmatprep.mubr.bf16.mxu1 %v1184_v46 }
 0x18c   : > { %v903_v51 = vadd.f32 %v902_v50, %v9229_v30  ;;  %v904_v52 = vpop.f32.mrb[83].mxu0  ;;  %1636 = vmatmul.mubr.bf16.gmra.mrb[76].mxu1 %v1183_v44  ;;  %v1097_v54 = vmax.f32 %v899_v47, 0.0 }
 0x18d   : > { %v905_v53 = vadd.f32 %v904_v52, %v9233_v31  ;;  %v1098_v56 = vmax.f32 %v901_v49, 0.0 }
 0x18e   : > { %v1099_v55 = vmax.f32 %v903_v51, 0.0 }
 0x18f   : > { %v1100_v57 = vmax.f32 %v905_v53, 0.0 }
 0x190   : > { %v1185_v58 = vpack.c.bf16 %v1099_v55, %v1097_v54 }
 0x191   : > { %v908_v59 = vpop.f32.mrb[84].mxu0  ;;  %v1186_v60 = vpack.c.bf16 %v1100_v57, %v1098_v56 }
 0x192   : > { %v909_v61 = vadd.f32 %v908_v59, %v9229_v30  ;;  %v910_v62 = vpop.f32.mrb[85].mxu0 }
 0x193   : > { %v911_v1 = vadd.f32 %v910_v62, %v9233_v31  ;;  %v912_v3 = vpop.f32.mrb[86].mxu0  ;;  %1645 = vmatprep.mubr.bf16.mxu1 %v1186_v60 }
 0x194   : > { %v913_v4 = vadd.f32 %v912_v3, %v9229_v30  ;;  %v914_v5 = vpop.f32.mrb[87].mxu0  ;;  %1646 = vmatmul.mubr.bf16.gmra.mrb[80].mxu1 %v1185_v58  ;;  %v1101_v7 = vmax.f32 %v909_v61, 0.0 }
 0x195   : > { %v915_v6 = vadd.f32 %v914_v5, %v9233_v31  ;;  %v1102_v9 = vmax.f32 %v911_v1, 0.0  ;;  %v8617_v1 = vld [vmem:[%s11368_s3 + $0x284] ss:$8 sps:$4 sm:$0xff]  }
 0x196   : > { %v1103_v8 = vmax.f32 %v913_v4, 0.0  ;;  %2931 = vmatprep.subr.bf16.mxu1 %v8617_v1 }
 0x197   : > { %v1104_v10 = vmax.f32 %v915_v6, 0.0  ;;  %2932 = vmatpush1.bf16.msra.mxu1 %v8615_v0 }
 0x198   : > { %v1187_v11 = vpack.c.bf16 %v1103_v8, %v1101_v7 }
 0x199   : > { %v918_v12 = vpop.f32.mrb[88].mxu0  ;;  %v1188_v13 = vpack.c.bf16 %v1104_v10, %v1102_v9 }
 0x19a   : > { %v919_v14 = vadd.f32 %v918_v12, %v9229_v30  ;;  %v920_v15 = vpop.f32.mrb[89].mxu0 }
 0x19b   : > { %v921_v16 = vadd.f32 %v920_v15, %v9233_v31  ;;  %v922_v17 = vpop.f32.mrb[90].mxu0  ;;  %1655 = vmatprep.mubr.bf16.mxu1 %v1188_v13 }
 0x19c   : > { %v923_v18 = vadd.f32 %v922_v17, %v9229_v30  ;;  %v924_v19 = vpop.f32.mrb[91].mxu0  ;;  %1656 = vmatmul.mubr.bf16.gmra.mrb[84].mxu1 %v1187_v11  ;;  %v1105_v21 = vmax.f32 %v919_v14, 0.0 }
 0x19d   : > { %v925_v20 = vadd.f32 %v924_v19, %v9233_v31  ;;  %v1106_v23 = vmax.f32 %v921_v16, 0.0 }
 0x19e   : > { %v1107_v22 = vmax.f32 %v923_v18, 0.0 }
 0x19f   : > { %v1108_v24 = vmax.f32 %v925_v20, 0.0 }
 0x1a0   : > { %v1189_v26 = vpack.c.bf16 %v1107_v22, %v1105_v21 }
 0x1a1   : > { %v928_v28 = vpop.f32.mrb[92].mxu0  ;;  %v1190_v29 = vpack.c.bf16 %v1108_v24, %v1106_v23 }
 0x1a2   : > { %v929_v32 = vadd.f32 %v928_v28, %v9229_v30  ;;  %v930_v33 = vpop.f32.mrb[93].mxu0 }
 0x1a3   : > { %v931_v36 = vadd.f32 %v930_v33, %v9233_v31  ;;  %v932_v37 = vpop.f32.mrb[94].mxu0  ;;  %1665 = vmatprep.mubr.bf16.mxu1 %v1190_v29  ;;  %v1241_v33 = vld [vmem:[%s11369_s4] sm:$0x3] }
 0x1a4   : > { %v933_v38 = vadd.f32 %v932_v37, %v9229_v30  ;;  %v934_v39 = vpop.f32.mrb[95].mxu0  ;;  %1666 = vmatmul.mubr.bf16.gmra.mrb[88].mxu1 %v1189_v26  ;;  %v1109_v41 = vmax.f32 %v929_v32, 0.0  ;;  %v8620_v37 = vld [vmem:[%s11368_s3 + $0x294] ss:$8 sps:$4 sm:$0xff]  }
 0x1a5   : > { %v935_v40 = vadd.f32 %v934_v39, %v9233_v31  ;;  %v1110_v43 = vmax.f32 %v931_v36, 0.0  ;;  %v8618_v36 = vld [vmem:[%s11368_s3 + $0x290] ss:$8 sps:$4 sm:$0xff]   ;;  %2933 = vmatprep.subr.bf16.mxu1 %v8620_v37 }
 0x1a6   : > { %v1111_v42 = vmax.f32 %v933_v38, 0.0  ;;  %2934 = vmatpush1.bf16.msra.mxu1 %v8618_v36 }
 0x1a7   : > { %v1112_v44 = vmax.f32 %v935_v40, 0.0 }
 0x1a8   : > { %v1191_v45 = vpack.c.bf16 %v1111_v42, %v1109_v41  ;;  %v9460_v42 = vrot.slane %v1241_v33, %v9214_v25 }
 0x1a9   : > { %v938_v46 = vpop.f32.mrb[96].mxu0  ;;  %v1192_v47 = vpack.c.bf16 %v1112_v44, %v1110_v43  ;;  %v9464_v44 = vrot.slane %v1241_v33, %v9219_v27 }
 0x1aa   : > { %v939_v48 = vadd.f32 %v938_v46, %v9229_v30  ;;  %v940_v49 = vpop.f32.mrb[97].mxu0 }
 0x1ab   : > { %v941_v50 = vadd.f32 %v940_v49, %v9233_v31  ;;  %v942_v51 = vpop.f32.mrb[98].mxu0  ;;  %1675 = vmatprep.mubr.bf16.mxu1 %v1192_v47 }
 0x1ac   : > { %v943_v52 = vadd.f32 %v942_v51, %v9229_v30  ;;  %v944_v53 = vpop.f32.mrb[99].mxu0  ;;  %1676 = vmatmul.mubr.bf16.gmra.mrb[92].mxu1 %v1191_v45  ;;  %v1113_v55 = vmax.f32 %v939_v48, 0.0 }
 0x1ad   : > { %v945_v54 = vadd.f32 %v944_v53, %v9233_v31  ;;  %v1114_v57 = vmax.f32 %v941_v50, 0.0 }
 0x1ae   : > { %v1115_v56 = vmax.f32 %v943_v52, 0.0 }
 0x1af   : > { %v1116_v58 = vmax.f32 %v945_v54, 0.0 }
 0x1b0   : > { %v1193_v59 = vpack.c.bf16 %v1115_v56, %v1113_v55 }
 0x1b1   : > { %v948_v60 = vpop.f32.mrb[100].mxu0  ;;  %v1194_v61 = vpack.c.bf16 %v1116_v58, %v1114_v57 }
 0x1b2   : > { %v949_v62 = vadd.f32 %v948_v60, %v9229_v30  ;;  %v950_v63 = vpop.f32.mrb[101].mxu0 }
 0x1b3   : > { %v951_v3 = vadd.f32 %v950_v63, %v9233_v31  ;;  %v952_v4 = vpop.f32.mrb[102].mxu0  ;;  %1685 = vmatprep.mubr.bf16.mxu1 %v1194_v61 }
 0x1b4   : > { %v953_v5 = vadd.f32 %v952_v4, %v9229_v30  ;;  %v954_v6 = vpop.f32.mrb[103].mxu0  ;;  %1686 = vmatmul.mubr.bf16.gmra.mrb[96].mxu1 %v1193_v59  ;;  %v1117_v8 = vmax.f32 %v949_v62, 0.0 }
 0x1b5   : > { %v955_v7 = vadd.f32 %v954_v6, %v9233_v31  ;;  %v1118_v10 = vmax.f32 %v951_v3, 0.0 }
 0x1b6   : > { %v1119_v9 = vmax.f32 %v953_v5, 0.0 }
 0x1b7   : > { %v1120_v11 = vmax.f32 %v955_v7, 0.0 }
 0x1b8   : > { %v1195_v12 = vpack.c.bf16 %v1119_v9, %v1117_v8 }
 0x1b9   : > { %v958_v13 = vpop.f32.mrb[104].mxu0  ;;  %v1196_v14 = vpack.c.bf16 %v1120_v11, %v1118_v10 }
 0x1ba   : > { %v959_v15 = vadd.f32 %v958_v13, %v9229_v30  ;;  %v960_v16 = vpop.f32.mrb[105].mxu0 }
 0x1bb   : > { %v961_v17 = vadd.f32 %v960_v16, %v9233_v31  ;;  %v962_v18 = vpop.f32.mrb[106].mxu0  ;;  %1695 = vmatprep.mubr.bf16.mxu1 %v1196_v14 }
 0x1bc   : > { %v963_v19 = vadd.f32 %v962_v18, %v9229_v30  ;;  %v964_v20 = vpop.f32.mrb[107].mxu0  ;;  %1696 = vmatmul.mubr.bf16.gmra.mrb[100].mxu1 %v1195_v12  ;;  %v1121_v22 = vmax.f32 %v959_v15, 0.0 }
 0x1bd   : > { %v965_v21 = vadd.f32 %v964_v20, %v9233_v31  ;;  %v1122_v24 = vmax.f32 %v961_v17, 0.0 }
 0x1be   : > { %v1123_v23 = vmax.f32 %v963_v19, 0.0 }
 0x1bf   : > { %v1124_v26 = vmax.f32 %v965_v21, 0.0 }
 0x1c0   : > { %v1197_v28 = vpack.c.bf16 %v1123_v23, %v1121_v22 }
 0x1c1   : > { %v968_v29 = vpop.f32.mrb[108].mxu0  ;;  %v1198_v32 = vpack.c.bf16 %v1124_v26, %v1122_v24 }
 0x1c2   : > { %v969_v34 = vadd.f32 %v968_v29, %v9229_v30  ;;  %v970_v35 = vpop.f32.mrb[109].mxu0 }
 0x1c3   : > { %v971_v38 = vadd.f32 %v970_v35, %v9233_v31  ;;  %v972_v39 = vpop.f32.mrb[110].mxu0  ;;  %1705 = vmatprep.mubr.bf16.mxu1 %v1198_v32 }
 0x1c4   : > { %v973_v40 = vadd.f32 %v972_v39, %v9229_v30  ;;  %v974_v41 = vpop.f32.mrb[111].mxu0  ;;  %1706 = vmatmul.mubr.bf16.gmra.mrb[104].mxu1 %v1197_v28  ;;  %v1125_v45 = vmax.f32 %v969_v34, 0.0  ;;  %v8621_v28 = vld [vmem:[%s11368_s3 + $0x2a0] ss:$8 sps:$4 sm:$0xff]   ;;  %v8623_v34 = vld [vmem:[%s11368_s3 + $0x2a4] ss:$8 sps:$4 sm:$0xff]  }
 0x1c5   : > { %v975_v43 = vadd.f32 %v974_v41, %v9233_v31  ;;  %v1126_v47 = vmax.f32 %v971_v38, 0.0  ;;  %2935 = vmatprep.subr.bf16.mxu1 %v8623_v34 }
 0x1c6   : > { %v1127_v46 = vmax.f32 %v973_v40, 0.0  ;;  %2936 = vmatpush1.bf16.msra.mxu1 %v8621_v28 }
 0x1c7   : > { %v1128_v48 = vmax.f32 %v975_v43, 0.0  ;;  %v1447_v49 = vpop.f32.mrb[0].mxu1 }
 0x1c8   : > { %v1448_v50 = vadd.f32 %v1447_v49, %v9460_v42  ;;  %v1449_v51 = vpop.f32.mrb[1].mxu1  ;;  %v1199_v52 = vpack.c.bf16 %v1127_v46, %v1125_v45 }
 0x1c9   : > { %v1450_v53 = vadd.f32 %v1449_v51, %v9464_v44  ;;  %v978_v54 = vpop.f32.mrb[112].mxu0  ;;  %v1451_v55 = vpop.f32.mrb[2].mxu1  ;;  %v1200_v56 = vpack.c.bf16 %v1128_v48, %v1126_v47 }
 0x1ca   : > { %v979_v57 = vadd.f32 %v978_v54, %v9229_v30  ;;  %v1452_v58 = vadd.f32 %v1451_v55, %v9460_v42  ;;  %v980_v59 = vpop.f32.mrb[113].mxu0  ;;  %v1453_v60 = vpop.f32.mrb[3].mxu1  ;;  %v1766_v0 = vmax.f32 %v1448_v50, 0.0 }
 0x1cb   : > { %v981_v61 = vadd.f32 %v980_v59, %v9233_v31  ;;  %v1454_v62 = vadd.f32 %v1453_v60, %v9464_v44  ;;  %v982_v63 = vpop.f32.mrb[114].mxu0  ;;  %1715 = vmatprep.mubr.bf16.mxu1 %v1200_v56  ;;  %v1767_v5 = vmax.f32 %v1450_v53, 0.0 }
 0x1cc   : > { %v1768_v1 = vmax.f32 %v1452_v58, 0.0  ;;  %v983_v3 = vadd.f32 %v982_v63, %v9229_v30  ;;  %v984_v4 = vpop.f32.mrb[115].mxu0  ;;  %1716 = vmatmul.mubr.bf16.gmra.mrb[108].mxu1 %v1199_v52  ;;  %v1129_v8 = vmax.f32 %v979_v57, 0.0 }
 0x1cd   : > { %v1769_v6 = vmax.f32 %v1454_v62, 0.0  ;;  %v985_v7 = vadd.f32 %v984_v4, %v9233_v31  ;;  %v1130_v11 = vmax.f32 %v981_v61, 0.0 }
 0x1ce   : > { %v1894_v9 = vpack.c.bf16 %v1768_v1, %v1766_v0  ;;  %v1131_v10 = vmax.f32 %v983_v3, 0.0 }
 0x1cf   : > { %v1132_v12 = vmax.f32 %v985_v7, 0.0  ;;  %v1457_v13 = vpop.f32.mrb[4].mxu1  ;;  %v1895_v14 = vpack.c.bf16 %v1769_v6, %v1767_v5 }
 0x1d0   : > { %v1458_v15 = vadd.f32 %v1457_v13, %v9460_v42  ;;  %v1459_v16 = vpop.f32.mrb[5].mxu1  ;;  %v1201_v17 = vpack.c.bf16 %v1131_v10, %v1129_v8 }
 0x1d1   : > { %v1460_v18 = vadd.f32 %v1459_v16, %v9464_v44  ;;  %v988_v19 = vpop.f32.mrb[116].mxu0  ;;  %v1461_v20 = vpop.f32.mrb[6].mxu1  ;;  %2196 = vmatprep.mubr.bf16.mxu0 %v1895_v14  ;;  %v1202_v21 = vpack.c.bf16 %v1132_v12, %v1130_v11 }
 0x1d2   : > { %v989_v22 = vadd.f32 %v988_v19, %v9229_v30  ;;  %v1462_v23 = vadd.f32 %v1461_v20, %v9460_v42  ;;  %v990_v24 = vpop.f32.mrb[117].mxu0  ;;  %v1463_v26 = vpop.f32.mrb[7].mxu1  ;;  %2197 = vmatmul.mubr.bf16.vlgmr.msra.gmra.mrb[128].mxu0 %v1894_v9  ;;  %v1770_v35 = vmax.f32 %v1458_v15, 0.0 }
 0x1d3   : > { %v991_v29 = vadd.f32 %v990_v24, %v9233_v31  ;;  %v1464_v32 = vadd.f32 %v1463_v26, %v9464_v44  ;;  %v992_v33 = vpop.f32.mrb[118].mxu0  ;;  %1725 = vmatprep.mubr.bf16.mxu1 %v1202_v21  ;;  %v1771_v39 = vmax.f32 %v1460_v18, 0.0 }
 0x1d4   : > { %v1772_v36 = vmax.f32 %v1462_v23, 0.0  ;;  %v993_v37 = vadd.f32 %v992_v33, %v9229_v30  ;;  %v994_v38 = vpop.f32.mrb[119].mxu0  ;;  %1726 = vmatmul.mubr.bf16.gmra.mrb[112].mxu1 %v1201_v17  ;;  %v1133_v43 = vmax.f32 %v989_v22, 0.0 }
 0x1d5   : > { %v1773_v40 = vmax.f32 %v1464_v32, 0.0  ;;  %v995_v41 = vadd.f32 %v994_v38, %v9233_v31  ;;  %v1134_v47 = vmax.f32 %v991_v29, 0.0  ;;  %v8624_v29 = vld [vmem:[%s11368_s3 + $0x2b0] ss:$8 sps:$4 sm:$0xff]  }
 0x1d6   : > { %v1135_v45 = vmax.f32 %v993_v37, 0.0  ;;  %v1896_v46 = vpack.c.bf16 %v1772_v36, %v1770_v35  ;;  %v8626_v35 = vld [vmem:[%s11368_s3 + $0x2b4] ss:$8 sps:$4 sm:$0xff]  }
 0x1d7   : > { %v1136_v48 = vmax.f32 %v995_v41, 0.0  ;;  %v1467_v49 = vpop.f32.mrb[8].mxu1  ;;  %v1897_v50 = vpack.c.bf16 %v1773_v40, %v1771_v39  ;;  %2937 = vmatprep.subr.bf16.mxu1 %v8626_v35 }
 0x1d8   : > { %v1468_v51 = vadd.f32 %v1467_v49, %v9460_v42  ;;  %v1469_v52 = vpop.f32.mrb[9].mxu1  ;;  %v1203_v53 = vpack.c.bf16 %v1135_v45, %v1133_v43  ;;  %2938 = vmatpush1.bf16.msra.mxu1 %v8624_v29 }
 0x1d9   : > { %v1470_v54 = vadd.f32 %v1469_v52, %v9464_v44  ;;  %v998_v55 = vpop.f32.mrb[120].mxu0  ;;  %v1471_v56 = vpop.f32.mrb[10].mxu1  ;;  %2206 = vmatprep.mubr.bf16.mxu0 %v1897_v50  ;;  %v1204_v57 = vpack.c.bf16 %v1136_v48, %v1134_v47 }
 0x1da   : > { %v999_v58 = vadd.f32 %v998_v55, %v9229_v30  ;;  %v1472_v59 = vadd.f32 %v1471_v56, %v9460_v42  ;;  %v1000_v60 = vpop.f32.mrb[121].mxu0  ;;  %v1473_v61 = vpop.f32.mrb[11].mxu1  ;;  %2207 = vmatmul.mubr.bf16.gmra.mrb[132].mxu0 %v1896_v46  ;;  %v1774_v1 = vmax.f32 %v1468_v51, 0.0 }
 0x1db   : > { %v1001_v62 = vadd.f32 %v1000_v60, %v9233_v31  ;;  %v1474_v63 = vadd.f32 %v1473_v61, %v9464_v44  ;;  %v1002_v0 = vpop.f32.mrb[122].mxu0  ;;  %1735 = vmatprep.mubr.bf16.mxu1 %v1204_v57  ;;  %v1775_v6 = vmax.f32 %v1470_v54, 0.0 }
 0x1dc   : > { %v1776_v3 = vmax.f32 %v1472_v59, 0.0  ;;  %v1003_v4 = vadd.f32 %v1002_v0, %v9229_v30  ;;  %v1004_v5 = vpop.f32.mrb[123].mxu0  ;;  %1736 = vmatmul.mubr.bf16.gmra.mrb[116].mxu1 %v1203_v53  ;;  %v1137_v9 = vmax.f32 %v999_v58, 0.0 }
 0x1dd   : > { %v1777_v7 = vmax.f32 %v1474_v63, 0.0  ;;  %v1005_v8 = vadd.f32 %v1004_v5, %v9233_v31  ;;  %v1138_v12 = vmax.f32 %v1001_v62, 0.0 }
 0x1de   : > { %v1139_v10 = vmax.f32 %v1003_v4, 0.0  ;;  %v1898_v11 = vpack.c.bf16 %v1776_v3, %v1774_v1 }
 0x1df   : > { %v1140_v13 = vmax.f32 %v1005_v8, 0.0  ;;  %v1477_v14 = vpop.f32.mrb[12].mxu1  ;;  %v1899_v15 = vpack.c.bf16 %v1777_v7, %v1775_v6 }
 0x1e0   : > { %v1478_v16 = vadd.f32 %v1477_v14, %v9460_v42  ;;  %v1479_v17 = vpop.f32.mrb[13].mxu1  ;;  %v1205_v18 = vpack.c.bf16 %v1139_v10, %v1137_v9  ;;  %v8627_v9 = vld [vmem:[%s11368_s3 + $0x2c0] ss:$8 sps:$4 sm:$0xff]   ;;  %v8629_v10 = vld [vmem:[%s11368_s3 + $0x2c4] ss:$8 sps:$4 sm:$0xff]  }
 0x1e1   : > { %v1480_v19 = vadd.f32 %v1479_v17, %v9464_v44  ;;  %v1008_v20 = vpop.f32.mrb[124].mxu0  ;;  %v1481_v21 = vpop.f32.mrb[14].mxu1  ;;  %2216 = vmatprep.mubr.bf16.mxu0 %v1899_v15  ;;  %v1206_v22 = vpack.c.bf16 %v1140_v13, %v1138_v12  ;;  %2939 = vmatprep.subr.bf16.mxu1 %v8629_v10 }
 0x1e2   : > { %v1009_v23 = vadd.f32 %v1008_v20, %v9229_v30  ;;  %v1482_v24 = vadd.f32 %v1481_v21, %v9460_v42  ;;  %v1010_v26 = vpop.f32.mrb[125].mxu0  ;;  %v1483_v28 = vpop.f32.mrb[15].mxu1  ;;  %2217 = vmatmul.mubr.bf16.gmra.mrb[136].mxu0 %v1898_v11  ;;  %v1778_v36 = vmax.f32 %v1478_v16, 0.0  ;;  %2940 = vmatpush1.bf16.msra.mxu1 %v8627_v9 }
 0x1e3   : > { %v1011_v32 = vadd.f32 %v1010_v26, %v9233_v31  ;;  %v1484_v33 = vadd.f32 %v1483_v28, %v9464_v44  ;;  %v1012_v34 = vpop.f32.mrb[126].mxu0  ;;  %1745 = vmatprep.mubr.bf16.mxu1 %v1206_v22  ;;  %v1779_v40 = vmax.f32 %v1480_v19, 0.0 }
 0x1e4   : > { %v1780_v37 = vmax.f32 %v1482_v24, 0.0  ;;  %v1013_v38 = vadd.f32 %v1012_v34, %v9229_v30  ;;  %v1014_v39 = vpop.f32.mrb[127].mxu0  ;;  %1746 = vmatmul.mubr.bf16.gmra.mrb[120].mxu1 %v1205_v18  ;;  %v1141_v45 = vmax.f32 %v1009_v23, 0.0 }
 0x1e5   : > { %v1781_v41 = vmax.f32 %v1484_v33, 0.0  ;;  %v1015_v43 = vadd.f32 %v1014_v39, %v9233_v31  ;;  %v1142_v48 = vmax.f32 %v1011_v32, 0.0 }
 0x1e6   : > { %v1143_v46 = vmax.f32 %v1013_v38, 0.0  ;;  %v1900_v47 = vpack.c.bf16 %v1780_v37, %v1778_v36 }
 0x1e7   : > { %v1144_v49 = vmax.f32 %v1015_v43, 0.0  ;;  %v1487_v50 = vpop.f32.mrb[16].mxu1  ;;  %v1901_v51 = vpack.c.bf16 %v1781_v41, %v1779_v40 }
 0x1e8   : > { %v1488_v52 = vadd.f32 %v1487_v50, %v9460_v42  ;;  %v1489_v53 = vpop.f32.mrb[17].mxu1  ;;  %v1207_v54 = vpack.c.bf16 %v1143_v46, %v1141_v45  ;;  %v8630_v45 = vld [vmem:[%s11368_s3 + $0x2d0] ss:$8 sps:$4 sm:$0xff]   ;;  %v8632_v46 = vld [vmem:[%s11368_s3 + $0x2d4] ss:$8 sps:$4 sm:$0xff]  }
 0x1e9   : > { %v1490_v30 = vadd.f32 %v1489_v53, %v9464_v44  ;;  %v1491_v55 = vpop.f32.mrb[18].mxu1  ;;  %2226 = vmatprep.mubr.bf16.mxu0 %v1901_v51  ;;  %v1208_v56 = vpack.c.bf16 %v1144_v49, %v1142_v48  ;;  %2941 = vmatprep.subr.bf16.mxu1 %v8632_v46 }
 0x1ea   : > { %v1492_v31 = vadd.f32 %v1491_v55, %v9460_v42  ;;  %v1493_v57 = vpop.f32.mrb[19].mxu1  ;;  %2227 = vmatmul.mubr.bf16.gmra.mrb[140].mxu0 %v1900_v47  ;;  %v1782_v59 = vmax.f32 %v1488_v52, 0.0  ;;  %2942 = vmatpush1.bf16.msra.mxu1 %v8630_v45 }
 0x1eb   : > { %v1494_v58 = vadd.f32 %v1493_v57, %v9464_v44  ;;  %1755 = vmatprep.mubr.bf16.mxu1 %v1208_v56  ;;  %v1783_v61 = vmax.f32 %v1490_v30, 0.0 }
 0x1ec   : > { %v1784_v60 = vmax.f32 %v1492_v31, 0.0  ;;  %1756 = vmatmul.mubr.bf16.gmra.mrb[124].mxu1 %v1207_v54 }
 0x1ed   : > { %v1785_v62 = vmax.f32 %v1494_v58, 0.0 }
 0x1ee   : > { %v1902_v63 = vpack.c.bf16 %v1784_v60, %v1782_v59 }
 0x1ef   : > { %v1497_v0 = vpop.f32.mrb[20].mxu1  ;;  %v1903_v1 = vpack.c.bf16 %v1785_v62, %v1783_v61 }
 0x1f0   : > { %v1498_v3 = vadd.f32 %v1497_v0, %v9460_v42  ;;  %v1499_v4 = vpop.f32.mrb[21].mxu1  ;;  %v8633_v0 = vld [vmem:[%s11368_s3 + $0x300] ss:$8 sps:$4 sm:$0xff]  }
 0x1f1   : > { %v1500_v5 = vadd.f32 %v1499_v4, %v9464_v44  ;;  %v1501_v6 = vpop.f32.mrb[22].mxu1  ;;  %2236 = vmatprep.mubr.bf16.mxu0 %v1903_v1  ;;  %v8635_v1 = vld [vmem:[%s11368_s3 + $0x304] ss:$8 sps:$4 sm:$0xff]  }
 0x1f2   : > { %v1502_v7 = vadd.f32 %v1501_v6, %v9460_v42  ;;  %v1503_v8 = vpop.f32.mrb[23].mxu1  ;;  %2237 = vmatmul.mubr.bf16.gmra.mrb[144].mxu0 %v1902_v63  ;;  %v1786_v12 = vmax.f32 %v1498_v3, 0.0  ;;  %3666 = vmatprep.subr.bf16.mxu0 %v8635_v1 }
 0x1f3   : > { %v1504_v11 = vadd.f32 %v1503_v8, %v9464_v44  ;;  %v1787_v14 = vmax.f32 %v1500_v5, 0.0  ;;  %3667 = vmatpush1.bf16.msra.mxu0 %v8633_v0 }
 0x1f4   : > { %v1788_v13 = vmax.f32 %v1502_v7, 0.0 }
 0x1f5   : > { %v1789_v15 = vmax.f32 %v1504_v11, 0.0 }
 0x1f6   : > { %v1904_v16 = vpack.c.bf16 %v1788_v13, %v1786_v12  ;;  %v8636_v12 = vld [vmem:[%s11368_s3 + $0x2e0] ss:$8 sps:$4 sm:$0xff]   ;;  %v8638_v13 = vld [vmem:[%s11368_s3 + $0x2e4] ss:$8 sps:$4 sm:$0xff]  }
 0x1f7   : > { %v1507_v17 = vpop.f32.mrb[24].mxu1  ;;  %v1905_v18 = vpack.c.bf16 %v1789_v15, %v1787_v14  ;;  %2943 = vmatprep.subr.bf16.mxu1 %v8638_v13 }
 0x1f8   : > { %v1508_v19 = vadd.f32 %v1507_v17, %v9460_v42  ;;  %v1509_v20 = vpop.f32.mrb[25].mxu1  ;;  %2944 = vmatpush1.bf16.msra.mxu1 %v8636_v12  ;;  %v8647_v12 = vld [vmem:[%s11368_s3 + $0x324] ss:$8 sps:$4 sm:$0xff]  }
 0x1f9   : > { %v1510_v21 = vadd.f32 %v1509_v20, %v9464_v44  ;;  %v1511_v22 = vpop.f32.mrb[26].mxu1  ;;  %2246 = vmatprep.mubr.bf16.mxu0 %v1905_v18 }
 0x1fa   : > { %v1512_v23 = vadd.f32 %v1511_v22, %v9460_v42  ;;  %v1513_v24 = vpop.f32.mrb[27].mxu1  ;;  %2247 = vmatmul.mubr.bf16.gmra.mrb[148].mxu0 %v1904_v16  ;;  %v1790_v28 = vmax.f32 %v1508_v19, 0.0 }
 0x1fb   : > { %v1514_v26 = vadd.f32 %v1513_v24, %v9464_v44  ;;  %v1791_v32 = vmax.f32 %v1510_v21, 0.0 }
 0x1fc   : > { %v1792_v29 = vmax.f32 %v1512_v23, 0.0 }
 0x1fd   : > { %v1793_v33 = vmax.f32 %v1514_v26, 0.0 }
 0x1fe   : > { %v1906_v34 = vpack.c.bf16 %v1792_v29, %v1790_v28 }
 0x1ff   : > { %v1517_v35 = vpop.f32.mrb[28].mxu1  ;;  %v1907_v36 = vpack.c.bf16 %v1793_v33, %v1791_v32 }
 0x200   : > { %v1518_v37 = vadd.f32 %v1517_v35, %v9460_v42  ;;  %v1519_v38 = vpop.f32.mrb[29].mxu1 }
 0x201   : > { %v1520_v39 = vadd.f32 %v1519_v38, %v9464_v44  ;;  %v1521_v40 = vpop.f32.mrb[30].mxu1  ;;  %2256 = vmatprep.mubr.bf16.mxu0 %v1907_v36  ;;  %v8641_v38 = vld [vmem:[%s11368_s3 + $0x314] ss:$8 sps:$4 sm:$0xff]  }
 0x202   : > { %v1522_v41 = vadd.f32 %v1521_v40, %v9460_v42  ;;  %v1523_v43 = vpop.f32.mrb[31].mxu1  ;;  %2257 = vmatmul.mubr.bf16.gmra.mrb[152].mxu0 %v1906_v34  ;;  %v1794_v48 = vmax.f32 %v1518_v37, 0.0  ;;  %v8639_v37 = vld [vmem:[%s11368_s3 + $0x310] ss:$8 sps:$4 sm:$0xff]   ;;  %3668 = vmatprep.subr.bf16.mxu0 %v8641_v38 }
 0x203   : > { %v1524_v47 = vadd.f32 %v1523_v43, %v9464_v44  ;;  %v1795_v50 = vmax.f32 %v1520_v39, 0.0  ;;  %3669 = vmatpush1.bf16.msra.mxu0 %v8639_v37 }
 0x204   : > { %v1796_v49 = vmax.f32 %v1522_v41, 0.0  ;;  %3670 = vmatprep.subr.bf16.mxu0 %v8647_v12  ;;  %v8651_v12 = vld [vmem:[%s11368_s3 + $0x340] ss:$8 sps:$4 sm:$0xff]  }
 0x205   : > { %v1797_v51 = vmax.f32 %v1524_v47, 0.0 }
 0x206   : > { %v1908_v52 = vpack.c.bf16 %v1796_v49, %v1794_v48 }
 0x207   : > { %v1527_v53 = vpop.f32.mrb[32].mxu1  ;;  %v1909_v54 = vpack.c.bf16 %v1797_v51, %v1795_v50  ;;  %v8642_v50 = vld [vmem:[%s11368_s3 + $0x2f0] ss:$8 sps:$4 sm:$0xff]   ;;  %v8644_v51 = vld [vmem:[%s11368_s3 + $0x2f4] ss:$8 sps:$4 sm:$0xff]  }
 0x208   : > { %v1528_v30 = vadd.f32 %v1527_v53, %v9460_v42  ;;  %v1529_v55 = vpop.f32.mrb[33].mxu1  ;;  %2945 = vmatprep.subr.bf16.mxu1 %v8644_v51 }
 0x209   : > { %v1530_v56 = vadd.f32 %v1529_v55, %v9464_v44  ;;  %v1531_v31 = vpop.f32.mrb[34].mxu1  ;;  %2266 = vmatprep.mubr.bf16.mxu0 %v1909_v54  ;;  %2946 = vmatpush1.bf16.msra.mxu1 %v8642_v50 }
 0x20a   : > { %v1532_v57 = vadd.f32 %v1531_v31, %v9460_v42  ;;  %v1533_v58 = vpop.f32.mrb[35].mxu1  ;;  %2267 = vmatmul.mubr.bf16.gmra.mrb[156].mxu0 %v1908_v52  ;;  %v1798_v60 = vmax.f32 %v1528_v30, 0.0 }
 0x20b   : > { %v1534_v59 = vadd.f32 %v1533_v58, %v9464_v44  ;;  %v1799_v62 = vmax.f32 %v1530_v56, 0.0 }
 0x20c   : > { %v1800_v61 = vmax.f32 %v1532_v57, 0.0 }
 0x20d   : > { %v1801_v63 = vmax.f32 %v1534_v59, 0.0 }
 0x20e   : > { %v1910_v3 = vpack.c.bf16 %v1800_v61, %v1798_v60 }
 0x20f   : > { %v1537_v4 = vpop.f32.mrb[36].mxu1  ;;  %v1911_v5 = vpack.c.bf16 %v1801_v63, %v1799_v62 }
 0x210   : > { %v1538_v6 = vadd.f32 %v1537_v4, %v9460_v42  ;;  %v1539_v7 = vpop.f32.mrb[37].mxu1 }
 0x211   : > { %v1540_v8 = vadd.f32 %v1539_v7, %v9464_v44  ;;  %v1541_v9 = vpop.f32.mrb[38].mxu1  ;;  %2276 = vmatprep.mubr.bf16.mxu0 %v1911_v5 }
 0x212   : > { %v1542_v10 = vadd.f32 %v1541_v9, %v9460_v42  ;;  %v1543_v11 = vpop.f32.mrb[39].mxu1  ;;  %2277 = vmatmul.mubr.bf16.gmra.mrb[160].mxu0 %v1910_v3  ;;  %v1802_v15 = vmax.f32 %v1538_v6, 0.0 }
 0x213   : > { %v1544_v14 = vadd.f32 %v1543_v11, %v9464_v44  ;;  %v1803_v17 = vmax.f32 %v1540_v8, 0.0  ;;  %v8645_v11 = vld [vmem:[%s11368_s3 + $0x320] ss:$8 sps:$4 sm:$0xff]  }
 0x214   : > { %v1804_v16 = vmax.f32 %v1542_v10, 0.0  ;;  %3671 = vmatpush1.bf16.msra.mxu0 %v8645_v11 }
 0x215   : > { %v1805_v18 = vmax.f32 %v1544_v14, 0.0 }
 0x216   : > { %v1912_v19 = vpack.c.bf16 %v1804_v16, %v1802_v15 }
 0x217   : > { %v1547_v20 = vpop.f32.mrb[40].mxu1  ;;  %v1913_v21 = vpack.c.bf16 %v1805_v18, %v1803_v17 }
 0x218   : > { %v1548_v22 = vadd.f32 %v1547_v20, %v9460_v42  ;;  %v1549_v23 = vpop.f32.mrb[41].mxu1 }
 0x219   : > { %v1550_v24 = vadd.f32 %v1549_v23, %v9464_v44  ;;  %v1551_v26 = vpop.f32.mrb[42].mxu1  ;;  %2286 = vmatprep.mubr.bf16.mxu0 %v1913_v21 }
 0x21a   : > { %v1552_v28 = vadd.f32 %v1551_v26, %v9460_v42  ;;  %v1553_v29 = vpop.f32.mrb[43].mxu1  ;;  %2287 = vmatmul.mubr.bf16.gmra.mrb[164].mxu0 %v1912_v19  ;;  %v1806_v33 = vmax.f32 %v1548_v22, 0.0 }
 0x21b   : > { %v1554_v32 = vadd.f32 %v1553_v29, %v9464_v44  ;;  %v1807_v35 = vmax.f32 %v1550_v24, 0.0 }
 0x21c   : > { %v1808_v34 = vmax.f32 %v1552_v28, 0.0 }
 0x21d   : > { %v1809_v36 = vmax.f32 %v1554_v32, 0.0 }
 0x21e   : > { %v1914_v39 = vpack.c.bf16 %v1808_v34, %v1806_v33 }
 0x21f   : > { %v1557_v40 = vpop.f32.mrb[44].mxu1  ;;  %v1915_v41 = vpack.c.bf16 %v1809_v36, %v1807_v35 }
 0x220   : > { %v1558_v43 = vadd.f32 %v1557_v40, %v9460_v42  ;;  %v1559_v45 = vpop.f32.mrb[45].mxu1 }
 0x221   : > { %v1560_v46 = vadd.f32 %v1559_v45, %v9464_v44  ;;  %v1561_v47 = vpop.f32.mrb[46].mxu1  ;;  %2296 = vmatprep.mubr.bf16.mxu0 %v1915_v41 }
 0x222   : > { %v1562_v48 = vadd.f32 %v1561_v47, %v9460_v42  ;;  %v1563_v49 = vpop.f32.mrb[47].mxu1  ;;  %2297 = vmatmul.mubr.bf16.gmra.mrb[168].mxu0 %v1914_v39  ;;  %v1810_v53 = vmax.f32 %v1558_v43, 0.0  ;;  %v8648_v47 = vld [vmem:[%s11368_s3 + $0x330] ss:$8 sps:$4 sm:$0xff]  }
 0x223   : > { %v1564_v52 = vadd.f32 %v1563_v49, %v9464_v44  ;;  %v1811_v30 = vmax.f32 %v1560_v46, 0.0 }
 0x224   : > { %v1812_v54 = vmax.f32 %v1562_v48, 0.0  ;;  %v8650_v48 = vld [vmem:[%s11368_s3 + $0x334] ss:$8 sps:$4 sm:$0xff]  }
 0x225   : > { %v1813_v55 = vmax.f32 %v1564_v52, 0.0  ;;  %3672 = vmatprep.subr.bf16.mxu0 %v8650_v48  ;;  %v8654_v48 = vld [vmem:[%s11368_s3 + $0x350] ss:$8 sps:$4 sm:$0xff]  }
 0x226   : > { %v1916_v56 = vpack.c.bf16 %v1812_v54, %v1810_v53  ;;  %3673 = vmatpush1.bf16.msra.mxu0 %v8648_v47 }
 0x227   : > { %v1567_v31 = vpop.f32.mrb[48].mxu1  ;;  %v1917_v57 = vpack.c.bf16 %v1813_v55, %v1811_v30 }
 0x228   : > { %v1568_v58 = vadd.f32 %v1567_v31, %v9460_v42  ;;  %v1569_v59 = vpop.f32.mrb[49].mxu1 }
 0x229   : > { %v1570_v60 = vadd.f32 %v1569_v59, %v9464_v44  ;;  %v1571_v61 = vpop.f32.mrb[50].mxu1  ;;  %2306 = vmatprep.mubr.bf16.mxu0 %v1917_v57 }
 0x22a   : > { %v1572_v62 = vadd.f32 %v1571_v61, %v9460_v42  ;;  %v1573_v63 = vpop.f32.mrb[51].mxu1  ;;  %2307 = vmatmul.mubr.bf16.gmra.mrb[172].mxu0 %v1916_v56  ;;  %v1814_v1 = vmax.f32 %v1568_v58, 0.0 }
 0x22b   : > { %v1574_v0 = vadd.f32 %v1573_v63, %v9464_v44  ;;  %v1815_v4 = vmax.f32 %v1570_v60, 0.0 }
 0x22c   : > { %v1816_v3 = vmax.f32 %v1572_v62, 0.0 }
 0x22d   : > { %v1817_v5 = vmax.f32 %v1574_v0, 0.0 }
 0x22e   : > { %v1918_v6 = vpack.c.bf16 %v1816_v3, %v1814_v1 }
 0x22f   : > { %v1577_v7 = vpop.f32.mrb[52].mxu1  ;;  %v1919_v8 = vpack.c.bf16 %v1817_v5, %v1815_v4 }
 0x230   : > { %v1578_v9 = vadd.f32 %v1577_v7, %v9460_v42  ;;  %v1579_v10 = vpop.f32.mrb[53].mxu1 }
 0x231   : > { %v1580_v13 = vadd.f32 %v1579_v10, %v9464_v44  ;;  %v1581_v14 = vpop.f32.mrb[54].mxu1  ;;  %2316 = vmatprep.mubr.bf16.mxu0 %v1919_v8 }
 0x232   : > { %v1582_v15 = vadd.f32 %v1581_v14, %v9460_v42  ;;  %v1583_v16 = vpop.f32.mrb[55].mxu1  ;;  %2317 = vmatmul.mubr.bf16.gmra.mrb[176].mxu0 %v1918_v6  ;;  %v1818_v18 = vmax.f32 %v1578_v9, 0.0 }
 0x233   : > { %v1584_v17 = vadd.f32 %v1583_v16, %v9464_v44  ;;  %v1819_v20 = vmax.f32 %v1580_v13, 0.0  ;;  %v8653_v13 = vld [vmem:[%s11368_s3 + $0x344] ss:$8 sps:$4 sm:$0xff]  }
 0x234   : > { %v1820_v19 = vmax.f32 %v1582_v15, 0.0  ;;  %3674 = vmatprep.subr.bf16.mxu0 %v8653_v13  ;;  %v8657_v13 = vld [vmem:[%s11368_s3 + $0x360] ss:$8 sps:$4 sm:$0xff]  }
 0x235   : > { %v1821_v21 = vmax.f32 %v1584_v17, 0.0  ;;  %3675 = vmatpush1.bf16.msra.mxu0 %v8651_v12 }
 0x236   : > { %v1920_v22 = vpack.c.bf16 %v1820_v19, %v1818_v18 }
 0x237   : > { %v1587_v23 = vpop.f32.mrb[56].mxu1  ;;  %v1921_v24 = vpack.c.bf16 %v1821_v21, %v1819_v20 }
 0x238   : > { %v1588_v26 = vadd.f32 %v1587_v23, %v9460_v42  ;;  %v1589_v28 = vpop.f32.mrb[57].mxu1 }
 0x239   : > { %v1590_v29 = vadd.f32 %v1589_v28, %v9464_v44  ;;  %v1591_v32 = vpop.f32.mrb[58].mxu1  ;;  %2326 = vmatprep.mubr.bf16.mxu0 %v1921_v24 }
 0x23a   : > { %v1592_v33 = vadd.f32 %v1591_v32, %v9460_v42  ;;  %v1593_v34 = vpop.f32.mrb[59].mxu1  ;;  %2327 = vmatmul.mubr.bf16.gmra.mrb[180].mxu0 %v1920_v22  ;;  %v1822_v36 = vmax.f32 %v1588_v26, 0.0 }
 0x23b   : > { %v1594_v35 = vadd.f32 %v1593_v34, %v9464_v44  ;;  %v1823_v38 = vmax.f32 %v1590_v29, 0.0 }
 0x23c   : > { %v1824_v37 = vmax.f32 %v1592_v33, 0.0 }
 0x23d   : > { %v1825_v39 = vmax.f32 %v1594_v35, 0.0 }
 0x23e   : > { %v1922_v40 = vpack.c.bf16 %v1824_v37, %v1822_v36 }
 0x23f   : > { %v1597_v41 = vpop.f32.mrb[60].mxu1  ;;  %v1923_v43 = vpack.c.bf16 %v1825_v39, %v1823_v38 }
 0x240   : > { %v1598_v45 = vadd.f32 %v1597_v41, %v9460_v42  ;;  %v1599_v46 = vpop.f32.mrb[61].mxu1 }
 0x241   : > { %v1600_v49 = vadd.f32 %v1599_v46, %v9464_v44  ;;  %v1601_v50 = vpop.f32.mrb[62].mxu1  ;;  %2336 = vmatprep.mubr.bf16.mxu0 %v1923_v43 }
 0x242   : > { %v1602_v51 = vadd.f32 %v1601_v50, %v9460_v42  ;;  %v1603_v52 = vpop.f32.mrb[63].mxu1  ;;  %2337 = vmatmul.mubr.bf16.gmra.mrb[184].mxu0 %v1922_v40  ;;  %v1826_v54 = vmax.f32 %v1598_v45, 0.0 }
 0x243   : > { %v1604_v53 = vadd.f32 %v1603_v52, %v9464_v44  ;;  %v1827_v55 = vmax.f32 %v1600_v49, 0.0  ;;  %v8656_v49 = vld [vmem:[%s11368_s3 + $0x354] ss:$8 sps:$4 sm:$0xff]  }
 0x244   : > { %v1828_v30 = vmax.f32 %v1602_v51, 0.0  ;;  %3676 = vmatprep.subr.bf16.mxu0 %v8656_v49  ;;  %v8660_v49 = vld [vmem:[%s11368_s3 + $0x370] ss:$8 sps:$4 sm:$0xff]  }
 0x245   : > { %v1829_v56 = vmax.f32 %v1604_v53, 0.0  ;;  %3677 = vmatpush1.bf16.msra.mxu0 %v8654_v48 }
 0x246   : > { %v1924_v31 = vpack.c.bf16 %v1828_v30, %v1826_v54 }
 0x247   : > { %v1607_v57 = vpop.f32.mrb[64].mxu1  ;;  %v1925_v58 = vpack.c.bf16 %v1829_v56, %v1827_v55 }
 0x248   : > { %v1608_v59 = vadd.f32 %v1607_v57, %v9460_v42  ;;  %v1609_v60 = vpop.f32.mrb[65].mxu1 }
 0x249   : > { %v1610_v61 = vadd.f32 %v1609_v60, %v9464_v44  ;;  %v1611_v62 = vpop.f32.mrb[66].mxu1  ;;  %2346 = vmatprep.mubr.bf16.mxu0 %v1925_v58 }
 0x24a   : > { %v1612_v63 = vadd.f32 %v1611_v62, %v9460_v42  ;;  %v1613_v0 = vpop.f32.mrb[67].mxu1  ;;  %2347 = vmatmul.mubr.bf16.gmra.mrb[188].mxu0 %v1924_v31  ;;  %v1830_v3 = vmax.f32 %v1608_v59, 0.0 }
 0x24b   : > { %v1614_v1 = vadd.f32 %v1613_v0, %v9464_v44  ;;  %v1831_v5 = vmax.f32 %v1610_v61, 0.0 }
 0x24c   : > { %v1832_v4 = vmax.f32 %v1612_v63, 0.0 }
 0x24d   : > { %v1833_v6 = vmax.f32 %v1614_v1, 0.0 }
 0x24e   : > { %v1926_v7 = vpack.c.bf16 %v1832_v4, %v1830_v3 }
 0x24f   : > { %v1617_v8 = vpop.f32.mrb[68].mxu1  ;;  %v1927_v9 = vpack.c.bf16 %v1833_v6, %v1831_v5 }
 0x250   : > { %v1618_v10 = vadd.f32 %v1617_v8, %v9460_v42  ;;  %v1619_v11 = vpop.f32.mrb[69].mxu1 }
 0x251   : > { %v1620_v14 = vadd.f32 %v1619_v11, %v9464_v44  ;;  %v1621_v15 = vpop.f32.mrb[70].mxu1  ;;  %2356 = vmatprep.mubr.bf16.mxu0 %v1927_v9 }
 0x252   : > { %v1622_v16 = vadd.f32 %v1621_v15, %v9460_v42  ;;  %v1623_v17 = vpop.f32.mrb[71].mxu1  ;;  %2357 = vmatmul.mubr.bf16.gmra.mrb[192].mxu0 %v1926_v7  ;;  %v1834_v19 = vmax.f32 %v1618_v10, 0.0 }
 0x253   : > { %v1624_v18 = vadd.f32 %v1623_v17, %v9464_v44  ;;  %v1835_v21 = vmax.f32 %v1620_v14, 0.0  ;;  %v8659_v14 = vld [vmem:[%s11368_s3 + $0x364] ss:$8 sps:$4 sm:$0xff]  }
 0x254   : > { %v1836_v20 = vmax.f32 %v1622_v16, 0.0  ;;  %3678 = vmatprep.subr.bf16.mxu0 %v8659_v14  ;;  %v8663_v14 = vld [vmem:[%s11368_s3 + $0x380] ss:$8 sps:$4 sm:$0xff]  }
 0x255   : > { %v1837_v22 = vmax.f32 %v1624_v18, 0.0  ;;  %3679 = vmatpush1.bf16.msra.mxu0 %v8657_v13 }
 0x256   : > { %v1928_v23 = vpack.c.bf16 %v1836_v20, %v1834_v19 }
 0x257   : > { %v1627_v24 = vpop.f32.mrb[72].mxu1  ;;  %v1929_v26 = vpack.c.bf16 %v1837_v22, %v1835_v21 }
 0x258   : > { %v1628_v28 = vadd.f32 %v1627_v24, %v9460_v42  ;;  %v1629_v29 = vpop.f32.mrb[73].mxu1 }
 0x259   : > { %v1630_v32 = vadd.f32 %v1629_v29, %v9464_v44  ;;  %v1631_v33 = vpop.f32.mrb[74].mxu1  ;;  %2366 = vmatprep.mubr.bf16.mxu0 %v1929_v26 }
 0x25a   : > { %v1632_v34 = vadd.f32 %v1631_v33, %v9460_v42  ;;  %v1633_v35 = vpop.f32.mrb[75].mxu1  ;;  %2367 = vmatmul.mubr.bf16.gmra.mrb[196].mxu0 %v1928_v23  ;;  %v1838_v37 = vmax.f32 %v1628_v28, 0.0 }
 0x25b   : > { %v1634_v36 = vadd.f32 %v1633_v35, %v9464_v44  ;;  %v1839_v39 = vmax.f32 %v1630_v32, 0.0 }
 0x25c   : > { %v1840_v38 = vmax.f32 %v1632_v34, 0.0 }
 0x25d   : > { %v1841_v40 = vmax.f32 %v1634_v36, 0.0 }
 0x25e   : > { %v1930_v41 = vpack.c.bf16 %v1840_v38, %v1838_v37 }
 0x25f   : > { %v1637_v43 = vpop.f32.mrb[76].mxu1  ;;  %v1931_v45 = vpack.c.bf16 %v1841_v40, %v1839_v39 }
 0x260   : > { %v1638_v46 = vadd.f32 %v1637_v43, %v9460_v42  ;;  %v1639_v47 = vpop.f32.mrb[77].mxu1 }
 0x261   : > { %v1640_v50 = vadd.f32 %v1639_v47, %v9464_v44  ;;  %v1641_v51 = vpop.f32.mrb[78].mxu1  ;;  %2376 = vmatprep.mubr.bf16.mxu0 %v1931_v45 }
 0x262   : > { %v1642_v52 = vadd.f32 %v1641_v51, %v9460_v42  ;;  %v1643_v53 = vpop.f32.mrb[79].mxu1  ;;  %2377 = vmatmul.mubr.bf16.gmra.mrb[200].mxu0 %v1930_v41  ;;  %v1842_v30 = vmax.f32 %v1638_v46, 0.0 }
 0x263   : > { %v1644_v54 = vadd.f32 %v1643_v53, %v9464_v44  ;;  %v1843_v56 = vmax.f32 %v1640_v50, 0.0  ;;  %v8662_v50 = vld [vmem:[%s11368_s3 + $0x374] ss:$8 sps:$4 sm:$0xff]  }
 0x264   : > { %v1844_v55 = vmax.f32 %v1642_v52, 0.0  ;;  %3680 = vmatprep.subr.bf16.mxu0 %v8662_v50 }
 0x265   : > { %v1845_v31 = vmax.f32 %v1644_v54, 0.0  ;;  %3681 = vmatpush1.bf16.msra.mxu0 %v8660_v49 }
 0x266   : > { %v1932_v57 = vpack.c.bf16 %v1844_v55, %v1842_v30 }
 0x267   : > { %v1647_v58 = vpop.f32.mrb[80].mxu1  ;;  %v1933_v59 = vpack.c.bf16 %v1845_v31, %v1843_v56 }
 0x268   : > { %v1648_v60 = vadd.f32 %v1647_v58, %v9460_v42  ;;  %v1649_v61 = vpop.f32.mrb[81].mxu1 }
 0x269   : > { %v1650_v62 = vadd.f32 %v1649_v61, %v9464_v44  ;;  %v1651_v63 = vpop.f32.mrb[82].mxu1  ;;  %2386 = vmatprep.mubr.bf16.mxu0 %v1933_v59 }
 0x26a   : > { %v1652_v0 = vadd.f32 %v1651_v63, %v9460_v42  ;;  %v1653_v1 = vpop.f32.mrb[83].mxu1  ;;  %2387 = vmatmul.mubr.bf16.gmra.mrb[204].mxu0 %v1932_v57  ;;  %v1846_v4 = vmax.f32 %v1648_v60, 0.0 }
 0x26b   : > { %v1654_v3 = vadd.f32 %v1653_v1, %v9464_v44  ;;  %v1847_v6 = vmax.f32 %v1650_v62, 0.0 }
 0x26c   : > { %v1848_v5 = vmax.f32 %v1652_v0, 0.0 }
 0x26d   : > { %v1849_v7 = vmax.f32 %v1654_v3, 0.0 }
 0x26e   : > { %v1934_v8 = vpack.c.bf16 %v1848_v5, %v1846_v4 }
 0x26f   : > { %v1657_v9 = vpop.f32.mrb[84].mxu1  ;;  %v1935_v10 = vpack.c.bf16 %v1849_v7, %v1847_v6 }
 0x270   : > { %v1658_v11 = vadd.f32 %v1657_v9, %v9460_v42  ;;  %v1659_v12 = vpop.f32.mrb[85].mxu1 }
 0x271   : > { %v1660_v15 = vadd.f32 %v1659_v12, %v9464_v44  ;;  %v1661_v16 = vpop.f32.mrb[86].mxu1  ;;  %2396 = vmatprep.mubr.bf16.mxu0 %v1935_v10 }
 0x272   : > { %v1662_v17 = vadd.f32 %v1661_v16, %v9460_v42  ;;  %v1663_v18 = vpop.f32.mrb[87].mxu1  ;;  %2397 = vmatmul.mubr.bf16.gmra.mrb[208].mxu0 %v1934_v8  ;;  %v1850_v20 = vmax.f32 %v1658_v11, 0.0 }
 0x273   : > { %v1664_v19 = vadd.f32 %v1663_v18, %v9464_v44  ;;  %v1851_v22 = vmax.f32 %v1660_v15, 0.0  ;;  %v8665_v15 = vld [vmem:[%s11368_s3 + $0x384] ss:$8 sps:$4 sm:$0xff]  }
 0x274   : > { %v1852_v21 = vmax.f32 %v1662_v17, 0.0  ;;  %3682 = vmatprep.subr.bf16.mxu0 %v8665_v15 }
 0x275   : > { %v1853_v23 = vmax.f32 %v1664_v19, 0.0  ;;  %3683 = vmatpush1.bf16.msra.mxu0 %v8663_v14 }
 0x276   : > { %v1936_v24 = vpack.c.bf16 %v1852_v21, %v1850_v20 }
 0x277   : > { %v1667_v26 = vpop.f32.mrb[88].mxu1  ;;  %v1937_v28 = vpack.c.bf16 %v1853_v23, %v1851_v22 }
 0x278   : > { %v1668_v29 = vadd.f32 %v1667_v26, %v9460_v42  ;;  %v1669_v32 = vpop.f32.mrb[89].mxu1 }
 0x279   : > { %v1670_v33 = vadd.f32 %v1669_v32, %v9464_v44  ;;  %v1671_v34 = vpop.f32.mrb[90].mxu1  ;;  %2406 = vmatprep.mubr.bf16.mxu0 %v1937_v28 }
 0x27a   : > { %v1672_v35 = vadd.f32 %v1671_v34, %v9460_v42  ;;  %v1673_v36 = vpop.f32.mrb[91].mxu1  ;;  %2407 = vmatmul.mubr.bf16.gmra.mrb[212].mxu0 %v1936_v24  ;;  %v1854_v38 = vmax.f32 %v1668_v29, 0.0 }
 0x27b   : > { %v1674_v37 = vadd.f32 %v1673_v36, %v9464_v44  ;;  %v1855_v40 = vmax.f32 %v1670_v33, 0.0 }
 0x27c   : > { %v1856_v39 = vmax.f32 %v1672_v35, 0.0 }
 0x27d   : > { %v1857_v41 = vmax.f32 %v1674_v37, 0.0 }
 0x27e   : > { %v1938_v43 = vpack.c.bf16 %v1856_v39, %v1854_v38 }
 0x27f   : > { %v1677_v45 = vpop.f32.mrb[92].mxu1  ;;  %v1939_v46 = vpack.c.bf16 %v1857_v41, %v1855_v40 }
 0x280   : > { %v1678_v47 = vadd.f32 %v1677_v45, %v9460_v42  ;;  %v1679_v48 = vpop.f32.mrb[93].mxu1 }
 0x281   : > { %v1680_v51 = vadd.f32 %v1679_v48, %v9464_v44  ;;  %v1681_v52 = vpop.f32.mrb[94].mxu1  ;;  %2416 = vmatprep.mubr.bf16.mxu0 %v1939_v46  ;;  %v7968_v48 = vld [vmem:[%s11369_s4 + $0x2] sm:$0x3] }
 0x282   : > { %v1682_v53 = vadd.f32 %v1681_v52, %v9460_v42  ;;  %v1683_v54 = vpop.f32.mrb[95].mxu1  ;;  %2417 = vmatmul.mubr.bf16.gmra.mrb[216].mxu0 %v1938_v43  ;;  %v1858_v55 = vmax.f32 %v1678_v47, 0.0  ;;  %v8668_v52 = vld [vmem:[%s11368_s3 + $0x394] ss:$8 sps:$4 sm:$0xff]  }
 0x283   : > { %v1684_v30 = vadd.f32 %v1683_v54, %v9464_v44  ;;  %v1859_v31 = vmax.f32 %v1680_v51, 0.0  ;;  %v8666_v51 = vld [vmem:[%s11368_s3 + $0x390] ss:$8 sps:$4 sm:$0xff]   ;;  %3684 = vmatprep.subr.bf16.mxu0 %v8668_v52 }
 0x284   : > { %v1860_v56 = vmax.f32 %v1682_v53, 0.0  ;;  %3685 = vmatpush1.bf16.msra.mxu0 %v8666_v51 }
 0x285   : > { %v1861_v57 = vmax.f32 %v1684_v30, 0.0 }
 0x286   : > { %v1940_v58 = vpack.c.bf16 %v1860_v56, %v1858_v55  ;;  %v9693_v56 = vrot.slane %v7968_v48, %v9214_v25 }
 0x287   : > { %v1687_v59 = vpop.f32.mrb[96].mxu1  ;;  %v1941_v60 = vpack.c.bf16 %v1861_v57, %v1859_v31  ;;  %v9697_v57 = vrot.slane %v7968_v48, %v9219_v27 }
 0x288   : > { %v1688_v61 = vadd.f32 %v1687_v59, %v9460_v42  ;;  %v1689_v62 = vpop.f32.mrb[97].mxu1 }
 0x289   : > { %v1690_v63 = vadd.f32 %v1689_v62, %v9464_v44  ;;  %v1691_v0 = vpop.f32.mrb[98].mxu1  ;;  %2426 = vmatprep.mubr.bf16.mxu0 %v1941_v60 }
 0x28a   : > { %v1692_v1 = vadd.f32 %v1691_v0, %v9460_v42  ;;  %v1693_v3 = vpop.f32.mrb[99].mxu1  ;;  %2427 = vmatmul.mubr.bf16.gmra.mrb[220].mxu0 %v1940_v58  ;;  %v1862_v5 = vmax.f32 %v1688_v61, 0.0 }
 0x28b   : > { %v1694_v4 = vadd.f32 %v1693_v3, %v9464_v44  ;;  %v1863_v7 = vmax.f32 %v1690_v63, 0.0 }
 0x28c   : > { %v1864_v6 = vmax.f32 %v1692_v1, 0.0 }
 0x28d   : > { %v1865_v8 = vmax.f32 %v1694_v4, 0.0 }
 0x28e   : > { %v1942_v9 = vpack.c.bf16 %v1864_v6, %v1862_v5 }
 0x28f   : > { %v1697_v10 = vpop.f32.mrb[100].mxu1  ;;  %v1943_v11 = vpack.c.bf16 %v1865_v8, %v1863_v7 }
 0x290   : > { %v1698_v12 = vadd.f32 %v1697_v10, %v9460_v42  ;;  %v1699_v13 = vpop.f32.mrb[101].mxu1 }
 0x291   : > { %v1700_v16 = vadd.f32 %v1699_v13, %v9464_v44  ;;  %v1701_v17 = vpop.f32.mrb[102].mxu1  ;;  %2436 = vmatprep.mubr.bf16.mxu0 %v1943_v11 }
 0x292   : > { %v1702_v18 = vadd.f32 %v1701_v17, %v9460_v42  ;;  %v1703_v19 = vpop.f32.mrb[103].mxu1  ;;  %2437 = vmatmul.mubr.bf16.gmra.mrb[224].mxu0 %v1942_v9  ;;  %v1866_v21 = vmax.f32 %v1698_v12, 0.0 }
 0x293   : > { %v1704_v20 = vadd.f32 %v1703_v19, %v9464_v44  ;;  %v1867_v23 = vmax.f32 %v1700_v16, 0.0 }
 0x294   : > { %v1868_v22 = vmax.f32 %v1702_v18, 0.0 }
 0x295   : > { %v1869_v24 = vmax.f32 %v1704_v20, 0.0 }
 0x296   : > { %v1944_v26 = vpack.c.bf16 %v1868_v22, %v1866_v21 }
 0x297   : > { %v1707_v28 = vpop.f32.mrb[104].mxu1  ;;  %v1945_v29 = vpack.c.bf16 %v1869_v24, %v1867_v23 }
 0x298   : > { %v1708_v32 = vadd.f32 %v1707_v28, %v9460_v42  ;;  %v1709_v33 = vpop.f32.mrb[105].mxu1 }
 0x299   : > { %v1710_v34 = vadd.f32 %v1709_v33, %v9464_v44  ;;  %v1711_v35 = vpop.f32.mrb[106].mxu1  ;;  %2446 = vmatprep.mubr.bf16.mxu0 %v1945_v29 }
 0x29a   : > { %v1712_v36 = vadd.f32 %v1711_v35, %v9460_v42  ;;  %v1713_v37 = vpop.f32.mrb[107].mxu1  ;;  %2447 = vmatmul.mubr.bf16.gmra.mrb[228].mxu0 %v1944_v26  ;;  %v1870_v39 = vmax.f32 %v1708_v32, 0.0 }
 0x29b   : > { %v1714_v38 = vadd.f32 %v1713_v37, %v9464_v44  ;;  %v1871_v41 = vmax.f32 %v1710_v34, 0.0 }
 0x29c   : > { %v1872_v40 = vmax.f32 %v1712_v36, 0.0 }
 0x29d   : > { %v1873_v43 = vmax.f32 %v1714_v38, 0.0 }
 0x29e   : > { %v1946_v45 = vpack.c.bf16 %v1872_v40, %v1870_v39 }
 0x29f   : > { %v1717_v46 = vpop.f32.mrb[108].mxu1  ;;  %v1947_v47 = vpack.c.bf16 %v1873_v43, %v1871_v41 }
 0x2a0   : > { %v1718_v49 = vadd.f32 %v1717_v46, %v9460_v42  ;;  %v1719_v50 = vpop.f32.mrb[109].mxu1 }
 0x2a1   : > { %v1720_v53 = vadd.f32 %v1719_v50, %v9464_v44  ;;  %v1721_v54 = vpop.f32.mrb[110].mxu1  ;;  %2456 = vmatprep.mubr.bf16.mxu0 %v1947_v47 }
 0x2a2   : > { %v1722_v30 = vadd.f32 %v1721_v54, %v9460_v42  ;;  %v1723_v55 = vpop.f32.mrb[111].mxu1  ;;  %2457 = vmatmul.mubr.bf16.gmra.mrb[232].mxu0 %v1946_v45  ;;  %v1874_v58 = vmax.f32 %v1718_v49, 0.0  ;;  %v8669_v45 = vld [vmem:[%s11368_s3 + $0x3a0] ss:$8 sps:$4 sm:$0xff]   ;;  %v8671_v49 = vld [vmem:[%s11368_s3 + $0x3a4] ss:$8 sps:$4 sm:$0xff]  }
 0x2a3   : > { %v1724_v31 = vadd.f32 %v1723_v55, %v9464_v44  ;;  %v1875_v60 = vmax.f32 %v1720_v53, 0.0  ;;  %3686 = vmatprep.subr.bf16.mxu0 %v8671_v49 }
 0x2a4   : > { %v1876_v59 = vmax.f32 %v1722_v30, 0.0  ;;  %3687 = vmatpush1.bf16.msra.mxu0 %v8669_v45 }
 0x2a5   : > { %v1877_v61 = vmax.f32 %v1724_v31, 0.0  ;;  %v2198_v62 = vpop.f32.mrb[128].mxu0 }
 0x2a6   : > { %v2199_v63 = vadd.f32 %v2198_v62, %v9693_v56  ;;  %v2200_v0 = vpop.f32.mrb[129].mxu0  ;;  %v1948_v1 = vpack.c.bf16 %v1876_v59, %v1874_v58 }
 0x2a7   : > { %v2201_v3 = vadd.f32 %v2200_v0, %v9697_v57  ;;  %v1727_v4 = vpop.f32.mrb[112].mxu1  ;;  %v2202_v5 = vpop.f32.mrb[130].mxu0  ;;  %v1949_v6 = vpack.c.bf16 %v1877_v61, %v1875_v60 }
 0x2a8   : > { %v1728_v7 = vadd.f32 %v1727_v4, %v9460_v42  ;;  %v2203_v8 = vadd.f32 %v2202_v5, %v9693_v56  ;;  %v1729_v9 = vpop.f32.mrb[113].mxu1  ;;  %v2204_v10 = vpop.f32.mrb[131].mxu0  ;;  %v2517_v14 = vmax.f32 %v2199_v63, 0.0 }
 0x2a9   : > { %v1730_v11 = vadd.f32 %v1729_v9, %v9464_v44  ;;  %v2205_v12 = vadd.f32 %v2204_v10, %v9697_v57  ;;  %v1731_v13 = vpop.f32.mrb[114].mxu1  ;;  %2466 = vmatprep.mubr.bf16.mxu0 %v1949_v6  ;;  %v2518_v18 = vmax.f32 %v2201_v3, 0.0 }
 0x2aa   : > { %v2519_v15 = vmax.f32 %v2203_v8, 0.0  ;;  %v1732_v16 = vadd.f32 %v1731_v13, %v9460_v42  ;;  %v1733_v17 = vpop.f32.mrb[115].mxu1  ;;  %2467 = vmatmul.mubr.bf16.gmra.mrb[236].mxu0 %v1948_v1  ;;  %v1878_v21 = vmax.f32 %v1728_v7, 0.0 }
 0x2ab   : > { %v2520_v19 = vmax.f32 %v2205_v12, 0.0  ;;  %v1734_v20 = vadd.f32 %v1733_v17, %v9464_v44  ;;  %v1879_v24 = vmax.f32 %v1730_v11, 0.0 }
 0x2ac   : > { %v2645_v22 = vpack.c.bf16 %v2519_v15, %v2517_v14  ;;  %v1880_v23 = vmax.f32 %v1732_v16, 0.0 }
 0x2ad   : > { %v1881_v26 = vmax.f32 %v1734_v20, 0.0  ;;  %v2208_v28 = vpop.f32.mrb[132].mxu0  ;;  %v2646_v29 = vpack.c.bf16 %v2520_v19, %v2518_v18 }
 0x2ae   : > { %v2209_v32 = vadd.f32 %v2208_v28, %v9693_v56  ;;  %v2210_v33 = vpop.f32.mrb[133].mxu0  ;;  %v1950_v34 = vpack.c.bf16 %v1880_v23, %v1878_v21 }
 0x2af   : > { %v2211_v35 = vadd.f32 %v2210_v33, %v9697_v57  ;;  %v1737_v36 = vpop.f32.mrb[116].mxu1  ;;  %v2212_v37 = vpop.f32.mrb[134].mxu0  ;;  %2947 = vmatprep.mubr.bf16.mxu1 %v2646_v29  ;;  %v1951_v38 = vpack.c.bf16 %v1881_v26, %v1879_v24 }
 0x2b0   : > { %v1738_v39 = vadd.f32 %v1737_v36, %v9460_v42  ;;  %v2213_v40 = vadd.f32 %v2212_v37, %v9693_v56  ;;  %v1739_v41 = vpop.f32.mrb[117].mxu1  ;;  %v2214_v43 = vpop.f32.mrb[135].mxu0  ;;  %2948 = vmatmul.mubr.bf16.vlgmr.msra.gmra.mrb[128].mxu1 %v2645_v22  ;;  %v2521_v50 = vmax.f32 %v2209_v32, 0.0 }
 0x2b1   : > { %v1740_v46 = vadd.f32 %v1739_v41, %v9464_v44  ;;  %v2215_v47 = vadd.f32 %v2214_v43, %v9697_v57  ;;  %v1741_v48 = vpop.f32.mrb[118].mxu1  ;;  %2476 = vmatprep.mubr.bf16.mxu0 %v1951_v38  ;;  %v2522_v54 = vmax.f32 %v2211_v35, 0.0 }
 0x2b2   : > { %v2523_v51 = vmax.f32 %v2213_v40, 0.0  ;;  %v1742_v52 = vadd.f32 %v1741_v48, %v9460_v42  ;;  %v1743_v53 = vpop.f32.mrb[119].mxu1  ;;  %2477 = vmatmul.mubr.bf16.gmra.mrb[240].mxu0 %v1950_v34  ;;  %v1882_v31 = vmax.f32 %v1738_v39, 0.0 }
 0x2b3   : > { %v2524_v30 = vmax.f32 %v2215_v47, 0.0  ;;  %v1744_v55 = vadd.f32 %v1743_v53, %v9464_v44  ;;  %v1883_v60 = vmax.f32 %v1740_v46, 0.0  ;;  %v8672_v46 = vld [vmem:[%s11368_s3 + $0x3b0] ss:$8 sps:$4 sm:$0xff]  }
 0x2b4   : > { %v1884_v58 = vmax.f32 %v1742_v52, 0.0  ;;  %v2647_v59 = vpack.c.bf16 %v2523_v51, %v2521_v50  ;;  %v8674_v50 = vld [vmem:[%s11368_s3 + $0x3b4] ss:$8 sps:$4 sm:$0xff]  }
 0x2b5   : > { %v1885_v61 = vmax.f32 %v1744_v55, 0.0  ;;  %v2218_v62 = vpop.f32.mrb[136].mxu0  ;;  %v2648_v63 = vpack.c.bf16 %v2524_v30, %v2522_v54  ;;  %3688 = vmatprep.subr.bf16.mxu0 %v8674_v50 }
 0x2b6   : > { %v2219_v0 = vadd.f32 %v2218_v62, %v9693_v56  ;;  %v2220_v1 = vpop.f32.mrb[137].mxu0  ;;  %v1952_v3 = vpack.c.bf16 %v1884_v58, %v1882_v31  ;;  %3689 = vmatpush1.bf16.msra.mxu0 %v8672_v46 }
 0x2b7   : > { %v2221_v4 = vadd.f32 %v2220_v1, %v9697_v57  ;;  %v1747_v5 = vpop.f32.mrb[120].mxu1  ;;  %v2222_v6 = vpop.f32.mrb[138].mxu0  ;;  %2957 = vmatprep.mubr.bf16.mxu1 %v2648_v63  ;;  %v1953_v7 = vpack.c.bf16 %v1885_v61, %v1883_v60 }
 0x2b8   : > { %v1748_v8 = vadd.f32 %v1747_v5, %v9460_v42  ;;  %v2223_v9 = vadd.f32 %v2222_v6, %v9693_v56  ;;  %v1749_v10 = vpop.f32.mrb[121].mxu1  ;;  %v2224_v11 = vpop.f32.mrb[139].mxu0  ;;  %2958 = vmatmul.mubr.bf16.gmra.mrb[132].mxu1 %v2647_v59  ;;  %v2525_v15 = vmax.f32 %v2219_v0, 0.0 }
 0x2b9   : > { %v1750_v12 = vadd.f32 %v1749_v10, %v9464_v44  ;;  %v2225_v13 = vadd.f32 %v2224_v11, %v9697_v57  ;;  %v1751_v14 = vpop.f32.mrb[122].mxu1  ;;  %2486 = vmatprep.mubr.bf16.mxu0 %v1953_v7  ;;  %v2526_v19 = vmax.f32 %v2221_v4, 0.0 }
 0x2ba   : > { %v2527_v16 = vmax.f32 %v2223_v9, 0.0  ;;  %v1752_v17 = vadd.f32 %v1751_v14, %v9460_v42  ;;  %v1753_v18 = vpop.f32.mrb[123].mxu1  ;;  %2487 = vmatmul.mubr.bf16.gmra.mrb[244].mxu0 %v1952_v3  ;;  %v1886_v22 = vmax.f32 %v1748_v8, 0.0 }
 0x2bb   : > { %v2528_v20 = vmax.f32 %v2225_v13, 0.0  ;;  %v1754_v21 = vadd.f32 %v1753_v18, %v9464_v44  ;;  %v1887_v26 = vmax.f32 %v1750_v12, 0.0 }
 0x2bc   : > { %v1888_v23 = vmax.f32 %v1752_v17, 0.0  ;;  %v2649_v24 = vpack.c.bf16 %v2527_v16, %v2525_v15 }
 0x2bd   : > { %v1889_v28 = vmax.f32 %v1754_v21, 0.0  ;;  %v2228_v29 = vpop.f32.mrb[140].mxu0  ;;  %v2650_v32 = vpack.c.bf16 %v2528_v20, %v2526_v19 }
 0x2be   : > { %v2229_v33 = vadd.f32 %v2228_v29, %v9693_v56  ;;  %v2230_v34 = vpop.f32.mrb[141].mxu0  ;;  %v1954_v35 = vpack.c.bf16 %v1888_v23, %v1886_v22  ;;  %v8675_v22 = vld [vmem:[%s11368_s3 + $0x3c0] ss:$8 sps:$4 sm:$0xff]   ;;  %v8677_v23 = vld [vmem:[%s11368_s3 + $0x3c4] ss:$8 sps:$4 sm:$0xff]  }
 0x2bf   : > { %v2231_v36 = vadd.f32 %v2230_v34, %v9697_v57  ;;  %v1757_v37 = vpop.f32.mrb[124].mxu1  ;;  %v2232_v38 = vpop.f32.mrb[142].mxu0  ;;  %2967 = vmatprep.mubr.bf16.mxu1 %v2650_v32  ;;  %v1955_v39 = vpack.c.bf16 %v1889_v28, %v1887_v26  ;;  %3690 = vmatprep.subr.bf16.mxu0 %v8677_v23 }
 0x2c0   : > { %v1758_v40 = vadd.f32 %v1757_v37, %v9460_v42  ;;  %v2233_v41 = vadd.f32 %v2232_v38, %v9693_v56  ;;  %v1759_v43 = vpop.f32.mrb[125].mxu1  ;;  %v2234_v45 = vpop.f32.mrb[143].mxu0  ;;  %2968 = vmatmul.mubr.bf16.gmra.mrb[136].mxu1 %v2649_v24  ;;  %v2529_v51 = vmax.f32 %v2229_v33, 0.0  ;;  %3691 = vmatpush1.bf16.msra.mxu0 %v8675_v22 }
 0x2c1   : > { %v1760_v47 = vadd.f32 %v1759_v43, %v9464_v44  ;;  %v2235_v48 = vadd.f32 %v2234_v45, %v9697_v57  ;;  %v1761_v49 = vpop.f32.mrb[126].mxu1  ;;  %2496 = vmatprep.mubr.bf16.mxu0 %v1955_v39  ;;  %v2530_v30 = vmax.f32 %v2231_v36, 0.0 }
 0x2c2   : > { %v2531_v52 = vmax.f32 %v2233_v41, 0.0  ;;  %v1762_v53 = vadd.f32 %v1761_v49, %v9460_v42  ;;  %v1763_v54 = vpop.f32.mrb[127].mxu1  ;;  %2497 = vmatmul.mubr.bf16.gmra.mrb[248].mxu0 %v1954_v35  ;;  %v1890_v58 = vmax.f32 %v1758_v40, 0.0 }
 0x2c3   : > { %v2532_v55 = vmax.f32 %v2235_v48, 0.0  ;;  %v1764_v31 = vadd.f32 %v1763_v54, %v9464_v44  ;;  %v1891_v61 = vmax.f32 %v1760_v47, 0.0 }
 0x2c4   : > { %v1892_v59 = vmax.f32 %v1762_v53, 0.0  ;;  %v2651_v60 = vpack.c.bf16 %v2531_v52, %v2529_v51 }
 0x2c5   : > { %v1893_v62 = vmax.f32 %v1764_v31, 0.0  ;;  %v2238_v63 = vpop.f32.mrb[144].mxu0  ;;  %v2652_v0 = vpack.c.bf16 %v2532_v55, %v2530_v30 }
 0x2c6   : > { %v2239_v1 = vadd.f32 %v2238_v63, %v9693_v56  ;;  %v2240_v3 = vpop.f32.mrb[145].mxu0  ;;  %v1956_v4 = vpack.c.bf16 %v1892_v59, %v1890_v58  ;;  %v8678_v58 = vld [vmem:[%s11368_s3 + $0x3d0] ss:$8 sps:$4 sm:$0xff]   ;;  %v8680_v59 = vld [vmem:[%s11368_s3 + $0x3d4] ss:$8 sps:$4 sm:$0xff]  }
 0x2c7   : > { %v2241_v42 = vadd.f32 %v2240_v3, %v9697_v57  ;;  %v2242_v5 = vpop.f32.mrb[146].mxu0  ;;  %2977 = vmatprep.mubr.bf16.mxu1 %v2652_v0  ;;  %v1957_v6 = vpack.c.bf16 %v1893_v62, %v1891_v61  ;;  %3692 = vmatprep.subr.bf16.mxu0 %v8680_v59 }
 0x2c8   : > { %v2243_v44 = vadd.f32 %v2242_v5, %v9693_v56  ;;  %v2244_v7 = vpop.f32.mrb[147].mxu0  ;;  %2978 = vmatmul.mubr.bf16.gmra.mrb[140].mxu1 %v2651_v60  ;;  %v2533_v9 = vmax.f32 %v2239_v1, 0.0  ;;  %3693 = vmatpush1.bf16.msra.mxu0 %v8678_v58 }
 0x2c9   : > { %v2245_v8 = vadd.f32 %v2244_v7, %v9697_v57  ;;  %2506 = vmatprep.mubr.bf16.mxu0 %v1957_v6  ;;  %v2534_v11 = vmax.f32 %v2241_v42, 0.0 }
 0x2ca   : > { %v2535_v10 = vmax.f32 %v2243_v44, 0.0  ;;  %2507 = vmatmul.mubr.bf16.gmra.mrb[252].mxu0 %v1956_v4 }
 0x2cb   : > { %v2536_v12 = vmax.f32 %v2245_v8, 0.0 }
 0x2cc   : > { %v2653_v13 = vpack.c.bf16 %v2535_v10, %v2533_v9 }
 0x2cd   : > { %v2248_v14 = vpop.f32.mrb[148].mxu0  ;;  %v2654_v15 = vpack.c.bf16 %v2536_v12, %v2534_v11 }
 0x2ce   : > { %v2249_v16 = vadd.f32 %v2248_v14, %v9693_v56  ;;  %v2250_v17 = vpop.f32.mrb[149].mxu0  ;;  %v8681_v14 = vld [vmem:[%s11368_s3 + $0x400] ss:$8 sps:$4 sm:$0xff]  }
 0x2cf   : > { %v2251_v18 = vadd.f32 %v2250_v17, %v9697_v57  ;;  %v2252_v19 = vpop.f32.mrb[150].mxu0  ;;  %2987 = vmatprep.mubr.bf16.mxu1 %v2654_v15  ;;  %v8683_v15 = vld [vmem:[%s11368_s3 + $0x404] ss:$8 sps:$4 sm:$0xff]  }
 0x2d0   : > { %v2253_v20 = vadd.f32 %v2252_v19, %v9693_v56  ;;  %v2254_v21 = vpop.f32.mrb[151].mxu0  ;;  %2988 = vmatmul.mubr.bf16.gmra.mrb[144].mxu1 %v2653_v13  ;;  %v2537_v26 = vmax.f32 %v2249_v16, 0.0  ;;  %4417 = vmatprep.subr.bf16.mxu1 %v8683_v15 }
 0x2d1   : > { %v2255_v24 = vadd.f32 %v2254_v21, %v9697_v57  ;;  %v2538_v29 = vmax.f32 %v2251_v18, 0.0  ;;  %4418 = vmatpush1.bf16.msra.mxu1 %v8681_v14 }
 0x2d2   : > { %v2539_v28 = vmax.f32 %v2253_v20, 0.0 }
 0x2d3   : > { %v2540_v32 = vmax.f32 %v2255_v24, 0.0 }
 0x2d4   : > { %v2655_v33 = vpack.c.bf16 %v2539_v28, %v2537_v26  ;;  %v8684_v26 = vld [vmem:[%s11368_s3 + $0x3e0] ss:$8 sps:$4 sm:$0xff]   ;;  %v8686_v28 = vld [vmem:[%s11368_s3 + $0x3e4] ss:$8 sps:$4 sm:$0xff]  }
 0x2d5   : > { %v2258_v34 = vpop.f32.mrb[152].mxu0  ;;  %v2656_v35 = vpack.c.bf16 %v2540_v32, %v2538_v29  ;;  %3694 = vmatprep.subr.bf16.mxu0 %v8686_v28 }
 0x2d6   : > { %v2259_v36 = vadd.f32 %v2258_v34, %v9693_v56  ;;  %v2260_v37 = vpop.f32.mrb[153].mxu0  ;;  %3695 = vmatpush1.bf16.msra.mxu0 %v8684_v26  ;;  %v8695_v26 = vld [vmem:[%s11368_s3 + $0x424] ss:$8 sps:$4 sm:$0xff]  }
 0x2d7   : > { %v2261_v38 = vadd.f32 %v2260_v37, %v9697_v57  ;;  %v2262_v39 = vpop.f32.mrb[154].mxu0  ;;  %2997 = vmatprep.mubr.bf16.mxu1 %v2656_v35 }
 0x2d8   : > { %v2263_v40 = vadd.f32 %v2262_v39, %v9693_v56  ;;  %v2264_v41 = vpop.f32.mrb[155].mxu0  ;;  %2998 = vmatmul.mubr.bf16.gmra.mrb[148].mxu1 %v2655_v33  ;;  %v2541_v45 = vmax.f32 %v2259_v36, 0.0 }
 0x2d9   : > { %v2265_v43 = vadd.f32 %v2264_v41, %v9697_v57  ;;  %v2542_v47 = vmax.f32 %v2261_v38, 0.0 }
 0x2da   : > { %v2543_v46 = vmax.f32 %v2263_v40, 0.0 }
 0x2db   : > { %v2544_v48 = vmax.f32 %v2265_v43, 0.0 }
 0x2dc   : > { %v2657_v49 = vpack.c.bf16 %v2543_v46, %v2541_v45 }
 0x2dd   : > { %v2268_v50 = vpop.f32.mrb[156].mxu0  ;;  %v2658_v51 = vpack.c.bf16 %v2544_v48, %v2542_v47 }
 0x2de   : > { %v2269_v52 = vadd.f32 %v2268_v50, %v9693_v56  ;;  %v2270_v53 = vpop.f32.mrb[157].mxu0 }
 0x2df   : > { %v2271_v54 = vadd.f32 %v2270_v53, %v9697_v57  ;;  %v2272_v30 = vpop.f32.mrb[158].mxu0  ;;  %3007 = vmatprep.mubr.bf16.mxu1 %v2658_v51  ;;  %v8689_v53 = vld [vmem:[%s11368_s3 + $0x414] ss:$8 sps:$4 sm:$0xff]  }
 0x2e0   : > { %v2273_v55 = vadd.f32 %v2272_v30, %v9693_v56  ;;  %v2274_v31 = vpop.f32.mrb[159].mxu0  ;;  %3008 = vmatmul.mubr.bf16.gmra.mrb[152].mxu1 %v2657_v49  ;;  %v2545_v61 = vmax.f32 %v2269_v52, 0.0  ;;  %v8687_v52 = vld [vmem:[%s11368_s3 + $0x410] ss:$8 sps:$4 sm:$0xff]   ;;  %4419 = vmatprep.subr.bf16.mxu1 %v8689_v53 }
 0x2e1   : > { %v2275_v60 = vadd.f32 %v2274_v31, %v9697_v57  ;;  %v2546_v63 = vmax.f32 %v2271_v54, 0.0  ;;  %4420 = vmatpush1.bf16.msra.mxu1 %v8687_v52 }
 0x2e2   : > { %v2547_v62 = vmax.f32 %v2273_v55, 0.0  ;;  %4421 = vmatprep.subr.bf16.mxu1 %v8695_v26  ;;  %v8699_v26 = vld [vmem:[%s11368_s3 + $0x440] ss:$8 sps:$4 sm:$0xff]  }
 0x2e3   : > { %v2548_v0 = vmax.f32 %v2275_v60, 0.0 }
 0x2e4   : > { %v2659_v1 = vpack.c.bf16 %v2547_v62, %v2545_v61 }
 0x2e5   : > { %v2278_v3 = vpop.f32.mrb[160].mxu0  ;;  %v2660_v4 = vpack.c.bf16 %v2548_v0, %v2546_v63  ;;  %v8690_v63 = vld [vmem:[%s11368_s3 + $0x3f0] ss:$8 sps:$4 sm:$0xff]   ;;  %v8692_v0 = vld [vmem:[%s11368_s3 + $0x3f4] ss:$8 sps:$4 sm:$0xff]  }
 0x2e6   : > { %v2279_v42 = vadd.f32 %v2278_v3, %v9693_v56  ;;  %v2280_v5 = vpop.f32.mrb[161].mxu0  ;;  %3696 = vmatprep.subr.bf16.mxu0 %v8692_v0 }
 0x2e7   : > { %v2281_v6 = vadd.f32 %v2280_v5, %v9697_v57  ;;  %v2282_v44 = vpop.f32.mrb[162].mxu0  ;;  %3017 = vmatprep.mubr.bf16.mxu1 %v2660_v4  ;;  %3697 = vmatpush1.bf16.msra.mxu0 %v8690_v63 }
 0x2e8   : > { %v2283_v7 = vadd.f32 %v2282_v44, %v9693_v56  ;;  %v2284_v8 = vpop.f32.mrb[163].mxu0  ;;  %3018 = vmatmul.mubr.bf16.gmra.mrb[156].mxu1 %v2659_v1  ;;  %v2549_v10 = vmax.f32 %v2279_v42, 0.0 }
 0x2e9   : > { %v2285_v9 = vadd.f32 %v2284_v8, %v9697_v57  ;;  %v2550_v12 = vmax.f32 %v2281_v6, 0.0 }
 0x2ea   : > { %v2551_v11 = vmax.f32 %v2283_v7, 0.0 }
 0x2eb   : > { %v2552_v13 = vmax.f32 %v2285_v9, 0.0 }
 0x2ec   : > { %v2661_v16 = vpack.c.bf16 %v2551_v11, %v2549_v10 }
 0x2ed   : > { %v2288_v17 = vpop.f32.mrb[164].mxu0  ;;  %v2662_v18 = vpack.c.bf16 %v2552_v13, %v2550_v12 }
 0x2ee   : > { %v2289_v19 = vadd.f32 %v2288_v17, %v9693_v56  ;;  %v2290_v20 = vpop.f32.mrb[165].mxu0 }
 0x2ef   : > { %v2291_v21 = vadd.f32 %v2290_v20, %v9697_v57  ;;  %v2292_v22 = vpop.f32.mrb[166].mxu0  ;;  %3027 = vmatprep.mubr.bf16.mxu1 %v2662_v18 }
 0x2f0   : > { %v2293_v23 = vadd.f32 %v2292_v22, %v9693_v56  ;;  %v2294_v24 = vpop.f32.mrb[167].mxu0  ;;  %3028 = vmatmul.mubr.bf16.gmra.mrb[160].mxu1 %v2661_v16  ;;  %v2553_v32 = vmax.f32 %v2289_v19, 0.0 }
 0x2f1   : > { %v2295_v29 = vadd.f32 %v2294_v24, %v9697_v57  ;;  %v2554_v34 = vmax.f32 %v2291_v21, 0.0  ;;  %v8693_v24 = vld [vmem:[%s11368_s3 + $0x420] ss:$8 sps:$4 sm:$0xff]  }
 0x2f2   : > { %v2555_v33 = vmax.f32 %v2293_v23, 0.0  ;;  %4422 = vmatpush1.bf16.msra.mxu1 %v8693_v24 }
 0x2f3   : > { %v2556_v35 = vmax.f32 %v2295_v29, 0.0 }
 0x2f4   : > { %v2663_v36 = vpack.c.bf16 %v2555_v33, %v2553_v32 }
 0x2f5   : > { %v2298_v37 = vpop.f32.mrb[168].mxu0  ;;  %v2664_v38 = vpack.c.bf16 %v2556_v35, %v2554_v34 }
 0x2f6   : > { %v2299_v39 = vadd.f32 %v2298_v37, %v9693_v56  ;;  %v2300_v40 = vpop.f32.mrb[169].mxu0 }
 0x2f7   : > { %v2301_v41 = vadd.f32 %v2300_v40, %v9697_v57  ;;  %v2302_v43 = vpop.f32.mrb[170].mxu0  ;;  %3037 = vmatprep.mubr.bf16.mxu1 %v2664_v38 }
 0x2f8   : > { %v2303_v45 = vadd.f32 %v2302_v43, %v9693_v56  ;;  %v2304_v46 = vpop.f32.mrb[171].mxu0  ;;  %3038 = vmatmul.mubr.bf16.gmra.mrb[164].mxu1 %v2663_v36  ;;  %v2557_v48 = vmax.f32 %v2299_v39, 0.0 }
 0x2f9   : > { %v2305_v47 = vadd.f32 %v2304_v46, %v9697_v57  ;;  %v2558_v50 = vmax.f32 %v2301_v41, 0.0 }
 0x2fa   : > { %v2559_v49 = vmax.f32 %v2303_v45, 0.0 }
 0x2fb   : > { %v2560_v51 = vmax.f32 %v2305_v47, 0.0 }
 0x2fc   : > { %v2665_v54 = vpack.c.bf16 %v2559_v49, %v2557_v48 }
 0x2fd   : > { %v2308_v30 = vpop.f32.mrb[172].mxu0  ;;  %v2666_v55 = vpack.c.bf16 %v2560_v51, %v2558_v50 }
 0x2fe   : > { %v2309_v31 = vadd.f32 %v2308_v30, %v9693_v56  ;;  %v2310_v58 = vpop.f32.mrb[173].mxu0 }
 0x2ff   : > { %v2311_v59 = vadd.f32 %v2310_v58, %v9697_v57  ;;  %v2312_v60 = vpop.f32.mrb[174].mxu0  ;;  %3047 = vmatprep.mubr.bf16.mxu1 %v2666_v55 }
 0x300   : > { %v2313_v61 = vadd.f32 %v2312_v60, %v9693_v56  ;;  %v2314_v62 = vpop.f32.mrb[175].mxu0  ;;  %3048 = vmatmul.mubr.bf16.gmra.mrb[168].mxu1 %v2665_v54  ;;  %v2561_v3 = vmax.f32 %v2309_v31, 0.0  ;;  %v8696_v60 = vld [vmem:[%s11368_s3 + $0x430] ss:$8 sps:$4 sm:$0xff]  }
 0x301   : > { %v2315_v1 = vadd.f32 %v2314_v62, %v9697_v57  ;;  %v2562_v42 = vmax.f32 %v2311_v59, 0.0 }
 0x302   : > { %v2563_v4 = vmax.f32 %v2313_v61, 0.0  ;;  %v8698_v61 = vld [vmem:[%s11368_s3 + $0x434] ss:$8 sps:$4 sm:$0xff]  }
 0x303   : > { %v2564_v5 = vmax.f32 %v2315_v1, 0.0  ;;  %4423 = vmatprep.subr.bf16.mxu1 %v8698_v61  ;;  %v8702_v61 = vld [vmem:[%s11368_s3 + $0x450] ss:$8 sps:$4 sm:$0xff]  }
 0x304   : > { %v2667_v6 = vpack.c.bf16 %v2563_v4, %v2561_v3  ;;  %4424 = vmatpush1.bf16.msra.mxu1 %v8696_v60 }
 0x305   : > { %v2318_v44 = vpop.f32.mrb[176].mxu0  ;;  %v2668_v7 = vpack.c.bf16 %v2564_v5, %v2562_v42 }
 0x306   : > { %v2319_v8 = vadd.f32 %v2318_v44, %v9693_v56  ;;  %v2320_v9 = vpop.f32.mrb[177].mxu0 }
 0x307   : > { %v2321_v10 = vadd.f32 %v2320_v9, %v9697_v57  ;;  %v2322_v11 = vpop.f32.mrb[178].mxu0  ;;  %3057 = vmatprep.mubr.bf16.mxu1 %v2668_v7 }
 0x308   : > { %v2323_v12 = vadd.f32 %v2322_v11, %v9693_v56  ;;  %v2324_v13 = vpop.f32.mrb[179].mxu0  ;;  %3058 = vmatmul.mubr.bf16.gmra.mrb[172].mxu1 %v2667_v6  ;;  %v2565_v15 = vmax.f32 %v2319_v8, 0.0 }
 0x309   : > { %v2325_v14 = vadd.f32 %v2324_v13, %v9697_v57  ;;  %v2566_v17 = vmax.f32 %v2321_v10, 0.0 }
 0x30a   : > { %v2567_v16 = vmax.f32 %v2323_v12, 0.0 }
 0x30b   : > { %v2568_v18 = vmax.f32 %v2325_v14, 0.0 }
 0x30c   : > { %v2669_v19 = vpack.c.bf16 %v2567_v16, %v2565_v15 }
 0x30d   : > { %v2328_v20 = vpop.f32.mrb[180].mxu0  ;;  %v2670_v21 = vpack.c.bf16 %v2568_v18, %v2566_v17 }
 0x30e   : > { %v2329_v22 = vadd.f32 %v2328_v20, %v9693_v56  ;;  %v2330_v23 = vpop.f32.mrb[181].mxu0 }
 0x30f   : > { %v2331_v28 = vadd.f32 %v2330_v23, %v9697_v57  ;;  %v2332_v29 = vpop.f32.mrb[182].mxu0  ;;  %3067 = vmatprep.mubr.bf16.mxu1 %v2670_v21 }
 0x310   : > { %v2333_v32 = vadd.f32 %v2332_v29, %v9693_v56  ;;  %v2334_v33 = vpop.f32.mrb[183].mxu0  ;;  %3068 = vmatmul.mubr.bf16.gmra.mrb[176].mxu1 %v2669_v19  ;;  %v2569_v35 = vmax.f32 %v2329_v22, 0.0 }
 0x311   : > { %v2335_v34 = vadd.f32 %v2334_v33, %v9697_v57  ;;  %v2570_v37 = vmax.f32 %v2331_v28, 0.0  ;;  %v8701_v28 = vld [vmem:[%s11368_s3 + $0x444] ss:$8 sps:$4 sm:$0xff]  }
 0x312   : > { %v2571_v36 = vmax.f32 %v2333_v32, 0.0  ;;  %4425 = vmatprep.subr.bf16.mxu1 %v8701_v28  ;;  %v8705_v28 = vld [vmem:[%s11368_s3 + $0x460] ss:$8 sps:$4 sm:$0xff]  }
 0x313   : > { %v2572_v38 = vmax.f32 %v2335_v34, 0.0  ;;  %4426 = vmatpush1.bf16.msra.mxu1 %v8699_v26 }
 0x314   : > { %v2671_v39 = vpack.c.bf16 %v2571_v36, %v2569_v35 }
 0x315   : > { %v2338_v40 = vpop.f32.mrb[184].mxu0  ;;  %v2672_v41 = vpack.c.bf16 %v2572_v38, %v2570_v37 }
 0x316   : > { %v2339_v43 = vadd.f32 %v2338_v40, %v9693_v56  ;;  %v2340_v45 = vpop.f32.mrb[185].mxu0 }
 0x317   : > { %v2341_v46 = vadd.f32 %v2340_v45, %v9697_v57  ;;  %v2342_v47 = vpop.f32.mrb[186].mxu0  ;;  %3077 = vmatprep.mubr.bf16.mxu1 %v2672_v41 }
 0x318   : > { %v2343_v48 = vadd.f32 %v2342_v47, %v9693_v56  ;;  %v2344_v49 = vpop.f32.mrb[187].mxu0  ;;  %3078 = vmatmul.mubr.bf16.gmra.mrb[180].mxu1 %v2671_v39  ;;  %v2573_v51 = vmax.f32 %v2339_v43, 0.0 }
 0x319   : > { %v2345_v50 = vadd.f32 %v2344_v49, %v9697_v57  ;;  %v2574_v53 = vmax.f32 %v2341_v46, 0.0 }
 0x31a   : > { %v2575_v52 = vmax.f32 %v2343_v48, 0.0 }
 0x31b   : > { %v2576_v54 = vmax.f32 %v2345_v50, 0.0 }
 0x31c   : > { %v2673_v30 = vpack.c.bf16 %v2575_v52, %v2573_v51 }
 0x31d   : > { %v2348_v55 = vpop.f32.mrb[188].mxu0  ;;  %v2674_v31 = vpack.c.bf16 %v2576_v54, %v2574_v53 }
 0x31e   : > { %v2349_v58 = vadd.f32 %v2348_v55, %v9693_v56  ;;  %v2350_v59 = vpop.f32.mrb[189].mxu0 }
 0x31f   : > { %v2351_v62 = vadd.f32 %v2350_v59, %v9697_v57  ;;  %v2352_v63 = vpop.f32.mrb[190].mxu0  ;;  %3087 = vmatprep.mubr.bf16.mxu1 %v2674_v31 }
 0x320   : > { %v2353_v0 = vadd.f32 %v2352_v63, %v9693_v56  ;;  %v2354_v1 = vpop.f32.mrb[191].mxu0  ;;  %3088 = vmatmul.mubr.bf16.gmra.mrb[184].mxu1 %v2673_v30  ;;  %v2577_v4 = vmax.f32 %v2349_v58, 0.0 }
 0x321   : > { %v2355_v3 = vadd.f32 %v2354_v1, %v9697_v57  ;;  %v2578_v5 = vmax.f32 %v2351_v62, 0.0  ;;  %v8704_v62 = vld [vmem:[%s11368_s3 + $0x454] ss:$8 sps:$4 sm:$0xff]  }
 0x322   : > { %v2579_v42 = vmax.f32 %v2353_v0, 0.0  ;;  %4427 = vmatprep.subr.bf16.mxu1 %v8704_v62  ;;  %v8708_v62 = vld [vmem:[%s11368_s3 + $0x470] ss:$8 sps:$4 sm:$0xff]  }
 0x323   : > { %v2580_v6 = vmax.f32 %v2355_v3, 0.0  ;;  %4428 = vmatpush1.bf16.msra.mxu1 %v8702_v61 }
 0x324   : > { %v2675_v44 = vpack.c.bf16 %v2579_v42, %v2577_v4 }
 0x325   : > { %v2358_v7 = vpop.f32.mrb[192].mxu0  ;;  %v2676_v8 = vpack.c.bf16 %v2580_v6, %v2578_v5 }
 0x326   : > { %v2359_v9 = vadd.f32 %v2358_v7, %v9693_v56  ;;  %v2360_v10 = vpop.f32.mrb[193].mxu0 }
 0x327   : > { %v2361_v11 = vadd.f32 %v2360_v10, %v9697_v57  ;;  %v2362_v12 = vpop.f32.mrb[194].mxu0  ;;  %3097 = vmatprep.mubr.bf16.mxu1 %v2676_v8 }
 0x328   : > { %v2363_v13 = vadd.f32 %v2362_v12, %v9693_v56  ;;  %v2364_v14 = vpop.f32.mrb[195].mxu0  ;;  %3098 = vmatmul.mubr.bf16.gmra.mrb[188].mxu1 %v2675_v44  ;;  %v2581_v16 = vmax.f32 %v2359_v9, 0.0 }
 0x329   : > { %v2365_v15 = vadd.f32 %v2364_v14, %v9697_v57  ;;  %v2582_v18 = vmax.f32 %v2361_v11, 0.0 }
 0x32a   : > { %v2583_v17 = vmax.f32 %v2363_v13, 0.0 }
 0x32b   : > { %v2584_v19 = vmax.f32 %v2365_v15, 0.0 }
 0x32c   : > { %v2677_v20 = vpack.c.bf16 %v2583_v17, %v2581_v16 }
 0x32d   : > { %v2368_v21 = vpop.f32.mrb[196].mxu0  ;;  %v2678_v22 = vpack.c.bf16 %v2584_v19, %v2582_v18 }
 0x32e   : > { %v2369_v23 = vadd.f32 %v2368_v21, %v9693_v56  ;;  %v2370_v24 = vpop.f32.mrb[197].mxu0 }
 0x32f   : > { %v2371_v29 = vadd.f32 %v2370_v24, %v9697_v57  ;;  %v2372_v32 = vpop.f32.mrb[198].mxu0  ;;  %3107 = vmatprep.mubr.bf16.mxu1 %v2678_v22 }
 0x330   : > { %v2373_v33 = vadd.f32 %v2372_v32, %v9693_v56  ;;  %v2374_v34 = vpop.f32.mrb[199].mxu0  ;;  %3108 = vmatmul.mubr.bf16.gmra.mrb[192].mxu1 %v2677_v20  ;;  %v2585_v36 = vmax.f32 %v2369_v23, 0.0 }
 0x331   : > { %v2375_v35 = vadd.f32 %v2374_v34, %v9697_v57  ;;  %v2586_v38 = vmax.f32 %v2371_v29, 0.0  ;;  %v8707_v29 = vld [vmem:[%s11368_s3 + $0x464] ss:$8 sps:$4 sm:$0xff]  }
 0x332   : > { %v2587_v37 = vmax.f32 %v2373_v33, 0.0  ;;  %4429 = vmatprep.subr.bf16.mxu1 %v8707_v29  ;;  %v8711_v29 = vld [vmem:[%s11368_s3 + $0x480] ss:$8 sps:$4 sm:$0xff]  }
 0x333   : > { %v2588_v39 = vmax.f32 %v2375_v35, 0.0  ;;  %4430 = vmatpush1.bf16.msra.mxu1 %v8705_v28 }
 0x334   : > { %v2679_v40 = vpack.c.bf16 %v2587_v37, %v2585_v36 }
 0x335   : > { %v2378_v41 = vpop.f32.mrb[200].mxu0  ;;  %v2680_v43 = vpack.c.bf16 %v2588_v39, %v2586_v38 }
 0x336   : > { %v2379_v45 = vadd.f32 %v2378_v41, %v9693_v56  ;;  %v2380_v46 = vpop.f32.mrb[201].mxu0 }
 0x337   : > { %v2381_v47 = vadd.f32 %v2380_v46, %v9697_v57  ;;  %v2382_v48 = vpop.f32.mrb[202].mxu0  ;;  %3117 = vmatprep.mubr.bf16.mxu1 %v2680_v43 }
 0x338   : > { %v2383_v49 = vadd.f32 %v2382_v48, %v9693_v56  ;;  %v2384_v50 = vpop.f32.mrb[203].mxu0  ;;  %3118 = vmatmul.mubr.bf16.gmra.mrb[196].mxu1 %v2679_v40  ;;  %v2589_v52 = vmax.f32 %v2379_v45, 0.0 }
 0x339   : > { %v2385_v51 = vadd.f32 %v2384_v50, %v9697_v57  ;;  %v2590_v54 = vmax.f32 %v2381_v47, 0.0 }
 0x33a   : > { %v2591_v53 = vmax.f32 %v2383_v49, 0.0 }
 0x33b   : > { %v2592_v30 = vmax.f32 %v2385_v51, 0.0 }
 0x33c   : > { %v2681_v55 = vpack.c.bf16 %v2591_v53, %v2589_v52 }
 0x33d   : > { %v2388_v31 = vpop.f32.mrb[204].mxu0  ;;  %v2682_v58 = vpack.c.bf16 %v2592_v30, %v2590_v54 }
 0x33e   : > { %v2389_v59 = vadd.f32 %v2388_v31, %v9693_v56  ;;  %v2390_v60 = vpop.f32.mrb[205].mxu0 }
 0x33f   : > { %v2391_v63 = vadd.f32 %v2390_v60, %v9697_v57  ;;  %v2392_v0 = vpop.f32.mrb[206].mxu0  ;;  %3127 = vmatprep.mubr.bf16.mxu1 %v2682_v58 }
 0x340   : > { %v2393_v1 = vadd.f32 %v2392_v0, %v9693_v56  ;;  %v2394_v3 = vpop.f32.mrb[207].mxu0  ;;  %3128 = vmatmul.mubr.bf16.gmra.mrb[200].mxu1 %v2681_v55  ;;  %v2593_v42 = vmax.f32 %v2389_v59, 0.0 }
 0x341   : > { %v2395_v4 = vadd.f32 %v2394_v3, %v9697_v57  ;;  %v2594_v6 = vmax.f32 %v2391_v63, 0.0  ;;  %v8710_v63 = vld [vmem:[%s11368_s3 + $0x474] ss:$8 sps:$4 sm:$0xff]  }
 0x342   : > { %v2595_v5 = vmax.f32 %v2393_v1, 0.0  ;;  %4431 = vmatprep.subr.bf16.mxu1 %v8710_v63 }
 0x343   : > { %v2596_v44 = vmax.f32 %v2395_v4, 0.0  ;;  %4432 = vmatpush1.bf16.msra.mxu1 %v8708_v62 }
 0x344   : > { %v2683_v7 = vpack.c.bf16 %v2595_v5, %v2593_v42 }
 0x345   : > { %v2398_v8 = vpop.f32.mrb[208].mxu0  ;;  %v2684_v9 = vpack.c.bf16 %v2596_v44, %v2594_v6 }
 0x346   : > { %v2399_v10 = vadd.f32 %v2398_v8, %v9693_v56  ;;  %v2400_v11 = vpop.f32.mrb[209].mxu0 }
 0x347   : > { %v2401_v12 = vadd.f32 %v2400_v11, %v9697_v57  ;;  %v2402_v13 = vpop.f32.mrb[210].mxu0  ;;  %3137 = vmatprep.mubr.bf16.mxu1 %v2684_v9 }
 0x348   : > { %v2403_v14 = vadd.f32 %v2402_v13, %v9693_v56  ;;  %v2404_v15 = vpop.f32.mrb[211].mxu0  ;;  %3138 = vmatmul.mubr.bf16.gmra.mrb[204].mxu1 %v2683_v7  ;;  %v2597_v17 = vmax.f32 %v2399_v10, 0.0 }
 0x349   : > { %v2405_v16 = vadd.f32 %v2404_v15, %v9697_v57  ;;  %v2598_v19 = vmax.f32 %v2401_v12, 0.0 }
 0x34a   : > { %v2599_v18 = vmax.f32 %v2403_v14, 0.0 }
 0x34b   : > { %v2600_v20 = vmax.f32 %v2405_v16, 0.0 }
 0x34c   : > { %v2685_v21 = vpack.c.bf16 %v2599_v18, %v2597_v17 }
 0x34d   : > { %v2408_v22 = vpop.f32.mrb[212].mxu0  ;;  %v2686_v23 = vpack.c.bf16 %v2600_v20, %v2598_v19 }
 0x34e   : > { %v2409_v24 = vadd.f32 %v2408_v22, %v9693_v56  ;;  %v2410_v26 = vpop.f32.mrb[213].mxu0 }
 0x34f   : > { %v2411_v32 = vadd.f32 %v2410_v26, %v9697_v57  ;;  %v2412_v33 = vpop.f32.mrb[214].mxu0  ;;  %3147 = vmatprep.mubr.bf16.mxu1 %v2686_v23 }
 0x350   : > { %v2413_v34 = vadd.f32 %v2412_v33, %v9693_v56  ;;  %v2414_v35 = vpop.f32.mrb[215].mxu0  ;;  %3148 = vmatmul.mubr.bf16.gmra.mrb[208].mxu1 %v2685_v21  ;;  %v2601_v37 = vmax.f32 %v2409_v24, 0.0 }
 0x351   : > { %v2415_v36 = vadd.f32 %v2414_v35, %v9697_v57  ;;  %v2602_v39 = vmax.f32 %v2411_v32, 0.0  ;;  %v8713_v32 = vld [vmem:[%s11368_s3 + $0x484] ss:$8 sps:$4 sm:$0xff]  }
 0x352   : > { %v2603_v38 = vmax.f32 %v2413_v34, 0.0  ;;  %4433 = vmatprep.subr.bf16.mxu1 %v8713_v32 }
 0x353   : > { %v2604_v40 = vmax.f32 %v2415_v36, 0.0  ;;  %4434 = vmatpush1.bf16.msra.mxu1 %v8711_v29 }
 0x354   : > { %v2687_v41 = vpack.c.bf16 %v2603_v38, %v2601_v37 }
 0x355   : > { %v2418_v43 = vpop.f32.mrb[216].mxu0  ;;  %v2688_v45 = vpack.c.bf16 %v2604_v40, %v2602_v39 }
 0x356   : > { %v2419_v46 = vadd.f32 %v2418_v43, %v9693_v56  ;;  %v2420_v47 = vpop.f32.mrb[217].mxu0 }
 0x357   : > { %v2421_v48 = vadd.f32 %v2420_v47, %v9697_v57  ;;  %v2422_v49 = vpop.f32.mrb[218].mxu0  ;;  %3157 = vmatprep.mubr.bf16.mxu1 %v2688_v45 }
 0x358   : > { %v2423_v50 = vadd.f32 %v2422_v49, %v9693_v56  ;;  %v2424_v51 = vpop.f32.mrb[219].mxu0  ;;  %3158 = vmatmul.mubr.bf16.gmra.mrb[212].mxu1 %v2687_v41  ;;  %v2605_v53 = vmax.f32 %v2419_v46, 0.0 }
 0x359   : > { %v2425_v52 = vadd.f32 %v2424_v51, %v9697_v57  ;;  %v2606_v30 = vmax.f32 %v2421_v48, 0.0 }
 0x35a   : > { %v2607_v54 = vmax.f32 %v2423_v50, 0.0 }
 0x35b   : > { %v2608_v55 = vmax.f32 %v2425_v52, 0.0 }
 0x35c   : > { %v2689_v31 = vpack.c.bf16 %v2607_v54, %v2605_v53 }
 0x35d   : > { %v2428_v58 = vpop.f32.mrb[220].mxu0  ;;  %v2690_v59 = vpack.c.bf16 %v2608_v55, %v2606_v30 }
 0x35e   : > { %v2429_v60 = vadd.f32 %v2428_v58, %v9693_v56  ;;  %v2430_v61 = vpop.f32.mrb[221].mxu0 }
 0x35f   : > { %v2431_v0 = vadd.f32 %v2430_v61, %v9697_v57  ;;  %v2432_v1 = vpop.f32.mrb[222].mxu0  ;;  %3167 = vmatprep.mubr.bf16.mxu1 %v2690_v59  ;;  %v8033_v61 = vld [vmem:[%s11369_s4 + $0x4] sm:$0x3] }
 0x360   : > { %v2433_v3 = vadd.f32 %v2432_v1, %v9693_v56  ;;  %v2434_v4 = vpop.f32.mrb[223].mxu0  ;;  %3168 = vmatmul.mubr.bf16.gmra.mrb[216].mxu1 %v2689_v31  ;;  %v2609_v5 = vmax.f32 %v2429_v60, 0.0  ;;  %v8716_v1 = vld [vmem:[%s11368_s3 + $0x494] ss:$8 sps:$4 sm:$0xff]  }
 0x361   : > { %v2435_v42 = vadd.f32 %v2434_v4, %v9697_v57  ;;  %v2610_v44 = vmax.f32 %v2431_v0, 0.0  ;;  %v8714_v0 = vld [vmem:[%s11368_s3 + $0x490] ss:$8 sps:$4 sm:$0xff]   ;;  %4435 = vmatprep.subr.bf16.mxu1 %v8716_v1 }
 0x362   : > { %v2611_v6 = vmax.f32 %v2433_v3, 0.0  ;;  %4436 = vmatpush1.bf16.msra.mxu1 %v8714_v0 }
 0x363   : > { %v2612_v7 = vmax.f32 %v2435_v42, 0.0 }
 0x364   : > { %v2691_v8 = vpack.c.bf16 %v2611_v6, %v2609_v5  ;;  %v9926_v6 = vrot.slane %v8033_v61, %v9214_v25 }
 0x365   : > { %v2438_v9 = vpop.f32.mrb[224].mxu0  ;;  %v2692_v10 = vpack.c.bf16 %v2612_v7, %v2610_v44  ;;  %v9930_v7 = vrot.slane %v8033_v61, %v9219_v27 }
 0x366   : > { %v2439_v11 = vadd.f32 %v2438_v9, %v9693_v56  ;;  %v2440_v12 = vpop.f32.mrb[225].mxu0 }
 0x367   : > { %v2441_v13 = vadd.f32 %v2440_v12, %v9697_v57  ;;  %v2442_v14 = vpop.f32.mrb[226].mxu0  ;;  %3177 = vmatprep.mubr.bf16.mxu1 %v2692_v10 }
 0x368   : > { %v2443_v15 = vadd.f32 %v2442_v14, %v9693_v56  ;;  %v2444_v16 = vpop.f32.mrb[227].mxu0  ;;  %3178 = vmatmul.mubr.bf16.gmra.mrb[220].mxu1 %v2691_v8  ;;  %v2613_v18 = vmax.f32 %v2439_v11, 0.0 }
 0x369   : > { %v2445_v17 = vadd.f32 %v2444_v16, %v9697_v57  ;;  %v2614_v20 = vmax.f32 %v2441_v13, 0.0 }
 0x36a   : > { %v2615_v19 = vmax.f32 %v2443_v15, 0.0 }
 0x36b   : > { %v2616_v21 = vmax.f32 %v2445_v17, 0.0 }
 0x36c   : > { %v2693_v22 = vpack.c.bf16 %v2615_v19, %v2613_v18 }
 0x36d   : > { %v2448_v23 = vpop.f32.mrb[228].mxu0  ;;  %v2694_v24 = vpack.c.bf16 %v2616_v21, %v2614_v20 }
 0x36e   : > { %v2449_v26 = vadd.f32 %v2448_v23, %v9693_v56  ;;  %v2450_v28 = vpop.f32.mrb[229].mxu0 }
 0x36f   : > { %v2451_v33 = vadd.f32 %v2450_v28, %v9697_v57  ;;  %v2452_v34 = vpop.f32.mrb[230].mxu0  ;;  %3187 = vmatprep.mubr.bf16.mxu1 %v2694_v24 }
 0x370   : > { %v2453_v35 = vadd.f32 %v2452_v34, %v9693_v56  ;;  %v2454_v36 = vpop.f32.mrb[231].mxu0  ;;  %3188 = vmatmul.mubr.bf16.gmra.mrb[224].mxu1 %v2693_v22  ;;  %v2617_v38 = vmax.f32 %v2449_v26, 0.0 }
 0x371   : > { %v2455_v37 = vadd.f32 %v2454_v36, %v9697_v57  ;;  %v2618_v40 = vmax.f32 %v2451_v33, 0.0 }
 0x372   : > { %v2619_v39 = vmax.f32 %v2453_v35, 0.0 }
 0x373   : > { %v2620_v41 = vmax.f32 %v2455_v37, 0.0 }
 0x374   : > { %v2695_v43 = vpack.c.bf16 %v2619_v39, %v2617_v38 }
 0x375   : > { %v2458_v45 = vpop.f32.mrb[232].mxu0  ;;  %v2696_v46 = vpack.c.bf16 %v2620_v41, %v2618_v40 }
 0x376   : > { %v2459_v47 = vadd.f32 %v2458_v45, %v9693_v56  ;;  %v2460_v48 = vpop.f32.mrb[233].mxu0 }
 0x377   : > { %v2461_v49 = vadd.f32 %v2460_v48, %v9697_v57  ;;  %v2462_v50 = vpop.f32.mrb[234].mxu0  ;;  %3197 = vmatprep.mubr.bf16.mxu1 %v2696_v46 }
 0x378   : > { %v2463_v51 = vadd.f32 %v2462_v50, %v9693_v56  ;;  %v2464_v52 = vpop.f32.mrb[235].mxu0  ;;  %3198 = vmatmul.mubr.bf16.gmra.mrb[228].mxu1 %v2695_v43  ;;  %v2621_v54 = vmax.f32 %v2459_v47, 0.0 }
 0x379   : > { %v2465_v53 = vadd.f32 %v2464_v52, %v9697_v57  ;;  %v2622_v55 = vmax.f32 %v2461_v49, 0.0 }
 0x37a   : > { %v2623_v30 = vmax.f32 %v2463_v51, 0.0 }
 0x37b   : > { %v2624_v31 = vmax.f32 %v2465_v53, 0.0 }
 0x37c   : > { %v2697_v58 = vpack.c.bf16 %v2623_v30, %v2621_v54 }
 0x37d   : > { %v2468_v59 = vpop.f32.mrb[236].mxu0  ;;  %v2698_v60 = vpack.c.bf16 %v2624_v31, %v2622_v55 }
 0x37e   : > { %v2469_v62 = vadd.f32 %v2468_v59, %v9693_v56  ;;  %v2470_v63 = vpop.f32.mrb[237].mxu0 }
 0x37f   : > { %v2471_v3 = vadd.f32 %v2470_v63, %v9697_v57  ;;  %v2472_v4 = vpop.f32.mrb[238].mxu0  ;;  %3207 = vmatprep.mubr.bf16.mxu1 %v2698_v60 }
 0x380   : > { %v2473_v42 = vadd.f32 %v2472_v4, %v9693_v56  ;;  %v2474_v5 = vpop.f32.mrb[239].mxu0  ;;  %3208 = vmatmul.mubr.bf16.gmra.mrb[232].mxu1 %v2697_v58  ;;  %v2625_v8 = vmax.f32 %v2469_v62, 0.0  ;;  %v8717_v58 = vld [vmem:[%s11368_s3 + $0x4a0] ss:$8 sps:$4 sm:$0xff]   ;;  %v8719_v62 = vld [vmem:[%s11368_s3 + $0x4a4] ss:$8 sps:$4 sm:$0xff]  }
 0x381   : > { %v2475_v44 = vadd.f32 %v2474_v5, %v9697_v57  ;;  %v2626_v10 = vmax.f32 %v2471_v3, 0.0  ;;  %4437 = vmatprep.subr.bf16.mxu1 %v8719_v62 }
 0x382   : > { %v2627_v9 = vmax.f32 %v2473_v42, 0.0  ;;  %4438 = vmatpush1.bf16.msra.mxu1 %v8717_v58 }
 0x383   : > { %v2628_v11 = vmax.f32 %v2475_v44, 0.0  ;;  %v2949_v12 = vpop.f32.mrb[128].mxu1 }
 0x384   : > { %v2950_v13 = vadd.f32 %v2949_v12, %v9926_v6  ;;  %v2951_v14 = vpop.f32.mrb[129].mxu1  ;;  %v2699_v15 = vpack.c.bf16 %v2627_v9, %v2625_v8 }
 0x385   : > { %v2952_v16 = vadd.f32 %v2951_v14, %v9930_v7  ;;  %v2478_v17 = vpop.f32.mrb[240].mxu0  ;;  %v2953_v18 = vpop.f32.mrb[130].mxu1  ;;  %v2700_v19 = vpack.c.bf16 %v2628_v11, %v2626_v10 }
 0x386   : > { %v2479_v20 = vadd.f32 %v2478_v17, %v9693_v56  ;;  %v2954_v21 = vadd.f32 %v2953_v18, %v9926_v6  ;;  %v2480_v22 = vpop.f32.mrb[241].mxu0  ;;  %v2955_v23 = vpop.f32.mrb[131].mxu1  ;;  %v3268_v29 = vmax.f32 %v2950_v13, 0.0 }
 0x387   : > { %v2481_v24 = vadd.f32 %v2480_v22, %v9697_v57  ;;  %v2956_v26 = vadd.f32 %v2955_v23, %v9930_v7  ;;  %v2482_v28 = vpop.f32.mrb[242].mxu0  ;;  %3217 = vmatprep.mubr.bf16.mxu1 %v2700_v19  ;;  %v3269_v35 = vmax.f32 %v2952_v16, 0.0 }
 0x388   : > { %v3270_v32 = vmax.f32 %v2954_v21, 0.0  ;;  %v2483_v33 = vadd.f32 %v2482_v28, %v9693_v56  ;;  %v2484_v34 = vpop.f32.mrb[243].mxu0  ;;  %3218 = vmatmul.mubr.bf16.gmra.mrb[236].mxu1 %v2699_v15  ;;  %v2629_v38 = vmax.f32 %v2479_v20, 0.0 }
 0x389   : > { %v3271_v36 = vmax.f32 %v2956_v26, 0.0  ;;  %v2485_v37 = vadd.f32 %v2484_v34, %v9697_v57  ;;  %v2630_v41 = vmax.f32 %v2481_v24, 0.0 }
 0x38a   : > { %v3396_v39 = vpack.c.bf16 %v3270_v32, %v3268_v29  ;;  %v2631_v40 = vmax.f32 %v2483_v33, 0.0 }
 0x38b   : > { %v2632_v43 = vmax.f32 %v2485_v37, 0.0  ;;  %v2959_v45 = vpop.f32.mrb[132].mxu1  ;;  %v3397_v46 = vpack.c.bf16 %v3271_v36, %v3269_v35 }
 0x38c   : > { %v2960_v47 = vadd.f32 %v2959_v45, %v9926_v6  ;;  %v2961_v48 = vpop.f32.mrb[133].mxu1  ;;  %v2701_v49 = vpack.c.bf16 %v2631_v40, %v2629_v38 }
 0x38d   : > { %v2962_v50 = vadd.f32 %v2961_v48, %v9930_v7  ;;  %v2488_v51 = vpop.f32.mrb[244].mxu0  ;;  %v2963_v52 = vpop.f32.mrb[134].mxu1  ;;  %3698 = vmatprep.mubr.bf16.mxu0 %v3397_v46  ;;  %v2702_v53 = vpack.c.bf16 %v2632_v43, %v2630_v41 }
 0x38e   : > { %v2489_v54 = vadd.f32 %v2488_v51, %v9693_v56  ;;  %v2964_v30 = vadd.f32 %v2963_v52, %v9926_v6  ;;  %v2490_v55 = vpop.f32.mrb[245].mxu0  ;;  %v2965_v31 = vpop.f32.mrb[135].mxu1  ;;  %3699 = vmatmul.mubr.bf16.vlgmr.msra.gmra.mrb[0].mxu0 %v3396_v39  ;;  %v3272_v63 = vmax.f32 %v2960_v47, 0.0 }
 0x38f   : > { %v2491_v59 = vadd.f32 %v2490_v55, %v9697_v57  ;;  %v2966_v60 = vadd.f32 %v2965_v31, %v9930_v7  ;;  %v2492_v61 = vpop.f32.mrb[246].mxu0  ;;  %3227 = vmatprep.mubr.bf16.mxu1 %v2702_v53  ;;  %v3273_v4 = vmax.f32 %v2962_v50, 0.0 }
 0x390   : > { %v3274_v0 = vmax.f32 %v2964_v30, 0.0  ;;  %v2493_v1 = vadd.f32 %v2492_v61, %v9693_v56  ;;  %v2494_v3 = vpop.f32.mrb[247].mxu0  ;;  %3228 = vmatmul.mubr.bf16.gmra.mrb[240].mxu1 %v2701_v49  ;;  %v2633_v44 = vmax.f32 %v2489_v54, 0.0 }
 0x391   : > { %v3275_v42 = vmax.f32 %v2966_v60, 0.0  ;;  %v2495_v5 = vadd.f32 %v2494_v3, %v9697_v57  ;;  %v2634_v10 = vmax.f32 %v2491_v59, 0.0  ;;  %v8720_v59 = vld [vmem:[%s11368_s3 + $0x4b0] ss:$8 sps:$4 sm:$0xff]  }
 0x392   : > { %v3398_v8 = vpack.c.bf16 %v3274_v0, %v3272_v63  ;;  %v2635_v9 = vmax.f32 %v2493_v1, 0.0  ;;  %v8722_v63 = vld [vmem:[%s11368_s3 + $0x4b4] ss:$8 sps:$4 sm:$0xff]  }
 0x393   : > { %v2636_v11 = vmax.f32 %v2495_v5, 0.0  ;;  %v2969_v12 = vpop.f32.mrb[136].mxu1  ;;  %v3399_v13 = vpack.c.bf16 %v3275_v42, %v3273_v4  ;;  %4439 = vmatprep.subr.bf16.mxu1 %v8722_v63 }
 0x394   : > { %v2970_v14 = vadd.f32 %v2969_v12, %v9926_v6  ;;  %v2971_v15 = vpop.f32.mrb[137].mxu1  ;;  %v2703_v16 = vpack.c.bf16 %v2635_v9, %v2633_v44  ;;  %4440 = vmatpush1.bf16.msra.mxu1 %v8720_v59 }
 0x395   : > { %v2972_v17 = vadd.f32 %v2971_v15, %v9930_v7  ;;  %v2498_v18 = vpop.f32.mrb[248].mxu0  ;;  %v2973_v19 = vpop.f32.mrb[138].mxu1  ;;  %3708 = vmatprep.mubr.bf16.mxu0 %v3399_v13  ;;  %v2704_v20 = vpack.c.bf16 %v2636_v11, %v2634_v10 }
 0x396   : > { %v2499_v21 = vadd.f32 %v2498_v18, %v9693_v56  ;;  %v2974_v22 = vadd.f32 %v2973_v19, %v9926_v6  ;;  %v2500_v23 = vpop.f32.mrb[249].mxu0  ;;  %v2975_v24 = vpop.f32.mrb[139].mxu1  ;;  %3709 = vmatmul.mubr.bf16.gmra.mrb[4].mxu0 %v3398_v8  ;;  %v3276_v32 = vmax.f32 %v2970_v14, 0.0 }
 0x397   : > { %v2501_v26 = vadd.f32 %v2500_v23, %v9697_v57  ;;  %v2976_v28 = vadd.f32 %v2975_v24, %v9930_v7  ;;  %v2502_v29 = vpop.f32.mrb[250].mxu0  ;;  %3237 = vmatprep.mubr.bf16.mxu1 %v2704_v20  ;;  %v3277_v36 = vmax.f32 %v2972_v17, 0.0 }
 0x398   : > { %v3278_v33 = vmax.f32 %v2974_v22, 0.0  ;;  %v2503_v34 = vadd.f32 %v2502_v29, %v9693_v56  ;;  %v2504_v35 = vpop.f32.mrb[251].mxu0  ;;  %3238 = vmatmul.mubr.bf16.gmra.mrb[244].mxu1 %v2703_v16  ;;  %v2637_v39 = vmax.f32 %v2499_v21, 0.0 }
 0x399   : > { %v3279_v37 = vmax.f32 %v2976_v28, 0.0  ;;  %v2505_v38 = vadd.f32 %v2504_v35, %v9697_v57  ;;  %v2638_v43 = vmax.f32 %v2501_v26, 0.0 }
 0x39a   : > { %v3400_v40 = vpack.c.bf16 %v3278_v33, %v3276_v32  ;;  %v2639_v41 = vmax.f32 %v2503_v34, 0.0 }
 0x39b   : > { %v2640_v45 = vmax.f32 %v2505_v38, 0.0  ;;  %v2979_v46 = vpop.f32.mrb[140].mxu1  ;;  %v3401_v47 = vpack.c.bf16 %v3279_v37, %v3277_v36 }
 0x39c   : > { %v2980_v48 = vadd.f32 %v2979_v46, %v9926_v6  ;;  %v2981_v49 = vpop.f32.mrb[141].mxu1  ;;  %v2705_v50 = vpack.c.bf16 %v2639_v41, %v2637_v39  ;;  %v8723_v39 = vld [vmem:[%s11368_s3 + $0x4c0] ss:$8 sps:$4 sm:$0xff]  }
 0x39d   : > { %v2982_v51 = vadd.f32 %v2981_v49, %v9930_v7  ;;  %v2508_v52 = vpop.f32.mrb[252].mxu0  ;;  %v2983_v53 = vpop.f32.mrb[142].mxu1  ;;  %3718 = vmatprep.mubr.bf16.mxu0 %v3401_v47  ;;  %v2706_v54 = vpack.c.bf16 %v2640_v45, %v2638_v43 }
 0x39e   : > { %v2509_v30 = vadd.f32 %v2508_v52, %v9693_v56  ;;  %v2984_v55 = vadd.f32 %v2983_v53, %v9926_v6  ;;  %v2510_v31 = vpop.f32.mrb[253].mxu0  ;;  %v2985_v58 = vpop.f32.mrb[143].mxu1  ;;  %3719 = vmatmul.mubr.bf16.gmra.mrb[8].mxu0 %v3400_v40  ;;  %v3280_v0 = vmax.f32 %v2980_v48, 0.0  ;;  %v8725_v40 = vld [vmem:[%s11368_s3 + $0x4c4] ss:$8 sps:$4 sm:$0xff]  }
 0x39f   : > { %v2511_v60 = vadd.f32 %v2510_v31, %v9697_v57  ;;  %v2986_v61 = vadd.f32 %v2985_v58, %v9930_v7  ;;  %v2512_v62 = vpop.f32.mrb[254].mxu0  ;;  %3247 = vmatprep.mubr.bf16.mxu1 %v2706_v54  ;;  %v3281_v42 = vmax.f32 %v2982_v51, 0.0  ;;  %4441 = vmatprep.subr.bf16.mxu1 %v8725_v40 }
 0x3a0   : > { %v3282_v1 = vmax.f32 %v2984_v55, 0.0  ;;  %v2513_v3 = vadd.f32 %v2512_v62, %v9693_v56  ;;  %v2514_v4 = vpop.f32.mrb[255].mxu0  ;;  %3248 = vmatmul.mubr.bf16.gmra.mrb[248].mxu1 %v2705_v50  ;;  %v2641_v8 = vmax.f32 %v2509_v30, 0.0 }
 0x3a1   : > { %v3283_v5 = vmax.f32 %v2986_v61, 0.0  ;;  %v2515_v44 = vadd.f32 %v2514_v4, %v9697_v57  ;;  %v2642_v11 = vmax.f32 %v2511_v60, 0.0  ;;  %4442 = vmatpush1.bf16.msra.mxu1 %v8723_v39 }
 0x3a2   : > { %v3402_v9 = vpack.c.bf16 %v3282_v1, %v3280_v0  ;;  %v2643_v10 = vmax.f32 %v2513_v3, 0.0 }
 0x3a3   : > { %v2644_v12 = vmax.f32 %v2515_v44, 0.0  ;;  %v2989_v13 = vpop.f32.mrb[144].mxu1  ;;  %v3403_v14 = vpack.c.bf16 %v3283_v5, %v3281_v42 }
 0x3a4   : > { %v2990_v15 = vadd.f32 %v2989_v13, %v9926_v6  ;;  %v2991_v16 = vpop.f32.mrb[145].mxu1  ;;  %v2707_v17 = vpack.c.bf16 %v2643_v10, %v2641_v8  ;;  %v8726_v8 = vld [vmem:[%s11368_s3 + $0x4d0] ss:$8 sps:$4 sm:$0xff]  }
 0x3a5   : > { %v2992_v56 = vadd.f32 %v2991_v16, %v9930_v7  ;;  %v2993_v18 = vpop.f32.mrb[146].mxu1  ;;  %3728 = vmatprep.mubr.bf16.mxu0 %v3403_v14  ;;  %v2708_v19 = vpack.c.bf16 %v2644_v12, %v2642_v11 }
 0x3a6   : > { %v2994_v57 = vadd.f32 %v2993_v18, %v9926_v6  ;;  %v2995_v20 = vpop.f32.mrb[147].mxu1  ;;  %3729 = vmatmul.mubr.bf16.gmra.mrb[12].mxu0 %v3402_v9  ;;  %v3284_v22 = vmax.f32 %v2990_v15, 0.0  ;;  %v8728_v9 = vld [vmem:[%s11368_s3 + $0x4d4] ss:$8 sps:$4 sm:$0xff]  }
 0x3a7   : > { %v2996_v21 = vadd.f32 %v2995_v20, %v9930_v7  ;;  %3257 = vmatprep.mubr.bf16.mxu1 %v2708_v19  ;;  %v3285_v24 = vmax.f32 %v2992_v56, 0.0  ;;  %4443 = vmatprep.subr.bf16.mxu1 %v8728_v9 }
 0x3a8   : > { %v3286_v23 = vmax.f32 %v2994_v57, 0.0  ;;  %3258 = vmatmul.mubr.bf16.gmra.mrb[252].mxu1 %v2707_v17 }
 0x3a9   : > { %v3287_v26 = vmax.f32 %v2996_v21, 0.0  ;;  %4444 = vmatpush1.bf16.msra.mxu1 %v8726_v8 }
 0x3aa   : > { %v3404_v28 = vpack.c.bf16 %v3286_v23, %v3284_v22 }
 0x3ab   : > { %v2999_v29 = vpop.f32.mrb[148].mxu1  ;;  %v3405_v32 = vpack.c.bf16 %v3287_v26, %v3285_v24 }
 0x3ac   : > { %v3000_v33 = vadd.f32 %v2999_v29, %v9926_v6  ;;  %v3001_v34 = vpop.f32.mrb[149].mxu1 }
 0x3ad   : > { %v3002_v35 = vadd.f32 %v3001_v34, %v9930_v7  ;;  %v3003_v36 = vpop.f32.mrb[150].mxu1  ;;  %3738 = vmatprep.mubr.bf16.mxu0 %v3405_v32  ;;  %v8729_v32 = vld [vmem:[%s11368_s3 + $0x500] ss:$8 sps:$4 sm:$0xff]  }
 0x3ae   : > { %v3004_v37 = vadd.f32 %v3003_v36, %v9926_v6  ;;  %v3005_v38 = vpop.f32.mrb[151].mxu1  ;;  %3739 = vmatmul.mubr.bf16.gmra.mrb[16].mxu0 %v3404_v28  ;;  %v3288_v43 = vmax.f32 %v3000_v33, 0.0  ;;  %v8731_v33 = vld [vmem:[%s11368_s3 + $0x504] ss:$8 sps:$4 sm:$0xff]  }
 0x3af   : > { %v3006_v41 = vadd.f32 %v3005_v38, %v9930_v7  ;;  %v3289_v46 = vmax.f32 %v3002_v35, 0.0  ;;  %5168 = vmatprep.subr.bf16.mxu0 %v8731_v33 }
 0x3b0   : > { %v3290_v45 = vmax.f32 %v3004_v37, 0.0  ;;  %5169 = vmatpush1.bf16.msra.mxu0 %v8729_v32 }
 0x3b1   : > { %v3291_v47 = vmax.f32 %v3006_v41, 0.0 }
 0x3b2   : > { %v3406_v48 = vpack.c.bf16 %v3290_v45, %v3288_v43  ;;  %v8732_v43 = vld [vmem:[%s11368_s3 + $0x4e0] ss:$8 sps:$4 sm:$0xff]   ;;  %v8734_v45 = vld [vmem:[%s11368_s3 + $0x4e4] ss:$8 sps:$4 sm:$0xff]  }
 0x3b3   : > { %v3009_v49 = vpop.f32.mrb[152].mxu1  ;;  %v3407_v50 = vpack.c.bf16 %v3291_v47, %v3289_v46  ;;  %4445 = vmatprep.subr.bf16.mxu1 %v8734_v45 }
 0x3b4   : > { %v3010_v51 = vadd.f32 %v3009_v49, %v9926_v6  ;;  %v3011_v52 = vpop.f32.mrb[153].mxu1  ;;  %4446 = vmatpush1.bf16.msra.mxu1 %v8732_v43  ;;  %v8743_v43 = vld [vmem:[%s11368_s3 + $0x524] ss:$8 sps:$4 sm:$0xff]  }
 0x3b5   : > { %v3012_v53 = vadd.f32 %v3011_v52, %v9930_v7  ;;  %v3013_v54 = vpop.f32.mrb[154].mxu1  ;;  %3748 = vmatprep.mubr.bf16.mxu0 %v3407_v50 }
 0x3b6   : > { %v3014_v30 = vadd.f32 %v3013_v54, %v9926_v6  ;;  %v3015_v55 = vpop.f32.mrb[155].mxu1  ;;  %3749 = vmatmul.mubr.bf16.gmra.mrb[20].mxu0 %v3406_v48  ;;  %v3292_v58 = vmax.f32 %v3010_v51, 0.0 }
 0x3b7   : > { %v3016_v31 = vadd.f32 %v3015_v55, %v9930_v7  ;;  %v3293_v60 = vmax.f32 %v3012_v53, 0.0 }
 0x3b8   : > { %v3294_v59 = vmax.f32 %v3014_v30, 0.0 }
 0x3b9   : > { %v3295_v61 = vmax.f32 %v3016_v31, 0.0 }
 0x3ba   : > { %v3408_v62 = vpack.c.bf16 %v3294_v59, %v3292_v58 }
 0x3bb   : > { %v3019_v63 = vpop.f32.mrb[156].mxu1  ;;  %v3409_v0 = vpack.c.bf16 %v3295_v61, %v3293_v60 }
 0x3bc   : > { %v3020_v1 = vadd.f32 %v3019_v63, %v9926_v6  ;;  %v3021_v3 = vpop.f32.mrb[157].mxu1 }
 0x3bd   : > { %v3022_v4 = vadd.f32 %v3021_v3, %v9930_v7  ;;  %v3023_v42 = vpop.f32.mrb[158].mxu1  ;;  %3758 = vmatprep.mubr.bf16.mxu0 %v3409_v0  ;;  %v8735_v3 = vld [vmem:[%s11368_s3 + $0x510] ss:$8 sps:$4 sm:$0xff]  }
 0x3be   : > { %v3024_v5 = vadd.f32 %v3023_v42, %v9926_v6  ;;  %v3025_v44 = vpop.f32.mrb[159].mxu1  ;;  %3759 = vmatmul.mubr.bf16.gmra.mrb[24].mxu0 %v3408_v62  ;;  %v3296_v11 = vmax.f32 %v3020_v1, 0.0 }
 0x3bf   : > { %v3026_v10 = vadd.f32 %v3025_v44, %v9930_v7  ;;  %v3297_v13 = vmax.f32 %v3022_v4, 0.0  ;;  %v8737_v4 = vld [vmem:[%s11368_s3 + $0x514] ss:$8 sps:$4 sm:$0xff]  }
 0x3c0   : > { %v3298_v12 = vmax.f32 %v3024_v5, 0.0  ;;  %5170 = vmatprep.subr.bf16.mxu0 %v8737_v4 }
 0x3c1   : > { %v3299_v14 = vmax.f32 %v3026_v10, 0.0  ;;  %5171 = vmatpush1.bf16.msra.mxu0 %v8735_v3 }
 0x3c2   : > { %v3410_v15 = vpack.c.bf16 %v3298_v12, %v3296_v11  ;;  %5172 = vmatprep.subr.bf16.mxu0 %v8743_v43  ;;  %v8747_v43 = vld [vmem:[%s11368_s3 + $0x540] ss:$8 sps:$4 sm:$0xff]  }
 0x3c3   : > { %v3029_v16 = vpop.f32.mrb[160].mxu1  ;;  %v3411_v17 = vpack.c.bf16 %v3299_v14, %v3297_v13  ;;  %v8738_v13 = vld [vmem:[%s11368_s3 + $0x4f0] ss:$8 sps:$4 sm:$0xff]   ;;  %v8740_v14 = vld [vmem:[%s11368_s3 + $0x4f4] ss:$8 sps:$4 sm:$0xff]  }
 0x3c4   : > { %v3030_v56 = vadd.f32 %v3029_v16, %v9926_v6  ;;  %v3031_v18 = vpop.f32.mrb[161].mxu1  ;;  %4447 = vmatprep.subr.bf16.mxu1 %v8740_v14 }
 0x3c5   : > { %v3032_v19 = vadd.f32 %v3031_v18, %v9930_v7  ;;  %v3033_v57 = vpop.f32.mrb[162].mxu1  ;;  %3768 = vmatprep.mubr.bf16.mxu0 %v3411_v17  ;;  %4448 = vmatpush1.bf16.msra.mxu1 %v8738_v13 }
 0x3c6   : > { %v3034_v20 = vadd.f32 %v3033_v57, %v9926_v6  ;;  %v3035_v21 = vpop.f32.mrb[163].mxu1  ;;  %3769 = vmatmul.mubr.bf16.gmra.mrb[28].mxu0 %v3410_v15  ;;  %v3300_v23 = vmax.f32 %v3030_v56, 0.0 }
 0x3c7   : > { %v3036_v22 = vadd.f32 %v3035_v21, %v9930_v7  ;;  %v3301_v26 = vmax.f32 %v3032_v19, 0.0 }
 0x3c8   : > { %v3302_v24 = vmax.f32 %v3034_v20, 0.0 }
 0x3c9   : > { %v3303_v28 = vmax.f32 %v3036_v22, 0.0 }
 0x3ca   : > { %v3412_v29 = vpack.c.bf16 %v3302_v24, %v3300_v23 }
 0x3cb   : > { %v3039_v34 = vpop.f32.mrb[164].mxu1  ;;  %v3413_v35 = vpack.c.bf16 %v3303_v28, %v3301_v26 }
 0x3cc   : > { %v3040_v36 = vadd.f32 %v3039_v34, %v9926_v6  ;;  %v3041_v37 = vpop.f32.mrb[165].mxu1 }
 0x3cd   : > { %v3042_v38 = vadd.f32 %v3041_v37, %v9930_v7  ;;  %v3043_v39 = vpop.f32.mrb[166].mxu1  ;;  %3778 = vmatprep.mubr.bf16.mxu0 %v3413_v35 }
 0x3ce   : > { %v3044_v40 = vadd.f32 %v3043_v39, %v9926_v6  ;;  %v3045_v41 = vpop.f32.mrb[167].mxu1  ;;  %3779 = vmatmul.mubr.bf16.gmra.mrb[32].mxu0 %v3412_v29  ;;  %v3304_v47 = vmax.f32 %v3040_v36, 0.0 }
 0x3cf   : > { %v3046_v46 = vadd.f32 %v3045_v41, %v9930_v7  ;;  %v3305_v49 = vmax.f32 %v3042_v38, 0.0  ;;  %v8741_v41 = vld [vmem:[%s11368_s3 + $0x520] ss:$8 sps:$4 sm:$0xff]  }
 0x3d0   : > { %v3306_v48 = vmax.f32 %v3044_v40, 0.0  ;;  %5173 = vmatpush1.bf16.msra.mxu0 %v8741_v41 }
 0x3d1   : > { %v3307_v50 = vmax.f32 %v3046_v46, 0.0 }
 0x3d2   : > { %v3414_v51 = vpack.c.bf16 %v3306_v48, %v3304_v47 }
 0x3d3   : > { %v3049_v52 = vpop.f32.mrb[168].mxu1  ;;  %v3415_v53 = vpack.c.bf16 %v3307_v50, %v3305_v49 }
 0x3d4   : > { %v3050_v54 = vadd.f32 %v3049_v52, %v9926_v6  ;;  %v3051_v30 = vpop.f32.mrb[169].mxu1 }
 0x3d5   : > { %v3052_v55 = vadd.f32 %v3051_v30, %v9930_v7  ;;  %v3053_v31 = vpop.f32.mrb[170].mxu1  ;;  %3788 = vmatprep.mubr.bf16.mxu0 %v3415_v53 }
 0x3d6   : > { %v3054_v58 = vadd.f32 %v3053_v31, %v9926_v6  ;;  %v3055_v59 = vpop.f32.mrb[171].mxu1  ;;  %3789 = vmatmul.mubr.bf16.gmra.mrb[36].mxu0 %v3414_v51  ;;  %v3308_v61 = vmax.f32 %v3050_v54, 0.0 }
 0x3d7   : > { %v3056_v60 = vadd.f32 %v3055_v59, %v9930_v7  ;;  %v3309_v63 = vmax.f32 %v3052_v55, 0.0 }
 0x3d8   : > { %v3310_v62 = vmax.f32 %v3054_v58, 0.0 }
 0x3d9   : > { %v3311_v0 = vmax.f32 %v3056_v60, 0.0 }
 0x3da   : > { %v3416_v1 = vpack.c.bf16 %v3310_v62, %v3308_v61 }
 0x3db   : > { %v3059_v42 = vpop.f32.mrb[172].mxu1  ;;  %v3417_v5 = vpack.c.bf16 %v3311_v0, %v3309_v63 }
 0x3dc   : > { %v3060_v44 = vadd.f32 %v3059_v42, %v9926_v6  ;;  %v3061_v8 = vpop.f32.mrb[173].mxu1 }
 0x3dd   : > { %v3062_v9 = vadd.f32 %v3061_v8, %v9930_v7  ;;  %v3063_v10 = vpop.f32.mrb[174].mxu1  ;;  %3798 = vmatprep.mubr.bf16.mxu0 %v3417_v5 }
 0x3de   : > { %v3064_v11 = vadd.f32 %v3063_v10, %v9926_v6  ;;  %v3065_v12 = vpop.f32.mrb[175].mxu1  ;;  %3799 = vmatmul.mubr.bf16.gmra.mrb[40].mxu0 %v3416_v1  ;;  %v3312_v16 = vmax.f32 %v3060_v44, 0.0  ;;  %v8744_v10 = vld [vmem:[%s11368_s3 + $0x530] ss:$8 sps:$4 sm:$0xff]  }
 0x3df   : > { %v3066_v15 = vadd.f32 %v3065_v12, %v9930_v7  ;;  %v3313_v56 = vmax.f32 %v3062_v9, 0.0 }
 0x3e0   : > { %v3314_v17 = vmax.f32 %v3064_v11, 0.0  ;;  %v8746_v11 = vld [vmem:[%s11368_s3 + $0x534] ss:$8 sps:$4 sm:$0xff]  }
 0x3e1   : > { %v3315_v18 = vmax.f32 %v3066_v15, 0.0  ;;  %5174 = vmatprep.subr.bf16.mxu0 %v8746_v11  ;;  %v8750_v11 = vld [vmem:[%s11368_s3 + $0x550] ss:$8 sps:$4 sm:$0xff]  }
 0x3e2   : > { %v3418_v19 = vpack.c.bf16 %v3314_v17, %v3312_v16  ;;  %5175 = vmatpush1.bf16.msra.mxu0 %v8744_v10 }
 0x3e3   : > { %v3069_v57 = vpop.f32.mrb[176].mxu1  ;;  %v3419_v20 = vpack.c.bf16 %v3315_v18, %v3313_v56 }
 0x3e4   : > { %v3070_v21 = vadd.f32 %v3069_v57, %v9926_v6  ;;  %v3071_v22 = vpop.f32.mrb[177].mxu1 }
 0x3e5   : > { %v3072_v23 = vadd.f32 %v3071_v22, %v9930_v7  ;;  %v3073_v24 = vpop.f32.mrb[178].mxu1  ;;  %3808 = vmatprep.mubr.bf16.mxu0 %v3419_v20 }
 0x3e6   : > { %v3074_v26 = vadd.f32 %v3073_v24, %v9926_v6  ;;  %v3075_v28 = vpop.f32.mrb[179].mxu1  ;;  %3809 = vmatmul.mubr.bf16.gmra.mrb[44].mxu0 %v3418_v19  ;;  %v3316_v32 = vmax.f32 %v3070_v21, 0.0 }
 0x3e7   : > { %v3076_v29 = vadd.f32 %v3075_v28, %v9930_v7  ;;  %v3317_v34 = vmax.f32 %v3072_v23, 0.0 }
 0x3e8   : > { %v3318_v33 = vmax.f32 %v3074_v26, 0.0 }
 0x3e9   : > { %v3319_v35 = vmax.f32 %v3076_v29, 0.0 }
 0x3ea   : > { %v3420_v36 = vpack.c.bf16 %v3318_v33, %v3316_v32 }
 0x3eb   : > { %v3079_v37 = vpop.f32.mrb[180].mxu1  ;;  %v3421_v38 = vpack.c.bf16 %v3319_v35, %v3317_v34 }
 0x3ec   : > { %v3080_v39 = vadd.f32 %v3079_v37, %v9926_v6  ;;  %v3081_v40 = vpop.f32.mrb[181].mxu1 }
 0x3ed   : > { %v3082_v45 = vadd.f32 %v3081_v40, %v9930_v7  ;;  %v3083_v46 = vpop.f32.mrb[182].mxu1  ;;  %3818 = vmatprep.mubr.bf16.mxu0 %v3421_v38 }
 0x3ee   : > { %v3084_v47 = vadd.f32 %v3083_v46, %v9926_v6  ;;  %v3085_v48 = vpop.f32.mrb[183].mxu1  ;;  %3819 = vmatmul.mubr.bf16.gmra.mrb[48].mxu0 %v3420_v36  ;;  %v3320_v50 = vmax.f32 %v3080_v39, 0.0 }
 0x3ef   : > { %v3086_v49 = vadd.f32 %v3085_v48, %v9930_v7  ;;  %v3321_v52 = vmax.f32 %v3082_v45, 0.0  ;;  %v8749_v45 = vld [vmem:[%s11368_s3 + $0x544] ss:$8 sps:$4 sm:$0xff]  }
 0x3f0   : > { %v3322_v51 = vmax.f32 %v3084_v47, 0.0  ;;  %5176 = vmatprep.subr.bf16.mxu0 %v8749_v45  ;;  %v8753_v45 = vld [vmem:[%s11368_s3 + $0x560] ss:$8 sps:$4 sm:$0xff]  }
 0x3f1   : > { %v3323_v53 = vmax.f32 %v3086_v49, 0.0  ;;  %5177 = vmatpush1.bf16.msra.mxu0 %v8747_v43 }
 0x3f2   : > { %v3422_v54 = vpack.c.bf16 %v3322_v51, %v3320_v50 }
 0x3f3   : > { %v3089_v30 = vpop.f32.mrb[184].mxu1  ;;  %v3423_v55 = vpack.c.bf16 %v3323_v53, %v3321_v52 }
 0x3f4   : > { %v3090_v31 = vadd.f32 %v3089_v30, %v9926_v6  ;;  %v3091_v58 = vpop.f32.mrb[185].mxu1 }
 0x3f5   : > { %v3092_v59 = vadd.f32 %v3091_v58, %v9930_v7  ;;  %v3093_v60 = vpop.f32.mrb[186].mxu1  ;;  %3828 = vmatprep.mubr.bf16.mxu0 %v3423_v55 }
 0x3f6   : > { %v3094_v61 = vadd.f32 %v3093_v60, %v9926_v6  ;;  %v3095_v62 = vpop.f32.mrb[187].mxu1  ;;  %3829 = vmatmul.mubr.bf16.gmra.mrb[52].mxu0 %v3422_v54  ;;  %v3324_v0 = vmax.f32 %v3090_v31, 0.0 }
 0x3f7   : > { %v3096_v63 = vadd.f32 %v3095_v62, %v9930_v7  ;;  %v3325_v3 = vmax.f32 %v3092_v59, 0.0 }
 0x3f8   : > { %v3326_v1 = vmax.f32 %v3094_v61, 0.0 }
 0x3f9   : > { %v3327_v4 = vmax.f32 %v3096_v63, 0.0 }
 0x3fa   : > { %v3424_v42 = vpack.c.bf16 %v3326_v1, %v3324_v0 }
 0x3fb   : > { %v3099_v5 = vpop.f32.mrb[188].mxu1  ;;  %v3425_v44 = vpack.c.bf16 %v3327_v4, %v3325_v3 }
 0x3fc   : > { %v3100_v8 = vadd.f32 %v3099_v5, %v9926_v6  ;;  %v3101_v9 = vpop.f32.mrb[189].mxu1 }
 0x3fd   : > { %v3102_v12 = vadd.f32 %v3101_v9, %v9930_v7  ;;  %v3103_v13 = vpop.f32.mrb[190].mxu1  ;;  %3838 = vmatprep.mubr.bf16.mxu0 %v3425_v44 }
 0x3fe   : > { %v3104_v14 = vadd.f32 %v3103_v13, %v9926_v6  ;;  %v3105_v15 = vpop.f32.mrb[191].mxu1  ;;  %3839 = vmatmul.mubr.bf16.gmra.mrb[56].mxu0 %v3424_v42  ;;  %v3328_v17 = vmax.f32 %v3100_v8, 0.0 }
 0x3ff   : > { %v3106_v16 = vadd.f32 %v3105_v15, %v9930_v7  ;;  %v3329_v18 = vmax.f32 %v3102_v12, 0.0  ;;  %v8752_v12 = vld [vmem:[%s11368_s3 + $0x554] ss:$8 sps:$4 sm:$0xff]  }
 0x400   : > { %v3330_v56 = vmax.f32 %v3104_v14, 0.0  ;;  %5178 = vmatprep.subr.bf16.mxu0 %v8752_v12  ;;  %v8756_v12 = vld [vmem:[%s11368_s3 + $0x570] ss:$8 sps:$4 sm:$0xff]  }
 0x401   : > { %v3331_v19 = vmax.f32 %v3106_v16, 0.0  ;;  %5179 = vmatpush1.bf16.msra.mxu0 %v8750_v11 }
 0x402   : > { %v3426_v57 = vpack.c.bf16 %v3330_v56, %v3328_v17 }
 0x403   : > { %v3109_v20 = vpop.f32.mrb[192].mxu1  ;;  %v3427_v21 = vpack.c.bf16 %v3331_v19, %v3329_v18 }
 0x404   : > { %v3110_v22 = vadd.f32 %v3109_v20, %v9926_v6  ;;  %v3111_v23 = vpop.f32.mrb[193].mxu1 }
 0x405   : > { %v3112_v24 = vadd.f32 %v3111_v23, %v9930_v7  ;;  %v3113_v26 = vpop.f32.mrb[194].mxu1  ;;  %3848 = vmatprep.mubr.bf16.mxu0 %v3427_v21 }
 0x406   : > { %v3114_v28 = vadd.f32 %v3113_v26, %v9926_v6  ;;  %v3115_v29 = vpop.f32.mrb[195].mxu1  ;;  %3849 = vmatmul.mubr.bf16.gmra.mrb[60].mxu0 %v3426_v57  ;;  %v3332_v33 = vmax.f32 %v3110_v22, 0.0 }
 0x407   : > { %v3116_v32 = vadd.f32 %v3115_v29, %v9930_v7  ;;  %v3333_v35 = vmax.f32 %v3112_v24, 0.0 }
 0x408   : > { %v3334_v34 = vmax.f32 %v3114_v28, 0.0 }
 0x409   : > { %v3335_v36 = vmax.f32 %v3116_v32, 0.0 }
 0x40a   : > { %v3428_v37 = vpack.c.bf16 %v3334_v34, %v3332_v33 }
 0x40b   : > { %v3119_v38 = vpop.f32.mrb[196].mxu1  ;;  %v3429_v39 = vpack.c.bf16 %v3335_v36, %v3333_v35 }
 0x40c   : > { %v3120_v40 = vadd.f32 %v3119_v38, %v9926_v6  ;;  %v3121_v41 = vpop.f32.mrb[197].mxu1 }
 0x40d   : > { %v3122_v46 = vadd.f32 %v3121_v41, %v9930_v7  ;;  %v3123_v47 = vpop.f32.mrb[198].mxu1  ;;  %3858 = vmatprep.mubr.bf16.mxu0 %v3429_v39 }
 0x40e   : > { %v3124_v48 = vadd.f32 %v3123_v47, %v9926_v6  ;;  %v3125_v49 = vpop.f32.mrb[199].mxu1  ;;  %3859 = vmatmul.mubr.bf16.gmra.mrb[64].mxu0 %v3428_v37  ;;  %v3336_v51 = vmax.f32 %v3120_v40, 0.0 }
 0x40f   : > { %v3126_v50 = vadd.f32 %v3125_v49, %v9930_v7  ;;  %v3337_v53 = vmax.f32 %v3122_v46, 0.0  ;;  %v8755_v46 = vld [vmem:[%s11368_s3 + $0x564] ss:$8 sps:$4 sm:$0xff]  }
 0x410   : > { %v3338_v52 = vmax.f32 %v3124_v48, 0.0  ;;  %5180 = vmatprep.subr.bf16.mxu0 %v8755_v46  ;;  %v8759_v46 = vld [vmem:[%s11368_s3 + $0x580] ss:$8 sps:$4 sm:$0xff]  }
 0x411   : > { %v3339_v54 = vmax.f32 %v3126_v50, 0.0  ;;  %5181 = vmatpush1.bf16.msra.mxu0 %v8753_v45 }
 0x412   : > { %v3430_v30 = vpack.c.bf16 %v3338_v52, %v3336_v51 }
 0x413   : > { %v3129_v55 = vpop.f32.mrb[200].mxu1  ;;  %v3431_v31 = vpack.c.bf16 %v3339_v54, %v3337_v53 }
 0x414   : > { %v3130_v58 = vadd.f32 %v3129_v55, %v9926_v6  ;;  %v3131_v59 = vpop.f32.mrb[201].mxu1 }
 0x415   : > { %v3132_v60 = vadd.f32 %v3131_v59, %v9930_v7  ;;  %v3133_v61 = vpop.f32.mrb[202].mxu1  ;;  %3868 = vmatprep.mubr.bf16.mxu0 %v3431_v31 }
 0x416   : > { %v3134_v62 = vadd.f32 %v3133_v61, %v9926_v6  ;;  %v3135_v63 = vpop.f32.mrb[203].mxu1  ;;  %3869 = vmatmul.mubr.bf16.gmra.mrb[68].mxu0 %v3430_v30  ;;  %v3340_v1 = vmax.f32 %v3130_v58, 0.0 }
 0x417   : > { %v3136_v0 = vadd.f32 %v3135_v63, %v9930_v7  ;;  %v3341_v4 = vmax.f32 %v3132_v60, 0.0 }
 0x418   : > { %v3342_v3 = vmax.f32 %v3134_v62, 0.0 }
 0x419   : > { %v3343_v42 = vmax.f32 %v3136_v0, 0.0 }
 0x41a   : > { %v3432_v5 = vpack.c.bf16 %v3342_v3, %v3340_v1 }
 0x41b   : > { %v3139_v44 = vpop.f32.mrb[204].mxu1  ;;  %v3433_v8 = vpack.c.bf16 %v3343_v42, %v3341_v4 }
 0x41c   : > { %v3140_v9 = vadd.f32 %v3139_v44, %v9926_v6  ;;  %v3141_v10 = vpop.f32.mrb[205].mxu1 }
 0x41d   : > { %v3142_v13 = vadd.f32 %v3141_v10, %v9930_v7  ;;  %v3143_v14 = vpop.f32.mrb[206].mxu1  ;;  %3878 = vmatprep.mubr.bf16.mxu0 %v3433_v8 }
 0x41e   : > { %v3144_v15 = vadd.f32 %v3143_v14, %v9926_v6  ;;  %v3145_v16 = vpop.f32.mrb[207].mxu1  ;;  %3879 = vmatmul.mubr.bf16.gmra.mrb[72].mxu0 %v3432_v5  ;;  %v3344_v56 = vmax.f32 %v3140_v9, 0.0 }
 0x41f   : > { %v3146_v17 = vadd.f32 %v3145_v16, %v9930_v7  ;;  %v3345_v19 = vmax.f32 %v3142_v13, 0.0  ;;  %v8758_v13 = vld [vmem:[%s11368_s3 + $0x574] ss:$8 sps:$4 sm:$0xff]  }
 0x420   : > { %v3346_v18 = vmax.f32 %v3144_v15, 0.0  ;;  %5182 = vmatprep.subr.bf16.mxu0 %v8758_v13 }
 0x421   : > { %v3347_v57 = vmax.f32 %v3146_v17, 0.0  ;;  %5183 = vmatpush1.bf16.msra.mxu0 %v8756_v12 }
 0x422   : > { %v3434_v20 = vpack.c.bf16 %v3346_v18, %v3344_v56 }
 0x423   : > { %v3149_v21 = vpop.f32.mrb[208].mxu1  ;;  %v3435_v22 = vpack.c.bf16 %v3347_v57, %v3345_v19 }
 0x424   : > { %v3150_v23 = vadd.f32 %v3149_v21, %v9926_v6  ;;  %v3151_v24 = vpop.f32.mrb[209].mxu1 }
 0x425   : > { %v3152_v26 = vadd.f32 %v3151_v24, %v9930_v7  ;;  %v3153_v28 = vpop.f32.mrb[210].mxu1  ;;  %3888 = vmatprep.mubr.bf16.mxu0 %v3435_v22 }
 0x426   : > { %v3154_v29 = vadd.f32 %v3153_v28, %v9926_v6  ;;  %v3155_v32 = vpop.f32.mrb[211].mxu1  ;;  %3889 = vmatmul.mubr.bf16.gmra.mrb[76].mxu0 %v3434_v20  ;;  %v3348_v34 = vmax.f32 %v3150_v23, 0.0 }
 0x427   : > { %v3156_v33 = vadd.f32 %v3155_v32, %v9930_v7  ;;  %v3349_v36 = vmax.f32 %v3152_v26, 0.0 }
 0x428   : > { %v3350_v35 = vmax.f32 %v3154_v29, 0.0 }
 0x429   : > { %v3351_v37 = vmax.f32 %v3156_v33, 0.0 }
 0x42a   : > { %v3436_v38 = vpack.c.bf16 %v3350_v35, %v3348_v34 }
 0x42b   : > { %v3159_v39 = vpop.f32.mrb[212].mxu1  ;;  %v3437_v40 = vpack.c.bf16 %v3351_v37, %v3349_v36 }
 0x42c   : > { %v3160_v41 = vadd.f32 %v3159_v39, %v9926_v6  ;;  %v3161_v43 = vpop.f32.mrb[213].mxu1 }
 0x42d   : > { %v3162_v47 = vadd.f32 %v3161_v43, %v9930_v7  ;;  %v3163_v48 = vpop.f32.mrb[214].mxu1  ;;  %3898 = vmatprep.mubr.bf16.mxu0 %v3437_v40 }
 0x42e   : > { %v3164_v49 = vadd.f32 %v3163_v48, %v9926_v6  ;;  %v3165_v50 = vpop.f32.mrb[215].mxu1  ;;  %3899 = vmatmul.mubr.bf16.gmra.mrb[80].mxu0 %v3436_v38  ;;  %v3352_v52 = vmax.f32 %v3160_v41, 0.0 }
 0x42f   : > { %v3166_v51 = vadd.f32 %v3165_v50, %v9930_v7  ;;  %v3353_v54 = vmax.f32 %v3162_v47, 0.0  ;;  %v8761_v47 = vld [vmem:[%s11368_s3 + $0x584] ss:$8 sps:$4 sm:$0xff]  }
 0x430   : > { %v3354_v53 = vmax.f32 %v3164_v49, 0.0  ;;  %5184 = vmatprep.subr.bf16.mxu0 %v8761_v47 }
 0x431   : > { %v3355_v30 = vmax.f32 %v3166_v51, 0.0  ;;  %5185 = vmatpush1.bf16.msra.mxu0 %v8759_v46 }
 0x432   : > { %v3438_v55 = vpack.c.bf16 %v3354_v53, %v3352_v52 }
 0x433   : > { %v3169_v31 = vpop.f32.mrb[216].mxu1  ;;  %v3439_v58 = vpack.c.bf16 %v3355_v30, %v3353_v54 }
 0x434   : > { %v3170_v59 = vadd.f32 %v3169_v31, %v9926_v6  ;;  %v3171_v60 = vpop.f32.mrb[217].mxu1 }
 0x435   : > { %v3172_v61 = vadd.f32 %v3171_v60, %v9930_v7  ;;  %v3173_v62 = vpop.f32.mrb[218].mxu1  ;;  %3908 = vmatprep.mubr.bf16.mxu0 %v3439_v58 }
 0x436   : > { %v3174_v63 = vadd.f32 %v3173_v62, %v9926_v6  ;;  %v3175_v0 = vpop.f32.mrb[219].mxu1  ;;  %3909 = vmatmul.mubr.bf16.gmra.mrb[84].mxu0 %v3438_v55  ;;  %v3356_v3 = vmax.f32 %v3170_v59, 0.0 }
 0x437   : > { %v3176_v1 = vadd.f32 %v3175_v0, %v9930_v7  ;;  %v3357_v42 = vmax.f32 %v3172_v61, 0.0 }
 0x438   : > { %v3358_v4 = vmax.f32 %v3174_v63, 0.0 }
 0x439   : > { %v3359_v5 = vmax.f32 %v3176_v1, 0.0 }
 0x43a   : > { %v3440_v44 = vpack.c.bf16 %v3358_v4, %v3356_v3 }
 0x43b   : > { %v3179_v8 = vpop.f32.mrb[220].mxu1  ;;  %v3441_v9 = vpack.c.bf16 %v3359_v5, %v3357_v42 }
 0x43c   : > { %v3180_v10 = vadd.f32 %v3179_v8, %v9926_v6  ;;  %v3181_v11 = vpop.f32.mrb[221].mxu1 }
 0x43d   : > { %v3182_v14 = vadd.f32 %v3181_v11, %v9930_v7  ;;  %v3183_v15 = vpop.f32.mrb[222].mxu1  ;;  %3918 = vmatprep.mubr.bf16.mxu0 %v3441_v9  ;;  %v8098_v11 = vld [vmem:[%s11369_s4 + $0x6] sm:$0x3] }
 0x43e   : > { %v3184_v16 = vadd.f32 %v3183_v15, %v9926_v6  ;;  %v3185_v17 = vpop.f32.mrb[223].mxu1  ;;  %3919 = vmatmul.mubr.bf16.gmra.mrb[88].mxu0 %v3440_v44  ;;  %v3360_v18 = vmax.f32 %v3180_v10, 0.0  ;;  %v8764_v15 = vld [vmem:[%s11368_s3 + $0x594] ss:$8 sps:$4 sm:$0xff]  }
 0x43f   : > { %v3186_v56 = vadd.f32 %v3185_v17, %v9930_v7  ;;  %v3361_v57 = vmax.f32 %v3182_v14, 0.0  ;;  %v8762_v14 = vld [vmem:[%s11368_s3 + $0x590] ss:$8 sps:$4 sm:$0xff]   ;;  %5186 = vmatprep.subr.bf16.mxu0 %v8764_v15 }
 0x440   : > { %v3362_v19 = vmax.f32 %v3184_v16, 0.0  ;;  %5187 = vmatpush1.bf16.msra.mxu0 %v8762_v14 }
 0x441   : > { %v3363_v20 = vmax.f32 %v3186_v56, 0.0 }
 0x442   : > { %v3442_v21 = vpack.c.bf16 %v3362_v19, %v3360_v18  ;;  %v10159_v19 = vrot.slane %v8098_v11, %v9214_v25 }
 0x443   : > { %v3189_v22 = vpop.f32.mrb[224].mxu1  ;;  %v3443_v23 = vpack.c.bf16 %v3363_v20, %v3361_v57  ;;  %v10163_v20 = vrot.slane %v8098_v11, %v9219_v27 }
 0x444   : > { %v3190_v24 = vadd.f32 %v3189_v22, %v9926_v6  ;;  %v3191_v26 = vpop.f32.mrb[225].mxu1 }
 0x445   : > { %v3192_v28 = vadd.f32 %v3191_v26, %v9930_v7  ;;  %v3193_v29 = vpop.f32.mrb[226].mxu1  ;;  %3928 = vmatprep.mubr.bf16.mxu0 %v3443_v23 }
 0x446   : > { %v3194_v32 = vadd.f32 %v3193_v29, %v9926_v6  ;;  %v3195_v33 = vpop.f32.mrb[227].mxu1  ;;  %3929 = vmatmul.mubr.bf16.gmra.mrb[92].mxu0 %v3442_v21  ;;  %v3364_v35 = vmax.f32 %v3190_v24, 0.0 }
 0x447   : > { %v3196_v34 = vadd.f32 %v3195_v33, %v9930_v7  ;;  %v3365_v37 = vmax.f32 %v3192_v28, 0.0 }
 0x448   : > { %v3366_v36 = vmax.f32 %v3194_v32, 0.0 }
 0x449   : > { %v3367_v38 = vmax.f32 %v3196_v34, 0.0 }
 0x44a   : > { %v3444_v39 = vpack.c.bf16 %v3366_v36, %v3364_v35 }
 0x44b   : > { %v3199_v40 = vpop.f32.mrb[228].mxu1  ;;  %v3445_v41 = vpack.c.bf16 %v3367_v38, %v3365_v37 }
 0x44c   : > { %v3200_v43 = vadd.f32 %v3199_v40, %v9926_v6  ;;  %v3201_v45 = vpop.f32.mrb[229].mxu1 }
 0x44d   : > { %v3202_v48 = vadd.f32 %v3201_v45, %v9930_v7  ;;  %v3203_v49 = vpop.f32.mrb[230].mxu1  ;;  %3938 = vmatprep.mubr.bf16.mxu0 %v3445_v41 }
 0x44e   : > { %v3204_v50 = vadd.f32 %v3203_v49, %v9926_v6  ;;  %v3205_v51 = vpop.f32.mrb[231].mxu1  ;;  %3939 = vmatmul.mubr.bf16.gmra.mrb[96].mxu0 %v3444_v39  ;;  %v3368_v53 = vmax.f32 %v3200_v43, 0.0 }
 0x44f   : > { %v3206_v52 = vadd.f32 %v3205_v51, %v9930_v7  ;;  %v3369_v30 = vmax.f32 %v3202_v48, 0.0 }
 0x450   : > { %v3370_v54 = vmax.f32 %v3204_v50, 0.0 }
 0x451   : > { %v3371_v55 = vmax.f32 %v3206_v52, 0.0 }
 0x452   : > { %v3446_v31 = vpack.c.bf16 %v3370_v54, %v3368_v53 }
 0x453   : > { %v3209_v58 = vpop.f32.mrb[232].mxu1  ;;  %v3447_v59 = vpack.c.bf16 %v3371_v55, %v3369_v30 }
 0x454   : > { %v3210_v60 = vadd.f32 %v3209_v58, %v9926_v6  ;;  %v3211_v61 = vpop.f32.mrb[233].mxu1 }
 0x455   : > { %v3212_v62 = vadd.f32 %v3211_v61, %v9930_v7  ;;  %v3213_v63 = vpop.f32.mrb[234].mxu1  ;;  %3948 = vmatprep.mubr.bf16.mxu0 %v3447_v59 }
 0x456   : > { %v3214_v0 = vadd.f32 %v3213_v63, %v9926_v6  ;;  %v3215_v1 = vpop.f32.mrb[235].mxu1  ;;  %3949 = vmatmul.mubr.bf16.gmra.mrb[100].mxu0 %v3446_v31  ;;  %v3372_v4 = vmax.f32 %v3210_v60, 0.0 }
 0x457   : > { %v3216_v3 = vadd.f32 %v3215_v1, %v9930_v7  ;;  %v3373_v5 = vmax.f32 %v3212_v62, 0.0 }
 0x458   : > { %v3374_v42 = vmax.f32 %v3214_v0, 0.0 }
 0x459   : > { %v3375_v44 = vmax.f32 %v3216_v3, 0.0 }
 0x45a   : > { %v3448_v8 = vpack.c.bf16 %v3374_v42, %v3372_v4 }
 0x45b   : > { %v3219_v9 = vpop.f32.mrb[236].mxu1  ;;  %v3449_v10 = vpack.c.bf16 %v3375_v44, %v3373_v5 }
 0x45c   : > { %v3220_v12 = vadd.f32 %v3219_v9, %v9926_v6  ;;  %v3221_v13 = vpop.f32.mrb[237].mxu1 }
 0x45d   : > { %v3222_v16 = vadd.f32 %v3221_v13, %v9930_v7  ;;  %v3223_v17 = vpop.f32.mrb[238].mxu1  ;;  %3958 = vmatprep.mubr.bf16.mxu0 %v3449_v10 }
 0x45e   : > { %v3224_v56 = vadd.f32 %v3223_v17, %v9926_v6  ;;  %v3225_v18 = vpop.f32.mrb[239].mxu1  ;;  %3959 = vmatmul.mubr.bf16.gmra.mrb[104].mxu0 %v3448_v8  ;;  %v3376_v21 = vmax.f32 %v3220_v12, 0.0  ;;  %v8765_v8 = vld [vmem:[%s11368_s3 + $0x5a0] ss:$8 sps:$4 sm:$0xff]   ;;  %v8767_v12 = vld [vmem:[%s11368_s3 + $0x5a4] ss:$8 sps:$4 sm:$0xff]  }
 0x45f   : > { %v3226_v57 = vadd.f32 %v3225_v18, %v9930_v7  ;;  %v3377_v23 = vmax.f32 %v3222_v16, 0.0  ;;  %5188 = vmatprep.subr.bf16.mxu0 %v8767_v12 }
 0x460   : > { %v3378_v22 = vmax.f32 %v3224_v56, 0.0  ;;  %5189 = vmatpush1.bf16.msra.mxu0 %v8765_v8 }
 0x461   : > { %v3379_v24 = vmax.f32 %v3226_v57, 0.0  ;;  %v3700_v26 = vpop.f32.mrb[0].mxu0 }
 0x462   : > { %v3450_v28 = vpack.c.bf16 %v3378_v22, %v3376_v21  ;;  %v3701_v29 = vadd.f32 %v3700_v26, %v10159_v19  ;;  %v3702_v32 = vpop.f32.mrb[1].mxu0 }
 0x463   : > { %v3703_v33 = vadd.f32 %v3702_v32, %v10163_v20  ;;  %v3229_v34 = vpop.f32.mrb[240].mxu1  ;;  %v3704_v35 = vpop.f32.mrb[2].mxu0  ;;  %v3451_v36 = vpack.c.bf16 %v3379_v24, %v3377_v23 }
 0x464   : > { %v3230_v37 = vadd.f32 %v3229_v34, %v9926_v6  ;;  %v3705_v38 = vadd.f32 %v3704_v35, %v10159_v19  ;;  %v3231_v39 = vpop.f32.mrb[241].mxu1  ;;  %v3706_v40 = vpop.f32.mrb[3].mxu0  ;;  %v4019_v46 = vmax.f32 %v3701_v29, 0.0 }
 0x465   : > { %v3232_v41 = vadd.f32 %v3231_v39, %v9930_v7  ;;  %v3707_v43 = vadd.f32 %v3706_v40, %v10163_v20  ;;  %v3233_v45 = vpop.f32.mrb[242].mxu1  ;;  %3968 = vmatprep.mubr.bf16.mxu0 %v3451_v36  ;;  %v4020_v50 = vmax.f32 %v3703_v33, 0.0 }
 0x466   : > { %v4021_v47 = vmax.f32 %v3705_v38, 0.0  ;;  %v3234_v48 = vadd.f32 %v3233_v45, %v9926_v6  ;;  %v3235_v49 = vpop.f32.mrb[243].mxu1  ;;  %3969 = vmatmul.mubr.bf16.gmra.mrb[108].mxu0 %v3450_v28  ;;  %v3380_v53 = vmax.f32 %v3230_v37, 0.0 }
 0x467   : > { %v4022_v51 = vmax.f32 %v3707_v43, 0.0  ;;  %v3236_v52 = vadd.f32 %v3235_v49, %v9930_v7  ;;  %v3381_v55 = vmax.f32 %v3232_v41, 0.0 }
 0x468   : > { %v4147_v54 = vpack.c.bf16 %v4021_v47, %v4019_v46  ;;  %v3382_v30 = vmax.f32 %v3234_v48, 0.0 }
 0x469   : > { %v3383_v31 = vmax.f32 %v3236_v52, 0.0  ;;  %v3710_v58 = vpop.f32.mrb[4].mxu0  ;;  %v4148_v59 = vpack.c.bf16 %v4022_v51, %v4020_v50 }
 0x46a   : > { %v3452_v60 = vpack.c.bf16 %v3382_v30, %v3380_v53  ;;  %v3711_v61 = vadd.f32 %v3710_v58, %v10159_v19  ;;  %v3712_v62 = vpop.f32.mrb[5].mxu0 }
 0x46b   : > { %v3713_v63 = vadd.f32 %v3712_v62, %v10163_v20  ;;  %v3239_v0 = vpop.f32.mrb[244].mxu1  ;;  %v3714_v1 = vpop.f32.mrb[6].mxu0  ;;  %4449 = vmatprep.mubr.bf16.mxu1 %v4148_v59  ;;  %v3453_v3 = vpack.c.bf16 %v3383_v31, %v3381_v55 }
 0x46c   : > { %v3240_v4 = vadd.f32 %v3239_v0, %v9926_v6  ;;  %v3715_v42 = vadd.f32 %v3714_v1, %v10159_v19  ;;  %v3241_v5 = vpop.f32.mrb[245].mxu1  ;;  %v3716_v44 = vpop.f32.mrb[7].mxu0  ;;  %4450 = vmatmul.mubr.bf16.vlgmr.msra.gmra.mrb[0].mxu1 %v4147_v54  ;;  %v4023_v13 = vmax.f32 %v3711_v61, 0.0 }
 0x46d   : > { %v3242_v9 = vadd.f32 %v3241_v5, %v9930_v7  ;;  %v3717_v10 = vadd.f32 %v3716_v44, %v10163_v20  ;;  %v3243_v11 = vpop.f32.mrb[246].mxu1  ;;  %3978 = vmatprep.mubr.bf16.mxu0 %v3453_v3  ;;  %v4024_v17 = vmax.f32 %v3713_v63, 0.0 }
 0x46e   : > { %v4025_v14 = vmax.f32 %v3715_v42, 0.0  ;;  %v3244_v15 = vadd.f32 %v3243_v11, %v9926_v6  ;;  %v3245_v16 = vpop.f32.mrb[247].mxu1  ;;  %3979 = vmatmul.mubr.bf16.gmra.mrb[112].mxu0 %v3452_v60  ;;  %v3384_v57 = vmax.f32 %v3240_v4, 0.0 }
 0x46f   : > { %v4026_v56 = vmax.f32 %v3717_v10, 0.0  ;;  %v3246_v18 = vadd.f32 %v3245_v16, %v9930_v7  ;;  %v3385_v23 = vmax.f32 %v3242_v9, 0.0  ;;  %v8768_v9 = vld [vmem:[%s11368_s3 + $0x5b0] ss:$8 sps:$4 sm:$0xff]  }
 0x470   : > { %v4149_v21 = vpack.c.bf16 %v4025_v14, %v4023_v13  ;;  %v3386_v22 = vmax.f32 %v3244_v15, 0.0  ;;  %v8770_v13 = vld [vmem:[%s11368_s3 + $0x5b4] ss:$8 sps:$4 sm:$0xff]  }
 0x471   : > { %v3387_v24 = vmax.f32 %v3246_v18, 0.0  ;;  %v3720_v26 = vpop.f32.mrb[8].mxu0  ;;  %v4150_v28 = vpack.c.bf16 %v4026_v56, %v4024_v17  ;;  %5190 = vmatprep.subr.bf16.mxu0 %v8770_v13 }
 0x472   : > { %v3454_v29 = vpack.c.bf16 %v3386_v22, %v3384_v57  ;;  %v3721_v32 = vadd.f32 %v3720_v26, %v10159_v19  ;;  %v3722_v33 = vpop.f32.mrb[9].mxu0  ;;  %5191 = vmatpush1.bf16.msra.mxu0 %v8768_v9 }
 0x473   : > { %v3723_v34 = vadd.f32 %v3722_v33, %v10163_v20  ;;  %v3249_v35 = vpop.f32.mrb[248].mxu1  ;;  %v3724_v36 = vpop.f32.mrb[10].mxu0  ;;  %4459 = vmatprep.mubr.bf16.mxu1 %v4150_v28  ;;  %v3455_v37 = vpack.c.bf16 %v3387_v24, %v3385_v23 }
 0x474   : > { %v3250_v38 = vadd.f32 %v3249_v35, %v9926_v6  ;;  %v3725_v39 = vadd.f32 %v3724_v36, %v10159_v19  ;;  %v3251_v40 = vpop.f32.mrb[249].mxu1  ;;  %v3726_v41 = vpop.f32.mrb[11].mxu0  ;;  %4460 = vmatmul.mubr.bf16.gmra.mrb[4].mxu1 %v4149_v21  ;;  %v4027_v47 = vmax.f32 %v3721_v32, 0.0 }
 0x475   : > { %v3252_v43 = vadd.f32 %v3251_v40, %v9930_v7  ;;  %v3727_v45 = vadd.f32 %v3726_v41, %v10163_v20  ;;  %v3253_v46 = vpop.f32.mrb[250].mxu1  ;;  %3988 = vmatprep.mubr.bf16.mxu0 %v3455_v37  ;;  %v4028_v51 = vmax.f32 %v3723_v34, 0.0 }
 0x476   : > { %v4029_v48 = vmax.f32 %v3725_v39, 0.0  ;;  %v3254_v49 = vadd.f32 %v3253_v46, %v9926_v6  ;;  %v3255_v50 = vpop.f32.mrb[251].mxu1  ;;  %3989 = vmatmul.mubr.bf16.gmra.mrb[116].mxu0 %v3454_v29  ;;  %v3388_v54 = vmax.f32 %v3250_v38, 0.0 }
 0x477   : > { %v4030_v52 = vmax.f32 %v3727_v45, 0.0  ;;  %v3256_v53 = vadd.f32 %v3255_v50, %v9930_v7  ;;  %v3389_v31 = vmax.f32 %v3252_v43, 0.0 }
 0x478   : > { %v4151_v30 = vpack.c.bf16 %v4029_v48, %v4027_v47  ;;  %v3390_v55 = vmax.f32 %v3254_v49, 0.0 }
 0x479   : > { %v3391_v58 = vmax.f32 %v3256_v53, 0.0  ;;  %v3730_v59 = vpop.f32.mrb[12].mxu0  ;;  %v4152_v60 = vpack.c.bf16 %v4030_v52, %v4028_v51 }
 0x47a   : > { %v3456_v61 = vpack.c.bf16 %v3390_v55, %v3388_v54  ;;  %v3731_v62 = vadd.f32 %v3730_v59, %v10159_v19  ;;  %v3732_v63 = vpop.f32.mrb[13].mxu0  ;;  %v8771_v54 = vld [vmem:[%s11368_s3 + $0x5c0] ss:$8 sps:$4 sm:$0xff]  }
 0x47b   : > { %v3733_v0 = vadd.f32 %v3732_v63, %v10163_v20  ;;  %v3259_v1 = vpop.f32.mrb[252].mxu1  ;;  %v3734_v3 = vpop.f32.mrb[14].mxu0  ;;  %4469 = vmatprep.mubr.bf16.mxu1 %v4152_v60  ;;  %v3457_v4 = vpack.c.bf16 %v3391_v58, %v3389_v31 }
 0x47c   : > { %v3260_v42 = vadd.f32 %v3259_v1, %v9926_v6  ;;  %v3735_v5 = vadd.f32 %v3734_v3, %v10159_v19  ;;  %v3261_v44 = vpop.f32.mrb[253].mxu1  ;;  %v3736_v8 = vpop.f32.mrb[15].mxu0  ;;  %4470 = vmatmul.mubr.bf16.gmra.mrb[8].mxu1 %v4151_v30  ;;  %v4031_v14 = vmax.f32 %v3731_v62, 0.0  ;;  %v8773_v30 = vld [vmem:[%s11368_s3 + $0x5c4] ss:$8 sps:$4 sm:$0xff]  }
 0x47d   : > { %v3262_v10 = vadd.f32 %v3261_v44, %v9930_v7  ;;  %v3737_v11 = vadd.f32 %v3736_v8, %v10163_v20  ;;  %v3263_v12 = vpop.f32.mrb[254].mxu1  ;;  %3998 = vmatprep.mubr.bf16.mxu0 %v3457_v4  ;;  %v4032_v56 = vmax.f32 %v3733_v0, 0.0  ;;  %5192 = vmatprep.subr.bf16.mxu0 %v8773_v30 }
 0x47e   : > { %v4033_v15 = vmax.f32 %v3735_v5, 0.0  ;;  %v3264_v16 = vadd.f32 %v3263_v12, %v9926_v6  ;;  %v3265_v17 = vpop.f32.mrb[255].mxu1  ;;  %3999 = vmatmul.mubr.bf16.gmra.mrb[120].mxu0 %v3456_v61  ;;  %v3392_v21 = vmax.f32 %v3260_v42, 0.0 }
 0x47f   : > { %v4034_v18 = vmax.f32 %v3737_v11, 0.0  ;;  %v3266_v57 = vadd.f32 %v3265_v17, %v9930_v7  ;;  %v3393_v24 = vmax.f32 %v3262_v10, 0.0  ;;  %5193 = vmatpush1.bf16.msra.mxu0 %v8771_v54 }
 0x480   : > { %v4153_v22 = vpack.c.bf16 %v4033_v15, %v4031_v14  ;;  %v3394_v23 = vmax.f32 %v3264_v16, 0.0 }
 0x481   : > { %v3395_v26 = vmax.f32 %v3266_v57, 0.0  ;;  %v3740_v28 = vpop.f32.mrb[16].mxu0  ;;  %v4154_v29 = vpack.c.bf16 %v4034_v18, %v4032_v56 }
 0x482   : > { %v3458_v32 = vpack.c.bf16 %v3394_v23, %v3392_v21  ;;  %v3741_v33 = vadd.f32 %v3740_v28, %v10159_v19  ;;  %v3742_v34 = vpop.f32.mrb[17].mxu0  ;;  %v8774_v21 = vld [vmem:[%s11368_s3 + $0x5d0] ss:$8 sps:$4 sm:$0xff]  }
 0x483   : > { %v3743_v6 = vadd.f32 %v3742_v34, %v10163_v20  ;;  %v3744_v35 = vpop.f32.mrb[18].mxu0  ;;  %4479 = vmatprep.mubr.bf16.mxu1 %v4154_v29  ;;  %v3459_v36 = vpack.c.bf16 %v3395_v26, %v3393_v24 }
 0x484   : > { %v3745_v7 = vadd.f32 %v3744_v35, %v10159_v19  ;;  %v3746_v37 = vpop.f32.mrb[19].mxu0  ;;  %4480 = vmatmul.mubr.bf16.gmra.mrb[12].mxu1 %v4153_v22  ;;  %v4035_v39 = vmax.f32 %v3741_v33, 0.0  ;;  %v8776_v22 = vld [vmem:[%s11368_s3 + $0x5d4] ss:$8 sps:$4 sm:$0xff]  }
 0x485   : > { %v3747_v38 = vadd.f32 %v3746_v37, %v10163_v20  ;;  %4008 = vmatprep.mubr.bf16.mxu0 %v3459_v36  ;;  %v4036_v41 = vmax.f32 %v3743_v6, 0.0  ;;  %5194 = vmatprep.subr.bf16.mxu0 %v8776_v22 }
 0x486   : > { %v4037_v40 = vmax.f32 %v3745_v7, 0.0  ;;  %4009 = vmatmul.mubr.bf16.gmra.mrb[124].mxu0 %v3458_v32 }
 0x487   : > { %v4038_v43 = vmax.f32 %v3747_v38, 0.0  ;;  %5195 = vmatpush1.bf16.msra.mxu0 %v8774_v21 }
 0x488   : > { %v4155_v45 = vpack.c.bf16 %v4037_v40, %v4035_v39 }
 0x489   : > { %v3750_v46 = vpop.f32.mrb[20].mxu0  ;;  %v4156_v47 = vpack.c.bf16 %v4038_v43, %v4036_v41 }
 0x48a   : > { %v3751_v48 = vadd.f32 %v3750_v46, %v10159_v19  ;;  %v3752_v49 = vpop.f32.mrb[21].mxu0 }
 0x48b   : > { %v3753_v50 = vadd.f32 %v3752_v49, %v10163_v20  ;;  %v3754_v51 = vpop.f32.mrb[22].mxu0  ;;  %4489 = vmatprep.mubr.bf16.mxu1 %v4156_v47  ;;  %v8777_v47 = vld [vmem:[%s11368_s3 + $0x600] ss:$8 sps:$4 sm:$0xff]  }
 0x48c   : > { %v3755_v52 = vadd.f32 %v3754_v51, %v10159_v19  ;;  %v3756_v53 = vpop.f32.mrb[23].mxu0  ;;  %4490 = vmatmul.mubr.bf16.gmra.mrb[16].mxu1 %v4155_v45  ;;  %v4039_v31 = vmax.f32 %v3751_v48, 0.0  ;;  %v8779_v48 = vld [vmem:[%s11368_s3 + $0x604] ss:$8 sps:$4 sm:$0xff]  }
 0x48d   : > { %v3757_v55 = vadd.f32 %v3756_v53, %v10163_v20  ;;  %v4040_v59 = vmax.f32 %v3753_v50, 0.0  ;;  %5919 = vmatprep.subr.bf16.mxu1 %v8779_v48 }
 0x48e   : > { %v4041_v58 = vmax.f32 %v3755_v52, 0.0  ;;  %5920 = vmatpush1.bf16.msra.mxu1 %v8777_v47 }
 0x48f   : > { %v4042_v60 = vmax.f32 %v3757_v55, 0.0 }
 0x490   : > { %v4157_v61 = vpack.c.bf16 %v4041_v58, %v4039_v31  ;;  %v8780_v31 = vld [vmem:[%s11368_s3 + $0x5e0] ss:$8 sps:$4 sm:$0xff]   ;;  %v8782_v58 = vld [vmem:[%s11368_s3 + $0x5e4] ss:$8 sps:$4 sm:$0xff]  }
 0x491   : > { %v3760_v62 = vpop.f32.mrb[24].mxu0  ;;  %v4158_v63 = vpack.c.bf16 %v4042_v60, %v4040_v59  ;;  %5196 = vmatprep.subr.bf16.mxu0 %v8782_v58 }
 0x492   : > { %v3761_v0 = vadd.f32 %v3760_v62, %v10159_v19  ;;  %v3762_v1 = vpop.f32.mrb[25].mxu0  ;;  %5197 = vmatpush1.bf16.msra.mxu0 %v8780_v31  ;;  %v8791_v31 = vld [vmem:[%s11368_s3 + $0x624] ss:$8 sps:$4 sm:$0xff]  }
 0x493   : > { %v3763_v3 = vadd.f32 %v3762_v1, %v10163_v20  ;;  %v3764_v4 = vpop.f32.mrb[26].mxu0  ;;  %4499 = vmatprep.mubr.bf16.mxu1 %v4158_v63 }
 0x494   : > { %v3765_v42 = vadd.f32 %v3764_v4, %v10159_v19  ;;  %v3766_v5 = vpop.f32.mrb[27].mxu0  ;;  %4500 = vmatmul.mubr.bf16.gmra.mrb[20].mxu1 %v4157_v61  ;;  %v4043_v8 = vmax.f32 %v3761_v0, 0.0 }
 0x495   : > { %v3767_v44 = vadd.f32 %v3766_v5, %v10163_v20  ;;  %v4044_v10 = vmax.f32 %v3763_v3, 0.0 }
 0x496   : > { %v4045_v9 = vmax.f32 %v3765_v42, 0.0 }
 0x497   : > { %v4046_v11 = vmax.f32 %v3767_v44, 0.0 }
 0x498   : > { %v4159_v12 = vpack.c.bf16 %v4045_v9, %v4043_v8 }
 0x499   : > { %v3770_v13 = vpop.f32.mrb[28].mxu0  ;;  %v4160_v14 = vpack.c.bf16 %v4046_v11, %v4044_v10 }
 0x49a   : > { %v3771_v15 = vadd.f32 %v3770_v13, %v10159_v19  ;;  %v3772_v16 = vpop.f32.mrb[29].mxu0 }
 0x49b   : > { %v3773_v17 = vadd.f32 %v3772_v16, %v10163_v20  ;;  %v3774_v56 = vpop.f32.mrb[30].mxu0  ;;  %4509 = vmatprep.mubr.bf16.mxu1 %v4160_v14  ;;  %v8783_v16 = vld [vmem:[%s11368_s3 + $0x610] ss:$8 sps:$4 sm:$0xff]  }
 0x49c   : > { %v3775_v18 = vadd.f32 %v3774_v56, %v10159_v19  ;;  %v3776_v57 = vpop.f32.mrb[31].mxu0  ;;  %4510 = vmatmul.mubr.bf16.gmra.mrb[24].mxu1 %v4159_v12  ;;  %v4047_v24 = vmax.f32 %v3771_v15, 0.0 }
 0x49d   : > { %v3777_v23 = vadd.f32 %v3776_v57, %v10163_v20  ;;  %v4048_v28 = vmax.f32 %v3773_v17, 0.0  ;;  %v8785_v17 = vld [vmem:[%s11368_s3 + $0x614] ss:$8 sps:$4 sm:$0xff]  }
 0x49e   : > { %v4049_v26 = vmax.f32 %v3775_v18, 0.0  ;;  %5921 = vmatprep.subr.bf16.mxu1 %v8785_v17 }
 0x49f   : > { %v4050_v29 = vmax.f32 %v3777_v23, 0.0  ;;  %5922 = vmatpush1.bf16.msra.mxu1 %v8783_v16 }
 0x4a0   : > { %v4161_v32 = vpack.c.bf16 %v4049_v26, %v4047_v24  ;;  %5923 = vmatprep.subr.bf16.mxu1 %v8791_v31  ;;  %v8795_v31 = vld [vmem:[%s11368_s3 + $0x640] ss:$8 sps:$4 sm:$0xff]  }
 0x4a1   : > { %v3780_v33 = vpop.f32.mrb[32].mxu0  ;;  %v4162_v34 = vpack.c.bf16 %v4050_v29, %v4048_v28  ;;  %v8786_v28 = vld [vmem:[%s11368_s3 + $0x5f0] ss:$8 sps:$4 sm:$0xff]   ;;  %v8788_v29 = vld [vmem:[%s11368_s3 + $0x5f4] ss:$8 sps:$4 sm:$0xff]  }
 0x4a2   : > { %v3781_v6 = vadd.f32 %v3780_v33, %v10159_v19  ;;  %v3782_v35 = vpop.f32.mrb[33].mxu0  ;;  %5198 = vmatprep.subr.bf16.mxu0 %v8788_v29 }
 0x4a3   : > { %v3783_v36 = vadd.f32 %v3782_v35, %v10163_v20  ;;  %v3784_v7 = vpop.f32.mrb[34].mxu0  ;;  %4519 = vmatprep.mubr.bf16.mxu1 %v4162_v34  ;;  %5199 = vmatpush1.bf16.msra.mxu0 %v8786_v28 }
 0x4a4   : > { %v3785_v37 = vadd.f32 %v3784_v7, %v10159_v19  ;;  %v3786_v38 = vpop.f32.mrb[35].mxu0  ;;  %4520 = vmatmul.mubr.bf16.gmra.mrb[28].mxu1 %v4161_v32  ;;  %v4051_v40 = vmax.f32 %v3781_v6, 0.0 }
 0x4a5   : > { %v3787_v39 = vadd.f32 %v3786_v38, %v10163_v20  ;;  %v4052_v43 = vmax.f32 %v3783_v36, 0.0 }
 0x4a6   : > { %v4053_v41 = vmax.f32 %v3785_v37, 0.0 }
 0x4a7   : > { %v4054_v45 = vmax.f32 %v3787_v39, 0.0 }
 0x4a8   : > { %v4163_v46 = vpack.c.bf16 %v4053_v41, %v4051_v40 }
 0x4a9   : > { %v3790_v49 = vpop.f32.mrb[36].mxu0  ;;  %v4164_v50 = vpack.c.bf16 %v4054_v45, %v4052_v43 }
 0x4aa   : > { %v3791_v51 = vadd.f32 %v3790_v49, %v10159_v19  ;;  %v3792_v52 = vpop.f32.mrb[37].mxu0 }
 0x4ab   : > { %v3793_v53 = vadd.f32 %v3792_v52, %v10163_v20  ;;  %v3794_v54 = vpop.f32.mrb[38].mxu0  ;;  %4529 = vmatprep.mubr.bf16.mxu1 %v4164_v50 }
 0x4ac   : > { %v3795_v30 = vadd.f32 %v3794_v54, %v10159_v19  ;;  %v3796_v55 = vpop.f32.mrb[39].mxu0  ;;  %4530 = vmatmul.mubr.bf16.gmra.mrb[32].mxu1 %v4163_v46  ;;  %v4055_v60 = vmax.f32 %v3791_v51, 0.0 }
 0x4ad   : > { %v3797_v59 = vadd.f32 %v3796_v55, %v10163_v20  ;;  %v4056_v62 = vmax.f32 %v3793_v53, 0.0  ;;  %v8789_v55 = vld [vmem:[%s11368_s3 + $0x620] ss:$8 sps:$4 sm:$0xff]  }
 0x4ae   : > { %v4057_v61 = vmax.f32 %v3795_v30, 0.0  ;;  %5924 = vmatpush1.bf16.msra.mxu1 %v8789_v55 }
 0x4af   : > { %v4058_v63 = vmax.f32 %v3797_v59, 0.0 }
 0x4b0   : > { %v4165_v0 = vpack.c.bf16 %v4057_v61, %v4055_v60 }
 0x4b1   : > { %v3800_v1 = vpop.f32.mrb[40].mxu0  ;;  %v4166_v3 = vpack.c.bf16 %v4058_v63, %v4056_v62 }
 0x4b2   : > { %v3801_v4 = vadd.f32 %v3800_v1, %v10159_v19  ;;  %v3802_v42 = vpop.f32.mrb[41].mxu0 }
 0x4b3   : > { %v3803_v5 = vadd.f32 %v3802_v42, %v10163_v20  ;;  %v3804_v44 = vpop.f32.mrb[42].mxu0  ;;  %4539 = vmatprep.mubr.bf16.mxu1 %v4166_v3 }
 0x4b4   : > { %v3805_v8 = vadd.f32 %v3804_v44, %v10159_v19  ;;  %v3806_v9 = vpop.f32.mrb[43].mxu0  ;;  %4540 = vmatmul.mubr.bf16.gmra.mrb[36].mxu1 %v4165_v0  ;;  %v4059_v11 = vmax.f32 %v3801_v4, 0.0 }
 0x4b5   : > { %v3807_v10 = vadd.f32 %v3806_v9, %v10163_v20  ;;  %v4060_v13 = vmax.f32 %v3803_v5, 0.0 }
 0x4b6   : > { %v4061_v12 = vmax.f32 %v3805_v8, 0.0 }
 0x4b7   : > { %v4062_v14 = vmax.f32 %v3807_v10, 0.0 }
 0x4b8   : > { %v4167_v15 = vpack.c.bf16 %v4061_v12, %v4059_v11 }
 0x4b9   : > { %v3810_v56 = vpop.f32.mrb[44].mxu0  ;;  %v4168_v18 = vpack.c.bf16 %v4062_v14, %v4060_v13 }
 0x4ba   : > { %v3811_v57 = vadd.f32 %v3810_v56, %v10159_v19  ;;  %v3812_v21 = vpop.f32.mrb[45].mxu0 }
 0x4bb   : > { %v3813_v22 = vadd.f32 %v3812_v21, %v10163_v20  ;;  %v3814_v23 = vpop.f32.mrb[46].mxu0  ;;  %4549 = vmatprep.mubr.bf16.mxu1 %v4168_v18 }
 0x4bc   : > { %v3815_v24 = vadd.f32 %v3814_v23, %v10159_v19  ;;  %v3816_v26 = vpop.f32.mrb[47].mxu0  ;;  %4550 = vmatmul.mubr.bf16.gmra.mrb[40].mxu1 %v4167_v15  ;;  %v4063_v33 = vmax.f32 %v3811_v57, 0.0  ;;  %v8792_v23 = vld [vmem:[%s11368_s3 + $0x630] ss:$8 sps:$4 sm:$0xff]  }
 0x4bd   : > { %v3817_v32 = vadd.f32 %v3816_v26, %v10163_v20  ;;  %v4064_v6 = vmax.f32 %v3813_v22, 0.0 }
 0x4be   : > { %v4065_v34 = vmax.f32 %v3815_v24, 0.0  ;;  %v8794_v24 = vld [vmem:[%s11368_s3 + $0x634] ss:$8 sps:$4 sm:$0xff]  }
 0x4bf   : > { %v4066_v35 = vmax.f32 %v3817_v32, 0.0  ;;  %5925 = vmatprep.subr.bf16.mxu1 %v8794_v24  ;;  %v8798_v24 = vld [vmem:[%s11368_s3 + $0x650] ss:$8 sps:$4 sm:$0xff]  }
 0x4c0   : > { %v4169_v36 = vpack.c.bf16 %v4065_v34, %v4063_v33  ;;  %5926 = vmatpush1.bf16.msra.mxu1 %v8792_v23 }
 0x4c1   : > { %v3820_v7 = vpop.f32.mrb[48].mxu0  ;;  %v4170_v37 = vpack.c.bf16 %v4066_v35, %v4064_v6 }
 0x4c2   : > { %v3821_v38 = vadd.f32 %v3820_v7, %v10159_v19  ;;  %v3822_v39 = vpop.f32.mrb[49].mxu0 }
 0x4c3   : > { %v3823_v40 = vadd.f32 %v3822_v39, %v10163_v20  ;;  %v3824_v41 = vpop.f32.mrb[50].mxu0  ;;  %4559 = vmatprep.mubr.bf16.mxu1 %v4170_v37 }
 0x4c4   : > { %v3825_v43 = vadd.f32 %v3824_v41, %v10159_v19  ;;  %v3826_v45 = vpop.f32.mrb[51].mxu0  ;;  %4560 = vmatmul.mubr.bf16.gmra.mrb[44].mxu1 %v4169_v36  ;;  %v4067_v47 = vmax.f32 %v3821_v38, 0.0 }
 0x4c5   : > { %v3827_v46 = vadd.f32 %v3826_v45, %v10163_v20  ;;  %v4068_v49 = vmax.f32 %v3823_v40, 0.0 }
 0x4c6   : > { %v4069_v48 = vmax.f32 %v3825_v43, 0.0 }
 0x4c7   : > { %v4070_v50 = vmax.f32 %v3827_v46, 0.0 }
 0x4c8   : > { %v4171_v51 = vpack.c.bf16 %v4069_v48, %v4067_v47 }
 0x4c9   : > { %v3830_v52 = vpop.f32.mrb[52].mxu0  ;;  %v4172_v53 = vpack.c.bf16 %v4070_v50, %v4068_v49 }
 0x4ca   : > { %v3831_v54 = vadd.f32 %v3830_v52, %v10159_v19  ;;  %v3832_v30 = vpop.f32.mrb[53].mxu0 }
 0x4cb   : > { %v3833_v58 = vadd.f32 %v3832_v30, %v10163_v20  ;;  %v3834_v59 = vpop.f32.mrb[54].mxu0  ;;  %4569 = vmatprep.mubr.bf16.mxu1 %v4172_v53 }
 0x4cc   : > { %v3835_v60 = vadd.f32 %v3834_v59, %v10159_v19  ;;  %v3836_v61 = vpop.f32.mrb[55].mxu0  ;;  %4570 = vmatmul.mubr.bf16.gmra.mrb[48].mxu1 %v4171_v51  ;;  %v4071_v63 = vmax.f32 %v3831_v54, 0.0 }
 0x4cd   : > { %v3837_v62 = vadd.f32 %v3836_v61, %v10163_v20  ;;  %v4072_v1 = vmax.f32 %v3833_v58, 0.0  ;;  %v8797_v58 = vld [vmem:[%s11368_s3 + $0x644] ss:$8 sps:$4 sm:$0xff]  }
 0x4ce   : > { %v4073_v0 = vmax.f32 %v3835_v60, 0.0  ;;  %5927 = vmatprep.subr.bf16.mxu1 %v8797_v58  ;;  %v8801_v58 = vld [vmem:[%s11368_s3 + $0x660] ss:$8 sps:$4 sm:$0xff]  }
 0x4cf   : > { %v4074_v3 = vmax.f32 %v3837_v62, 0.0  ;;  %5928 = vmatpush1.bf16.msra.mxu1 %v8795_v31 }
 0x4d0   : > { %v4173_v4 = vpack.c.bf16 %v4073_v0, %v4071_v63 }
 0x4d1   : > { %v3840_v42 = vpop.f32.mrb[56].mxu0  ;;  %v4174_v5 = vpack.c.bf16 %v4074_v3, %v4072_v1 }
 0x4d2   : > { %v3841_v44 = vadd.f32 %v3840_v42, %v10159_v19  ;;  %v3842_v8 = vpop.f32.mrb[57].mxu0 }
 0x4d3   : > { %v3843_v9 = vadd.f32 %v3842_v8, %v10163_v20  ;;  %v3844_v10 = vpop.f32.mrb[58].mxu0  ;;  %4579 = vmatprep.mubr.bf16.mxu1 %v4174_v5 }
 0x4d4   : > { %v3845_v11 = vadd.f32 %v3844_v10, %v10159_v19  ;;  %v3846_v12 = vpop.f32.mrb[59].mxu0  ;;  %4580 = vmatmul.mubr.bf16.gmra.mrb[52].mxu1 %v4173_v4  ;;  %v4075_v14 = vmax.f32 %v3841_v44, 0.0 }
 0x4d5   : > { %v3847_v13 = vadd.f32 %v3846_v12, %v10163_v20  ;;  %v4076_v16 = vmax.f32 %v3843_v9, 0.0 }
 0x4d6   : > { %v4077_v15 = vmax.f32 %v3845_v11, 0.0 }
 0x4d7   : > { %v4078_v17 = vmax.f32 %v3847_v13, 0.0 }
 0x4d8   : > { %v4175_v56 = vpack.c.bf16 %v4077_v15, %v4075_v14 }
 0x4d9   : > { %v3850_v18 = vpop.f32.mrb[60].mxu0  ;;  %v4176_v57 = vpack.c.bf16 %v4078_v17, %v4076_v16 }
 0x4da   : > { %v3851_v21 = vadd.f32 %v3850_v18, %v10159_v19  ;;  %v3852_v22 = vpop.f32.mrb[61].mxu0 }
 0x4db   : > { %v3853_v26 = vadd.f32 %v3852_v22, %v10163_v20  ;;  %v3854_v28 = vpop.f32.mrb[62].mxu0  ;;  %4589 = vmatprep.mubr.bf16.mxu1 %v4176_v57 }
 0x4dc   : > { %v3855_v29 = vadd.f32 %v3854_v28, %v10159_v19  ;;  %v3856_v32 = vpop.f32.mrb[63].mxu0  ;;  %4590 = vmatmul.mubr.bf16.gmra.mrb[56].mxu1 %v4175_v56  ;;  %v4079_v34 = vmax.f32 %v3851_v21, 0.0 }
 0x4dd   : > { %v3857_v33 = vadd.f32 %v3856_v32, %v10163_v20  ;;  %v4080_v35 = vmax.f32 %v3853_v26, 0.0  ;;  %v8800_v26 = vld [vmem:[%s11368_s3 + $0x654] ss:$8 sps:$4 sm:$0xff]  }
 0x4de   : > { %v4081_v6 = vmax.f32 %v3855_v29, 0.0  ;;  %5929 = vmatprep.subr.bf16.mxu1 %v8800_v26  ;;  %v8804_v26 = vld [vmem:[%s11368_s3 + $0x670] ss:$8 sps:$4 sm:$0xff]  }
 0x4df   : > { %v4082_v36 = vmax.f32 %v3857_v33, 0.0  ;;  %5930 = vmatpush1.bf16.msra.mxu1 %v8798_v24 }
 0x4e0   : > { %v4177_v7 = vpack.c.bf16 %v4081_v6, %v4079_v34 }
 0x4e1   : > { %v3860_v37 = vpop.f32.mrb[64].mxu0  ;;  %v4178_v38 = vpack.c.bf16 %v4082_v36, %v4080_v35 }
 0x4e2   : > { %v3861_v39 = vadd.f32 %v3860_v37, %v10159_v19  ;;  %v3862_v40 = vpop.f32.mrb[65].mxu0 }
 0x4e3   : > { %v3863_v41 = vadd.f32 %v3862_v40, %v10163_v20  ;;  %v3864_v43 = vpop.f32.mrb[66].mxu0  ;;  %4599 = vmatprep.mubr.bf16.mxu1 %v4178_v38 }
 0x4e4   : > { %v3865_v45 = vadd.f32 %v3864_v43, %v10159_v19  ;;  %v3866_v46 = vpop.f32.mrb[67].mxu0  ;;  %4600 = vmatmul.mubr.bf16.gmra.mrb[60].mxu1 %v4177_v7  ;;  %v4083_v48 = vmax.f32 %v3861_v39, 0.0 }
 0x4e5   : > { %v3867_v47 = vadd.f32 %v3866_v46, %v10163_v20  ;;  %v4084_v50 = vmax.f32 %v3863_v41, 0.0 }
 0x4e6   : > { %v4085_v49 = vmax.f32 %v3865_v45, 0.0 }
 0x4e7   : > { %v4086_v51 = vmax.f32 %v3867_v47, 0.0 }
 0x4e8   : > { %v4179_v52 = vpack.c.bf16 %v4085_v49, %v4083_v48 }
 0x4e9   : > { %v3870_v53 = vpop.f32.mrb[68].mxu0  ;;  %v4180_v54 = vpack.c.bf16 %v4086_v51, %v4084_v50 }
 0x4ea   : > { %v3871_v30 = vadd.f32 %v3870_v53, %v10159_v19  ;;  %v3872_v55 = vpop.f32.mrb[69].mxu0 }
 0x4eb   : > { %v3873_v59 = vadd.f32 %v3872_v55, %v10163_v20  ;;  %v3874_v60 = vpop.f32.mrb[70].mxu0  ;;  %4609 = vmatprep.mubr.bf16.mxu1 %v4180_v54 }
 0x4ec   : > { %v3875_v61 = vadd.f32 %v3874_v60, %v10159_v19  ;;  %v3876_v62 = vpop.f32.mrb[71].mxu0  ;;  %4610 = vmatmul.mubr.bf16.gmra.mrb[64].mxu1 %v4179_v52  ;;  %v4087_v0 = vmax.f32 %v3871_v30, 0.0 }
 0x4ed   : > { %v3877_v63 = vadd.f32 %v3876_v62, %v10163_v20  ;;  %v4088_v3 = vmax.f32 %v3873_v59, 0.0  ;;  %v8803_v59 = vld [vmem:[%s11368_s3 + $0x664] ss:$8 sps:$4 sm:$0xff]  }
 0x4ee   : > { %v4089_v1 = vmax.f32 %v3875_v61, 0.0  ;;  %5931 = vmatprep.subr.bf16.mxu1 %v8803_v59  ;;  %v8807_v59 = vld [vmem:[%s11368_s3 + $0x680] ss:$8 sps:$4 sm:$0xff]  }
 0x4ef   : > { %v4090_v4 = vmax.f32 %v3877_v63, 0.0  ;;  %5932 = vmatpush1.bf16.msra.mxu1 %v8801_v58 }
 0x4f0   : > { %v4181_v42 = vpack.c.bf16 %v4089_v1, %v4087_v0 }
 0x4f1   : > { %v3880_v5 = vpop.f32.mrb[72].mxu0  ;;  %v4182_v44 = vpack.c.bf16 %v4090_v4, %v4088_v3 }
 0x4f2   : > { %v3881_v8 = vadd.f32 %v3880_v5, %v10159_v19  ;;  %v3882_v9 = vpop.f32.mrb[73].mxu0 }
 0x4f3   : > { %v3883_v10 = vadd.f32 %v3882_v9, %v10163_v20  ;;  %v3884_v11 = vpop.f32.mrb[74].mxu0  ;;  %4619 = vmatprep.mubr.bf16.mxu1 %v4182_v44 }
 0x4f4   : > { %v3885_v12 = vadd.f32 %v3884_v11, %v10159_v19  ;;  %v3886_v13 = vpop.f32.mrb[75].mxu0  ;;  %4620 = vmatmul.mubr.bf16.gmra.mrb[68].mxu1 %v4181_v42  ;;  %v4091_v15 = vmax.f32 %v3881_v8, 0.0 }
 0x4f5   : > { %v3887_v14 = vadd.f32 %v3886_v13, %v10163_v20  ;;  %v4092_v17 = vmax.f32 %v3883_v10, 0.0 }
 0x4f6   : > { %v4093_v16 = vmax.f32 %v3885_v12, 0.0 }
 0x4f7   : > { %v4094_v56 = vmax.f32 %v3887_v14, 0.0 }
 0x4f8   : > { %v4183_v18 = vpack.c.bf16 %v4093_v16, %v4091_v15 }
 0x4f9   : > { %v3890_v57 = vpop.f32.mrb[76].mxu0  ;;  %v4184_v21 = vpack.c.bf16 %v4094_v56, %v4092_v17 }
 0x4fa   : > { %v3891_v22 = vadd.f32 %v3890_v57, %v10159_v19  ;;  %v3892_v23 = vpop.f32.mrb[77].mxu0 }
 0x4fb   : > { %v3893_v28 = vadd.f32 %v3892_v23, %v10163_v20  ;;  %v3894_v29 = vpop.f32.mrb[78].mxu0  ;;  %4629 = vmatprep.mubr.bf16.mxu1 %v4184_v21 }
 0x4fc   : > { %v3895_v32 = vadd.f32 %v3894_v29, %v10159_v19  ;;  %v3896_v33 = vpop.f32.mrb[79].mxu0  ;;  %4630 = vmatmul.mubr.bf16.gmra.mrb[72].mxu1 %v4183_v18  ;;  %v4095_v6 = vmax.f32 %v3891_v22, 0.0 }
 0x4fd   : > { %v3897_v34 = vadd.f32 %v3896_v33, %v10163_v20  ;;  %v4096_v36 = vmax.f32 %v3893_v28, 0.0  ;;  %v8806_v28 = vld [vmem:[%s11368_s3 + $0x674] ss:$8 sps:$4 sm:$0xff]  }
 0x4fe   : > { %v4097_v35 = vmax.f32 %v3895_v32, 0.0  ;;  %5933 = vmatprep.subr.bf16.mxu1 %v8806_v28 }
 0x4ff   : > { %v4098_v7 = vmax.f32 %v3897_v34, 0.0  ;;  %5934 = vmatpush1.bf16.msra.mxu1 %v8804_v26 }
 0x500   : > { %v4185_v37 = vpack.c.bf16 %v4097_v35, %v4095_v6 }
 0x501   : > { %v3900_v38 = vpop.f32.mrb[80].mxu0  ;;  %v4186_v39 = vpack.c.bf16 %v4098_v7, %v4096_v36 }
 0x502   : > { %v3901_v40 = vadd.f32 %v3900_v38, %v10159_v19  ;;  %v3902_v41 = vpop.f32.mrb[81].mxu0 }
 0x503   : > { %v3903_v43 = vadd.f32 %v3902_v41, %v10163_v20  ;;  %v3904_v45 = vpop.f32.mrb[82].mxu0  ;;  %4639 = vmatprep.mubr.bf16.mxu1 %v4186_v39 }
 0x504   : > { %v3905_v46 = vadd.f32 %v3904_v45, %v10159_v19  ;;  %v3906_v47 = vpop.f32.mrb[83].mxu0  ;;  %4640 = vmatmul.mubr.bf16.gmra.mrb[76].mxu1 %v4185_v37  ;;  %v4099_v49 = vmax.f32 %v3901_v40, 0.0 }
 0x505   : > { %v3907_v48 = vadd.f32 %v3906_v47, %v10163_v20  ;;  %v4100_v51 = vmax.f32 %v3903_v43, 0.0 }
 0x506   : > { %v4101_v50 = vmax.f32 %v3905_v46, 0.0 }
 0x507   : > { %v4102_v52 = vmax.f32 %v3907_v48, 0.0 }
 0x508   : > { %v4187_v53 = vpack.c.bf16 %v4101_v50, %v4099_v49 }
 0x509   : > { %v3910_v54 = vpop.f32.mrb[84].mxu0  ;;  %v4188_v30 = vpack.c.bf16 %v4102_v52, %v4100_v51 }
 0x50a   : > { %v3911_v55 = vadd.f32 %v3910_v54, %v10159_v19  ;;  %v3912_v31 = vpop.f32.mrb[85].mxu0 }
 0x50b   : > { %v3913_v60 = vadd.f32 %v3912_v31, %v10163_v20  ;;  %v3914_v61 = vpop.f32.mrb[86].mxu0  ;;  %4649 = vmatprep.mubr.bf16.mxu1 %v4188_v30 }
 0x50c   : > { %v3915_v62 = vadd.f32 %v3914_v61, %v10159_v19  ;;  %v3916_v63 = vpop.f32.mrb[87].mxu0  ;;  %4650 = vmatmul.mubr.bf16.gmra.mrb[80].mxu1 %v4187_v53  ;;  %v4103_v1 = vmax.f32 %v3911_v55, 0.0 }
 0x50d   : > { %v3917_v0 = vadd.f32 %v3916_v63, %v10163_v20  ;;  %v4104_v4 = vmax.f32 %v3913_v60, 0.0  ;;  %v8809_v60 = vld [vmem:[%s11368_s3 + $0x684] ss:$8 sps:$4 sm:$0xff]  }
 0x50e   : > { %v4105_v3 = vmax.f32 %v3915_v62, 0.0  ;;  %5935 = vmatprep.subr.bf16.mxu1 %v8809_v60 }
 0x50f   : > { %v4106_v42 = vmax.f32 %v3917_v0, 0.0  ;;  %5936 = vmatpush1.bf16.msra.mxu1 %v8807_v59 }
 0x510   : > { %v4189_v5 = vpack.c.bf16 %v4105_v3, %v4103_v1 }
 0x511   : > { %v3920_v44 = vpop.f32.mrb[88].mxu0  ;;  %v4190_v8 = vpack.c.bf16 %v4106_v42, %v4104_v4 }
 0x512   : > { %v3921_v9 = vadd.f32 %v3920_v44, %v10159_v19  ;;  %v3922_v10 = vpop.f32.mrb[89].mxu0 }
 0x513   : > { %v3923_v11 = vadd.f32 %v3922_v10, %v10163_v20  ;;  %v3924_v12 = vpop.f32.mrb[90].mxu0  ;;  %4659 = vmatprep.mubr.bf16.mxu1 %v4190_v8 }
 0x514   : > { %v3925_v13 = vadd.f32 %v3924_v12, %v10159_v19  ;;  %v3926_v14 = vpop.f32.mrb[91].mxu0  ;;  %4660 = vmatmul.mubr.bf16.gmra.mrb[84].mxu1 %v4189_v5  ;;  %v4107_v16 = vmax.f32 %v3921_v9, 0.0 }
 0x515   : > { %v3927_v15 = vadd.f32 %v3926_v14, %v10163_v20  ;;  %v4108_v56 = vmax.f32 %v3923_v11, 0.0 }
 0x516   : > { %v4109_v17 = vmax.f32 %v3925_v13, 0.0 }
 0x517   : > { %v4110_v18 = vmax.f32 %v3927_v15, 0.0 }
 0x518   : > { %v4191_v57 = vpack.c.bf16 %v4109_v17, %v4107_v16 }
 0x519   : > { %v3930_v21 = vpop.f32.mrb[92].mxu0  ;;  %v4192_v22 = vpack.c.bf16 %v4110_v18, %v4108_v56 }
 0x51a   : > { %v3931_v23 = vadd.f32 %v3930_v21, %v10159_v19  ;;  %v3932_v24 = vpop.f32.mrb[93].mxu0 }
 0x51b   : > { %v3933_v29 = vadd.f32 %v3932_v24, %v10163_v20  ;;  %v3934_v32 = vpop.f32.mrb[94].mxu0  ;;  %4669 = vmatprep.mubr.bf16.mxu1 %v4192_v22  ;;  %v8163_v24 = vld [vmem:[%s11369_s4 + $0x8] sm:$0x3] }
 0x51c   : > { %v3935_v33 = vadd.f32 %v3934_v32, %v10159_v19  ;;  %v3936_v34 = vpop.f32.mrb[95].mxu0  ;;  %4670 = vmatmul.mubr.bf16.gmra.mrb[88].mxu1 %v4191_v57  ;;  %v4111_v35 = vmax.f32 %v3931_v23, 0.0  ;;  %v8812_v32 = vld [vmem:[%s11368_s3 + $0x694] ss:$8 sps:$4 sm:$0xff]  }
 0x51d   : > { %v3937_v6 = vadd.f32 %v3936_v34, %v10163_v20  ;;  %v4112_v7 = vmax.f32 %v3933_v29, 0.0  ;;  %v8810_v29 = vld [vmem:[%s11368_s3 + $0x690] ss:$8 sps:$4 sm:$0xff]   ;;  %5937 = vmatprep.subr.bf16.mxu1 %v8812_v32 }
 0x51e   : > { %v4113_v36 = vmax.f32 %v3935_v33, 0.0  ;;  %5938 = vmatpush1.bf16.msra.mxu1 %v8810_v29 }
 0x51f   : > { %v4114_v37 = vmax.f32 %v3937_v6, 0.0 }
 0x520   : > { %v4193_v38 = vpack.c.bf16 %v4113_v36, %v4111_v35  ;;  %v10392_v36 = vrot.slane %v8163_v24, %v9214_v25 }
 0x521   : > { %v3940_v39 = vpop.f32.mrb[96].mxu0  ;;  %v4194_v40 = vpack.c.bf16 %v4114_v37, %v4112_v7  ;;  %v10396_v37 = vrot.slane %v8163_v24, %v9219_v27 }
 0x522   : > { %v3941_v41 = vadd.f32 %v3940_v39, %v10159_v19  ;;  %v3942_v43 = vpop.f32.mrb[97].mxu0 }
 0x523   : > { %v3943_v45 = vadd.f32 %v3942_v43, %v10163_v20  ;;  %v3944_v46 = vpop.f32.mrb[98].mxu0  ;;  %4679 = vmatprep.mubr.bf16.mxu1 %v4194_v40 }
 0x524   : > { %v3945_v47 = vadd.f32 %v3944_v46, %v10159_v19  ;;  %v3946_v48 = vpop.f32.mrb[99].mxu0  ;;  %4680 = vmatmul.mubr.bf16.gmra.mrb[92].mxu1 %v4193_v38  ;;  %v4115_v50 = vmax.f32 %v3941_v41, 0.0 }
 0x525   : > { %v3947_v49 = vadd.f32 %v3946_v48, %v10163_v20  ;;  %v4116_v52 = vmax.f32 %v3943_v45, 0.0 }
 0x526   : > { %v4117_v51 = vmax.f32 %v3945_v47, 0.0 }
 0x527   : > { %v4118_v53 = vmax.f32 %v3947_v49, 0.0 }
 0x528   : > { %v4195_v54 = vpack.c.bf16 %v4117_v51, %v4115_v50 }
 0x529   : > { %v3950_v30 = vpop.f32.mrb[100].mxu0  ;;  %v4196_v55 = vpack.c.bf16 %v4118_v53, %v4116_v52 }
 0x52a   : > { %v3951_v31 = vadd.f32 %v3950_v30, %v10159_v19  ;;  %v3952_v58 = vpop.f32.mrb[101].mxu0 }
 0x52b   : > { %v3953_v61 = vadd.f32 %v3952_v58, %v10163_v20  ;;  %v3954_v62 = vpop.f32.mrb[102].mxu0  ;;  %4689 = vmatprep.mubr.bf16.mxu1 %v4196_v55 }
 0x52c   : > { %v3955_v63 = vadd.f32 %v3954_v62, %v10159_v19  ;;  %v3956_v0 = vpop.f32.mrb[103].mxu0  ;;  %4690 = vmatmul.mubr.bf16.gmra.mrb[96].mxu1 %v4195_v54  ;;  %v4119_v3 = vmax.f32 %v3951_v31, 0.0 }
 0x52d   : > { %v3957_v1 = vadd.f32 %v3956_v0, %v10163_v20  ;;  %v4120_v42 = vmax.f32 %v3953_v61, 0.0 }
 0x52e   : > { %v4121_v4 = vmax.f32 %v3955_v63, 0.0 }
 0x52f   : > { %v4122_v5 = vmax.f32 %v3957_v1, 0.0 }
 0x530   : > { %v4197_v44 = vpack.c.bf16 %v4121_v4, %v4119_v3 }
 0x531   : > { %v3960_v8 = vpop.f32.mrb[104].mxu0  ;;  %v4198_v9 = vpack.c.bf16 %v4122_v5, %v4120_v42 }
 0x532   : > { %v3961_v10 = vadd.f32 %v3960_v8, %v10159_v19  ;;  %v3962_v11 = vpop.f32.mrb[105].mxu0 }
 0x533   : > { %v3963_v12 = vadd.f32 %v3962_v11, %v10163_v20  ;;  %v3964_v13 = vpop.f32.mrb[106].mxu0  ;;  %4699 = vmatprep.mubr.bf16.mxu1 %v4198_v9 }
 0x534   : > { %v3965_v14 = vadd.f32 %v3964_v13, %v10159_v19  ;;  %v3966_v15 = vpop.f32.mrb[107].mxu0  ;;  %4700 = vmatmul.mubr.bf16.gmra.mrb[100].mxu1 %v4197_v44  ;;  %v4123_v17 = vmax.f32 %v3961_v10, 0.0 }
 0x535   : > { %v3967_v16 = vadd.f32 %v3966_v15, %v10163_v20  ;;  %v4124_v18 = vmax.f32 %v3963_v12, 0.0 }
 0x536   : > { %v4125_v56 = vmax.f32 %v3965_v14, 0.0 }
 0x537   : > { %v4126_v57 = vmax.f32 %v3967_v16, 0.0 }
 0x538   : > { %v4199_v21 = vpack.c.bf16 %v4125_v56, %v4123_v17 }
 0x539   : > { %v3970_v22 = vpop.f32.mrb[108].mxu0  ;;  %v4200_v23 = vpack.c.bf16 %v4126_v57, %v4124_v18 }
 0x53a   : > { %v3971_v26 = vadd.f32 %v3970_v22, %v10159_v19  ;;  %v3972_v28 = vpop.f32.mrb[109].mxu0 }
 0x53b   : > { %v3973_v33 = vadd.f32 %v3972_v28, %v10163_v20  ;;  %v3974_v34 = vpop.f32.mrb[110].mxu0  ;;  %4709 = vmatprep.mubr.bf16.mxu1 %v4200_v23 }
 0x53c   : > { %v3975_v6 = vadd.f32 %v3974_v34, %v10159_v19  ;;  %v3976_v35 = vpop.f32.mrb[111].mxu0  ;;  %4710 = vmatmul.mubr.bf16.gmra.mrb[104].mxu1 %v4199_v21  ;;  %v4127_v38 = vmax.f32 %v3971_v26, 0.0  ;;  %v8813_v21 = vld [vmem:[%s11368_s3 + $0x6a0] ss:$8 sps:$4 sm:$0xff]   ;;  %v8815_v26 = vld [vmem:[%s11368_s3 + $0x6a4] ss:$8 sps:$4 sm:$0xff]  }
 0x53d   : > { %v3977_v7 = vadd.f32 %v3976_v35, %v10163_v20  ;;  %v4128_v40 = vmax.f32 %v3973_v33, 0.0  ;;  %5939 = vmatprep.subr.bf16.mxu1 %v8815_v26 }
 0x53e   : > { %v4129_v39 = vmax.f32 %v3975_v6, 0.0  ;;  %5940 = vmatpush1.bf16.msra.mxu1 %v8813_v21 }
 0x53f   : > { %v4130_v41 = vmax.f32 %v3977_v7, 0.0  ;;  %v4451_v43 = vpop.f32.mrb[0].mxu1 }
 0x540   : > { %v4201_v45 = vpack.c.bf16 %v4129_v39, %v4127_v38  ;;  %v4452_v46 = vadd.f32 %v4451_v43, %v10392_v36  ;;  %v4453_v47 = vpop.f32.mrb[1].mxu1 }
 0x541   : > { %v4454_v48 = vadd.f32 %v4453_v47, %v10396_v37  ;;  %v3980_v49 = vpop.f32.mrb[112].mxu0  ;;  %v4455_v50 = vpop.f32.mrb[2].mxu1  ;;  %v4202_v51 = vpack.c.bf16 %v4130_v41, %v4128_v40 }
 0x542   : > { %v3981_v52 = vadd.f32 %v3980_v49, %v10159_v19  ;;  %v4456_v53 = vadd.f32 %v4455_v50, %v10392_v36  ;;  %v3982_v54 = vpop.f32.mrb[113].mxu0  ;;  %v4457_v30 = vpop.f32.mrb[3].mxu1  ;;  %v4770_v59 = vmax.f32 %v4452_v46, 0.0 }
 0x543   : > { %v3983_v55 = vadd.f32 %v3982_v54, %v10163_v20  ;;  %v4458_v31 = vadd.f32 %v4457_v30, %v10396_v37  ;;  %v3984_v58 = vpop.f32.mrb[114].mxu0  ;;  %4719 = vmatprep.mubr.bf16.mxu1 %v4202_v51  ;;  %v4771_v63 = vmax.f32 %v4454_v48, 0.0 }
 0x544   : > { %v4772_v60 = vmax.f32 %v4456_v53, 0.0  ;;  %v3985_v61 = vadd.f32 %v3984_v58, %v10159_v19  ;;  %v3986_v62 = vpop.f32.mrb[115].mxu0  ;;  %4720 = vmatmul.mubr.bf16.gmra.mrb[108].mxu1 %v4201_v45  ;;  %v4131_v3 = vmax.f32 %v3981_v52, 0.0 }
 0x545   : > { %v4773_v0 = vmax.f32 %v4458_v31, 0.0  ;;  %v3987_v1 = vadd.f32 %v3986_v62, %v10163_v20  ;;  %v4132_v5 = vmax.f32 %v3983_v55, 0.0 }
 0x546   : > { %v4898_v4 = vpack.c.bf16 %v4772_v60, %v4770_v59  ;;  %v4133_v42 = vmax.f32 %v3985_v61, 0.0 }
 0x547   : > { %v4134_v44 = vmax.f32 %v3987_v1, 0.0  ;;  %v4461_v8 = vpop.f32.mrb[4].mxu1  ;;  %v4899_v9 = vpack.c.bf16 %v4773_v0, %v4771_v63 }
 0x548   : > { %v4203_v10 = vpack.c.bf16 %v4133_v42, %v4131_v3  ;;  %v4462_v11 = vadd.f32 %v4461_v8, %v10392_v36  ;;  %v4463_v12 = vpop.f32.mrb[5].mxu1 }
 0x549   : > { %v4464_v13 = vadd.f32 %v4463_v12, %v10396_v37  ;;  %v3990_v14 = vpop.f32.mrb[116].mxu0  ;;  %v4465_v15 = vpop.f32.mrb[6].mxu1  ;;  %5200 = vmatprep.mubr.bf16.mxu0 %v4899_v9  ;;  %v4204_v16 = vpack.c.bf16 %v4134_v44, %v4132_v5 }
 0x54a   : > { %v3991_v17 = vadd.f32 %v3990_v14, %v10159_v19  ;;  %v4466_v56 = vadd.f32 %v4465_v15, %v10392_v36  ;;  %v3992_v18 = vpop.f32.mrb[117].mxu0  ;;  %v4467_v57 = vpop.f32.mrb[7].mxu1  ;;  %5201 = vmatmul.mubr.bf16.vlgmr.msra.gmra.mrb[128].mxu0 %v4898_v4  ;;  %v4774_v28 = vmax.f32 %v4462_v11, 0.0 }
 0x54b   : > { %v3993_v22 = vadd.f32 %v3992_v18, %v10163_v20  ;;  %v4468_v23 = vadd.f32 %v4467_v57, %v10396_v37  ;;  %v3994_v24 = vpop.f32.mrb[118].mxu0  ;;  %4729 = vmatprep.mubr.bf16.mxu1 %v4204_v16  ;;  %v4775_v34 = vmax.f32 %v4464_v13, 0.0 }
 0x54c   : > { %v4776_v29 = vmax.f32 %v4466_v56, 0.0  ;;  %v3995_v32 = vadd.f32 %v3994_v24, %v10159_v19  ;;  %v3996_v33 = vpop.f32.mrb[119].mxu0  ;;  %4730 = vmatmul.mubr.bf16.gmra.mrb[112].mxu1 %v4203_v10  ;;  %v4135_v7 = vmax.f32 %v3991_v17, 0.0 }
 0x54d   : > { %v4777_v6 = vmax.f32 %v4468_v23, 0.0  ;;  %v3997_v35 = vadd.f32 %v3996_v33, %v10163_v20  ;;  %v4136_v40 = vmax.f32 %v3993_v22, 0.0  ;;  %v8816_v22 = vld [vmem:[%s11368_s3 + $0x6b0] ss:$8 sps:$4 sm:$0xff]  }
 0x54e   : > { %v4900_v38 = vpack.c.bf16 %v4776_v29, %v4774_v28  ;;  %v4137_v39 = vmax.f32 %v3995_v32, 0.0  ;;  %v8818_v28 = vld [vmem:[%s11368_s3 + $0x6b4] ss:$8 sps:$4 sm:$0xff]  }
 0x54f   : > { %v4138_v41 = vmax.f32 %v3997_v35, 0.0  ;;  %v4471_v43 = vpop.f32.mrb[8].mxu1  ;;  %v4901_v45 = vpack.c.bf16 %v4777_v6, %v4775_v34  ;;  %5941 = vmatprep.subr.bf16.mxu1 %v8818_v28 }
 0x550   : > { %v4205_v46 = vpack.c.bf16 %v4137_v39, %v4135_v7  ;;  %v4472_v47 = vadd.f32 %v4471_v43, %v10392_v36  ;;  %v4473_v48 = vpop.f32.mrb[9].mxu1  ;;  %5942 = vmatpush1.bf16.msra.mxu1 %v8816_v22 }
 0x551   : > { %v4474_v49 = vadd.f32 %v4473_v48, %v10396_v37  ;;  %v4000_v50 = vpop.f32.mrb[120].mxu0  ;;  %v4475_v51 = vpop.f32.mrb[10].mxu1  ;;  %5210 = vmatprep.mubr.bf16.mxu0 %v4901_v45  ;;  %v4206_v52 = vpack.c.bf16 %v4138_v41, %v4136_v40 }
 0x552   : > { %v4001_v53 = vadd.f32 %v4000_v50, %v10159_v19  ;;  %v4476_v54 = vadd.f32 %v4475_v51, %v10392_v36  ;;  %v4002_v30 = vpop.f32.mrb[121].mxu0  ;;  %v4477_v55 = vpop.f32.mrb[11].mxu1  ;;  %5211 = vmatmul.mubr.bf16.gmra.mrb[132].mxu0 %v4900_v38  ;;  %v4778_v60 = vmax.f32 %v4472_v47, 0.0 }
 0x553   : > { %v4003_v31 = vadd.f32 %v4002_v30, %v10163_v20  ;;  %v4478_v58 = vadd.f32 %v4477_v55, %v10396_v37  ;;  %v4004_v59 = vpop.f32.mrb[122].mxu0  ;;  %4739 = vmatprep.mubr.bf16.mxu1 %v4206_v52  ;;  %v4779_v0 = vmax.f32 %v4474_v49, 0.0 }
 0x554   : > { %v4780_v61 = vmax.f32 %v4476_v54, 0.0  ;;  %v4005_v62 = vadd.f32 %v4004_v59, %v10159_v19  ;;  %v4006_v63 = vpop.f32.mrb[123].mxu0  ;;  %4740 = vmatmul.mubr.bf16.gmra.mrb[116].mxu1 %v4205_v46  ;;  %v4139_v4 = vmax.f32 %v4001_v53, 0.0 }
 0x555   : > { %v4781_v1 = vmax.f32 %v4478_v58, 0.0  ;;  %v4007_v3 = vadd.f32 %v4006_v63, %v10163_v20  ;;  %v4140_v44 = vmax.f32 %v4003_v31, 0.0 }
 0x556   : > { %v4902_v42 = vpack.c.bf16 %v4780_v61, %v4778_v60  ;;  %v4141_v5 = vmax.f32 %v4005_v62, 0.0 }
 0x557   : > { %v4142_v8 = vmax.f32 %v4007_v3, 0.0  ;;  %v4481_v9 = vpop.f32.mrb[12].mxu1  ;;  %v4903_v10 = vpack.c.bf16 %v4781_v1, %v4779_v0 }
 0x558   : > { %v4207_v11 = vpack.c.bf16 %v4141_v5, %v4139_v4  ;;  %v4482_v12 = vadd.f32 %v4481_v9, %v10392_v36  ;;  %v4483_v13 = vpop.f32.mrb[13].mxu1  ;;  %v8819_v4 = vld [vmem:[%s11368_s3 + $0x6c0] ss:$8 sps:$4 sm:$0xff]  }
 0x559   : > { %v4484_v14 = vadd.f32 %v4483_v13, %v10396_v37  ;;  %v4010_v15 = vpop.f32.mrb[124].mxu0  ;;  %v4485_v16 = vpop.f32.mrb[14].mxu1  ;;  %5220 = vmatprep.mubr.bf16.mxu0 %v4903_v10  ;;  %v4208_v17 = vpack.c.bf16 %v4142_v8, %v4140_v44 }
 0x55a   : > { %v4011_v56 = vadd.f32 %v4010_v15, %v10159_v19  ;;  %v4486_v18 = vadd.f32 %v4485_v16, %v10392_v36  ;;  %v4012_v57 = vpop.f32.mrb[125].mxu0  ;;  %v4487_v21 = vpop.f32.mrb[15].mxu1  ;;  %5221 = vmatmul.mubr.bf16.gmra.mrb[136].mxu0 %v4902_v42  ;;  %v4782_v29 = vmax.f32 %v4482_v12, 0.0  ;;  %v8821_v42 = vld [vmem:[%s11368_s3 + $0x6c4] ss:$8 sps:$4 sm:$0xff]  }
 0x55b   : > { %v4013_v23 = vadd.f32 %v4012_v57, %v10163_v20  ;;  %v4488_v24 = vadd.f32 %v4487_v21, %v10396_v37  ;;  %v4014_v26 = vpop.f32.mrb[126].mxu0  ;;  %4749 = vmatprep.mubr.bf16.mxu1 %v4208_v17  ;;  %v4783_v6 = vmax.f32 %v4484_v14, 0.0  ;;  %5943 = vmatprep.subr.bf16.mxu1 %v8821_v42 }
 0x55c   : > { %v4784_v32 = vmax.f32 %v4486_v18, 0.0  ;;  %v4015_v33 = vadd.f32 %v4014_v26, %v10159_v19  ;;  %v4016_v34 = vpop.f32.mrb[127].mxu0  ;;  %4750 = vmatmul.mubr.bf16.gmra.mrb[120].mxu1 %v4207_v11  ;;  %v4143_v38 = vmax.f32 %v4011_v56, 0.0 }
 0x55d   : > { %v4785_v35 = vmax.f32 %v4488_v24, 0.0  ;;  %v4017_v7 = vadd.f32 %v4016_v34, %v10163_v20  ;;  %v4144_v41 = vmax.f32 %v4013_v23, 0.0  ;;  %5944 = vmatpush1.bf16.msra.mxu1 %v8819_v4 }
 0x55e   : > { %v4904_v39 = vpack.c.bf16 %v4784_v32, %v4782_v29  ;;  %v4145_v40 = vmax.f32 %v4015_v33, 0.0 }
 0x55f   : > { %v4146_v43 = vmax.f32 %v4017_v7, 0.0  ;;  %v4491_v45 = vpop.f32.mrb[16].mxu1  ;;  %v4905_v46 = vpack.c.bf16 %v4785_v35, %v4783_v6 }
 0x560   : > { %v4209_v47 = vpack.c.bf16 %v4145_v40, %v4143_v38  ;;  %v4492_v48 = vadd.f32 %v4491_v45, %v10392_v36  ;;  %v4493_v49 = vpop.f32.mrb[17].mxu1  ;;  %v8822_v38 = vld [vmem:[%s11368_s3 + $0x6d0] ss:$8 sps:$4 sm:$0xff]  }
 0x561   : > { %v4494_v19 = vadd.f32 %v4493_v49, %v10396_v37  ;;  %v4495_v50 = vpop.f32.mrb[18].mxu1  ;;  %5230 = vmatprep.mubr.bf16.mxu0 %v4905_v46  ;;  %v4210_v51 = vpack.c.bf16 %v4146_v43, %v4144_v41 }
 0x562   : > { %v4496_v20 = vadd.f32 %v4495_v50, %v10392_v36  ;;  %v4497_v52 = vpop.f32.mrb[19].mxu1  ;;  %5231 = vmatmul.mubr.bf16.gmra.mrb[140].mxu0 %v4904_v39  ;;  %v4786_v54 = vmax.f32 %v4492_v48, 0.0  ;;  %v8824_v39 = vld [vmem:[%s11368_s3 + $0x6d4] ss:$8 sps:$4 sm:$0xff]  }
 0x563   : > { %v4498_v53 = vadd.f32 %v4497_v52, %v10396_v37  ;;  %4759 = vmatprep.mubr.bf16.mxu1 %v4210_v51  ;;  %v4787_v55 = vmax.f32 %v4494_v19, 0.0  ;;  %5945 = vmatprep.subr.bf16.mxu1 %v8824_v39 }
 0x564   : > { %v4788_v30 = vmax.f32 %v4496_v20, 0.0  ;;  %4760 = vmatmul.mubr.bf16.gmra.mrb[124].mxu1 %v4209_v47 }
 0x565   : > { %v4789_v31 = vmax.f32 %v4498_v53, 0.0  ;;  %5946 = vmatpush1.bf16.msra.mxu1 %v8822_v38 }
 0x566   : > { %v4906_v58 = vpack.c.bf16 %v4788_v30, %v4786_v54 }
 0x567   : > { %v4501_v59 = vpop.f32.mrb[20].mxu1  ;;  %v4907_v60 = vpack.c.bf16 %v4789_v31, %v4787_v55 }
 0x568   : > { %v4502_v61 = vadd.f32 %v4501_v59, %v10392_v36  ;;  %v4503_v62 = vpop.f32.mrb[21].mxu1 }
 0x569   : > { %v4504_v63 = vadd.f32 %v4503_v62, %v10396_v37  ;;  %v4505_v0 = vpop.f32.mrb[22].mxu1  ;;  %5240 = vmatprep.mubr.bf16.mxu0 %v4907_v60  ;;  %v8825_v60 = vld [vmem:[%s11368_s3 + $0x700] ss:$8 sps:$4 sm:$0xff]  }
 0x56a   : > { %v4506_v1 = vadd.f32 %v4505_v0, %v10392_v36  ;;  %v4507_v3 = vpop.f32.mrb[23].mxu1  ;;  %5241 = vmatmul.mubr.bf16.gmra.mrb[144].mxu0 %v4906_v58  ;;  %v4790_v44 = vmax.f32 %v4502_v61, 0.0  ;;  %v8827_v61 = vld [vmem:[%s11368_s3 + $0x704] ss:$8 sps:$4 sm:$0xff]  }
 0x56b   : > { %v4508_v5 = vadd.f32 %v4507_v3, %v10396_v37  ;;  %v4791_v9 = vmax.f32 %v4504_v63, 0.0  ;;  %6670 = vmatprep.subr.bf16.mxu0 %v8827_v61 }
 0x56c   : > { %v4792_v8 = vmax.f32 %v4506_v1, 0.0  ;;  %6671 = vmatpush1.bf16.msra.mxu0 %v8825_v60 }
 0x56d   : > { %v4793_v10 = vmax.f32 %v4508_v5, 0.0 }
 0x56e   : > { %v4908_v11 = vpack.c.bf16 %v4792_v8, %v4790_v44  ;;  %v8828_v44 = vld [vmem:[%s11368_s3 + $0x6e0] ss:$8 sps:$4 sm:$0xff]   ;;  %v8830_v8 = vld [vmem:[%s11368_s3 + $0x6e4] ss:$8 sps:$4 sm:$0xff]  }
 0x56f   : > { %v4511_v12 = vpop.f32.mrb[24].mxu1  ;;  %v4909_v13 = vpack.c.bf16 %v4793_v10, %v4791_v9  ;;  %5947 = vmatprep.subr.bf16.mxu1 %v8830_v8 }
 0x570   : > { %v4512_v14 = vadd.f32 %v4511_v12, %v10392_v36  ;;  %v4513_v15 = vpop.f32.mrb[25].mxu1  ;;  %5948 = vmatpush1.bf16.msra.mxu1 %v8828_v44  ;;  %v8839_v44 = vld [vmem:[%s11368_s3 + $0x724] ss:$8 sps:$4 sm:$0xff]  }
 0x571   : > { %v4514_v16 = vadd.f32 %v4513_v15, %v10396_v37  ;;  %v4515_v17 = vpop.f32.mrb[26].mxu1  ;;  %5250 = vmatprep.mubr.bf16.mxu0 %v4909_v13 }
 0x572   : > { %v4516_v56 = vadd.f32 %v4515_v17, %v10392_v36  ;;  %v4517_v18 = vpop.f32.mrb[27].mxu1  ;;  %5251 = vmatmul.mubr.bf16.gmra.mrb[148].mxu0 %v4908_v11  ;;  %v4794_v21 = vmax.f32 %v4512_v14, 0.0 }
 0x573   : > { %v4518_v57 = vadd.f32 %v4517_v18, %v10396_v37  ;;  %v4795_v23 = vmax.f32 %v4514_v16, 0.0 }
 0x574   : > { %v4796_v22 = vmax.f32 %v4516_v56, 0.0 }
 0x575   : > { %v4797_v24 = vmax.f32 %v4518_v57, 0.0 }
 0x576   : > { %v4910_v26 = vpack.c.bf16 %v4796_v22, %v4794_v21 }
 0x577   : > { %v4521_v28 = vpop.f32.mrb[28].mxu1  ;;  %v4911_v29 = vpack.c.bf16 %v4797_v24, %v4795_v23 }
 0x578   : > { %v4522_v32 = vadd.f32 %v4521_v28, %v10392_v36  ;;  %v4523_v33 = vpop.f32.mrb[29].mxu1 }
 0x579   : > { %v4524_v34 = vadd.f32 %v4523_v33, %v10396_v37  ;;  %v4525_v6 = vpop.f32.mrb[30].mxu1  ;;  %5260 = vmatprep.mubr.bf16.mxu0 %v4911_v29  ;;  %v8831_v33 = vld [vmem:[%s11368_s3 + $0x710] ss:$8 sps:$4 sm:$0xff]  }
 0x57a   : > { %v4526_v35 = vadd.f32 %v4525_v6, %v10392_v36  ;;  %v4527_v7 = vpop.f32.mrb[31].mxu1  ;;  %5261 = vmatmul.mubr.bf16.gmra.mrb[152].mxu0 %v4910_v26  ;;  %v4798_v41 = vmax.f32 %v4522_v32, 0.0 }
 0x57b   : > { %v4528_v40 = vadd.f32 %v4527_v7, %v10396_v37  ;;  %v4799_v45 = vmax.f32 %v4524_v34, 0.0  ;;  %v8833_v34 = vld [vmem:[%s11368_s3 + $0x714] ss:$8 sps:$4 sm:$0xff]  }
 0x57c   : > { %v4800_v43 = vmax.f32 %v4526_v35, 0.0  ;;  %6672 = vmatprep.subr.bf16.mxu0 %v8833_v34 }
 0x57d   : > { %v4801_v46 = vmax.f32 %v4528_v40, 0.0  ;;  %6673 = vmatpush1.bf16.msra.mxu0 %v8831_v33 }
 0x57e   : > { %v4912_v47 = vpack.c.bf16 %v4800_v43, %v4798_v41  ;;  %6674 = vmatprep.subr.bf16.mxu0 %v8839_v44  ;;  %v8843_v44 = vld [vmem:[%s11368_s3 + $0x740] ss:$8 sps:$4 sm:$0xff]  }
 0x57f   : > { %v4531_v48 = vpop.f32.mrb[32].mxu1  ;;  %v4913_v49 = vpack.c.bf16 %v4801_v46, %v4799_v45  ;;  %v8834_v45 = vld [vmem:[%s11368_s3 + $0x6f0] ss:$8 sps:$4 sm:$0xff]   ;;  %v8836_v46 = vld [vmem:[%s11368_s3 + $0x6f4] ss:$8 sps:$4 sm:$0xff]  }
 0x580   : > { %v4532_v19 = vadd.f32 %v4531_v48, %v10392_v36  ;;  %v4533_v50 = vpop.f32.mrb[33].mxu1  ;;  %5949 = vmatprep.subr.bf16.mxu1 %v8836_v46 }
 0x581   : > { %v4534_v51 = vadd.f32 %v4533_v50, %v10396_v37  ;;  %v4535_v20 = vpop.f32.mrb[34].mxu1  ;;  %5270 = vmatprep.mubr.bf16.mxu0 %v4913_v49  ;;  %5950 = vmatpush1.bf16.msra.mxu1 %v8834_v45 }
 0x582   : > { %v4536_v52 = vadd.f32 %v4535_v20, %v10392_v36  ;;  %v4537_v53 = vpop.f32.mrb[35].mxu1  ;;  %5271 = vmatmul.mubr.bf16.gmra.mrb[156].mxu0 %v4912_v47  ;;  %v4802_v30 = vmax.f32 %v4532_v19, 0.0  ;;  %8410 = vmatprep.subr.bf16.mxu1 %v8903_v2 }
 0x583   : > { %v4538_v54 = vadd.f32 %v4537_v53, %v10396_v37  ;;  %v4803_v31 = vmax.f32 %v4534_v51, 0.0 }
 0x584   : > { %v4804_v55 = vmax.f32 %v4536_v52, 0.0 }
 0x585   : > { %v4805_v58 = vmax.f32 %v4538_v54, 0.0 }
 0x586   : > { %v4914_v59 = vpack.c.bf16 %v4804_v55, %v4802_v30 }
 0x587   : > { %v4541_v62 = vpop.f32.mrb[36].mxu1  ;;  %v4915_v63 = vpack.c.bf16 %v4805_v58, %v4803_v31 }
 0x588   : > { %v4542_v0 = vadd.f32 %v4541_v62, %v10392_v36  ;;  %v4543_v1 = vpop.f32.mrb[37].mxu1 }
 0x589   : > { %v4544_v3 = vadd.f32 %v4543_v1, %v10396_v37  ;;  %v4545_v4 = vpop.f32.mrb[38].mxu1  ;;  %5280 = vmatprep.mubr.bf16.mxu0 %v4915_v63 }
 0x58a   : > { %v4546_v42 = vadd.f32 %v4545_v4, %v10392_v36  ;;  %v4547_v5 = vpop.f32.mrb[39].mxu1  ;;  %5281 = vmatmul.mubr.bf16.gmra.mrb[160].mxu0 %v4914_v59  ;;  %v4806_v10 = vmax.f32 %v4542_v0, 0.0 }
 0x58b   : > { %v4548_v9 = vadd.f32 %v4547_v5, %v10396_v37  ;;  %v4807_v12 = vmax.f32 %v4544_v3, 0.0  ;;  %v8837_v5 = vld [vmem:[%s11368_s3 + $0x720] ss:$8 sps:$4 sm:$0xff]  }
 0x58c   : > { %v4808_v11 = vmax.f32 %v4546_v42, 0.0  ;;  %6675 = vmatpush1.bf16.msra.mxu0 %v8837_v5 }
 0x58d   : > { %v4809_v13 = vmax.f32 %v4548_v9, 0.0 }
 0x58e   : > { %v4916_v14 = vpack.c.bf16 %v4808_v11, %v4806_v10 }
 0x58f   : > { %v4551_v15 = vpop.f32.mrb[40].mxu1  ;;  %v4917_v16 = vpack.c.bf16 %v4809_v13, %v4807_v12 }
 0x590   : > { %v4552_v17 = vadd.f32 %v4551_v15, %v10392_v36  ;;  %v4553_v56 = vpop.f32.mrb[41].mxu1 }
 0x591   : > { %v4554_v18 = vadd.f32 %v4553_v56, %v10396_v37  ;;  %v4555_v57 = vpop.f32.mrb[42].mxu1  ;;  %5290 = vmatprep.mubr.bf16.mxu0 %v4917_v16 }
 0x592   : > { %v4556_v21 = vadd.f32 %v4555_v57, %v10392_v36  ;;  %v4557_v22 = vpop.f32.mrb[43].mxu1  ;;  %5291 = vmatmul.mubr.bf16.gmra.mrb[164].mxu0 %v4916_v14  ;;  %v4810_v24 = vmax.f32 %v4552_v17, 0.0 }
 0x593   : > { %v4558_v23 = vadd.f32 %v4557_v22, %v10396_v37  ;;  %v4811_v28 = vmax.f32 %v4554_v18, 0.0 }
 0x594   : > { %v4812_v26 = vmax.f32 %v4556_v21, 0.0 }
 0x595   : > { %v4813_v29 = vmax.f32 %v4558_v23, 0.0 }
 0x596   : > { %v4918_v32 = vpack.c.bf16 %v4812_v26, %v4810_v24 }
 0x597   : > { %v4561_v6 = vpop.f32.mrb[44].mxu1  ;;  %v4919_v35 = vpack.c.bf16 %v4813_v29, %v4811_v28 }
 0x598   : > { %v4562_v7 = vadd.f32 %v4561_v6, %v10392_v36  ;;  %v4563_v38 = vpop.f32.mrb[45].mxu1 }
 0x599   : > { %v4564_v39 = vadd.f32 %v4563_v38, %v10396_v37  ;;  %v4565_v40 = vpop.f32.mrb[46].mxu1  ;;  %5300 = vmatprep.mubr.bf16.mxu0 %v4919_v35 }
 0x59a   : > { %v4566_v41 = vadd.f32 %v4565_v40, %v10392_v36  ;;  %v4567_v43 = vpop.f32.mrb[47].mxu1  ;;  %5301 = vmatmul.mubr.bf16.gmra.mrb[168].mxu0 %v4918_v32  ;;  %v4814_v48 = vmax.f32 %v4562_v7, 0.0  ;;  %v8840_v40 = vld [vmem:[%s11368_s3 + $0x730] ss:$8 sps:$4 sm:$0xff]  }
 0x59b   : > { %v4568_v47 = vadd.f32 %v4567_v43, %v10396_v37  ;;  %v4815_v19 = vmax.f32 %v4564_v39, 0.0 }
 0x59c   : > { %v4816_v49 = vmax.f32 %v4566_v41, 0.0  ;;  %v8842_v41 = vld [vmem:[%s11368_s3 + $0x734] ss:$8 sps:$4 sm:$0xff]  }
 0x59d   : > { %v4817_v50 = vmax.f32 %v4568_v47, 0.0  ;;  %6676 = vmatprep.subr.bf16.mxu0 %v8842_v41  ;;  %v8846_v41 = vld [vmem:[%s11368_s3 + $0x750] ss:$8 sps:$4 sm:$0xff]  }
 0x59e   : > { %v4920_v51 = vpack.c.bf16 %v4816_v49, %v4814_v48  ;;  %6677 = vmatpush1.bf16.msra.mxu0 %v8840_v40 }
 0x59f   : > { %v4571_v20 = vpop.f32.mrb[48].mxu1  ;;  %v4921_v52 = vpack.c.bf16 %v4817_v50, %v4815_v19 }
 0x5a0   : > { %v4572_v53 = vadd.f32 %v4571_v20, %v10392_v36  ;;  %v4573_v54 = vpop.f32.mrb[49].mxu1 }
 0x5a1   : > { %v4574_v30 = vadd.f32 %v4573_v54, %v10396_v37  ;;  %v4575_v55 = vpop.f32.mrb[50].mxu1  ;;  %5310 = vmatprep.mubr.bf16.mxu0 %v4921_v52 }
 0x5a2   : > { %v4576_v31 = vadd.f32 %v4575_v55, %v10392_v36  ;;  %v4577_v58 = vpop.f32.mrb[51].mxu1  ;;  %5311 = vmatmul.mubr.bf16.gmra.mrb[172].mxu0 %v4920_v51  ;;  %v4818_v60 = vmax.f32 %v4572_v53, 0.0 }
 0x5a3   : > { %v4578_v59 = vadd.f32 %v4577_v58, %v10396_v37  ;;  %v4819_v62 = vmax.f32 %v4574_v30, 0.0 }
 0x5a4   : > { %v4820_v61 = vmax.f32 %v4576_v31, 0.0 }
 0x5a5   : > { %v4821_v63 = vmax.f32 %v4578_v59, 0.0 }
 0x5a6   : > { %v4922_v0 = vpack.c.bf16 %v4820_v61, %v4818_v60 }
 0x5a7   : > { %v4581_v1 = vpop.f32.mrb[52].mxu1  ;;  %v4923_v3 = vpack.c.bf16 %v4821_v63, %v4819_v62 }
 0x5a8   : > { %v4582_v4 = vadd.f32 %v4581_v1, %v10392_v36  ;;  %v4583_v42 = vpop.f32.mrb[53].mxu1 }
 0x5a9   : > { %v4584_v8 = vadd.f32 %v4583_v42, %v10396_v37  ;;  %v4585_v9 = vpop.f32.mrb[54].mxu1  ;;  %5320 = vmatprep.mubr.bf16.mxu0 %v4923_v3 }
 0x5aa   : > { %v4586_v10 = vadd.f32 %v4585_v9, %v10392_v36  ;;  %v4587_v11 = vpop.f32.mrb[55].mxu1  ;;  %5321 = vmatmul.mubr.bf16.gmra.mrb[176].mxu0 %v4922_v0  ;;  %v4822_v13 = vmax.f32 %v4582_v4, 0.0 }
 0x5ab   : > { %v4588_v12 = vadd.f32 %v4587_v11, %v10396_v37  ;;  %v4823_v15 = vmax.f32 %v4584_v8, 0.0  ;;  %v8845_v8 = vld [vmem:[%s11368_s3 + $0x744] ss:$8 sps:$4 sm:$0xff]  }
 0x5ac   : > { %v4824_v14 = vmax.f32 %v4586_v10, 0.0  ;;  %6678 = vmatprep.subr.bf16.mxu0 %v8845_v8  ;;  %v8849_v8 = vld [vmem:[%s11368_s3 + $0x760] ss:$8 sps:$4 sm:$0xff]  }
 0x5ad   : > { %v4825_v16 = vmax.f32 %v4588_v12, 0.0  ;;  %6679 = vmatpush1.bf16.msra.mxu0 %v8843_v44 }
 0x5ae   : > { %v4924_v17 = vpack.c.bf16 %v4824_v14, %v4822_v13 }
 0x5af   : > { %v4591_v56 = vpop.f32.mrb[56].mxu1  ;;  %v4925_v18 = vpack.c.bf16 %v4825_v16, %v4823_v15 }
 0x5b0   : > { %v4592_v57 = vadd.f32 %v4591_v56, %v10392_v36  ;;  %v4593_v21 = vpop.f32.mrb[57].mxu1 }
 0x5b1   : > { %v4594_v22 = vadd.f32 %v4593_v21, %v10396_v37  ;;  %v4595_v23 = vpop.f32.mrb[58].mxu1  ;;  %5330 = vmatprep.mubr.bf16.mxu0 %v4925_v18 }
 0x5b2   : > { %v4596_v24 = vadd.f32 %v4595_v23, %v10392_v36  ;;  %v4597_v26 = vpop.f32.mrb[59].mxu1  ;;  %5331 = vmatmul.mubr.bf16.gmra.mrb[180].mxu0 %v4924_v17  ;;  %v4826_v29 = vmax.f32 %v4592_v57, 0.0 }
 0x5b3   : > { %v4598_v28 = vadd.f32 %v4597_v26, %v10396_v37  ;;  %v4827_v33 = vmax.f32 %v4594_v22, 0.0 }
 0x5b4   : > { %v4828_v32 = vmax.f32 %v4596_v24, 0.0 }
 0x5b5   : > { %v4829_v34 = vmax.f32 %v4598_v28, 0.0 }
 0x5b6   : > { %v4926_v6 = vpack.c.bf16 %v4828_v32, %v4826_v29 }
 0x5b7   : > { %v4601_v35 = vpop.f32.mrb[60].mxu1  ;;  %v4927_v7 = vpack.c.bf16 %v4829_v34, %v4827_v33 }
 0x5b8   : > { %v4602_v38 = vadd.f32 %v4601_v35, %v10392_v36  ;;  %v4603_v39 = vpop.f32.mrb[61].mxu1 }
 0x5b9   : > { %v4604_v43 = vadd.f32 %v4603_v39, %v10396_v37  ;;  %v4605_v45 = vpop.f32.mrb[62].mxu1  ;;  %5340 = vmatprep.mubr.bf16.mxu0 %v4927_v7 }
 0x5ba   : > { %v4606_v46 = vadd.f32 %v4605_v45, %v10392_v36  ;;  %v4607_v47 = vpop.f32.mrb[63].mxu1  ;;  %5341 = vmatmul.mubr.bf16.gmra.mrb[184].mxu0 %v4926_v6  ;;  %v4830_v49 = vmax.f32 %v4602_v38, 0.0 }
 0x5bb   : > { %v4608_v48 = vadd.f32 %v4607_v47, %v10396_v37  ;;  %v4831_v50 = vmax.f32 %v4604_v43, 0.0  ;;  %v8848_v43 = vld [vmem:[%s11368_s3 + $0x754] ss:$8 sps:$4 sm:$0xff]  }
 0x5bc   : > { %v4832_v19 = vmax.f32 %v4606_v46, 0.0  ;;  %6680 = vmatprep.subr.bf16.mxu0 %v8848_v43  ;;  %v8852_v43 = vld [vmem:[%s11368_s3 + $0x770] ss:$8 sps:$4 sm:$0xff]  }
 0x5bd   : > { %v4833_v51 = vmax.f32 %v4608_v48, 0.0  ;;  %6681 = vmatpush1.bf16.msra.mxu0 %v8846_v41 }
 0x5be   : > { %v4928_v20 = vpack.c.bf16 %v4832_v19, %v4830_v49 }
 0x5bf   : > { %v4611_v52 = vpop.f32.mrb[64].mxu1  ;;  %v4929_v53 = vpack.c.bf16 %v4833_v51, %v4831_v50 }
 0x5c0   : > { %v4612_v54 = vadd.f32 %v4611_v52, %v10392_v36  ;;  %v4613_v30 = vpop.f32.mrb[65].mxu1 }
 0x5c1   : > { %v4614_v55 = vadd.f32 %v4613_v30, %v10396_v37  ;;  %v4615_v31 = vpop.f32.mrb[66].mxu1  ;;  %5350 = vmatprep.mubr.bf16.mxu0 %v4929_v53 }
 0x5c2   : > { %v4616_v58 = vadd.f32 %v4615_v31, %v10392_v36  ;;  %v4617_v59 = vpop.f32.mrb[67].mxu1  ;;  %5351 = vmatmul.mubr.bf16.gmra.mrb[188].mxu0 %v4928_v20  ;;  %v4834_v61 = vmax.f32 %v4612_v54, 0.0 }
 0x5c3   : > { %v4618_v60 = vadd.f32 %v4617_v59, %v10396_v37  ;;  %v4835_v63 = vmax.f32 %v4614_v55, 0.0 }
 0x5c4   : > { %v4836_v62 = vmax.f32 %v4616_v58, 0.0 }
 0x5c5   : > { %v4837_v0 = vmax.f32 %v4618_v60, 0.0 }
 0x5c6   : > { %v4930_v1 = vpack.c.bf16 %v4836_v62, %v4834_v61 }
 0x5c7   : > { %v4621_v3 = vpop.f32.mrb[68].mxu1  ;;  %v4931_v4 = vpack.c.bf16 %v4837_v0, %v4835_v63 }
 0x5c8   : > { %v4622_v42 = vadd.f32 %v4621_v3, %v10392_v36  ;;  %v4623_v5 = vpop.f32.mrb[69].mxu1 }
 0x5c9   : > { %v4624_v9 = vadd.f32 %v4623_v5, %v10396_v37  ;;  %v4625_v10 = vpop.f32.mrb[70].mxu1  ;;  %5360 = vmatprep.mubr.bf16.mxu0 %v4931_v4 }
 0x5ca   : > { %v4626_v11 = vadd.f32 %v4625_v10, %v10392_v36  ;;  %v4627_v12 = vpop.f32.mrb[71].mxu1  ;;  %5361 = vmatmul.mubr.bf16.gmra.mrb[192].mxu0 %v4930_v1  ;;  %v4838_v14 = vmax.f32 %v4622_v42, 0.0 }
 0x5cb   : > { %v4628_v13 = vadd.f32 %v4627_v12, %v10396_v37  ;;  %v4839_v16 = vmax.f32 %v4624_v9, 0.0  ;;  %v8851_v9 = vld [vmem:[%s11368_s3 + $0x764] ss:$8 sps:$4 sm:$0xff]  }
 0x5cc   : > { %v4840_v15 = vmax.f32 %v4626_v11, 0.0  ;;  %6682 = vmatprep.subr.bf16.mxu0 %v8851_v9  ;;  %v8855_v9 = vld [vmem:[%s11368_s3 + $0x780] ss:$8 sps:$4 sm:$0xff]  }
 0x5cd   : > { %v4841_v17 = vmax.f32 %v4628_v13, 0.0  ;;  %6683 = vmatpush1.bf16.msra.mxu0 %v8849_v8 }
 0x5ce   : > { %v4932_v56 = vpack.c.bf16 %v4840_v15, %v4838_v14 }
 0x5cf   : > { %v4631_v18 = vpop.f32.mrb[72].mxu1  ;;  %v4933_v57 = vpack.c.bf16 %v4841_v17, %v4839_v16 }
 0x5d0   : > { %v4632_v21 = vadd.f32 %v4631_v18, %v10392_v36  ;;  %v4633_v22 = vpop.f32.mrb[73].mxu1 }
 0x5d1   : > { %v4634_v23 = vadd.f32 %v4633_v22, %v10396_v37  ;;  %v4635_v24 = vpop.f32.mrb[74].mxu1  ;;  %5370 = vmatprep.mubr.bf16.mxu0 %v4933_v57 }
 0x5d2   : > { %v4636_v26 = vadd.f32 %v4635_v24, %v10392_v36  ;;  %v4637_v28 = vpop.f32.mrb[75].mxu1  ;;  %5371 = vmatmul.mubr.bf16.gmra.mrb[196].mxu0 %v4932_v56  ;;  %v4842_v32 = vmax.f32 %v4632_v21, 0.0 }
 0x5d3   : > { %v4638_v29 = vadd.f32 %v4637_v28, %v10396_v37  ;;  %v4843_v34 = vmax.f32 %v4634_v23, 0.0 }
 0x5d4   : > { %v4844_v33 = vmax.f32 %v4636_v26, 0.0 }
 0x5d5   : > { %v4845_v6 = vmax.f32 %v4638_v29, 0.0 }
 0x5d6   : > { %v4934_v35 = vpack.c.bf16 %v4844_v33, %v4842_v32 }
 0x5d7   : > { %v4641_v7 = vpop.f32.mrb[76].mxu1  ;;  %v4935_v38 = vpack.c.bf16 %v4845_v6, %v4843_v34 }
 0x5d8   : > { %v4642_v39 = vadd.f32 %v4641_v7, %v10392_v36  ;;  %v4643_v40 = vpop.f32.mrb[77].mxu1 }
 0x5d9   : > { %v4644_v45 = vadd.f32 %v4643_v40, %v10396_v37  ;;  %v4645_v46 = vpop.f32.mrb[78].mxu1  ;;  %5380 = vmatprep.mubr.bf16.mxu0 %v4935_v38 }
 0x5da   : > { %v4646_v47 = vadd.f32 %v4645_v46, %v10392_v36  ;;  %v4647_v48 = vpop.f32.mrb[79].mxu1  ;;  %5381 = vmatmul.mubr.bf16.gmra.mrb[200].mxu0 %v4934_v35  ;;  %v4846_v19 = vmax.f32 %v4642_v39, 0.0 }
 0x5db   : > { %v4648_v49 = vadd.f32 %v4647_v48, %v10396_v37  ;;  %v4847_v51 = vmax.f32 %v4644_v45, 0.0  ;;  %v8854_v45 = vld [vmem:[%s11368_s3 + $0x774] ss:$8 sps:$4 sm:$0xff]  }
 0x5dc   : > { %v4848_v50 = vmax.f32 %v4646_v47, 0.0  ;;  %6684 = vmatprep.subr.bf16.mxu0 %v8854_v45 }
 0x5dd   : > { %v4849_v20 = vmax.f32 %v4648_v49, 0.0  ;;  %6685 = vmatpush1.bf16.msra.mxu0 %v8852_v43 }
 0x5de   : > { %v4936_v52 = vpack.c.bf16 %v4848_v50, %v4846_v19 }
 0x5df   : > { %v4651_v53 = vpop.f32.mrb[80].mxu1  ;;  %v4937_v54 = vpack.c.bf16 %v4849_v20, %v4847_v51 }
 0x5e0   : > { %v4652_v30 = vadd.f32 %v4651_v53, %v10392_v36  ;;  %v4653_v55 = vpop.f32.mrb[81].mxu1 }
 0x5e1   : > { %v4654_v31 = vadd.f32 %v4653_v55, %v10396_v37  ;;  %v4655_v58 = vpop.f32.mrb[82].mxu1  ;;  %5390 = vmatprep.mubr.bf16.mxu0 %v4937_v54 }
 0x5e2   : > { %v4656_v59 = vadd.f32 %v4655_v58, %v10392_v36  ;;  %v4657_v60 = vpop.f32.mrb[83].mxu1  ;;  %5391 = vmatmul.mubr.bf16.gmra.mrb[204].mxu0 %v4936_v52  ;;  %v4850_v62 = vmax.f32 %v4652_v30, 0.0 }
 0x5e3   : > { %v4658_v61 = vadd.f32 %v4657_v60, %v10396_v37  ;;  %v4851_v0 = vmax.f32 %v4654_v31, 0.0 }
 0x5e4   : > { %v4852_v63 = vmax.f32 %v4656_v59, 0.0 }
 0x5e5   : > { %v4853_v1 = vmax.f32 %v4658_v61, 0.0 }
 0x5e6   : > { %v4938_v3 = vpack.c.bf16 %v4852_v63, %v4850_v62 }
 0x5e7   : > { %v4661_v4 = vpop.f32.mrb[84].mxu1  ;;  %v4939_v42 = vpack.c.bf16 %v4853_v1, %v4851_v0 }
 0x5e8   : > { %v4662_v5 = vadd.f32 %v4661_v4, %v10392_v36  ;;  %v4663_v44 = vpop.f32.mrb[85].mxu1 }
 0x5e9   : > { %v4664_v10 = vadd.f32 %v4663_v44, %v10396_v37  ;;  %v4665_v11 = vpop.f32.mrb[86].mxu1  ;;  %5400 = vmatprep.mubr.bf16.mxu0 %v4939_v42 }
 0x5ea   : > { %v4666_v12 = vadd.f32 %v4665_v11, %v10392_v36  ;;  %v4667_v13 = vpop.f32.mrb[87].mxu1  ;;  %5401 = vmatmul.mubr.bf16.gmra.mrb[208].mxu0 %v4938_v3  ;;  %v4854_v15 = vmax.f32 %v4662_v5, 0.0 }
 0x5eb   : > { %v4668_v14 = vadd.f32 %v4667_v13, %v10396_v37  ;;  %v4855_v17 = vmax.f32 %v4664_v10, 0.0  ;;  %v8857_v10 = vld [vmem:[%s11368_s3 + $0x784] ss:$8 sps:$4 sm:$0xff]  }
 0x5ec   : > { %v4856_v16 = vmax.f32 %v4666_v12, 0.0  ;;  %6686 = vmatprep.subr.bf16.mxu0 %v8857_v10 }
 0x5ed   : > { %v4857_v56 = vmax.f32 %v4668_v14, 0.0  ;;  %6687 = vmatpush1.bf16.msra.mxu0 %v8855_v9 }
 0x5ee   : > { %v4940_v18 = vpack.c.bf16 %v4856_v16, %v4854_v15 }
 0x5ef   : > { %v4671_v57 = vpop.f32.mrb[88].mxu1  ;;  %v4941_v21 = vpack.c.bf16 %v4857_v56, %v4855_v17 }
 0x5f0   : > { %v4672_v22 = vadd.f32 %v4671_v57, %v10392_v36  ;;  %v4673_v23 = vpop.f32.mrb[89].mxu1 }
 0x5f1   : > { %v4674_v24 = vadd.f32 %v4673_v23, %v10396_v37  ;;  %v4675_v26 = vpop.f32.mrb[90].mxu1  ;;  %5410 = vmatprep.mubr.bf16.mxu0 %v4941_v21 }
 0x5f2   : > { %v4676_v28 = vadd.f32 %v4675_v26, %v10392_v36  ;;  %v4677_v29 = vpop.f32.mrb[91].mxu1  ;;  %5411 = vmatmul.mubr.bf16.gmra.mrb[212].mxu0 %v4940_v18  ;;  %v4858_v33 = vmax.f32 %v4672_v22, 0.0 }
 0x5f3   : > { %v4678_v32 = vadd.f32 %v4677_v29, %v10396_v37  ;;  %v4859_v6 = vmax.f32 %v4674_v24, 0.0 }
 0x5f4   : > { %v4860_v34 = vmax.f32 %v4676_v28, 0.0 }
 0x5f5   : > { %v4861_v35 = vmax.f32 %v4678_v32, 0.0 }
 0x5f6   : > { %v4942_v7 = vpack.c.bf16 %v4860_v34, %v4858_v33 }
 0x5f7   : > { %v4681_v38 = vpop.f32.mrb[92].mxu1  ;;  %v4943_v39 = vpack.c.bf16 %v4861_v35, %v4859_v6 }
 0x5f8   : > { %v4682_v40 = vadd.f32 %v4681_v38, %v10392_v36  ;;  %v4683_v41 = vpop.f32.mrb[93].mxu1 }
 0x5f9   : > { %v4684_v46 = vadd.f32 %v4683_v41, %v10396_v37  ;;  %v4685_v47 = vpop.f32.mrb[94].mxu1  ;;  %5420 = vmatprep.mubr.bf16.mxu0 %v4943_v39  ;;  %v8228_v41 = vld [vmem:[%s11369_s4 + $0xa] sm:$0x3] }
 0x5fa   : > { %v4686_v48 = vadd.f32 %v4685_v47, %v10392_v36  ;;  %v4687_v49 = vpop.f32.mrb[95].mxu1  ;;  %5421 = vmatmul.mubr.bf16.gmra.mrb[216].mxu0 %v4942_v7  ;;  %v4862_v50 = vmax.f32 %v4682_v40, 0.0  ;;  %v8860_v47 = vld [vmem:[%s11368_s3 + $0x794] ss:$8 sps:$4 sm:$0xff]  }
 0x5fb   : > { %v4688_v19 = vadd.f32 %v4687_v49, %v10396_v37  ;;  %v4863_v20 = vmax.f32 %v4684_v46, 0.0  ;;  %v8858_v46 = vld [vmem:[%s11368_s3 + $0x790] ss:$8 sps:$4 sm:$0xff]   ;;  %6688 = vmatprep.subr.bf16.mxu0 %v8860_v47 }
 0x5fc   : > { %v4864_v51 = vmax.f32 %v4686_v48, 0.0  ;;  %6689 = vmatpush1.bf16.msra.mxu0 %v8858_v46 }
 0x5fd   : > { %v4865_v52 = vmax.f32 %v4688_v19, 0.0 }
 0x5fe   : > { %v4944_v53 = vpack.c.bf16 %v4864_v51, %v4862_v50  ;;  %v10626_v51 = vrot.slane %v8228_v41, %v9214_v25 }
 0x5ff   : > { %v4691_v54 = vpop.f32.mrb[96].mxu1  ;;  %v4945_v30 = vpack.c.bf16 %v4865_v52, %v4863_v20  ;;  %v10630_v52 = vrot.slane %v8228_v41, %v9219_v27 }
 0x600   : > { %v4692_v55 = vadd.f32 %v4691_v54, %v10392_v36  ;;  %v4693_v31 = vpop.f32.mrb[97].mxu1 }
 0x601   : > { %v4694_v58 = vadd.f32 %v4693_v31, %v10396_v37  ;;  %v4695_v59 = vpop.f32.mrb[98].mxu1  ;;  %5430 = vmatprep.mubr.bf16.mxu0 %v4945_v30 }
 0x602   : > { %v4696_v60 = vadd.f32 %v4695_v59, %v10392_v36  ;;  %v4697_v61 = vpop.f32.mrb[99].mxu1  ;;  %5431 = vmatmul.mubr.bf16.gmra.mrb[220].mxu0 %v4944_v53  ;;  %v4866_v63 = vmax.f32 %v4692_v55, 0.0 }
 0x603   : > { %v4698_v62 = vadd.f32 %v4697_v61, %v10396_v37  ;;  %v4867_v1 = vmax.f32 %v4694_v58, 0.0 }
 0x604   : > { %v4868_v0 = vmax.f32 %v4696_v60, 0.0 }
 0x605   : > { %v4869_v3 = vmax.f32 %v4698_v62, 0.0 }
 0x606   : > { %v4946_v4 = vpack.c.bf16 %v4868_v0, %v4866_v63 }
 0x607   : > { %v4701_v42 = vpop.f32.mrb[100].mxu1  ;;  %v4947_v5 = vpack.c.bf16 %v4869_v3, %v4867_v1 }
 0x608   : > { %v4702_v44 = vadd.f32 %v4701_v42, %v10392_v36  ;;  %v4703_v8 = vpop.f32.mrb[101].mxu1 }
 0x609   : > { %v4704_v11 = vadd.f32 %v4703_v8, %v10396_v37  ;;  %v4705_v12 = vpop.f32.mrb[102].mxu1  ;;  %5440 = vmatprep.mubr.bf16.mxu0 %v4947_v5 }
 0x60a   : > { %v4706_v13 = vadd.f32 %v4705_v12, %v10392_v36  ;;  %v4707_v14 = vpop.f32.mrb[103].mxu1  ;;  %5441 = vmatmul.mubr.bf16.gmra.mrb[224].mxu0 %v4946_v4  ;;  %v4870_v16 = vmax.f32 %v4702_v44, 0.0 }
 0x60b   : > { %v4708_v15 = vadd.f32 %v4707_v14, %v10396_v37  ;;  %v4871_v56 = vmax.f32 %v4704_v11, 0.0 }
 0x60c   : > { %v4872_v17 = vmax.f32 %v4706_v13, 0.0 }
 0x60d   : > { %v4873_v18 = vmax.f32 %v4708_v15, 0.0 }
 0x60e   : > { %v4948_v57 = vpack.c.bf16 %v4872_v17, %v4870_v16 }
 0x60f   : > { %v4711_v21 = vpop.f32.mrb[104].mxu1  ;;  %v4949_v22 = vpack.c.bf16 %v4873_v18, %v4871_v56 }
 0x610   : > { %v4712_v23 = vadd.f32 %v4711_v21, %v10392_v36  ;;  %v4713_v24 = vpop.f32.mrb[105].mxu1 }
 0x611   : > { %v4714_v26 = vadd.f32 %v4713_v24, %v10396_v37  ;;  %v4715_v28 = vpop.f32.mrb[106].mxu1  ;;  %5450 = vmatprep.mubr.bf16.mxu0 %v4949_v22 }
 0x612   : > { %v4716_v29 = vadd.f32 %v4715_v28, %v10392_v36  ;;  %v4717_v32 = vpop.f32.mrb[107].mxu1  ;;  %5451 = vmatmul.mubr.bf16.gmra.mrb[228].mxu0 %v4948_v57  ;;  %v4874_v34 = vmax.f32 %v4712_v23, 0.0 }
 0x613   : > { %v4718_v33 = vadd.f32 %v4717_v32, %v10396_v37  ;;  %v4875_v35 = vmax.f32 %v4714_v26, 0.0 }
 0x614   : > { %v4876_v6 = vmax.f32 %v4716_v29, 0.0 }
 0x615   : > { %v4877_v7 = vmax.f32 %v4718_v33, 0.0 }
 0x616   : > { %v4950_v38 = vpack.c.bf16 %v4876_v6, %v4874_v34 }
 0x617   : > { %v4721_v39 = vpop.f32.mrb[108].mxu1  ;;  %v4951_v40 = vpack.c.bf16 %v4877_v7, %v4875_v35 }
 0x618   : > { %v4722_v43 = vadd.f32 %v4721_v39, %v10392_v36  ;;  %v4723_v45 = vpop.f32.mrb[109].mxu1 }
 0x619   : > { %v4724_v48 = vadd.f32 %v4723_v45, %v10396_v37  ;;  %v4725_v49 = vpop.f32.mrb[110].mxu1  ;;  %5460 = vmatprep.mubr.bf16.mxu0 %v4951_v40 }
 0x61a   : > { %v4726_v19 = vadd.f32 %v4725_v49, %v10392_v36  ;;  %v4727_v50 = vpop.f32.mrb[111].mxu1  ;;  %5461 = vmatmul.mubr.bf16.gmra.mrb[232].mxu0 %v4950_v38  ;;  %v4878_v53 = vmax.f32 %v4722_v43, 0.0  ;;  %v8861_v38 = vld [vmem:[%s11368_s3 + $0x7a0] ss:$8 sps:$4 sm:$0xff]   ;;  %v8863_v43 = vld [vmem:[%s11368_s3 + $0x7a4] ss:$8 sps:$4 sm:$0xff]  }
 0x61b   : > { %v4728_v20 = vadd.f32 %v4727_v50, %v10396_v37  ;;  %v4879_v30 = vmax.f32 %v4724_v48, 0.0  ;;  %6690 = vmatprep.subr.bf16.mxu0 %v8863_v43 }
 0x61c   : > { %v4880_v54 = vmax.f32 %v4726_v19, 0.0  ;;  %6691 = vmatpush1.bf16.msra.mxu0 %v8861_v38 }
 0x61d   : > { %v4881_v55 = vmax.f32 %v4728_v20, 0.0  ;;  %v5202_v31 = vpop.f32.mrb[128].mxu0 }
 0x61e   : > { %v4952_v58 = vpack.c.bf16 %v4880_v54, %v4878_v53  ;;  %v5203_v59 = vadd.f32 %v5202_v31, %v10626_v51  ;;  %v5204_v60 = vpop.f32.mrb[129].mxu0 }
 0x61f   : > { %v5205_v61 = vadd.f32 %v5204_v60, %v10630_v52  ;;  %v4731_v62 = vpop.f32.mrb[112].mxu1  ;;  %v5206_v63 = vpop.f32.mrb[130].mxu0  ;;  %v4953_v0 = vpack.c.bf16 %v4881_v55, %v4879_v30 }
 0x620   : > { %v4732_v1 = vadd.f32 %v4731_v62, %v10392_v36  ;;  %v5207_v3 = vadd.f32 %v5206_v63, %v10626_v51  ;;  %v4733_v4 = vpop.f32.mrb[113].mxu1  ;;  %v5208_v42 = vpop.f32.mrb[131].mxu0  ;;  %v5521_v9 = vmax.f32 %v5203_v59, 0.0 }
 0x621   : > { %v4734_v5 = vadd.f32 %v4733_v4, %v10396_v37  ;;  %v5209_v44 = vadd.f32 %v5208_v42, %v10630_v52  ;;  %v4735_v8 = vpop.f32.mrb[114].mxu1  ;;  %5470 = vmatprep.mubr.bf16.mxu0 %v4953_v0  ;;  %v5522_v13 = vmax.f32 %v5205_v61, 0.0 }
 0x622   : > { %v5523_v10 = vmax.f32 %v5207_v3, 0.0  ;;  %v4736_v11 = vadd.f32 %v4735_v8, %v10392_v36  ;;  %v4737_v12 = vpop.f32.mrb[115].mxu1  ;;  %5471 = vmatmul.mubr.bf16.gmra.mrb[236].mxu0 %v4952_v58  ;;  %v4882_v16 = vmax.f32 %v4732_v1, 0.0 }
 0x623   : > { %v5524_v14 = vmax.f32 %v5209_v44, 0.0  ;;  %v4738_v15 = vadd.f32 %v4737_v12, %v10396_v37  ;;  %v4883_v18 = vmax.f32 %v4734_v5, 0.0 }
 0x624   : > { %v5649_v17 = vpack.c.bf16 %v5523_v10, %v5521_v9  ;;  %v4884_v56 = vmax.f32 %v4736_v11, 0.0 }
 0x625   : > { %v4885_v57 = vmax.f32 %v4738_v15, 0.0  ;;  %v5212_v21 = vpop.f32.mrb[132].mxu0  ;;  %v5650_v22 = vpack.c.bf16 %v5524_v14, %v5522_v13 }
 0x626   : > { %v4954_v23 = vpack.c.bf16 %v4884_v56, %v4882_v16  ;;  %v5213_v24 = vadd.f32 %v5212_v21, %v10626_v51  ;;  %v5214_v26 = vpop.f32.mrb[133].mxu0 }
 0x627   : > { %v5215_v28 = vadd.f32 %v5214_v26, %v10630_v52  ;;  %v4741_v29 = vpop.f32.mrb[116].mxu1  ;;  %v5216_v32 = vpop.f32.mrb[134].mxu0  ;;  %5951 = vmatprep.mubr.bf16.mxu1 %v5650_v22  ;;  %v4955_v33 = vpack.c.bf16 %v4885_v57, %v4883_v18 }
 0x628   : > { %v4742_v34 = vadd.f32 %v4741_v29, %v10392_v36  ;;  %v5217_v6 = vadd.f32 %v5216_v32, %v10626_v51  ;;  %v4743_v35 = vpop.f32.mrb[117].mxu1  ;;  %v5218_v7 = vpop.f32.mrb[135].mxu0  ;;  %5952 = vmatmul.mubr.bf16.vlgmr.msra.gmra.mrb[128].mxu1 %v5649_v17  ;;  %v5525_v45 = vmax.f32 %v5213_v24, 0.0 }
 0x629   : > { %v4744_v39 = vadd.f32 %v4743_v35, %v10396_v37  ;;  %v5219_v40 = vadd.f32 %v5218_v7, %v10630_v52  ;;  %v4745_v41 = vpop.f32.mrb[118].mxu1  ;;  %5480 = vmatprep.mubr.bf16.mxu0 %v4955_v33  ;;  %v5526_v49 = vmax.f32 %v5215_v28, 0.0 }
 0x62a   : > { %v5527_v46 = vmax.f32 %v5217_v6, 0.0  ;;  %v4746_v47 = vadd.f32 %v4745_v41, %v10392_v36  ;;  %v4747_v48 = vpop.f32.mrb[119].mxu1  ;;  %5481 = vmatmul.mubr.bf16.gmra.mrb[240].mxu0 %v4954_v23  ;;  %v4886_v20 = vmax.f32 %v4742_v34, 0.0 }
 0x62b   : > { %v5528_v19 = vmax.f32 %v5219_v40, 0.0  ;;  %v4748_v50 = vadd.f32 %v4747_v48, %v10396_v37  ;;  %v4887_v30 = vmax.f32 %v4744_v39, 0.0  ;;  %v8864_v39 = vld [vmem:[%s11368_s3 + $0x7b0] ss:$8 sps:$4 sm:$0xff]  }
 0x62c   : > { %v5651_v53 = vpack.c.bf16 %v5527_v46, %v5525_v45  ;;  %v4888_v54 = vmax.f32 %v4746_v47, 0.0  ;;  %v8866_v45 = vld [vmem:[%s11368_s3 + $0x7b4] ss:$8 sps:$4 sm:$0xff]  }
 0x62d   : > { %v4889_v55 = vmax.f32 %v4748_v50, 0.0  ;;  %v5222_v31 = vpop.f32.mrb[136].mxu0  ;;  %v5652_v58 = vpack.c.bf16 %v5528_v19, %v5526_v49  ;;  %6692 = vmatprep.subr.bf16.mxu0 %v8866_v45 }
 0x62e   : > { %v4956_v59 = vpack.c.bf16 %v4888_v54, %v4886_v20  ;;  %v5223_v60 = vadd.f32 %v5222_v31, %v10626_v51  ;;  %v5224_v61 = vpop.f32.mrb[137].mxu0  ;;  %6693 = vmatpush1.bf16.msra.mxu0 %v8864_v39 }
 0x62f   : > { %v4957_v62 = vpack.c.bf16 %v4889_v55, %v4887_v30  ;;  %v5225_v63 = vadd.f32 %v5224_v61, %v10630_v52  ;;  %v4751_v0 = vpop.f32.mrb[120].mxu1  ;;  %v5226_v1 = vpop.f32.mrb[138].mxu0  ;;  %5961 = vmatprep.mubr.bf16.mxu1 %v5652_v58 }
 0x630   : > { %v4752_v3 = vadd.f32 %v4751_v0, %v10392_v36  ;;  %v5227_v4 = vadd.f32 %v5226_v1, %v10626_v51  ;;  %v4753_v42 = vpop.f32.mrb[121].mxu1  ;;  %v5228_v5 = vpop.f32.mrb[139].mxu0  ;;  %5962 = vmatmul.mubr.bf16.gmra.mrb[132].mxu1 %v5651_v53  ;;  %v5529_v10 = vmax.f32 %v5223_v60, 0.0 }
 0x631   : > { %v4754_v44 = vadd.f32 %v4753_v42, %v10396_v37  ;;  %v5229_v8 = vadd.f32 %v5228_v5, %v10630_v52  ;;  %v4755_v9 = vpop.f32.mrb[122].mxu1  ;;  %5490 = vmatprep.mubr.bf16.mxu0 %v4957_v62  ;;  %v5530_v14 = vmax.f32 %v5225_v63, 0.0 }
 0x632   : > { %v5531_v11 = vmax.f32 %v5227_v4, 0.0  ;;  %v4756_v12 = vadd.f32 %v4755_v9, %v10392_v36  ;;  %v4757_v13 = vpop.f32.mrb[123].mxu1  ;;  %5491 = vmatmul.mubr.bf16.gmra.mrb[244].mxu0 %v4956_v59  ;;  %v4890_v17 = vmax.f32 %v4752_v3, 0.0 }
 0x633   : > { %v5532_v15 = vmax.f32 %v5229_v8, 0.0  ;;  %v4758_v16 = vadd.f32 %v4757_v13, %v10396_v37  ;;  %v4891_v57 = vmax.f32 %v4754_v44, 0.0 }
 0x634   : > { %v5653_v56 = vpack.c.bf16 %v5531_v11, %v5529_v10  ;;  %v4892_v18 = vmax.f32 %v4756_v12, 0.0 }
 0x635   : > { %v4893_v21 = vmax.f32 %v4758_v16, 0.0  ;;  %v5232_v22 = vpop.f32.mrb[140].mxu0  ;;  %v5654_v23 = vpack.c.bf16 %v5532_v15, %v5530_v14 }
 0x636   : > { %v4958_v24 = vpack.c.bf16 %v4892_v18, %v4890_v17  ;;  %v5233_v26 = vadd.f32 %v5232_v22, %v10626_v51  ;;  %v5234_v28 = vpop.f32.mrb[141].mxu0  ;;  %v8867_v17 = vld [vmem:[%s11368_s3 + $0x7c0] ss:$8 sps:$4 sm:$0xff]  }
 0x637   : > { %v4959_v29 = vpack.c.bf16 %v4893_v21, %v4891_v57  ;;  %v5235_v32 = vadd.f32 %v5234_v28, %v10630_v52  ;;  %v4761_v33 = vpop.f32.mrb[124].mxu1  ;;  %v5236_v34 = vpop.f32.mrb[142].mxu0  ;;  %5971 = vmatprep.mubr.bf16.mxu1 %v5654_v23 }
 0x638   : > { %v4762_v6 = vadd.f32 %v4761_v33, %v10392_v36  ;;  %v5237_v35 = vadd.f32 %v5236_v34, %v10626_v51  ;;  %v4763_v7 = vpop.f32.mrb[125].mxu1  ;;  %v5238_v38 = vpop.f32.mrb[143].mxu0  ;;  %5972 = vmatmul.mubr.bf16.gmra.mrb[136].mxu1 %v5653_v56  ;;  %v5533_v46 = vmax.f32 %v5233_v26, 0.0  ;;  %v8869_v56 = vld [vmem:[%s11368_s3 + $0x7c4] ss:$8 sps:$4 sm:$0xff]  }
 0x639   : > { %v4764_v40 = vadd.f32 %v4763_v7, %v10396_v37  ;;  %v5239_v41 = vadd.f32 %v5238_v38, %v10630_v52  ;;  %v4765_v43 = vpop.f32.mrb[126].mxu1  ;;  %5500 = vmatprep.mubr.bf16.mxu0 %v4959_v29  ;;  %v5534_v19 = vmax.f32 %v5235_v32, 0.0  ;;  %6694 = vmatprep.subr.bf16.mxu0 %v8869_v56  ;;  %v8873_v56 = vld [vmem:[%s11368_s3 + $0x7e0] ss:$8 sps:$4 sm:$0xff]  }
 0x63a   : > { %v5535_v47 = vmax.f32 %v5237_v35, 0.0  ;;  %v4766_v48 = vadd.f32 %v4765_v43, %v10392_v36  ;;  %v4767_v49 = vpop.f32.mrb[127].mxu1  ;;  %5501 = vmatmul.mubr.bf16.gmra.mrb[248].mxu0 %v4958_v24  ;;  %v4894_v53 = vmax.f32 %v4762_v6, 0.0 }
 0x63b   : > { %v5536_v50 = vmax.f32 %v5239_v41, 0.0  ;;  %v4768_v20 = vadd.f32 %v4767_v49, %v10396_v37  ;;  %v4895_v55 = vmax.f32 %v4764_v40, 0.0  ;;  %6695 = vmatpush1.bf16.msra.mxu0 %v8867_v17 }
 0x63c   : > { %v5655_v54 = vpack.c.bf16 %v5535_v47, %v5533_v46  ;;  %v4896_v30 = vmax.f32 %v4766_v48, 0.0 }
 0x63d   : > { %v5656_v31 = vpack.c.bf16 %v5536_v50, %v5534_v19  ;;  %v4897_v58 = vmax.f32 %v4768_v20, 0.0  ;;  %v5242_v59 = vpop.f32.mrb[144].mxu0 }
 0x63e   : > { %v4960_v60 = vpack.c.bf16 %v4896_v30, %v4894_v53  ;;  %v5243_v61 = vadd.f32 %v5242_v59, %v10626_v51  ;;  %v5244_v62 = vpop.f32.mrb[145].mxu0  ;;  %v8870_v53 = vld [vmem:[%s11368_s3 + $0x7d0] ss:$8 sps:$4 sm:$0xff]  }
 0x63f   : > { %v4961_v36 = vpack.c.bf16 %v4897_v58, %v4895_v55  ;;  %v5245_v63 = vadd.f32 %v5244_v62, %v10630_v52  ;;  %v5246_v0 = vpop.f32.mrb[146].mxu0  ;;  %5981 = vmatprep.mubr.bf16.mxu1 %v5656_v31 }
 0x640   : > { %v5247_v37 = vadd.f32 %v5246_v0, %v10626_v51  ;;  %v5248_v1 = vpop.f32.mrb[147].mxu0  ;;  %5982 = vmatmul.mubr.bf16.gmra.mrb[140].mxu1 %v5655_v54  ;;  %v5537_v4 = vmax.f32 %v5243_v61, 0.0  ;;  %v8872_v54 = vld [vmem:[%s11368_s3 + $0x7d4] ss:$8 sps:$4 sm:$0xff]  }
 0x641   : > { %v5249_v3 = vadd.f32 %v5248_v1, %v10630_v52  ;;  %5510 = vmatprep.mubr.bf16.mxu0 %v4961_v36  ;;  %v5538_v5 = vmax.f32 %v5245_v63, 0.0  ;;  %6696 = vmatprep.subr.bf16.mxu0 %v8872_v54  ;;  %v8876_v54 = vld [vmem:[%s11368_s3 + $0x7f0] ss:$8 sps:$4 sm:$0xff]  }
 0x642   : > { %v5539_v42 = vmax.f32 %v5247_v37, 0.0  ;;  %5511 = vmatmul.mubr.bf16.gmra.mrb[252].mxu0 %v4960_v60 }
 0x643   : > { %v5540_v44 = vmax.f32 %v5249_v3, 0.0  ;;  %6697 = vmatpush1.bf16.msra.mxu0 %v8870_v53 }
 0x644   : > { %v5657_v8 = vpack.c.bf16 %v5539_v42, %v5537_v4 }
 0x645   : > { %v5658_v9 = vpack.c.bf16 %v5540_v44, %v5538_v5  ;;  %v5252_v10 = vpop.f32.mrb[148].mxu0 }
 0x646   : > { %v5253_v11 = vadd.f32 %v5252_v10, %v10626_v51  ;;  %v5254_v12 = vpop.f32.mrb[149].mxu0 }
 0x647   : > { %v5255_v13 = vadd.f32 %v5254_v12, %v10630_v52  ;;  %v5256_v14 = vpop.f32.mrb[150].mxu0  ;;  %5991 = vmatprep.mubr.bf16.mxu1 %v5658_v9 }
 0x648   : > { %v5257_v15 = vadd.f32 %v5256_v14, %v10626_v51  ;;  %v5258_v16 = vpop.f32.mrb[151].mxu0  ;;  %5992 = vmatmul.mubr.bf16.gmra.mrb[144].mxu1 %v5657_v8  ;;  %v5541_v57 = vmax.f32 %v5253_v11, 0.0 }
 0x649   : > { %v5259_v18 = vadd.f32 %v5258_v16, %v10630_v52  ;;  %v5542_v22 = vmax.f32 %v5255_v13, 0.0 }
 0x64a   : > { %v5543_v21 = vmax.f32 %v5257_v15, 0.0 }
 0x64b   : > { %v5544_v23 = vmax.f32 %v5259_v18, 0.0  ;;  %v8875_v18 = vld [vmem:[%s11368_s3 + $0x7e4] ss:$8 sps:$4 sm:$0xff]  }
 0x64c   : > { %v5659_v24 = vpack.c.bf16 %v5543_v21, %v5541_v57  ;;  %6698 = vmatprep.subr.bf16.mxu0 %v8875_v18 }
 0x64d   : > { %v5660_v26 = vpack.c.bf16 %v5544_v23, %v5542_v22  ;;  %v5262_v28 = vpop.f32.mrb[152].mxu0  ;;  %6699 = vmatpush1.bf16.msra.mxu0 %v8873_v56 }
 0x64e   : > { %v5263_v29 = vadd.f32 %v5262_v28, %v10626_v51  ;;  %v5264_v32 = vpop.f32.mrb[153].mxu0 }
 0x64f   : > { %v5265_v33 = vadd.f32 %v5264_v32, %v10630_v52  ;;  %v5266_v34 = vpop.f32.mrb[154].mxu0  ;;  %6001 = vmatprep.mubr.bf16.mxu1 %v5660_v26 }
 0x650   : > { %v5267_v6 = vadd.f32 %v5266_v34, %v10626_v51  ;;  %v5268_v35 = vpop.f32.mrb[155].mxu0  ;;  %6002 = vmatmul.mubr.bf16.gmra.mrb[148].mxu1 %v5659_v24  ;;  %v5545_v38 = vmax.f32 %v5263_v29, 0.0 }
 0x651   : > { %v5269_v7 = vadd.f32 %v5268_v35, %v10630_v52  ;;  %v5546_v40 = vmax.f32 %v5265_v33, 0.0 }
 0x652   : > { %v5547_v39 = vmax.f32 %v5267_v6, 0.0 }
 0x653   : > { %v5548_v41 = vmax.f32 %v5269_v7, 0.0 }
 0x654   : > { %v5661_v43 = vpack.c.bf16 %v5547_v39, %v5545_v38 }
 0x655   : > { %v5662_v45 = vpack.c.bf16 %v5548_v41, %v5546_v40  ;;  %v5272_v46 = vpop.f32.mrb[156].mxu0 }
 0x656   : > { %v5273_v47 = vadd.f32 %v5272_v46, %v10626_v51  ;;  %v5274_v48 = vpop.f32.mrb[157].mxu0 }
 0x657   : > { %v5275_v49 = vadd.f32 %v5274_v48, %v10630_v52  ;;  %v5276_v19 = vpop.f32.mrb[158].mxu0  ;;  %6011 = vmatprep.mubr.bf16.mxu1 %v5662_v45 }
 0x658   : > { %v5277_v50 = vadd.f32 %v5276_v19, %v10626_v51  ;;  %v5278_v20 = vpop.f32.mrb[159].mxu0  ;;  %6012 = vmatmul.mubr.bf16.gmra.mrb[152].mxu1 %v5661_v43  ;;  %v5549_v55 = vmax.f32 %v5273_v47, 0.0 }
 0x659   : > { %v5279_v30 = vadd.f32 %v5278_v20, %v10630_v52  ;;  %v5550_v58 = vmax.f32 %v5275_v49, 0.0 }
 0x65a   : > { %v5551_v31 = vmax.f32 %v5277_v50, 0.0 }
 0x65b   : > { %v5552_v59 = vmax.f32 %v5279_v30, 0.0  ;;  %v8878_v30 = vld [vmem:[%s11368_s3 + $0x7f4] ss:$8 sps:$4 sm:$0xff]  }
 0x65c   : > { %v5663_v60 = vpack.c.bf16 %v5551_v31, %v5549_v55  ;;  %6700 = vmatprep.subr.bf16.mxu0 %v8878_v30 }
 0x65d   : > { %v5664_v61 = vpack.c.bf16 %v5552_v59, %v5550_v58  ;;  %v5282_v62 = vpop.f32.mrb[160].mxu0  ;;  %6701 = vmatpush1.bf16.msra.mxu0 %v8876_v54 }
 0x65e   : > { %v5283_v36 = vadd.f32 %v5282_v62, %v10626_v51  ;;  %v5284_v63 = vpop.f32.mrb[161].mxu0  ;;  %7350 = vmatprep.subr.bf16.mxu0 %v8903_v2 }
 0x65f   : > { %v5285_v0 = vadd.f32 %v5284_v63, %v10630_v52  ;;  %v5286_v37 = vpop.f32.mrb[162].mxu0  ;;  %6021 = vmatprep.mubr.bf16.mxu1 %v5664_v61 }
 0x660   : > { %v5287_v1 = vadd.f32 %v5286_v37, %v10626_v51  ;;  %v5288_v3 = vpop.f32.mrb[163].mxu0  ;;  %6022 = vmatmul.mubr.bf16.gmra.mrb[156].mxu1 %v5663_v60  ;;  %v5553_v42 = vmax.f32 %v5283_v36, 0.0 }
 0x661   : > { %v5289_v4 = vadd.f32 %v5288_v3, %v10630_v52  ;;  %v5554_v44 = vmax.f32 %v5285_v0, 0.0  ;;  %v10738_v3 = vld [vmem:[%s11370_s5] sm:$0xff]  }
 0x662   : > { %v5555_v5 = vmax.f32 %v5287_v1, 0.0  ;;  %8426 = vmatpush1.bf16.msra.mxu1 %v10738_v3 }
 0x663   : > { %v5556_v8 = vmax.f32 %v5289_v4, 0.0  ;;  %8411 = vmatprep.subr.bf16.mxu1 %v8903_v2 }
 0x664   : > { %v5665_v9 = vpack.c.bf16 %v5555_v5, %v5553_v42 }
 0x665   : > { %v5666_v10 = vpack.c.bf16 %v5556_v8, %v5554_v44  ;;  %v5292_v11 = vpop.f32.mrb[164].mxu0 }
 0x666   : > { %v5293_v12 = vadd.f32 %v5292_v11, %v10626_v51  ;;  %v5294_v13 = vpop.f32.mrb[165].mxu0 }
 0x667   : > { %v5295_v14 = vadd.f32 %v5294_v13, %v10630_v52  ;;  %v5296_v15 = vpop.f32.mrb[166].mxu0  ;;  %6031 = vmatprep.mubr.bf16.mxu1 %v5666_v10 }
 0x668   : > { %v5297_v16 = vadd.f32 %v5296_v15, %v10626_v51  ;;  %v5298_v17 = vpop.f32.mrb[167].mxu0  ;;  %6032 = vmatmul.mubr.bf16.gmra.mrb[160].mxu1 %v5665_v9  ;;  %v5557_v21 = vmax.f32 %v5293_v12, 0.0 }
 0x669   : > { %v5299_v57 = vadd.f32 %v5298_v17, %v10630_v52  ;;  %v5558_v23 = vmax.f32 %v5295_v14, 0.0 }
 0x66a   : > { %v5559_v22 = vmax.f32 %v5297_v16, 0.0 }
 0x66b   : > { %v5560_v24 = vmax.f32 %v5299_v57, 0.0 }
 0x66c   : > { %v5667_v26 = vpack.c.bf16 %v5559_v22, %v5557_v21 }
 0x66d   : > { %v5668_v28 = vpack.c.bf16 %v5560_v24, %v5558_v23  ;;  %v5302_v29 = vpop.f32.mrb[168].mxu0 }
 0x66e   : > { %v5303_v32 = vadd.f32 %v5302_v29, %v10626_v51  ;;  %v5304_v33 = vpop.f32.mrb[169].mxu0 }
 0x66f   : > { %v5305_v34 = vadd.f32 %v5304_v33, %v10630_v52  ;;  %v5306_v6 = vpop.f32.mrb[170].mxu0  ;;  %6041 = vmatprep.mubr.bf16.mxu1 %v5668_v28 }
 0x670   : > { %v5307_v35 = vadd.f32 %v5306_v6, %v10626_v51  ;;  %v5308_v7 = vpop.f32.mrb[171].mxu0  ;;  %6042 = vmatmul.mubr.bf16.gmra.mrb[164].mxu1 %v5667_v26  ;;  %v5561_v39 = vmax.f32 %v5303_v32, 0.0 }
 0x671   : > { %v5309_v38 = vadd.f32 %v5308_v7, %v10630_v52  ;;  %v5562_v41 = vmax.f32 %v5305_v34, 0.0 }
 0x672   : > { %v5563_v40 = vmax.f32 %v5307_v35, 0.0  ;;  %v10753_v35 = vld [vmem:[%s11370_s5 + $0x8] sm:$0xff]  }
 0x673   : > { %v5564_v43 = vmax.f32 %v5309_v38, 0.0  ;;  %8427 = vmatpush1.bf16.msra.mxu1 %v10753_v35 }
 0x674   : > { %v5669_v45 = vpack.c.bf16 %v5563_v40, %v5561_v39  ;;  %8412 = vmatprep.subr.bf16.mxu1 %v8903_v2 }
 0x675   : > { %v5670_v46 = vpack.c.bf16 %v5564_v43, %v5562_v41  ;;  %v5312_v47 = vpop.f32.mrb[172].mxu0 }
 0x676   : > { %v5313_v48 = vadd.f32 %v5312_v47, %v10626_v51  ;;  %v5314_v49 = vpop.f32.mrb[173].mxu0 }
 0x677   : > { %v5315_v19 = vadd.f32 %v5314_v49, %v10630_v52  ;;  %v5316_v50 = vpop.f32.mrb[174].mxu0  ;;  %6051 = vmatprep.mubr.bf16.mxu1 %v5670_v46 }
 0x678   : > { %v5317_v20 = vadd.f32 %v5316_v50, %v10626_v51  ;;  %v5318_v53 = vpop.f32.mrb[175].mxu0  ;;  %6052 = vmatmul.mubr.bf16.gmra.mrb[168].mxu1 %v5669_v45  ;;  %v5565_v31 = vmax.f32 %v5313_v48, 0.0 }
 0x679   : > { %v5319_v55 = vadd.f32 %v5318_v53, %v10630_v52  ;;  %v5566_v59 = vmax.f32 %v5315_v19, 0.0 }
 0x67a   : > { %v5567_v58 = vmax.f32 %v5317_v20, 0.0 }
 0x67b   : > { %v5568_v60 = vmax.f32 %v5319_v55, 0.0 }
 0x67c   : > { %v5671_v61 = vpack.c.bf16 %v5567_v58, %v5565_v31 }
 0x67d   : > { %v5672_v62 = vpack.c.bf16 %v5568_v60, %v5566_v59  ;;  %v5322_v36 = vpop.f32.mrb[176].mxu0 }
 0x67e   : > { %v5323_v63 = vadd.f32 %v5322_v36, %v10626_v51  ;;  %v5324_v0 = vpop.f32.mrb[177].mxu0 }
 0x67f   : > { %v5325_v37 = vadd.f32 %v5324_v0, %v10630_v52  ;;  %v5326_v1 = vpop.f32.mrb[178].mxu0  ;;  %6061 = vmatprep.mubr.bf16.mxu1 %v5672_v62 }
 0x680   : > { %v5327_v4 = vadd.f32 %v5326_v1, %v10626_v51  ;;  %v5328_v42 = vpop.f32.mrb[179].mxu0  ;;  %6062 = vmatmul.mubr.bf16.gmra.mrb[172].mxu1 %v5671_v61  ;;  %v5569_v44 = vmax.f32 %v5323_v63, 0.0  ;;  %v10768_v1 = vld [vmem:[%s11370_s5 + $0x10] sm:$0xff]  }
 0x681   : > { %v5329_v5 = vadd.f32 %v5328_v42, %v10630_v52  ;;  %v5570_v9 = vmax.f32 %v5325_v37, 0.0  ;;  %8428 = vmatpush1.bf16.msra.mxu1 %v10768_v1 }
 0x682   : > { %v5571_v8 = vmax.f32 %v5327_v4, 0.0  ;;  %8413 = vmatprep.subr.bf16.mxu1 %v8903_v2 }
 0x683   : > { %v5572_v10 = vmax.f32 %v5329_v5, 0.0 }
 0x684   : > { %v5673_v11 = vpack.c.bf16 %v5571_v8, %v5569_v44 }
 0x685   : > { %v5674_v12 = vpack.c.bf16 %v5572_v10, %v5570_v9  ;;  %v5332_v13 = vpop.f32.mrb[180].mxu0 }
 0x686   : > { %v5333_v14 = vadd.f32 %v5332_v13, %v10626_v51  ;;  %v5334_v15 = vpop.f32.mrb[181].mxu0 }
 0x687   : > { %v5335_v16 = vadd.f32 %v5334_v15, %v10630_v52  ;;  %v5336_v17 = vpop.f32.mrb[182].mxu0  ;;  %6071 = vmatprep.mubr.bf16.mxu1 %v5674_v12 }
 0x688   : > { %v5337_v56 = vadd.f32 %v5336_v17, %v10626_v51  ;;  %v5338_v18 = vpop.f32.mrb[183].mxu0  ;;  %6072 = vmatmul.mubr.bf16.gmra.mrb[176].mxu1 %v5673_v11  ;;  %v5573_v21 = vmax.f32 %v5333_v14, 0.0 }
 0x689   : > { %v5339_v57 = vadd.f32 %v5338_v18, %v10630_v52  ;;  %v5574_v23 = vmax.f32 %v5335_v16, 0.0 }
 0x68a   : > { %v5575_v22 = vmax.f32 %v5337_v56, 0.0 }
 0x68b   : > { %v5576_v24 = vmax.f32 %v5339_v57, 0.0 }
 0x68c   : > { %v5675_v26 = vpack.c.bf16 %v5575_v22, %v5573_v21 }
 0x68d   : > { %v5676_v28 = vpack.c.bf16 %v5576_v24, %v5574_v23  ;;  %v5342_v29 = vpop.f32.mrb[184].mxu0 }
 0x68e   : > { %v5343_v32 = vadd.f32 %v5342_v29, %v10626_v51  ;;  %v5344_v33 = vpop.f32.mrb[185].mxu0 }
 0x68f   : > { %v5345_v34 = vadd.f32 %v5344_v33, %v10630_v52  ;;  %v5346_v6 = vpop.f32.mrb[186].mxu0  ;;  %6081 = vmatprep.mubr.bf16.mxu1 %v5676_v28 }
 0x690   : > { %v5347_v7 = vadd.f32 %v5346_v6, %v10626_v51  ;;  %v5348_v38 = vpop.f32.mrb[187].mxu0  ;;  %6082 = vmatmul.mubr.bf16.gmra.mrb[180].mxu1 %v5675_v26  ;;  %v5577_v40 = vmax.f32 %v5343_v32, 0.0 }
 0x691   : > { %v5349_v39 = vadd.f32 %v5348_v38, %v10630_v52  ;;  %v5578_v43 = vmax.f32 %v5345_v34, 0.0 }
 0x692   : > { %v5579_v41 = vmax.f32 %v5347_v7, 0.0  ;;  %v10783_v7 = vld [vmem:[%s11370_s5 + $0x18] sm:$0xff]  }
 0x693   : > { %v5580_v45 = vmax.f32 %v5349_v39, 0.0  ;;  %8429 = vmatpush1.bf16.msra.mxu1 %v10783_v7 }
 0x694   : > { %v5677_v46 = vpack.c.bf16 %v5579_v41, %v5577_v40  ;;  %8414 = vmatprep.subr.bf16.mxu1 %v8903_v2 }
 0x695   : > { %v5678_v47 = vpack.c.bf16 %v5580_v45, %v5578_v43  ;;  %v5352_v48 = vpop.f32.mrb[188].mxu0 }
 0x696   : > { %v5353_v49 = vadd.f32 %v5352_v48, %v10626_v51  ;;  %v5354_v19 = vpop.f32.mrb[189].mxu0 }
 0x697   : > { %v5355_v50 = vadd.f32 %v5354_v19, %v10630_v52  ;;  %v5356_v20 = vpop.f32.mrb[190].mxu0  ;;  %6091 = vmatprep.mubr.bf16.mxu1 %v5678_v47 }
 0x698   : > { %v5357_v53 = vadd.f32 %v5356_v20, %v10626_v51  ;;  %v5358_v54 = vpop.f32.mrb[191].mxu0  ;;  %6092 = vmatmul.mubr.bf16.gmra.mrb[184].mxu1 %v5677_v46  ;;  %v5581_v55 = vmax.f32 %v5353_v49, 0.0 }
 0x699   : > { %v5359_v30 = vadd.f32 %v5358_v54, %v10630_v52  ;;  %v5582_v58 = vmax.f32 %v5355_v50, 0.0 }
 0x69a   : > { %v5583_v31 = vmax.f32 %v5357_v53, 0.0 }
 0x69b   : > { %v5584_v59 = vmax.f32 %v5359_v30, 0.0 }
 0x69c   : > { %v5679_v60 = vpack.c.bf16 %v5583_v31, %v5581_v55 }
 0x69d   : > { %v5680_v61 = vpack.c.bf16 %v5584_v59, %v5582_v58  ;;  %v5362_v62 = vpop.f32.mrb[192].mxu0 }
 0x69e   : > { %v5363_v36 = vadd.f32 %v5362_v62, %v10626_v51  ;;  %v5364_v63 = vpop.f32.mrb[193].mxu0 }
 0x69f   : > { %v5365_v0 = vadd.f32 %v5364_v63, %v10630_v52  ;;  %v5366_v37 = vpop.f32.mrb[194].mxu0  ;;  %6101 = vmatprep.mubr.bf16.mxu1 %v5680_v61 }
 0x6a0   : > { %v5367_v4 = vadd.f32 %v5366_v37, %v10626_v51  ;;  %v5368_v42 = vpop.f32.mrb[195].mxu0  ;;  %6102 = vmatmul.mubr.bf16.gmra.mrb[188].mxu1 %v5679_v60  ;;  %v5585_v44 = vmax.f32 %v5363_v36, 0.0 }
 0x6a1   : > { %v5369_v5 = vadd.f32 %v5368_v42, %v10630_v52  ;;  %v5586_v9 = vmax.f32 %v5365_v0, 0.0  ;;  %v10798_v42 = vld [vmem:[%s11370_s5 + $0x20] sm:$0xff]  }
 0x6a2   : > { %v5587_v8 = vmax.f32 %v5367_v4, 0.0  ;;  %8430 = vmatpush1.bf16.msra.mxu1 %v10798_v42 }
 0x6a3   : > { %v5588_v10 = vmax.f32 %v5369_v5, 0.0  ;;  %8415 = vmatprep.subr.bf16.mxu1 %v8903_v2 }
 0x6a4   : > { %v5681_v11 = vpack.c.bf16 %v5587_v8, %v5585_v44 }
 0x6a5   : > { %v5682_v12 = vpack.c.bf16 %v5588_v10, %v5586_v9  ;;  %v5372_v13 = vpop.f32.mrb[196].mxu0 }
 0x6a6   : > { %v5373_v14 = vadd.f32 %v5372_v13, %v10626_v51  ;;  %v5374_v15 = vpop.f32.mrb[197].mxu0 }
 0x6a7   : > { %v5375_v16 = vadd.f32 %v5374_v15, %v10630_v52  ;;  %v5376_v17 = vpop.f32.mrb[198].mxu0  ;;  %6111 = vmatprep.mubr.bf16.mxu1 %v5682_v12 }
 0x6a8   : > { %v5377_v56 = vadd.f32 %v5376_v17, %v10626_v51  ;;  %v5378_v18 = vpop.f32.mrb[199].mxu0  ;;  %6112 = vmatmul.mubr.bf16.gmra.mrb[192].mxu1 %v5681_v11  ;;  %v5589_v21 = vmax.f32 %v5373_v14, 0.0 }
 0x6a9   : > { %v5379_v57 = vadd.f32 %v5378_v18, %v10630_v52  ;;  %v5590_v23 = vmax.f32 %v5375_v16, 0.0 }
 0x6aa   : > { %v5591_v22 = vmax.f32 %v5377_v56, 0.0 }
 0x6ab   : > { %v5592_v24 = vmax.f32 %v5379_v57, 0.0 }
 0x6ac   : > { %v5683_v26 = vpack.c.bf16 %v5591_v22, %v5589_v21 }
 0x6ad   : > { %v5684_v28 = vpack.c.bf16 %v5592_v24, %v5590_v23  ;;  %v5382_v29 = vpop.f32.mrb[200].mxu0 }
 0x6ae   : > { %v5383_v32 = vadd.f32 %v5382_v29, %v10626_v51  ;;  %v5384_v33 = vpop.f32.mrb[201].mxu0 }
 0x6af   : > { %v5385_v34 = vadd.f32 %v5384_v33, %v10630_v52  ;;  %v5386_v6 = vpop.f32.mrb[202].mxu0  ;;  %6121 = vmatprep.mubr.bf16.mxu1 %v5684_v28 }
 0x6b0   : > { %v5387_v38 = vadd.f32 %v5386_v6, %v10626_v51  ;;  %v5388_v39 = vpop.f32.mrb[203].mxu0  ;;  %6122 = vmatmul.mubr.bf16.gmra.mrb[196].mxu1 %v5683_v26  ;;  %v5593_v41 = vmax.f32 %v5383_v32, 0.0 }
 0x6b1   : > { %v5389_v40 = vadd.f32 %v5388_v39, %v10630_v52  ;;  %v5594_v45 = vmax.f32 %v5385_v34, 0.0 }
 0x6b2   : > { %v5595_v43 = vmax.f32 %v5387_v38, 0.0 }
 0x6b3   : > { %v5596_v46 = vmax.f32 %v5389_v40, 0.0  ;;  %v10813_v40 = vld [vmem:[%s11370_s5 + $0x28] sm:$0xff]  }
 0x6b4   : > { %v5685_v47 = vpack.c.bf16 %v5595_v43, %v5593_v41  ;;  %8431 = vmatpush1.bf16.msra.mxu1 %v10813_v40 }
 0x6b5   : > { %v5686_v48 = vpack.c.bf16 %v5596_v46, %v5594_v45  ;;  %v5392_v49 = vpop.f32.mrb[204].mxu0  ;;  %8416 = vmatprep.subr.bf16.mxu1 %v8903_v2 }
 0x6b6   : > { %v5393_v19 = vadd.f32 %v5392_v49, %v10626_v51  ;;  %v5394_v50 = vpop.f32.mrb[205].mxu0 }
 0x6b7   : > { %v5395_v20 = vadd.f32 %v5394_v50, %v10630_v52  ;;  %v5396_v53 = vpop.f32.mrb[206].mxu0  ;;  %6131 = vmatprep.mubr.bf16.mxu1 %v5686_v48 }
 0x6b8   : > { %v5397_v54 = vadd.f32 %v5396_v53, %v10626_v51  ;;  %v5398_v30 = vpop.f32.mrb[207].mxu0  ;;  %6132 = vmatmul.mubr.bf16.gmra.mrb[200].mxu1 %v5685_v47  ;;  %v5597_v31 = vmax.f32 %v5393_v19, 0.0 }
 0x6b9   : > { %v5399_v55 = vadd.f32 %v5398_v30, %v10630_v52  ;;  %v5598_v59 = vmax.f32 %v5395_v20, 0.0 }
 0x6ba   : > { %v5599_v58 = vmax.f32 %v5397_v54, 0.0 }
 0x6bb   : > { %v5600_v60 = vmax.f32 %v5399_v55, 0.0 }
 0x6bc   : > { %v5687_v61 = vpack.c.bf16 %v5599_v58, %v5597_v31 }
 0x6bd   : > { %v5688_v62 = vpack.c.bf16 %v5600_v60, %v5598_v59  ;;  %v5402_v36 = vpop.f32.mrb[208].mxu0 }
 0x6be   : > { %v5403_v63 = vadd.f32 %v5402_v36, %v10626_v51  ;;  %v5404_v0 = vpop.f32.mrb[209].mxu0 }
 0x6bf   : > { %v5405_v37 = vadd.f32 %v5404_v0, %v10630_v52  ;;  %v5406_v4 = vpop.f32.mrb[210].mxu0  ;;  %6141 = vmatprep.mubr.bf16.mxu1 %v5688_v62 }
 0x6c0   : > { %v5407_v5 = vadd.f32 %v5406_v4, %v10626_v51  ;;  %v5408_v44 = vpop.f32.mrb[211].mxu0  ;;  %6142 = vmatmul.mubr.bf16.gmra.mrb[204].mxu1 %v5687_v61  ;;  %v5601_v9 = vmax.f32 %v5403_v63, 0.0 }
 0x6c1   : > { %v5409_v8 = vadd.f32 %v5408_v44, %v10630_v52  ;;  %v5602_v11 = vmax.f32 %v5405_v37, 0.0 }
 0x6c2   : > { %v5603_v10 = vmax.f32 %v5407_v5, 0.0 }
 0x6c3   : > { %v5604_v12 = vmax.f32 %v5409_v8, 0.0 }
 0x6c4   : > { %v5689_v13 = vpack.c.bf16 %v5603_v10, %v5601_v9  ;;  %v10828_v9 = vld [vmem:[%s11370_s5 + $0x30] sm:$0xff]  }
 0x6c5   : > { %v5690_v14 = vpack.c.bf16 %v5604_v12, %v5602_v11  ;;  %v5412_v15 = vpop.f32.mrb[212].mxu0  ;;  %8432 = vmatpush1.bf16.msra.mxu1 %v10828_v9 }
 0x6c6   : > { %v5413_v16 = vadd.f32 %v5412_v15, %v10626_v51  ;;  %v5414_v17 = vpop.f32.mrb[213].mxu0  ;;  %8417 = vmatprep.subr.bf16.mxu1 %v8903_v2 }
 0x6c7   : > { %v5415_v56 = vadd.f32 %v5414_v17, %v10630_v52  ;;  %v5416_v18 = vpop.f32.mrb[214].mxu0  ;;  %6151 = vmatprep.mubr.bf16.mxu1 %v5690_v14 }
 0x6c8   : > { %v5417_v57 = vadd.f32 %v5416_v18, %v10626_v51  ;;  %v5418_v21 = vpop.f32.mrb[215].mxu0  ;;  %6152 = vmatmul.mubr.bf16.gmra.mrb[208].mxu1 %v5689_v13  ;;  %v5605_v23 = vmax.f32 %v5413_v16, 0.0 }
 0x6c9   : > { %v5419_v22 = vadd.f32 %v5418_v21, %v10630_v52  ;;  %v5606_v26 = vmax.f32 %v5415_v56, 0.0 }
 0x6ca   : > { %v5607_v24 = vmax.f32 %v5417_v57, 0.0 }
 0x6cb   : > { %v5608_v28 = vmax.f32 %v5419_v22, 0.0 }
 0x6cc   : > { %v5691_v29 = vpack.c.bf16 %v5607_v24, %v5605_v23 }
 0x6cd   : > { %v5692_v32 = vpack.c.bf16 %v5608_v28, %v5606_v26  ;;  %v5422_v33 = vpop.f32.mrb[216].mxu0 }
 0x6ce   : > { %v5423_v34 = vadd.f32 %v5422_v33, %v10626_v51  ;;  %v5424_v6 = vpop.f32.mrb[217].mxu0 }
 0x6cf   : > { %v5425_v38 = vadd.f32 %v5424_v6, %v10630_v52  ;;  %v5426_v39 = vpop.f32.mrb[218].mxu0  ;;  %6161 = vmatprep.mubr.bf16.mxu1 %v5692_v32 }
 0x6d0   : > { %v5427_v41 = vadd.f32 %v5426_v39, %v10626_v51  ;;  %v5428_v43 = vpop.f32.mrb[219].mxu0  ;;  %6162 = vmatmul.mubr.bf16.gmra.mrb[212].mxu1 %v5691_v29  ;;  %v5609_v46 = vmax.f32 %v5423_v34, 0.0 }
 0x6d1   : > { %v5429_v45 = vadd.f32 %v5428_v43, %v10630_v52  ;;  %v5610_v48 = vmax.f32 %v5425_v38, 0.0 }
 0x6d2   : > { %v5611_v47 = vmax.f32 %v5427_v41, 0.0 }
 0x6d3   : > { %v5612_v49 = vmax.f32 %v5429_v45, 0.0 }
 0x6d4   : > { %v5693_v19 = vpack.c.bf16 %v5611_v47, %v5609_v46  ;;  %v10843_v47 = vld [vmem:[%s11370_s5 + $0x38] sm:$0xff]  }
 0x6d5   : > { %v5694_v50 = vpack.c.bf16 %v5612_v49, %v5610_v48  ;;  %v5432_v20 = vpop.f32.mrb[220].mxu0  ;;  %8433 = vmatpush1.bf16.msra.mxu1 %v10843_v47 }
 0x6d6   : > { %v5433_v53 = vadd.f32 %v5432_v20, %v10626_v51  ;;  %v5434_v54 = vpop.f32.mrb[221].mxu0  ;;  %8418 = vmatprep.subr.bf16.mxu1 %v8903_v2 }
 0x6d7   : > { %v5435_v30 = vadd.f32 %v5434_v54, %v10630_v52  ;;  %v5436_v55 = vpop.f32.mrb[222].mxu0  ;;  %6171 = vmatprep.mubr.bf16.mxu1 %v5694_v50 }
 0x6d8   : > { %v5437_v31 = vadd.f32 %v5436_v55, %v10626_v51  ;;  %v5438_v58 = vpop.f32.mrb[223].mxu0  ;;  %6172 = vmatmul.mubr.bf16.gmra.mrb[216].mxu1 %v5693_v19  ;;  %v5613_v60 = vmax.f32 %v5433_v53, 0.0 }
 0x6d9   : > { %v5439_v59 = vadd.f32 %v5438_v58, %v10630_v52  ;;  %v5614_v62 = vmax.f32 %v5435_v30, 0.0  ;;  %v8293_v58 = vld [vmem:[%s11369_s4 + $0xc] sm:$0x3] }
 0x6da   : > { %v5615_v61 = vmax.f32 %v5437_v31, 0.0 }
 0x6db   : > { %v5616_v36 = vmax.f32 %v5439_v59, 0.0 }
 0x6dc   : > { %v5695_v63 = vpack.c.bf16 %v5615_v61, %v5613_v60 }
 0x6dd   : > { %v5696_v0 = vpack.c.bf16 %v5616_v36, %v5614_v62  ;;  %v5442_v37 = vpop.f32.mrb[224].mxu0 }
 0x6de   : > { %v5443_v4 = vadd.f32 %v5442_v37, %v10626_v51  ;;  %v5444_v5 = vpop.f32.mrb[225].mxu0 }
 0x6df   : > { %v5445_v44 = vadd.f32 %v5444_v5, %v10630_v52  ;;  %v5446_v8 = vpop.f32.mrb[226].mxu0  ;;  %6181 = vmatprep.mubr.bf16.mxu1 %v5696_v0  ;;  %v10856_v0 = vrot.slane %v8293_v58, %v9214_v25 }
 0x6e0   : > { %v5447_v10 = vadd.f32 %v5446_v8, %v10626_v51  ;;  %v5448_v11 = vpop.f32.mrb[227].mxu0  ;;  %6182 = vmatmul.mubr.bf16.gmra.mrb[220].mxu1 %v5695_v63  ;;  %v5617_v13 = vmax.f32 %v5443_v4, 0.0  ;;  %v10860_v4 = vrot.slane %v8293_v58, %v9219_v27 }
 0x6e1   : > { %v5449_v12 = vadd.f32 %v5448_v11, %v10630_v52  ;;  %v5618_v15 = vmax.f32 %v5445_v44, 0.0 }
 0x6e2   : > { %v5619_v14 = vmax.f32 %v5447_v10, 0.0 }
 0x6e3   : > { %v5620_v16 = vmax.f32 %v5449_v12, 0.0 }
 0x6e4   : > { %v5697_v17 = vpack.c.bf16 %v5619_v14, %v5617_v13 }
 0x6e5   : > { %v5698_v56 = vpack.c.bf16 %v5620_v16, %v5618_v15  ;;  %v5452_v18 = vpop.f32.mrb[228].mxu0 }
 0x6e6   : > { %v5453_v57 = vadd.f32 %v5452_v18, %v10626_v51  ;;  %v5454_v21 = vpop.f32.mrb[229].mxu0 }
 0x6e7   : > { %v5455_v22 = vadd.f32 %v5454_v21, %v10630_v52  ;;  %v5456_v23 = vpop.f32.mrb[230].mxu0  ;;  %6191 = vmatprep.mubr.bf16.mxu1 %v5698_v56 }
 0x6e8   : > { %v5457_v24 = vadd.f32 %v5456_v23, %v10626_v51  ;;  %v5458_v26 = vpop.f32.mrb[231].mxu0  ;;  %6192 = vmatmul.mubr.bf16.gmra.mrb[224].mxu1 %v5697_v17  ;;  %v5621_v29 = vmax.f32 %v5453_v57, 0.0 }
 0x6e9   : > { %v5459_v28 = vadd.f32 %v5458_v26, %v10630_v52  ;;  %v5622_v33 = vmax.f32 %v5455_v22, 0.0 }
 0x6ea   : > { %v5623_v32 = vmax.f32 %v5457_v24, 0.0 }
 0x6eb   : > { %v5624_v34 = vmax.f32 %v5459_v28, 0.0  ;;  %v10871_v28 = vld [vmem:[%s11370_s5 + $0x40] sm:$0xff]  }
 0x6ec   : > { %v5699_v6 = vpack.c.bf16 %v5623_v32, %v5621_v29  ;;  %8434 = vmatpush1.bf16.msra.mxu1 %v10871_v28 }
 0x6ed   : > { %v5700_v38 = vpack.c.bf16 %v5624_v34, %v5622_v33  ;;  %v5462_v39 = vpop.f32.mrb[232].mxu0  ;;  %8419 = vmatprep.subr.bf16.mxu1 %v8903_v2 }
 0x6ee   : > { %v5463_v41 = vadd.f32 %v5462_v39, %v10626_v51  ;;  %v5464_v43 = vpop.f32.mrb[233].mxu0 }
 0x6ef   : > { %v5465_v45 = vadd.f32 %v5464_v43, %v10630_v52  ;;  %v5466_v46 = vpop.f32.mrb[234].mxu0  ;;  %6201 = vmatprep.mubr.bf16.mxu1 %v5700_v38 }
 0x6f0   : > { %v5467_v48 = vadd.f32 %v5466_v46, %v10626_v51  ;;  %v5468_v49 = vpop.f32.mrb[235].mxu0  ;;  %6202 = vmatmul.mubr.bf16.gmra.mrb[228].mxu1 %v5699_v6  ;;  %v5625_v50 = vmax.f32 %v5463_v41, 0.0 }
 0x6f1   : > { %v5469_v19 = vadd.f32 %v5468_v49, %v10630_v52  ;;  %v5626_v53 = vmax.f32 %v5465_v45, 0.0 }
 0x6f2   : > { %v5627_v20 = vmax.f32 %v5467_v48, 0.0 }
 0x6f3   : > { %v5628_v54 = vmax.f32 %v5469_v19, 0.0 }
 0x6f4   : > { %v5701_v30 = vpack.c.bf16 %v5627_v20, %v5625_v50 }
 0x6f5   : > { %v5702_v55 = vpack.c.bf16 %v5628_v54, %v5626_v53  ;;  %v5472_v31 = vpop.f32.mrb[236].mxu0 }
 0x6f6   : > { %v5473_v59 = vadd.f32 %v5472_v31, %v10626_v51  ;;  %v5474_v60 = vpop.f32.mrb[237].mxu0 }
 0x6f7   : > { %v5475_v61 = vadd.f32 %v5474_v60, %v10630_v52  ;;  %v5476_v62 = vpop.f32.mrb[238].mxu0  ;;  %6211 = vmatprep.mubr.bf16.mxu1 %v5702_v55 }
 0x6f8   : > { %v5477_v36 = vadd.f32 %v5476_v62, %v10626_v51  ;;  %v5478_v63 = vpop.f32.mrb[239].mxu0  ;;  %6212 = vmatmul.mubr.bf16.gmra.mrb[232].mxu1 %v5701_v30  ;;  %v5629_v5 = vmax.f32 %v5473_v59, 0.0 }
 0x6f9   : > { %v5479_v37 = vadd.f32 %v5478_v63, %v10630_v52  ;;  %v5630_v8 = vmax.f32 %v5475_v61, 0.0 }
 0x6fa   : > { %v5631_v44 = vmax.f32 %v5477_v36, 0.0 }
 0x6fb   : > { %v5632_v10 = vmax.f32 %v5479_v37, 0.0  ;;  %v5953_v11 = vpop.f32.mrb[128].mxu1 }
 0x6fc   : > { %v5703_v12 = vpack.c.bf16 %v5631_v44, %v5629_v5  ;;  %v5954_v13 = vadd.f32 %v5953_v11, %v10856_v0  ;;  %v5955_v14 = vpop.f32.mrb[129].mxu1 }
 0x6fd   : > { %v5704_v15 = vpack.c.bf16 %v5632_v10, %v5630_v8  ;;  %v5956_v16 = vadd.f32 %v5955_v14, %v10860_v4  ;;  %v5482_v17 = vpop.f32.mrb[240].mxu0  ;;  %v5957_v56 = vpop.f32.mrb[130].mxu1 }
 0x6fe   : > { %v5483_v18 = vadd.f32 %v5482_v17, %v10626_v51  ;;  %v5958_v57 = vadd.f32 %v5957_v56, %v10856_v0  ;;  %v5484_v21 = vpop.f32.mrb[241].mxu0  ;;  %v5959_v22 = vpop.f32.mrb[131].mxu1  ;;  %v6272_v29 = vmax.f32 %v5954_v13, 0.0 }
 0x6ff   : > { %v5485_v23 = vadd.f32 %v5484_v21, %v10630_v52  ;;  %v5960_v24 = vadd.f32 %v5959_v22, %v10860_v4  ;;  %v5486_v26 = vpop.f32.mrb[242].mxu0  ;;  %6221 = vmatprep.mubr.bf16.mxu1 %v5704_v15  ;;  %v6273_v6 = vmax.f32 %v5956_v16, 0.0 }
 0x700   : > { %v6274_v32 = vmax.f32 %v5958_v57, 0.0  ;;  %v5487_v33 = vadd.f32 %v5486_v26, %v10626_v51  ;;  %v5488_v34 = vpop.f32.mrb[243].mxu0  ;;  %6222 = vmatmul.mubr.bf16.gmra.mrb[236].mxu1 %v5703_v12  ;;  %v5633_v41 = vmax.f32 %v5483_v18, 0.0 }
 0x701   : > { %v6275_v38 = vmax.f32 %v5960_v24, 0.0  ;;  %v5489_v39 = vadd.f32 %v5488_v34, %v10630_v52  ;;  %v5634_v46 = vmax.f32 %v5485_v23, 0.0 }
 0x702   : > { %v6400_v43 = vpack.c.bf16 %v6274_v32, %v6272_v29  ;;  %v5635_v45 = vmax.f32 %v5487_v33, 0.0 }
 0x703   : > { %v6401_v48 = vpack.c.bf16 %v6275_v38, %v6273_v6  ;;  %v5636_v49 = vmax.f32 %v5489_v39, 0.0  ;;  %v5963_v19 = vpop.f32.mrb[132].mxu1  ;;  %v10898_v39 = vld [vmem:[%s11370_s5 + $0x48] sm:$0xff]  }
 0x704   : > { %v5705_v50 = vpack.c.bf16 %v5635_v45, %v5633_v41  ;;  %v5964_v20 = vadd.f32 %v5963_v19, %v10856_v0  ;;  %v5965_v53 = vpop.f32.mrb[133].mxu1  ;;  %8435 = vmatpush1.bf16.msra.mxu1 %v10898_v39 }
 0x705   : > { %v5706_v54 = vpack.c.bf16 %v5636_v49, %v5634_v46  ;;  %v5966_v30 = vadd.f32 %v5965_v53, %v10860_v4  ;;  %v5492_v55 = vpop.f32.mrb[244].mxu0  ;;  %v5967_v31 = vpop.f32.mrb[134].mxu1  ;;  %6702 = vmatprep.mubr.bf16.mxu0 %v6401_v48  ;;  %8420 = vmatprep.subr.bf16.mxu1 %v8903_v2 }
 0x706   : > { %v5493_v58 = vadd.f32 %v5492_v55, %v10626_v51  ;;  %v5968_v59 = vadd.f32 %v5967_v31, %v10856_v0  ;;  %v5494_v60 = vpop.f32.mrb[245].mxu0  ;;  %v5969_v61 = vpop.f32.mrb[135].mxu1  ;;  %6703 = vmatmul.mubr.bf16.vlgmr.msra.gmra.mrb[0].mxu0 %v6400_v43  ;;  %v6276_v37 = vmax.f32 %v5964_v20, 0.0 }
 0x707   : > { %v5495_v62 = vadd.f32 %v5494_v60, %v10630_v52  ;;  %v5970_v36 = vadd.f32 %v5969_v61, %v10860_v4  ;;  %v5496_v63 = vpop.f32.mrb[246].mxu0  ;;  %6231 = vmatprep.mubr.bf16.mxu1 %v5706_v54  ;;  %7351 = vmatpush1.bf16.msra.mxu0 %v10738_v3  ;;  %v6277_v10 = vmax.f32 %v5966_v30, 0.0 }
 0x708   : > { %v6278_v5 = vmax.f32 %v5968_v59, 0.0  ;;  %v5497_v44 = vadd.f32 %v5496_v63, %v10626_v51  ;;  %v5498_v8 = vpop.f32.mrb[247].mxu0  ;;  %6232 = vmatmul.mubr.bf16.gmra.mrb[240].mxu1 %v5705_v50  ;;  %7352 = vmatprep.subr.bf16.mxu0 %v8903_v2  ;;  %v5637_v13 = vmax.f32 %v5493_v58, 0.0 }
 0x709   : > { %v6279_v11 = vmax.f32 %v5970_v36, 0.0  ;;  %v5499_v12 = vadd.f32 %v5498_v8, %v10630_v52  ;;  %v5638_v16 = vmax.f32 %v5495_v62, 0.0 }
 0x70a   : > { %v6402_v14 = vpack.c.bf16 %v6278_v5, %v6276_v37  ;;  %v5639_v15 = vmax.f32 %v5497_v44, 0.0 }
 0x70b   : > { %v6403_v17 = vpack.c.bf16 %v6279_v11, %v6277_v10  ;;  %v5640_v56 = vmax.f32 %v5499_v12, 0.0  ;;  %v5973_v18 = vpop.f32.mrb[136].mxu1  ;;  %7353 = vmatpush1.bf16.msra.mxu0 %v10753_v35 }
 0x70c   : > { %v5707_v3 = vpack.c.bf16 %v5639_v15, %v5637_v13  ;;  %v5974_v57 = vadd.f32 %v5973_v18, %v10856_v0  ;;  %v5975_v21 = vpop.f32.mrb[137].mxu1  ;;  %7354 = vmatprep.subr.bf16.mxu0 %v8903_v2 }
 0x70d   : > { %v5708_v22 = vpack.c.bf16 %v5640_v56, %v5638_v16  ;;  %v5976_v23 = vadd.f32 %v5975_v21, %v10860_v4  ;;  %v5502_v24 = vpop.f32.mrb[248].mxu0  ;;  %v5977_v26 = vpop.f32.mrb[138].mxu1  ;;  %6712 = vmatprep.mubr.bf16.mxu0 %v6403_v17 }
 0x70e   : > { %v5503_v29 = vadd.f32 %v5502_v24, %v10626_v51  ;;  %v5978_v32 = vadd.f32 %v5977_v26, %v10856_v0  ;;  %v5504_v33 = vpop.f32.mrb[249].mxu0  ;;  %v5979_v34 = vpop.f32.mrb[139].mxu1  ;;  %6713 = vmatmul.mubr.bf16.gmra.mrb[4].mxu0 %v6402_v14  ;;  %v6280_v41 = vmax.f32 %v5974_v57, 0.0 }
 0x70f   : > { %v5505_v35 = vadd.f32 %v5504_v33, %v10630_v52  ;;  %v5980_v6 = vadd.f32 %v5979_v34, %v10860_v4  ;;  %v5506_v38 = vpop.f32.mrb[250].mxu0  ;;  %6241 = vmatprep.mubr.bf16.mxu1 %v5708_v22  ;;  %7355 = vmatpush1.bf16.msra.mxu0 %v10768_v1  ;;  %v6281_v48 = vmax.f32 %v5976_v23, 0.0 }
 0x710   : > { %v6282_v43 = vmax.f32 %v5978_v32, 0.0  ;;  %v5507_v45 = vadd.f32 %v5506_v38, %v10626_v51  ;;  %v5508_v46 = vpop.f32.mrb[251].mxu0  ;;  %6242 = vmatmul.mubr.bf16.gmra.mrb[244].mxu1 %v5707_v3  ;;  %7356 = vmatprep.subr.bf16.mxu0 %v8903_v2  ;;  %v5641_v50 = vmax.f32 %v5503_v29, 0.0 }
 0x711   : > { %v6283_v49 = vmax.f32 %v5980_v6, 0.0  ;;  %v5509_v19 = vadd.f32 %v5508_v46, %v10630_v52  ;;  %v5642_v1 = vmax.f32 %v5505_v35, 0.0 }
 0x712   : > { %v6404_v20 = vpack.c.bf16 %v6282_v43, %v6280_v41  ;;  %v5643_v53 = vmax.f32 %v5507_v45, 0.0 }
 0x713   : > { %v6405_v54 = vpack.c.bf16 %v6283_v49, %v6281_v48  ;;  %v5644_v30 = vmax.f32 %v5509_v19, 0.0  ;;  %v5983_v55 = vpop.f32.mrb[140].mxu1  ;;  %7357 = vmatpush1.bf16.msra.mxu0 %v10783_v7 }
 0x714   : > { %v5709_v31 = vpack.c.bf16 %v5643_v53, %v5641_v50  ;;  %v5984_v58 = vadd.f32 %v5983_v55, %v10856_v0  ;;  %v5985_v59 = vpop.f32.mrb[141].mxu1  ;;  %7358 = vmatprep.subr.bf16.mxu0 %v8903_v2 }
 0x715   : > { %v5710_v60 = vpack.c.bf16 %v5644_v30, %v5642_v1  ;;  %v5986_v61 = vadd.f32 %v5985_v59, %v10860_v4  ;;  %v5512_v62 = vpop.f32.mrb[252].mxu0  ;;  %v5987_v36 = vpop.f32.mrb[142].mxu1  ;;  %6722 = vmatprep.mubr.bf16.mxu0 %v6405_v54 }
 0x716   : > { %v5513_v63 = vadd.f32 %v5512_v62, %v10626_v51  ;;  %v5988_v37 = vadd.f32 %v5987_v36, %v10856_v0  ;;  %v5514_v5 = vpop.f32.mrb[253].mxu0  ;;  %v5989_v44 = vpop.f32.mrb[143].mxu1  ;;  %6723 = vmatmul.mubr.bf16.gmra.mrb[8].mxu0 %v6404_v20  ;;  %v6284_v11 = vmax.f32 %v5984_v58, 0.0 }
 0x717   : > { %v5515_v7 = vadd.f32 %v5514_v5, %v10630_v52  ;;  %v5990_v8 = vadd.f32 %v5989_v44, %v10860_v4  ;;  %v5516_v10 = vpop.f32.mrb[254].mxu0  ;;  %6251 = vmatprep.mubr.bf16.mxu1 %v5710_v60  ;;  %7359 = vmatpush1.bf16.msra.mxu0 %v10798_v42  ;;  %v6285_v15 = vmax.f32 %v5986_v61, 0.0 }
 0x718   : > { %v6286_v12 = vmax.f32 %v5988_v37, 0.0  ;;  %v5517_v13 = vadd.f32 %v5516_v10, %v10626_v51  ;;  %v5518_v14 = vpop.f32.mrb[255].mxu0  ;;  %6252 = vmatmul.mubr.bf16.gmra.mrb[248].mxu1 %v5709_v31  ;;  %7360 = vmatprep.subr.bf16.mxu0 %v8903_v2  ;;  %v5645_v56 = vmax.f32 %v5513_v63, 0.0  ;;  %v8890_v37 = vld [vmem:[%s11370_s5 + $0x58] sm:$0xff]  }
 0x719   : > { %v6287_v16 = vmax.f32 %v5990_v8, 0.0  ;;  %v5519_v17 = vadd.f32 %v5518_v14, %v10630_v52  ;;  %v5646_v57 = vmax.f32 %v5515_v7, 0.0 }
 0x71a   : > { %v6406_v18 = vpack.c.bf16 %v6286_v12, %v6284_v11  ;;  %v5647_v3 = vmax.f32 %v5517_v13, 0.0 }
 0x71b   : > { %v6407_v21 = vpack.c.bf16 %v6287_v16, %v6285_v15  ;;  %v5648_v22 = vmax.f32 %v5519_v17, 0.0  ;;  %v5993_v23 = vpop.f32.mrb[144].mxu1  ;;  %7361 = vmatpush1.bf16.msra.mxu0 %v10813_v40  ;;  %v8889_v40 = vld [vmem:[%s11370_s5 + $0x50] sm:$0xff]  }
 0x71c   : > { %v5711_v42 = vpack.c.bf16 %v5647_v3, %v5645_v56  ;;  %v5994_v51 = vadd.f32 %v5993_v23, %v10856_v0  ;;  %v5995_v24 = vpop.f32.mrb[145].mxu1  ;;  %7362 = vmatprep.subr.bf16.mxu0 %v8903_v2  ;;  %8436 = vmatpush1.bf16.msra.mxu1 %v8889_v40 }
 0x71d   : > { %v5712_v26 = vpack.c.bf16 %v5648_v22, %v5646_v57  ;;  %v5996_v29 = vadd.f32 %v5995_v24, %v10860_v4  ;;  %v5997_v32 = vpop.f32.mrb[146].mxu1  ;;  %6732 = vmatprep.mubr.bf16.mxu0 %v6407_v21  ;;  %8421 = vmatprep.subr.bf16.mxu1 %v8903_v2 }
 0x71e   : > { %v5998_v52 = vadd.f32 %v5997_v32, %v10856_v0  ;;  %v5999_v33 = vpop.f32.mrb[147].mxu1  ;;  %6733 = vmatmul.mubr.bf16.gmra.mrb[12].mxu0 %v6406_v18  ;;  %v6288_v35 = vmax.f32 %v5994_v51, 0.0 }
 0x71f   : > { %v6000_v34 = vadd.f32 %v5999_v33, %v10860_v4  ;;  %6261 = vmatprep.mubr.bf16.mxu1 %v5712_v26  ;;  %7363 = vmatpush1.bf16.msra.mxu0 %v10828_v9  ;;  %v6289_v38 = vmax.f32 %v5996_v29, 0.0 }
 0x720   : > { %v6290_v6 = vmax.f32 %v5998_v52, 0.0  ;;  %6262 = vmatmul.mubr.bf16.gmra.mrb[252].mxu1 %v5711_v42  ;;  %7364 = vmatprep.subr.bf16.mxu0 %v8903_v2 }
 0x721   : > { %v6291_v41 = vmax.f32 %v6000_v34, 0.0  ;;  %8437 = vmatpush1.bf16.msra.mxu1 %v8890_v37  ;;  %v8891_v34 = vld [vmem:[%s11370_s5 + $0x60] sm:$0xff]  }
 0x722   : > { %v6408_v43 = vpack.c.bf16 %v6290_v6, %v6288_v35  ;;  %8422 = vmatprep.subr.bf16.mxu1 %v8903_v2 }
 0x723   : > { %v6409_v45 = vpack.c.bf16 %v6291_v41, %v6289_v38  ;;  %v6003_v46 = vpop.f32.mrb[148].mxu1  ;;  %7365 = vmatpush1.bf16.msra.mxu0 %v10843_v47 }
 0x724   : > { %v6004_v48 = vadd.f32 %v6003_v46, %v10856_v0  ;;  %v6005_v49 = vpop.f32.mrb[149].mxu1  ;;  %7366 = vmatprep.subr.bf16.mxu0 %v8903_v2 }
 0x725   : > { %v6006_v9 = vadd.f32 %v6005_v49, %v10860_v4  ;;  %v6007_v19 = vpop.f32.mrb[150].mxu1  ;;  %6742 = vmatprep.mubr.bf16.mxu0 %v6409_v45  ;;  %8438 = vmatpush1.bf16.msra.mxu1 %v8891_v34 }
 0x726   : > { %v6008_v50 = vadd.f32 %v6007_v19, %v10856_v0  ;;  %v6009_v20 = vpop.f32.mrb[151].mxu1  ;;  %6743 = vmatmul.mubr.bf16.gmra.mrb[16].mxu0 %v6408_v43  ;;  %v6292_v1 = vmax.f32 %v6004_v48, 0.0  ;;  %8423 = vmatprep.subr.bf16.mxu1 %v8903_v2 }
 0x727   : > { %v6010_v53 = vadd.f32 %v6009_v20, %v10860_v4  ;;  %7367 = vmatpush1.bf16.msra.mxu0 %v10871_v28  ;;  %v6293_v47 = vmax.f32 %v6006_v9, 0.0 }
 0x728   : > { %v6294_v54 = vmax.f32 %v6008_v50, 0.0  ;;  %7368 = vmatprep.subr.bf16.mxu0 %v8903_v2 }
 0x729   : > { %v6295_v30 = vmax.f32 %v6010_v53, 0.0 }
 0x72a   : > { %v6410_v55 = vpack.c.bf16 %v6294_v54, %v6292_v1 }
 0x72b   : > { %v6411_v31 = vpack.c.bf16 %v6295_v30, %v6293_v47  ;;  %v6013_v58 = vpop.f32.mrb[152].mxu1  ;;  %7369 = vmatpush1.bf16.msra.mxu0 %v10898_v39 }
 0x72c   : > { %v6014_v59 = vadd.f32 %v6013_v58, %v10856_v0  ;;  %v6015_v60 = vpop.f32.mrb[153].mxu1  ;;  %7370 = vmatprep.subr.bf16.mxu0 %v8903_v2 }
 0x72d   : > { %v6016_v61 = vadd.f32 %v6015_v60, %v10860_v4  ;;  %v6017_v62 = vpop.f32.mrb[154].mxu1  ;;  %6752 = vmatprep.mubr.bf16.mxu0 %v6411_v31 }
 0x72e   : > { %v6018_v28 = vadd.f32 %v6017_v62, %v10856_v0  ;;  %v6019_v36 = vpop.f32.mrb[155].mxu1  ;;  %6753 = vmatmul.mubr.bf16.gmra.mrb[20].mxu0 %v6410_v55  ;;  %v6296_v39 = vmax.f32 %v6014_v59, 0.0 }
 0x72f   : > { %v6020_v63 = vadd.f32 %v6019_v36, %v10860_v4  ;;  %7371 = vmatpush1.bf16.msra.mxu0 %v8889_v40  ;;  %v6297_v44 = vmax.f32 %v6016_v61, 0.0 }
 0x730   : > { %v6298_v5 = vmax.f32 %v6018_v28, 0.0  ;;  %7372 = vmatprep.subr.bf16.mxu0 %v8903_v2 }
 0x731   : > { %v6299_v7 = vmax.f32 %v6020_v63, 0.0  ;;  %v8892_v63 = vld [vmem:[%s11370_s5 + $0x68] sm:$0xff]  }
 0x732   : > { %v6412_v8 = vpack.c.bf16 %v6298_v5, %v6296_v39  ;;  %8439 = vmatpush1.bf16.msra.mxu1 %v8892_v63 }
 0x733   : > { %v6413_v10 = vpack.c.bf16 %v6299_v7, %v6297_v44  ;;  %v6023_v11 = vpop.f32.mrb[156].mxu1  ;;  %7373 = vmatpush1.bf16.msra.mxu0 %v8890_v37  ;;  %8424 = vmatprep.subr.bf16.mxu1 %v8903_v2 }
 0x734   : > { %v6024_v12 = vadd.f32 %v6023_v11, %v10856_v0  ;;  %v6025_v13 = vpop.f32.mrb[157].mxu1  ;;  %7374 = vmatprep.subr.bf16.mxu0 %v8903_v2 }
 0x735   : > { %v6026_v14 = vadd.f32 %v6025_v13, %v10860_v4  ;;  %v6027_v15 = vpop.f32.mrb[158].mxu1  ;;  %6762 = vmatprep.mubr.bf16.mxu0 %v6413_v10 }
 0x736   : > { %v6028_v16 = vadd.f32 %v6027_v15, %v10856_v0  ;;  %v6029_v17 = vpop.f32.mrb[159].mxu1  ;;  %6763 = vmatmul.mubr.bf16.gmra.mrb[24].mxu0 %v6412_v8  ;;  %v6300_v18 = vmax.f32 %v6024_v12, 0.0 }
 0x737   : > { %v6030_v56 = vadd.f32 %v6029_v17, %v10860_v4  ;;  %v6301_v57 = vmax.f32 %v6026_v14, 0.0  ;;  %7375 = vmatpush1.bf16.msra.mxu0 %v8891_v34 }
 0x738   : > { %v6302_v3 = vmax.f32 %v6028_v16, 0.0  ;;  %7376 = vmatprep.subr.bf16.mxu0 %v8903_v2 }
 0x739   : > { %v6303_v21 = vmax.f32 %v6030_v56, 0.0 }
 0x73a   : > { %v6414_v22 = vpack.c.bf16 %v6302_v3, %v6300_v18 }
 0x73b   : > { %v6415_v23 = vpack.c.bf16 %v6303_v21, %v6301_v57  ;;  %v6033_v42 = vpop.f32.mrb[160].mxu1  ;;  %7377 = vmatpush1.bf16.msra.mxu0 %v8892_v63 }
 0x73c   : > { %v6034_v51 = vadd.f32 %v6033_v42, %v10856_v0  ;;  %v6035_v24 = vpop.f32.mrb[161].mxu1  ;;  %7378 = vmatprep.subr.bf16.mxu0 %v8903_v2 }
 0x73d   : > { %v6036_v26 = vadd.f32 %v6035_v24, %v10860_v4  ;;  %v6037_v29 = vpop.f32.mrb[162].mxu1  ;;  %6772 = vmatprep.mubr.bf16.mxu0 %v6415_v23 }
 0x73e   : > { %v6038_v32 = vadd.f32 %v6037_v29, %v10856_v0  ;;  %v6039_v52 = vpop.f32.mrb[163].mxu1  ;;  %6773 = vmatmul.mubr.bf16.gmra.mrb[28].mxu0 %v6414_v22  ;;  %v6304_v40 = vmax.f32 %v6034_v51, 0.0 }
 0x73f   : > { %v6040_v33 = vadd.f32 %v6039_v52, %v10860_v4  ;;  %v6305_v6 = vmax.f32 %v6036_v26, 0.0 }
 0x740   : > { %v6306_v35 = vmax.f32 %v6038_v32, 0.0 }
 0x741   : > { %v6307_v38 = vmax.f32 %v6040_v33, 0.0 }
 0x742   : > { %v6416_v41 = vpack.c.bf16 %v6306_v35, %v6304_v40 }
 0x743   : > { %v6417_v43 = vpack.c.bf16 %v6307_v38, %v6305_v6  ;;  %v6043_v45 = vpop.f32.mrb[164].mxu1  ;;  %v8893_v6 = vld [vmem:[%s11370_s5 + $0x70] sm:$0xff]  }
 0x744   : > { %v6044_v46 = vadd.f32 %v6043_v45, %v10856_v0  ;;  %v6045_v48 = vpop.f32.mrb[165].mxu1  ;;  %8440 = vmatpush1.bf16.msra.mxu1 %v8893_v6  ;;  %7379 = vmatpush1.bf16.msra.mxu0 %v8893_v6 }
 0x745   : > { %v6046_v49 = vadd.f32 %v6045_v48, %v10860_v4  ;;  %v6047_v9 = vpop.f32.mrb[166].mxu1  ;;  %6782 = vmatprep.mubr.bf16.mxu0 %v6417_v43  ;;  %8425 = vmatprep.subr.bf16.mxu1 %v8903_v2 }
 0x746   : > { %v6048_v19 = vadd.f32 %v6047_v9, %v10856_v0  ;;  %v6049_v50 = vpop.f32.mrb[167].mxu1  ;;  %6783 = vmatmul.mubr.bf16.gmra.mrb[32].mxu0 %v6416_v41  ;;  %v6308_v53 = vmax.f32 %v6044_v46, 0.0  ;;  %7380 = vmatprep.subr.bf16.mxu0 %v8903_v2 }
 0x747   : > { %v6050_v20 = vadd.f32 %v6049_v50, %v10860_v4  ;;  %v6309_v54 = vmax.f32 %v6046_v49, 0.0 }
 0x748   : > { %v6310_v1 = vmax.f32 %v6048_v19, 0.0 }
 0x749   : > { %v6311_v47 = vmax.f32 %v6050_v20, 0.0 }
 0x74a   : > { %v6418_v30 = vpack.c.bf16 %v6310_v1, %v6308_v53 }
 0x74b   : > { %v6419_v55 = vpack.c.bf16 %v6311_v47, %v6309_v54  ;;  %v6053_v31 = vpop.f32.mrb[168].mxu1 }
 0x74c   : > { %v6054_v58 = vadd.f32 %v6053_v31, %v10856_v0  ;;  %v6055_v59 = vpop.f32.mrb[169].mxu1 }
 0x74d   : > { %v6056_v60 = vadd.f32 %v6055_v59, %v10860_v4  ;;  %v6057_v61 = vpop.f32.mrb[170].mxu1  ;;  %6792 = vmatprep.mubr.bf16.mxu0 %v6419_v55 }
 0x74e   : > { %v6058_v62 = vadd.f32 %v6057_v61, %v10856_v0  ;;  %v6059_v28 = vpop.f32.mrb[171].mxu1  ;;  %6793 = vmatmul.mubr.bf16.gmra.mrb[36].mxu0 %v6418_v30  ;;  %v6312_v37 = vmax.f32 %v6054_v58, 0.0 }
 0x74f   : > { %v6060_v36 = vadd.f32 %v6059_v28, %v10860_v4  ;;  %v6313_v5 = vmax.f32 %v6056_v60, 0.0 }
 0x750   : > { %v6314_v39 = vmax.f32 %v6058_v62, 0.0 }
 0x751   : > { %v6315_v44 = vmax.f32 %v6060_v36, 0.0 }
 0x752   : > { %v6420_v7 = vpack.c.bf16 %v6314_v39, %v6312_v37  ;;  %v8894_v39 = vld [vmem:[%s11370_s5 + $0x78] sm:$0xff]  }
 0x753   : > { %v6421_v8 = vpack.c.bf16 %v6315_v44, %v6313_v5  ;;  %v6063_v10 = vpop.f32.mrb[172].mxu1  ;;  %8441 = vmatpush1.bf16.msra.mxu1 %v8894_v39  ;;  %7381 = vmatpush1.bf16.msra.mxu0 %v8894_v39 }
 0x754   : > { %v6064_v11 = vadd.f32 %v6063_v10, %v10856_v0  ;;  %v6065_v12 = vpop.f32.mrb[173].mxu1 }
 0x755   : > { %v6066_v13 = vadd.f32 %v6065_v12, %v10860_v4  ;;  %v6067_v14 = vpop.f32.mrb[174].mxu1  ;;  %6802 = vmatprep.mubr.bf16.mxu0 %v6421_v8 }
 0x756   : > { %v6068_v15 = vadd.f32 %v6067_v14, %v10856_v0  ;;  %v6069_v16 = vpop.f32.mrb[175].mxu1  ;;  %6803 = vmatmul.mubr.bf16.gmra.mrb[40].mxu0 %v6420_v7  ;;  %v6316_v56 = vmax.f32 %v6064_v11, 0.0 }
 0x757   : > { %v6070_v17 = vadd.f32 %v6069_v16, %v10860_v4  ;;  %v6317_v3 = vmax.f32 %v6066_v13, 0.0 }
 0x758   : > { %v6318_v18 = vmax.f32 %v6068_v15, 0.0 }
 0x759   : > { %v6319_v57 = vmax.f32 %v6070_v17, 0.0 }
 0x75a   : > { %v6422_v21 = vpack.c.bf16 %v6318_v18, %v6316_v56 }
 0x75b   : > { %v6423_v22 = vpack.c.bf16 %v6319_v57, %v6317_v3  ;;  %v6073_v23 = vpop.f32.mrb[176].mxu1 }
 0x75c   : > { %v6074_v42 = vadd.f32 %v6073_v23, %v10856_v0  ;;  %v6075_v51 = vpop.f32.mrb[177].mxu1 }
 0x75d   : > { %v6076_v24 = vadd.f32 %v6075_v51, %v10860_v4  ;;  %v6077_v26 = vpop.f32.mrb[178].mxu1  ;;  %6812 = vmatprep.mubr.bf16.mxu0 %v6423_v22 }
 0x75e   : > { %v6078_v29 = vadd.f32 %v6077_v26, %v10856_v0  ;;  %v6079_v32 = vpop.f32.mrb[179].mxu1  ;;  %6813 = vmatmul.mubr.bf16.gmra.mrb[44].mxu0 %v6422_v21  ;;  %v6320_v33 = vmax.f32 %v6074_v42, 0.0 }
 0x75f   : > { %v6080_v52 = vadd.f32 %v6079_v32, %v10860_v4  ;;  %v6321_v40 = vmax.f32 %v6076_v24, 0.0 }
 0x760   : > { %v6322_v34 = vmax.f32 %v6078_v29, 0.0 }
 0x761   : > { %v6323_v35 = vmax.f32 %v6080_v52, 0.0 }
 0x762   : > { %v6424_v38 = vpack.c.bf16 %v6322_v34, %v6320_v33 }
 0x763   : > { %v6425_v41 = vpack.c.bf16 %v6323_v35, %v6321_v40  ;;  %v6083_v43 = vpop.f32.mrb[180].mxu1 }
 0x764   : > { %v6084_v45 = vadd.f32 %v6083_v43, %v10856_v0  ;;  %v6085_v46 = vpop.f32.mrb[181].mxu1 }
 0x765   : > { %v6086_v48 = vadd.f32 %v6085_v46, %v10860_v4  ;;  %v6087_v49 = vpop.f32.mrb[182].mxu1  ;;  %6822 = vmatprep.mubr.bf16.mxu0 %v6425_v41 }
 0x766   : > { %v6088_v9 = vadd.f32 %v6087_v49, %v10856_v0  ;;  %v6089_v19 = vpop.f32.mrb[183].mxu1  ;;  %6823 = vmatmul.mubr.bf16.gmra.mrb[48].mxu0 %v6424_v38  ;;  %v6324_v20 = vmax.f32 %v6084_v45, 0.0 }
 0x767   : > { %v6090_v50 = vadd.f32 %v6089_v19, %v10860_v4  ;;  %v6325_v1 = vmax.f32 %v6086_v48, 0.0 }
 0x768   : > { %v6326_v53 = vmax.f32 %v6088_v9, 0.0 }
 0x769   : > { %v6327_v54 = vmax.f32 %v6090_v50, 0.0 }
 0x76a   : > { %v6426_v47 = vpack.c.bf16 %v6326_v53, %v6324_v20 }
 0x76b   : > { %v6427_v30 = vpack.c.bf16 %v6327_v54, %v6325_v1  ;;  %v6093_v55 = vpop.f32.mrb[184].mxu1 }
 0x76c   : > { %v6094_v31 = vadd.f32 %v6093_v55, %v10856_v0  ;;  %v6095_v2 = vpop.f32.mrb[185].mxu1 }
 0x76d   : > { %v6096_v58 = vadd.f32 %v6095_v2, %v10860_v4  ;;  %v6097_v59 = vpop.f32.mrb[186].mxu1  ;;  %6832 = vmatprep.mubr.bf16.mxu0 %v6427_v30 }
 0x76e   : > { %v6098_v60 = vadd.f32 %v6097_v59, %v10856_v0  ;;  %v6099_v61 = vpop.f32.mrb[187].mxu1  ;;  %6833 = vmatmul.mubr.bf16.gmra.mrb[52].mxu0 %v6426_v47  ;;  %v6328_v28 = vmax.f32 %v6094_v31, 0.0 }
 0x76f   : > { %v6100_v62 = vadd.f32 %v6099_v61, %v10860_v4  ;;  %v6329_v63 = vmax.f32 %v6096_v58, 0.0 }
 0x770   : > { %v6330_v36 = vmax.f32 %v6098_v60, 0.0 }
 0x771   : > { %v6331_v37 = vmax.f32 %v6100_v62, 0.0 }
 0x772   : > { %v6428_v5 = vpack.c.bf16 %v6330_v36, %v6328_v28 }
 0x773   : > { %v6429_v44 = vpack.c.bf16 %v6331_v37, %v6329_v63  ;;  %v6103_v7 = vpop.f32.mrb[188].mxu1 }
 0x774   : > { %v6104_v8 = vadd.f32 %v6103_v7, %v10856_v0  ;;  %v6105_v10 = vpop.f32.mrb[189].mxu1 }
 0x775   : > { %v6106_v11 = vadd.f32 %v6105_v10, %v10860_v4  ;;  %v6107_v12 = vpop.f32.mrb[190].mxu1  ;;  %6842 = vmatprep.mubr.bf16.mxu0 %v6429_v44 }
 0x776   : > { %v6108_v13 = vadd.f32 %v6107_v12, %v10856_v0  ;;  %v6109_v14 = vpop.f32.mrb[191].mxu1  ;;  %6843 = vmatmul.mubr.bf16.gmra.mrb[56].mxu0 %v6428_v5  ;;  %v6332_v16 = vmax.f32 %v6104_v8, 0.0 }
 0x777   : > { %v6110_v15 = vadd.f32 %v6109_v14, %v10860_v4  ;;  %v6333_v56 = vmax.f32 %v6106_v11, 0.0 }
 0x778   : > { %v6334_v17 = vmax.f32 %v6108_v13, 0.0 }
 0x779   : > { %v6335_v18 = vmax.f32 %v6110_v15, 0.0 }
 0x77a   : > { %v6430_v3 = vpack.c.bf16 %v6334_v17, %v6332_v16 }
 0x77b   : > { %v6431_v57 = vpack.c.bf16 %v6335_v18, %v6333_v56  ;;  %v6113_v21 = vpop.f32.mrb[192].mxu1 }
 0x77c   : > { %v6114_v22 = vadd.f32 %v6113_v21, %v10856_v0  ;;  %v6115_v23 = vpop.f32.mrb[193].mxu1 }
 0x77d   : > { %v6116_v42 = vadd.f32 %v6115_v23, %v10860_v4  ;;  %v6117_v51 = vpop.f32.mrb[194].mxu1  ;;  %6852 = vmatprep.mubr.bf16.mxu0 %v6431_v57 }
 0x77e   : > { %v6118_v24 = vadd.f32 %v6117_v51, %v10856_v0  ;;  %v6119_v26 = vpop.f32.mrb[195].mxu1  ;;  %6853 = vmatmul.mubr.bf16.gmra.mrb[60].mxu0 %v6430_v3  ;;  %v6336_v32 = vmax.f32 %v6114_v22, 0.0 }
 0x77f   : > { %v6120_v29 = vadd.f32 %v6119_v26, %v10860_v4  ;;  %v6337_v33 = vmax.f32 %v6116_v42, 0.0 }
 0x780   : > { %v6338_v52 = vmax.f32 %v6118_v24, 0.0 }
 0x781   : > { %v6339_v34 = vmax.f32 %v6120_v29, 0.0 }
 0x782   : > { %v6432_v40 = vpack.c.bf16 %v6338_v52, %v6336_v32 }
 0x783   : > { %v6433_v35 = vpack.c.bf16 %v6339_v34, %v6337_v33  ;;  %v6123_v6 = vpop.f32.mrb[196].mxu1 }
 0x784   : > { %v6124_v38 = vadd.f32 %v6123_v6, %v10856_v0  ;;  %v6125_v41 = vpop.f32.mrb[197].mxu1 }
 0x785   : > { %v6126_v43 = vadd.f32 %v6125_v41, %v10860_v4  ;;  %v6127_v45 = vpop.f32.mrb[198].mxu1  ;;  %6862 = vmatprep.mubr.bf16.mxu0 %v6433_v35 }
 0x786   : > { %v6128_v46 = vadd.f32 %v6127_v45, %v10856_v0  ;;  %v6129_v48 = vpop.f32.mrb[199].mxu1  ;;  %6863 = vmatmul.mubr.bf16.gmra.mrb[64].mxu0 %v6432_v40  ;;  %v6340_v9 = vmax.f32 %v6124_v38, 0.0 }
 0x787   : > { %v6130_v49 = vadd.f32 %v6129_v48, %v10860_v4  ;;  %v6341_v50 = vmax.f32 %v6126_v43, 0.0 }
 0x788   : > { %v6342_v19 = vmax.f32 %v6128_v46, 0.0 }
 0x789   : > { %v6343_v20 = vmax.f32 %v6130_v49, 0.0 }
 0x78a   : > { %v6434_v53 = vpack.c.bf16 %v6342_v19, %v6340_v9 }
 0x78b   : > { %v6435_v1 = vpack.c.bf16 %v6343_v20, %v6341_v50  ;;  %v6133_v54 = vpop.f32.mrb[200].mxu1 }
 0x78c   : > { %v6134_v47 = vadd.f32 %v6133_v54, %v10856_v0  ;;  %v6135_v30 = vpop.f32.mrb[201].mxu1 }
 0x78d   : > { %v6136_v55 = vadd.f32 %v6135_v30, %v10860_v4  ;;  %v6137_v31 = vpop.f32.mrb[202].mxu1  ;;  %6872 = vmatprep.mubr.bf16.mxu0 %v6435_v1 }
 0x78e   : > { %v6138_v2 = vadd.f32 %v6137_v31, %v10856_v0  ;;  %v6139_v58 = vpop.f32.mrb[203].mxu1  ;;  %6873 = vmatmul.mubr.bf16.gmra.mrb[68].mxu0 %v6434_v53  ;;  %v6344_v60 = vmax.f32 %v6134_v47, 0.0 }
 0x78f   : > { %v6140_v59 = vadd.f32 %v6139_v58, %v10860_v4  ;;  %v6345_v62 = vmax.f32 %v6136_v55, 0.0 }
 0x790   : > { %v6346_v61 = vmax.f32 %v6138_v2, 0.0 }
 0x791   : > { %v6347_v28 = vmax.f32 %v6140_v59, 0.0 }
 0x792   : > { %v6436_v36 = vpack.c.bf16 %v6346_v61, %v6344_v60 }
 0x793   : > { %v6437_v63 = vpack.c.bf16 %v6347_v28, %v6345_v62  ;;  %v6143_v37 = vpop.f32.mrb[204].mxu1 }
 0x794   : > { %v6144_v39 = vadd.f32 %v6143_v37, %v10856_v0  ;;  %v6145_v5 = vpop.f32.mrb[205].mxu1 }
 0x795   : > { %v6146_v44 = vadd.f32 %v6145_v5, %v10860_v4  ;;  %v6147_v7 = vpop.f32.mrb[206].mxu1  ;;  %6882 = vmatprep.mubr.bf16.mxu0 %v6437_v63 }
 0x796   : > { %v6148_v8 = vadd.f32 %v6147_v7, %v10856_v0  ;;  %v6149_v10 = vpop.f32.mrb[207].mxu1  ;;  %6883 = vmatmul.mubr.bf16.gmra.mrb[72].mxu0 %v6436_v36  ;;  %v6348_v12 = vmax.f32 %v6144_v39, 0.0 }
 0x797   : > { %v6150_v11 = vadd.f32 %v6149_v10, %v10860_v4  ;;  %v6349_v14 = vmax.f32 %v6146_v44, 0.0 }
 0x798   : > { %v6350_v13 = vmax.f32 %v6148_v8, 0.0 }
 0x799   : > { %v6351_v15 = vmax.f32 %v6150_v11, 0.0 }
 0x79a   : > { %v6438_v16 = vpack.c.bf16 %v6350_v13, %v6348_v12 }
 0x79b   : > { %v6439_v17 = vpack.c.bf16 %v6351_v15, %v6349_v14  ;;  %v6153_v56 = vpop.f32.mrb[208].mxu1 }
 0x79c   : > { %v6154_v18 = vadd.f32 %v6153_v56, %v10856_v0  ;;  %v6155_v3 = vpop.f32.mrb[209].mxu1 }
 0x79d   : > { %v6156_v57 = vadd.f32 %v6155_v3, %v10860_v4  ;;  %v6157_v21 = vpop.f32.mrb[210].mxu1  ;;  %6892 = vmatprep.mubr.bf16.mxu0 %v6439_v17 }
 0x79e   : > { %v6158_v22 = vadd.f32 %v6157_v21, %v10856_v0  ;;  %v6159_v23 = vpop.f32.mrb[211].mxu1  ;;  %6893 = vmatmul.mubr.bf16.gmra.mrb[76].mxu0 %v6438_v16  ;;  %v6352_v51 = vmax.f32 %v6154_v18, 0.0 }
 0x79f   : > { %v6160_v42 = vadd.f32 %v6159_v23, %v10860_v4  ;;  %v6353_v26 = vmax.f32 %v6156_v57, 0.0 }
 0x7a0   : > { %v6354_v24 = vmax.f32 %v6158_v22, 0.0 }
 0x7a1   : > { %v6355_v29 = vmax.f32 %v6160_v42, 0.0 }
 0x7a2   : > { %v6440_v32 = vpack.c.bf16 %v6354_v24, %v6352_v51 }
 0x7a3   : > { %v6441_v52 = vpack.c.bf16 %v6355_v29, %v6353_v26  ;;  %v6163_v33 = vpop.f32.mrb[212].mxu1 }
 0x7a4   : > { %v6164_v34 = vadd.f32 %v6163_v33, %v10856_v0  ;;  %v6165_v40 = vpop.f32.mrb[213].mxu1 }
 0x7a5   : > { %v6166_v35 = vadd.f32 %v6165_v40, %v10860_v4  ;;  %v6167_v6 = vpop.f32.mrb[214].mxu1  ;;  %6902 = vmatprep.mubr.bf16.mxu0 %v6441_v52 }
 0x7a6   : > { %v6168_v38 = vadd.f32 %v6167_v6, %v10856_v0  ;;  %v6169_v41 = vpop.f32.mrb[215].mxu1  ;;  %6903 = vmatmul.mubr.bf16.gmra.mrb[80].mxu0 %v6440_v32  ;;  %v6356_v45 = vmax.f32 %v6164_v34, 0.0 }
 0x7a7   : > { %v6170_v43 = vadd.f32 %v6169_v41, %v10860_v4  ;;  %v6357_v48 = vmax.f32 %v6166_v35, 0.0 }
 0x7a8   : > { %v6358_v46 = vmax.f32 %v6168_v38, 0.0 }
 0x7a9   : > { %v6359_v49 = vmax.f32 %v6170_v43, 0.0 }
 0x7aa   : > { %v6442_v9 = vpack.c.bf16 %v6358_v46, %v6356_v45 }
 0x7ab   : > { %v6443_v19 = vpack.c.bf16 %v6359_v49, %v6357_v48  ;;  %v6173_v50 = vpop.f32.mrb[216].mxu1 }
 0x7ac   : > { %v6174_v20 = vadd.f32 %v6173_v50, %v10856_v0  ;;  %v6175_v53 = vpop.f32.mrb[217].mxu1 }
 0x7ad   : > { %v6176_v1 = vadd.f32 %v6175_v53, %v10860_v4  ;;  %v6177_v54 = vpop.f32.mrb[218].mxu1  ;;  %6912 = vmatprep.mubr.bf16.mxu0 %v6443_v19 }
 0x7ae   : > { %v6178_v47 = vadd.f32 %v6177_v54, %v10856_v0  ;;  %v6179_v30 = vpop.f32.mrb[219].mxu1  ;;  %6913 = vmatmul.mubr.bf16.gmra.mrb[84].mxu0 %v6442_v9  ;;  %v6360_v31 = vmax.f32 %v6174_v20, 0.0 }
 0x7af   : > { %v6180_v55 = vadd.f32 %v6179_v30, %v10860_v4  ;;  %v6361_v58 = vmax.f32 %v6176_v1, 0.0 }
 0x7b0   : > { %v6362_v2 = vmax.f32 %v6178_v47, 0.0 }
 0x7b1   : > { %v6363_v59 = vmax.f32 %v6180_v55, 0.0 }
 0x7b2   : > { %v6444_v60 = vpack.c.bf16 %v6362_v2, %v6360_v31 }
 0x7b3   : > { %v6445_v61 = vpack.c.bf16 %v6363_v59, %v6361_v58  ;;  %v6183_v62 = vpop.f32.mrb[220].mxu1  ;;  %v8358_v59 = vld [vmem:[%s11369_s4 + $0xe] sm:$0x3] }
 0x7b4   : > { %v6184_v28 = vadd.f32 %v6183_v62, %v10856_v0  ;;  %v6185_v36 = vpop.f32.mrb[221].mxu1 }
 0x7b5   : > { %v6186_v63 = vadd.f32 %v6185_v36, %v10860_v4  ;;  %v6187_v37 = vpop.f32.mrb[222].mxu1  ;;  %6922 = vmatprep.mubr.bf16.mxu0 %v6445_v61 }
 0x7b6   : > { %v6188_v39 = vadd.f32 %v6187_v37, %v10856_v0  ;;  %v6189_v5 = vpop.f32.mrb[223].mxu1  ;;  %6923 = vmatmul.mubr.bf16.gmra.mrb[88].mxu0 %v6444_v60  ;;  %v6364_v7 = vmax.f32 %v6184_v28, 0.0  ;;  %v11055_v37 = vrot.slane %v8358_v59, %v9214_v25 }
 0x7b7   : > { %v6190_v44 = vadd.f32 %v6189_v5, %v10860_v4  ;;  %v6365_v10 = vmax.f32 %v6186_v63, 0.0  ;;  %v11059_v5 = vrot.slane %v8358_v59, %v9219_v27 }
 0x7b8   : > { %v6366_v8 = vmax.f32 %v6188_v39, 0.0 }
 0x7b9   : > { %v6367_v11 = vmax.f32 %v6190_v44, 0.0 }
 0x7ba   : > { %v6446_v12 = vpack.c.bf16 %v6366_v8, %v6364_v7 }
 0x7bb   : > { %v6447_v13 = vpack.c.bf16 %v6367_v11, %v6365_v10  ;;  %v6193_v14 = vpop.f32.mrb[224].mxu1 }
 0x7bc   : > { %v6194_v15 = vadd.f32 %v6193_v14, %v10856_v0  ;;  %v6195_v16 = vpop.f32.mrb[225].mxu1 }
 0x7bd   : > { %v6196_v17 = vadd.f32 %v6195_v16, %v10860_v4  ;;  %v6197_v56 = vpop.f32.mrb[226].mxu1  ;;  %6932 = vmatprep.mubr.bf16.mxu0 %v6447_v13 }
 0x7be   : > { %v6198_v18 = vadd.f32 %v6197_v56, %v10856_v0  ;;  %v6199_v3 = vpop.f32.mrb[227].mxu1  ;;  %6933 = vmatmul.mubr.bf16.gmra.mrb[92].mxu0 %v6446_v12  ;;  %v6368_v21 = vmax.f32 %v6194_v15, 0.0 }
 0x7bf   : > { %v6200_v57 = vadd.f32 %v6199_v3, %v10860_v4  ;;  %v6369_v23 = vmax.f32 %v6196_v17, 0.0 }
 0x7c0   : > { %v6370_v22 = vmax.f32 %v6198_v18, 0.0 }
 0x7c1   : > { %v6371_v42 = vmax.f32 %v6200_v57, 0.0 }
 0x7c2   : > { %v6448_v51 = vpack.c.bf16 %v6370_v22, %v6368_v21 }
 0x7c3   : > { %v6449_v24 = vpack.c.bf16 %v6371_v42, %v6369_v23  ;;  %v6203_v26 = vpop.f32.mrb[228].mxu1 }
 0x7c4   : > { %v6204_v29 = vadd.f32 %v6203_v26, %v10856_v0  ;;  %v6205_v32 = vpop.f32.mrb[229].mxu1 }
 0x7c5   : > { %v6206_v52 = vadd.f32 %v6205_v32, %v10860_v4  ;;  %v6207_v33 = vpop.f32.mrb[230].mxu1  ;;  %6942 = vmatprep.mubr.bf16.mxu0 %v6449_v24 }
 0x7c6   : > { %v6208_v34 = vadd.f32 %v6207_v33, %v10856_v0  ;;  %v6209_v40 = vpop.f32.mrb[231].mxu1  ;;  %6943 = vmatmul.mubr.bf16.gmra.mrb[96].mxu0 %v6448_v51  ;;  %v6372_v6 = vmax.f32 %v6204_v29, 0.0 }
 0x7c7   : > { %v6210_v35 = vadd.f32 %v6209_v40, %v10860_v4  ;;  %v6373_v41 = vmax.f32 %v6206_v52, 0.0 }
 0x7c8   : > { %v6374_v38 = vmax.f32 %v6208_v34, 0.0 }
 0x7c9   : > { %v6375_v43 = vmax.f32 %v6210_v35, 0.0 }
 0x7ca   : > { %v6450_v45 = vpack.c.bf16 %v6374_v38, %v6372_v6 }
 0x7cb   : > { %v6451_v46 = vpack.c.bf16 %v6375_v43, %v6373_v41  ;;  %v6213_v48 = vpop.f32.mrb[232].mxu1 }
 0x7cc   : > { %v6214_v49 = vadd.f32 %v6213_v48, %v10856_v0  ;;  %v6215_v9 = vpop.f32.mrb[233].mxu1 }
 0x7cd   : > { %v6216_v19 = vadd.f32 %v6215_v9, %v10860_v4  ;;  %v6217_v50 = vpop.f32.mrb[234].mxu1  ;;  %6952 = vmatprep.mubr.bf16.mxu0 %v6451_v46 }
 0x7ce   : > { %v6218_v20 = vadd.f32 %v6217_v50, %v10856_v0  ;;  %v6219_v53 = vpop.f32.mrb[235].mxu1  ;;  %6953 = vmatmul.mubr.bf16.gmra.mrb[100].mxu0 %v6450_v45  ;;  %v6376_v54 = vmax.f32 %v6214_v49, 0.0 }
 0x7cf   : > { %v6220_v1 = vadd.f32 %v6219_v53, %v10860_v4  ;;  %v6377_v30 = vmax.f32 %v6216_v19, 0.0 }
 0x7d0   : > { %v6378_v47 = vmax.f32 %v6218_v20, 0.0 }
 0x7d1   : > { %v6379_v55 = vmax.f32 %v6220_v1, 0.0 }
 0x7d2   : > { %v6452_v31 = vpack.c.bf16 %v6378_v47, %v6376_v54 }
 0x7d3   : > { %v6453_v2 = vpack.c.bf16 %v6379_v55, %v6377_v30  ;;  %v6223_v58 = vpop.f32.mrb[236].mxu1 }
 0x7d4   : > { %v6224_v60 = vadd.f32 %v6223_v58, %v10856_v0  ;;  %v6225_v61 = vpop.f32.mrb[237].mxu1 }
 0x7d5   : > { %v6226_v62 = vadd.f32 %v6225_v61, %v10860_v4  ;;  %v6227_v28 = vpop.f32.mrb[238].mxu1  ;;  %6962 = vmatprep.mubr.bf16.mxu0 %v6453_v2 }
 0x7d6   : > { %v6228_v36 = vadd.f32 %v6227_v28, %v10856_v0  ;;  %v6229_v63 = vpop.f32.mrb[239].mxu1  ;;  %6963 = vmatmul.mubr.bf16.gmra.mrb[104].mxu0 %v6452_v31  ;;  %v6380_v44 = vmax.f32 %v6224_v60, 0.0 }
 0x7d7   : > { %v6230_v39 = vadd.f32 %v6229_v63, %v10860_v4  ;;  %v6381_v8 = vmax.f32 %v6226_v62, 0.0 }
 0x7d8   : > { %v6382_v7 = vmax.f32 %v6228_v36, 0.0 }
 0x7d9   : > { %v6383_v10 = vmax.f32 %v6230_v39, 0.0  ;;  %v6704_v11 = vpop.f32.mrb[0].mxu0 }
 0x7da   : > { %v6454_v12 = vpack.c.bf16 %v6382_v7, %v6380_v44  ;;  %v6705_v13 = vadd.f32 %v6704_v11, %v11055_v37  ;;  %v6706_v14 = vpop.f32.mrb[1].mxu0 }
 0x7db   : > { %v6455_v15 = vpack.c.bf16 %v6383_v10, %v6381_v8  ;;  %v6707_v16 = vadd.f32 %v6706_v14, %v11059_v5  ;;  %v6233_v17 = vpop.f32.mrb[240].mxu1  ;;  %v6708_v25 = vpop.f32.mrb[2].mxu0 }
 0x7dc   : > { %v6234_v56 = vadd.f32 %v6233_v17, %v10856_v0  ;;  %v6709_v18 = vadd.f32 %v6708_v25, %v11055_v37  ;;  %v6235_v27 = vpop.f32.mrb[241].mxu1  ;;  %v6710_v3 = vpop.f32.mrb[3].mxu0  ;;  %v7023_v23 = vmax.f32 %v6705_v13, 0.0 }
 0x7dd   : > { %v6236_v57 = vadd.f32 %v6235_v27, %v10860_v4  ;;  %v6711_v21 = vadd.f32 %v6710_v3, %v11059_v5  ;;  %v6237_v22 = vpop.f32.mrb[242].mxu1  ;;  %6972 = vmatprep.mubr.bf16.mxu0 %v6455_v15  ;;  %v7024_v26 = vmax.f32 %v6707_v16, 0.0 }
 0x7de   : > { %v7025_v42 = vmax.f32 %v6709_v18, 0.0  ;;  %v6238_v51 = vadd.f32 %v6237_v22, %v10856_v0  ;;  %v6239_v24 = vpop.f32.mrb[243].mxu1  ;;  %6973 = vmatmul.mubr.bf16.gmra.mrb[108].mxu0 %v6454_v12  ;;  %v6384_v52 = vmax.f32 %v6234_v56, 0.0 }
 0x7df   : > { %v7026_v29 = vmax.f32 %v6711_v21, 0.0  ;;  %v6240_v32 = vadd.f32 %v6239_v24, %v10860_v4  ;;  %v6385_v40 = vmax.f32 %v6236_v57, 0.0 }
 0x7e0   : > { %v11069_v33 = vpack.c.bf16 %v7025_v42, %v7023_v23  ;;  %v6386_v34 = vmax.f32 %v6238_v51, 0.0 }
 0x7e1   : > { %v11071_v35 = vpack.c.bf16 %v7026_v29, %v7024_v26  ;;  %v6387_v6 = vmax.f32 %v6240_v32, 0.0  ;;  %v6714_v38 = vpop.f32.mrb[4].mxu0 }
 0x7e2   : > { %v6456_v41 = vpack.c.bf16 %v6386_v34, %v6384_v52  ;;  %v6715_v43 = vadd.f32 %v6714_v38, %v11055_v37  ;;  %v6716_v45 = vpop.f32.mrb[5].mxu0 }
 0x7e3   : > { %v6457_v46 = vpack.c.bf16 %v6387_v6, %v6385_v40  ;;  %v6717_v48 = vadd.f32 %v6716_v45, %v11059_v5  ;;  %v6243_v49 = vpop.f32.mrb[244].mxu1  ;;  %v6718_v9 = vpop.f32.mrb[6].mxu0 }
 0x7e4   : > { %v6244_v19 = vadd.f32 %v6243_v49, %v10856_v0  ;;  %v6719_v50 = vadd.f32 %v6718_v9, %v11055_v37  ;;  %v6245_v20 = vpop.f32.mrb[245].mxu1  ;;  %v6720_v53 = vpop.f32.mrb[7].mxu0  ;;  %v7027_v30 = vmax.f32 %v6715_v43, 0.0 }
 0x7e5   : > { %v6246_v1 = vadd.f32 %v6245_v20, %v10860_v4  ;;  %v6721_v54 = vadd.f32 %v6720_v53, %v11059_v5  ;;  %v6247_v47 = vpop.f32.mrb[246].mxu1  ;;  %6982 = vmatprep.mubr.bf16.mxu0 %v6457_v46  ;;  %v7028_v58 = vmax.f32 %v6717_v48, 0.0 }
 0x7e6   : > { %v7029_v55 = vmax.f32 %v6719_v50, 0.0  ;;  %v6248_v31 = vadd.f32 %v6247_v47, %v10856_v0  ;;  %v6249_v2 = vpop.f32.mrb[247].mxu1  ;;  %6983 = vmatmul.mubr.bf16.gmra.mrb[112].mxu0 %v6456_v41  ;;  %v6388_v61 = vmax.f32 %v6244_v19, 0.0 }
 0x7e7   : > { %v7030_v59 = vmax.f32 %v6721_v54, 0.0  ;;  %v6250_v60 = vadd.f32 %v6249_v2, %v10860_v4  ;;  %v6389_v36 = vmax.f32 %v6246_v1, 0.0 }
 0x7e8   : > { %v11081_v62 = vpack.c.bf16 %v7029_v55, %v7027_v30  ;;  %v6390_v28 = vmax.f32 %v6248_v31, 0.0 }
 0x7e9   : > { %v11083_v63 = vpack.c.bf16 %v7030_v59, %v7028_v58  ;;  %v6391_v39 = vmax.f32 %v6250_v60, 0.0  ;;  %v6724_v44 = vpop.f32.mrb[8].mxu0 }
 0x7ea   : > { %v6458_v7 = vpack.c.bf16 %v6390_v28, %v6388_v61  ;;  %v6725_v8 = vadd.f32 %v6724_v44, %v11055_v37  ;;  %v6726_v10 = vpop.f32.mrb[9].mxu0 }
 0x7eb   : > { %v6459_v11 = vpack.c.bf16 %v6391_v39, %v6389_v36  ;;  %v6727_v12 = vadd.f32 %v6726_v10, %v11059_v5  ;;  %v6253_v13 = vpop.f32.mrb[248].mxu1  ;;  %v6728_v14 = vpop.f32.mrb[10].mxu0 }
 0x7ec   : > { %v6254_v15 = vadd.f32 %v6253_v13, %v10856_v0  ;;  %v6729_v16 = vadd.f32 %v6728_v14, %v11055_v37  ;;  %v6255_v17 = vpop.f32.mrb[249].mxu1  ;;  %v6730_v25 = vpop.f32.mrb[11].mxu0  ;;  %v7031_v3 = vmax.f32 %v6725_v8, 0.0 }
 0x7ed   : > { %v6256_v56 = vadd.f32 %v6255_v17, %v10860_v4  ;;  %v6731_v18 = vadd.f32 %v6730_v25, %v11059_v5  ;;  %v6257_v27 = vpop.f32.mrb[250].mxu1  ;;  %6992 = vmatprep.mubr.bf16.mxu0 %v6459_v11  ;;  %v7032_v23 = vmax.f32 %v6727_v12, 0.0 }
 0x7ee   : > { %v7033_v57 = vmax.f32 %v6729_v16, 0.0  ;;  %v6258_v21 = vadd.f32 %v6257_v27, %v10856_v0  ;;  %v6259_v22 = vpop.f32.mrb[251].mxu1  ;;  %6993 = vmatmul.mubr.bf16.gmra.mrb[116].mxu0 %v6458_v7  ;;  %v6392_v24 = vmax.f32 %v6254_v15, 0.0 }
 0x7ef   : > { %v7034_v42 = vmax.f32 %v6731_v18, 0.0  ;;  %v6260_v51 = vadd.f32 %v6259_v22, %v10860_v4  ;;  %v6393_v32 = vmax.f32 %v6256_v56, 0.0 }
 0x7f0   : > { %v11093_v26 = vpack.c.bf16 %v7033_v57, %v7031_v3  ;;  %v6394_v29 = vmax.f32 %v6258_v21, 0.0 }
 0x7f1   : > { %v11095_v52 = vpack.c.bf16 %v7034_v42, %v7032_v23  ;;  %v6395_v34 = vmax.f32 %v6260_v51, 0.0  ;;  %v6734_v40 = vpop.f32.mrb[12].mxu0 }
 0x7f2   : > { %v6460_v6 = vpack.c.bf16 %v6394_v29, %v6392_v24  ;;  %v6735_v38 = vadd.f32 %v6734_v40, %v11055_v37  ;;  %v6736_v41 = vpop.f32.mrb[13].mxu0 }
 0x7f3   : > { %v6461_v43 = vpack.c.bf16 %v6395_v34, %v6393_v32  ;;  %v6737_v45 = vadd.f32 %v6736_v41, %v11059_v5  ;;  %v6263_v46 = vpop.f32.mrb[252].mxu1  ;;  %v6738_v48 = vpop.f32.mrb[14].mxu0 }
 0x7f4   : > { %v6264_v49 = vadd.f32 %v6263_v46, %v10856_v0  ;;  %v6739_v9 = vadd.f32 %v6738_v48, %v11055_v37  ;;  %v6265_v19 = vpop.f32.mrb[253].mxu1  ;;  %v6740_v50 = vpop.f32.mrb[15].mxu0  ;;  %v7035_v54 = vmax.f32 %v6735_v38, 0.0 }
 0x7f5   : > { %v6266_v20 = vadd.f32 %v6265_v19, %v10860_v4  ;;  %v6741_v53 = vadd.f32 %v6740_v50, %v11059_v5  ;;  %v6267_v1 = vpop.f32.mrb[254].mxu1  ;;  %7002 = vmatprep.mubr.bf16.mxu0 %v6461_v43  ;;  %v7036_v31 = vmax.f32 %v6737_v45, 0.0 }
 0x7f6   : > { %v7037_v47 = vmax.f32 %v6739_v9, 0.0  ;;  %v6268_v30 = vadd.f32 %v6267_v1, %v10856_v0  ;;  %v6269_v55 = vpop.f32.mrb[255].mxu1  ;;  %7003 = vmatmul.mubr.bf16.gmra.mrb[120].mxu0 %v6460_v6  ;;  %v6396_v59 = vmax.f32 %v6264_v49, 0.0 }
 0x7f7   : > { %v7038_v2 = vmax.f32 %v6741_v53, 0.0  ;;  %v6270_v58 = vadd.f32 %v6269_v55, %v10860_v4  ;;  %v6397_v28 = vmax.f32 %v6266_v20, 0.0 }
 0x7f8   : > { %v7157_v60 = vpack.c.bf16 %v7037_v47, %v7035_v54  ;;  %v6398_v61 = vmax.f32 %v6268_v30, 0.0 }
 0x7f9   : > { %v7158_v36 = vpack.c.bf16 %v7038_v2, %v7036_v31  ;;  %v6399_v39 = vmax.f32 %v6270_v58, 0.0  ;;  %v6744_v44 = vpop.f32.mrb[16].mxu0 }
 0x7fa   : > { %v6462_v7 = vpack.c.bf16 %v6398_v61, %v6396_v59  ;;  %v6745_v8 = vadd.f32 %v6744_v44, %v11055_v37  ;;  %v6746_v10 = vpop.f32.mrb[17].mxu0 }
 0x7fb   : > { %v6463_v11 = vpack.c.bf16 %v6399_v39, %v6397_v28  ;;  %v6747_v0 = vadd.f32 %v6746_v10, %v11059_v5  ;;  %v6748_v12 = vpop.f32.mrb[18].mxu0  ;;  %7406 = vmatprep.mubr.bf16.mxu1 %v7158_v36 }
 0x7fc   : > { %v6749_v13 = vadd.f32 %v6748_v12, %v11055_v37  ;;  %v6750_v14 = vpop.f32.mrb[19].mxu0  ;;  %7407 = vmatmul.mubr.bf16.vlgmr.msra.gmra.mrb[0].mxu1 %v7157_v60  ;;  %v7039_v15 = vmax.f32 %v6745_v8, 0.0 }
 0x7fd   : > { %v6751_v4 = vadd.f32 %v6750_v14, %v11059_v5  ;;  %7012 = vmatprep.mubr.bf16.mxu0 %v6463_v11  ;;  %v7040_v17 = vmax.f32 %v6747_v0, 0.0 }
 0x7fe   : > { %v7041_v16 = vmax.f32 %v6749_v13, 0.0  ;;  %7013 = vmatmul.mubr.bf16.gmra.mrb[124].mxu0 %v6462_v7 }
 0x7ff   : > { %v7042_v25 = vmax.f32 %v6751_v4, 0.0  ;;  %7382 = vmatprep.mubr.bf16.mxu0 %v11071_v35 }
 0x800   : > { %v7159_v56 = vpack.c.bf16 %v7041_v16, %v7039_v15 }
 0x801   : > { %v7160_v18 = vpack.c.bf16 %v7042_v25, %v7040_v17  ;;  %v6754_v27 = vpop.f32.mrb[20].mxu0 }
 0x802   : > { %v6755_v3 = vadd.f32 %v6754_v27, %v11055_v37  ;;  %v6756_v57 = vpop.f32.mrb[21].mxu0 }
 0x803   : > { %v6757_v21 = vadd.f32 %v6756_v57, %v11059_v5  ;;  %v6758_v22 = vpop.f32.mrb[22].mxu0  ;;  %7414 = vmatprep.mubr.bf16.mxu1 %v7160_v18 }
 0x804   : > { %v6759_v23 = vadd.f32 %v6758_v22, %v11055_v37  ;;  %v6760_v42 = vpop.f32.mrb[23].mxu0  ;;  %7415 = vmatmul.mubr.bf16.gmra.mrb[4].mxu1 %v7159_v56  ;;  %v7043_v24 = vmax.f32 %v6755_v3, 0.0 }
 0x805   : > { %v6761_v51 = vadd.f32 %v6760_v42, %v11059_v5  ;;  %v7044_v35 = vmax.f32 %v6757_v21, 0.0 }
 0x806   : > { %v7045_v29 = vmax.f32 %v6759_v23, 0.0  ;;  %7383 = vmatmul.mubr.bf16.vlgmr.msra.gmra.mrb[128].mxu0 %v11069_v33 }
 0x807   : > { %v7046_v32 = vmax.f32 %v6761_v51, 0.0  ;;  %7390 = vmatprep.mubr.bf16.mxu0 %v11083_v63 }
 0x808   : > { %v7161_v34 = vpack.c.bf16 %v7045_v29, %v7043_v24 }
 0x809   : > { %v7162_v40 = vpack.c.bf16 %v7046_v32, %v7044_v35  ;;  %v6764_v6 = vpop.f32.mrb[24].mxu0 }
 0x80a   : > { %v6765_v38 = vadd.f32 %v6764_v6, %v11055_v37  ;;  %v6766_v41 = vpop.f32.mrb[25].mxu0 }
 0x80b   : > { %v6767_v43 = vadd.f32 %v6766_v41, %v11059_v5  ;;  %v6768_v45 = vpop.f32.mrb[26].mxu0  ;;  %7422 = vmatprep.mubr.bf16.mxu1 %v7162_v40 }
 0x80c   : > { %v6769_v46 = vadd.f32 %v6768_v45, %v11055_v37  ;;  %v6770_v48 = vpop.f32.mrb[27].mxu0  ;;  %7423 = vmatmul.mubr.bf16.gmra.mrb[8].mxu1 %v7161_v34  ;;  %v7047_v49 = vmax.f32 %v6765_v38, 0.0 }
 0x80d   : > { %v6771_v33 = vadd.f32 %v6770_v48, %v11059_v5  ;;  %v7048_v63 = vmax.f32 %v6767_v43, 0.0 }
 0x80e   : > { %v7049_v9 = vmax.f32 %v6769_v46, 0.0  ;;  %7391 = vmatmul.mubr.bf16.gmra.mrb[132].mxu0 %v11081_v62 }
 0x80f   : > { %v7050_v19 = vmax.f32 %v6771_v33, 0.0  ;;  %7398 = vmatprep.mubr.bf16.mxu0 %v11095_v52 }
 0x810   : > { %v7163_v50 = vpack.c.bf16 %v7049_v9, %v7047_v49 }
 0x811   : > { %v7164_v20 = vpack.c.bf16 %v7050_v19, %v7048_v63  ;;  %v6774_v53 = vpop.f32.mrb[28].mxu0 }
 0x812   : > { %v6775_v1 = vadd.f32 %v6774_v53, %v11055_v37  ;;  %v6776_v54 = vpop.f32.mrb[29].mxu0 }
 0x813   : > { %v6777_v47 = vadd.f32 %v6776_v54, %v11059_v5  ;;  %v6778_v30 = vpop.f32.mrb[30].mxu0  ;;  %7430 = vmatprep.mubr.bf16.mxu1 %v7164_v20 }
 0x814   : > { %v6779_v55 = vadd.f32 %v6778_v30, %v11055_v37  ;;  %v6780_v31 = vpop.f32.mrb[31].mxu0  ;;  %7431 = vmatmul.mubr.bf16.gmra.mrb[12].mxu1 %v7163_v50  ;;  %v7051_v2 = vmax.f32 %v6775_v1, 0.0 }
 0x815   : > { %v6781_v62 = vadd.f32 %v6780_v31, %v11059_v5  ;;  %v7052_v52 = vmax.f32 %v6777_v47, 0.0 }
 0x816   : > { %v7053_v58 = vmax.f32 %v6779_v55, 0.0  ;;  %7399 = vmatmul.mubr.bf16.gmra.mrb[136].mxu0 %v11093_v26 }
 0x817   : > { %v7054_v59 = vmax.f32 %v6781_v62, 0.0 }
 0x818   : > { %v7165_v60 = vpack.c.bf16 %v7053_v58, %v7051_v2 }
 0x819   : > { %v7166_v61 = vpack.c.bf16 %v7054_v59, %v7052_v52  ;;  %v6784_v28 = vpop.f32.mrb[32].mxu0 }
 0x81a   : > { %v6785_v36 = vadd.f32 %v6784_v28, %v11055_v37  ;;  %v6786_v39 = vpop.f32.mrb[33].mxu0 }
 0x81b   : > { %v6787_v44 = vadd.f32 %v6786_v39, %v11059_v5  ;;  %v6788_v7 = vpop.f32.mrb[34].mxu0  ;;  %7438 = vmatprep.mubr.bf16.mxu1 %v7166_v61 }
 0x81c   : > { %v6789_v8 = vadd.f32 %v6788_v7, %v11055_v37  ;;  %v6790_v10 = vpop.f32.mrb[35].mxu0  ;;  %7439 = vmatmul.mubr.bf16.gmra.mrb[16].mxu1 %v7165_v60  ;;  %v7055_v0 = vmax.f32 %v6785_v36, 0.0 }
 0x81d   : > { %v6791_v11 = vadd.f32 %v6790_v10, %v11059_v5  ;;  %v7056_v12 = vmax.f32 %v6787_v44, 0.0 }
 0x81e   : > { %v7057_v26 = vmax.f32 %v6789_v8, 0.0 }
 0x81f   : > { %v7058_v13 = vmax.f32 %v6791_v11, 0.0 }
 0x820   : > { %v7167_v14 = vpack.c.bf16 %v7057_v26, %v7055_v0 }
 0x821   : > { %v7168_v4 = vpack.c.bf16 %v7058_v13, %v7056_v12  ;;  %v6794_v15 = vpop.f32.mrb[36].mxu0 }
 0x822   : > { %v6795_v16 = vadd.f32 %v6794_v15, %v11055_v37  ;;  %v6796_v17 = vpop.f32.mrb[37].mxu0 }
 0x823   : > { %v6797_v25 = vadd.f32 %v6796_v17, %v11059_v5  ;;  %v6798_v56 = vpop.f32.mrb[38].mxu0  ;;  %7446 = vmatprep.mubr.bf16.mxu1 %v7168_v4 }
 0x824   : > { %v6799_v18 = vadd.f32 %v6798_v56, %v11055_v37  ;;  %v6800_v27 = vpop.f32.mrb[39].mxu0  ;;  %7447 = vmatmul.mubr.bf16.gmra.mrb[20].mxu1 %v7167_v14  ;;  %v7059_v57 = vmax.f32 %v6795_v16, 0.0 }
 0x825   : > { %v6801_v3 = vadd.f32 %v6800_v27, %v11059_v5  ;;  %v7060_v22 = vmax.f32 %v6797_v25, 0.0 }
 0x826   : > { %v7061_v21 = vmax.f32 %v6799_v18, 0.0 }
 0x827   : > { %v7062_v23 = vmax.f32 %v6801_v3, 0.0 }
 0x828   : > { %v7169_v42 = vpack.c.bf16 %v7061_v21, %v7059_v57 }
 0x829   : > { %v7170_v51 = vpack.c.bf16 %v7062_v23, %v7060_v22  ;;  %v6804_v24 = vpop.f32.mrb[40].mxu0 }
 0x82a   : > { %v6805_v29 = vadd.f32 %v6804_v24, %v11055_v37  ;;  %v6806_v35 = vpop.f32.mrb[41].mxu0 }
 0x82b   : > { %v6807_v32 = vadd.f32 %v6806_v35, %v11059_v5  ;;  %v6808_v34 = vpop.f32.mrb[42].mxu0  ;;  %7454 = vmatprep.mubr.bf16.mxu1 %v7170_v51 }
 0x82c   : > { %v6809_v40 = vadd.f32 %v6808_v34, %v11055_v37  ;;  %v6810_v6 = vpop.f32.mrb[43].mxu0  ;;  %7455 = vmatmul.mubr.bf16.gmra.mrb[24].mxu1 %v7169_v42  ;;  %v7063_v41 = vmax.f32 %v6805_v29, 0.0 }
 0x82d   : > { %v6811_v38 = vadd.f32 %v6810_v6, %v11059_v5  ;;  %v7064_v45 = vmax.f32 %v6807_v32, 0.0 }
 0x82e   : > { %v7065_v43 = vmax.f32 %v6809_v40, 0.0 }
 0x82f   : > { %v7066_v46 = vmax.f32 %v6811_v38, 0.0 }
 0x830   : > { %v7171_v48 = vpack.c.bf16 %v7065_v43, %v7063_v41 }
 0x831   : > { %v7172_v33 = vpack.c.bf16 %v7066_v46, %v7064_v45  ;;  %v6814_v49 = vpop.f32.mrb[44].mxu0 }
 0x832   : > { %v6815_v9 = vadd.f32 %v6814_v49, %v11055_v37  ;;  %v6816_v63 = vpop.f32.mrb[45].mxu0 }
 0x833   : > { %v6817_v19 = vadd.f32 %v6816_v63, %v11059_v5  ;;  %v6818_v50 = vpop.f32.mrb[46].mxu0  ;;  %7462 = vmatprep.mubr.bf16.mxu1 %v7172_v33 }
 0x834   : > { %v6819_v20 = vadd.f32 %v6818_v50, %v11055_v37  ;;  %v6820_v53 = vpop.f32.mrb[47].mxu0  ;;  %7463 = vmatmul.mubr.bf16.gmra.mrb[28].mxu1 %v7171_v48  ;;  %v7067_v54 = vmax.f32 %v6815_v9, 0.0 }
 0x835   : > { %v6821_v1 = vadd.f32 %v6820_v53, %v11059_v5  ;;  %v7068_v30 = vmax.f32 %v6817_v19, 0.0 }
 0x836   : > { %v7069_v47 = vmax.f32 %v6819_v20, 0.0 }
 0x837   : > { %v7070_v55 = vmax.f32 %v6821_v1, 0.0 }
 0x838   : > { %v7173_v31 = vpack.c.bf16 %v7069_v47, %v7067_v54 }
 0x839   : > { %v7174_v62 = vpack.c.bf16 %v7070_v55, %v7068_v30  ;;  %v6824_v2 = vpop.f32.mrb[48].mxu0 }
 0x83a   : > { %v6825_v58 = vadd.f32 %v6824_v2, %v11055_v37  ;;  %v6826_v52 = vpop.f32.mrb[49].mxu0 }
 0x83b   : > { %v6827_v59 = vadd.f32 %v6826_v52, %v11059_v5  ;;  %v6828_v60 = vpop.f32.mrb[50].mxu0  ;;  %7470 = vmatprep.mubr.bf16.mxu1 %v7174_v62 }
 0x83c   : > { %v6829_v61 = vadd.f32 %v6828_v60, %v11055_v37  ;;  %v6830_v28 = vpop.f32.mrb[51].mxu0  ;;  %7471 = vmatmul.mubr.bf16.gmra.mrb[32].mxu1 %v7173_v31  ;;  %v7071_v39 = vmax.f32 %v6825_v58, 0.0 }
 0x83d   : > { %v6831_v36 = vadd.f32 %v6830_v28, %v11059_v5  ;;  %v7072_v7 = vmax.f32 %v6827_v59, 0.0 }
 0x83e   : > { %v7073_v44 = vmax.f32 %v6829_v61, 0.0 }
 0x83f   : > { %v7074_v8 = vmax.f32 %v6831_v36, 0.0 }
 0x840   : > { %v7175_v10 = vpack.c.bf16 %v7073_v44, %v7071_v39 }
 0x841   : > { %v7176_v11 = vpack.c.bf16 %v7074_v8, %v7072_v7  ;;  %v6834_v0 = vpop.f32.mrb[52].mxu0 }
 0x842   : > { %v6835_v26 = vadd.f32 %v6834_v0, %v11055_v37  ;;  %v6836_v12 = vpop.f32.mrb[53].mxu0 }
 0x843   : > { %v6837_v13 = vadd.f32 %v6836_v12, %v11059_v5  ;;  %v6838_v14 = vpop.f32.mrb[54].mxu0  ;;  %7478 = vmatprep.mubr.bf16.mxu1 %v7176_v11 }
 0x844   : > { %v6839_v4 = vadd.f32 %v6838_v14, %v11055_v37  ;;  %v6840_v15 = vpop.f32.mrb[55].mxu0  ;;  %7479 = vmatmul.mubr.bf16.gmra.mrb[36].mxu1 %v7175_v10  ;;  %v7075_v17 = vmax.f32 %v6835_v26, 0.0 }
 0x845   : > { %v6841_v16 = vadd.f32 %v6840_v15, %v11059_v5  ;;  %v7076_v56 = vmax.f32 %v6837_v13, 0.0 }
 0x846   : > { %v7077_v25 = vmax.f32 %v6839_v4, 0.0 }
 0x847   : > { %v7078_v18 = vmax.f32 %v6841_v16, 0.0 }
 0x848   : > { %v7177_v27 = vpack.c.bf16 %v7077_v25, %v7075_v17 }
 0x849   : > { %v7178_v3 = vpack.c.bf16 %v7078_v18, %v7076_v56  ;;  %v6844_v57 = vpop.f32.mrb[56].mxu0 }
 0x84a   : > { %v6845_v21 = vadd.f32 %v6844_v57, %v11055_v37  ;;  %v6846_v22 = vpop.f32.mrb[57].mxu0 }
 0x84b   : > { %v6847_v23 = vadd.f32 %v6846_v22, %v11059_v5  ;;  %v6848_v42 = vpop.f32.mrb[58].mxu0  ;;  %7486 = vmatprep.mubr.bf16.mxu1 %v7178_v3 }
 0x84c   : > { %v6849_v51 = vadd.f32 %v6848_v42, %v11055_v37  ;;  %v6850_v24 = vpop.f32.mrb[59].mxu0  ;;  %7487 = vmatmul.mubr.bf16.gmra.mrb[40].mxu1 %v7177_v27  ;;  %v7079_v35 = vmax.f32 %v6845_v21, 0.0 }
 0x84d   : > { %v6851_v29 = vadd.f32 %v6850_v24, %v11059_v5  ;;  %v7080_v34 = vmax.f32 %v6847_v23, 0.0 }
 0x84e   : > { %v7081_v32 = vmax.f32 %v6849_v51, 0.0 }
 0x84f   : > { %v7082_v40 = vmax.f32 %v6851_v29, 0.0 }
 0x850   : > { %v7179_v6 = vpack.c.bf16 %v7081_v32, %v7079_v35 }
 0x851   : > { %v7180_v38 = vpack.c.bf16 %v7082_v40, %v7080_v34  ;;  %v6854_v41 = vpop.f32.mrb[60].mxu0 }
 0x852   : > { %v6855_v43 = vadd.f32 %v6854_v41, %v11055_v37  ;;  %v6856_v45 = vpop.f32.mrb[61].mxu0 }
 0x853   : > { %v6857_v46 = vadd.f32 %v6856_v45, %v11059_v5  ;;  %v6858_v48 = vpop.f32.mrb[62].mxu0  ;;  %7494 = vmatprep.mubr.bf16.mxu1 %v7180_v38 }
 0x854   : > { %v6859_v33 = vadd.f32 %v6858_v48, %v11055_v37  ;;  %v6860_v49 = vpop.f32.mrb[63].mxu0  ;;  %7495 = vmatmul.mubr.bf16.gmra.mrb[44].mxu1 %v7179_v6  ;;  %v7083_v63 = vmax.f32 %v6855_v43, 0.0 }
 0x855   : > { %v6861_v9 = vadd.f32 %v6860_v49, %v11059_v5  ;;  %v7084_v50 = vmax.f32 %v6857_v46, 0.0 }
 0x856   : > { %v7085_v19 = vmax.f32 %v6859_v33, 0.0 }
 0x857   : > { %v7086_v20 = vmax.f32 %v6861_v9, 0.0 }
 0x858   : > { %v7181_v53 = vpack.c.bf16 %v7085_v19, %v7083_v63 }
 0x859   : > { %v7182_v1 = vpack.c.bf16 %v7086_v20, %v7084_v50  ;;  %v6864_v54 = vpop.f32.mrb[64].mxu0 }
 0x85a   : > { %v6865_v47 = vadd.f32 %v6864_v54, %v11055_v37  ;;  %v6866_v30 = vpop.f32.mrb[65].mxu0 }
 0x85b   : > { %v6867_v55 = vadd.f32 %v6866_v30, %v11059_v5  ;;  %v6868_v31 = vpop.f32.mrb[66].mxu0  ;;  %7502 = vmatprep.mubr.bf16.mxu1 %v7182_v1 }
 0x85c   : > { %v6869_v62 = vadd.f32 %v6868_v31, %v11055_v37  ;;  %v6870_v2 = vpop.f32.mrb[67].mxu0  ;;  %7503 = vmatmul.mubr.bf16.gmra.mrb[48].mxu1 %v7181_v53  ;;  %v7087_v52 = vmax.f32 %v6865_v47, 0.0 }
 0x85d   : > { %v6871_v58 = vadd.f32 %v6870_v2, %v11059_v5  ;;  %v7088_v60 = vmax.f32 %v6867_v55, 0.0 }
 0x85e   : > { %v7089_v59 = vmax.f32 %v6869_v62, 0.0 }
 0x85f   : > { %v7090_v61 = vmax.f32 %v6871_v58, 0.0 }
 0x860   : > { %v7183_v28 = vpack.c.bf16 %v7089_v59, %v7087_v52 }
 0x861   : > { %v7184_v36 = vpack.c.bf16 %v7090_v61, %v7088_v60  ;;  %v6874_v39 = vpop.f32.mrb[68].mxu0 }
 0x862   : > { %v6875_v44 = vadd.f32 %v6874_v39, %v11055_v37  ;;  %v6876_v7 = vpop.f32.mrb[69].mxu0 }
 0x863   : > { %v6877_v8 = vadd.f32 %v6876_v7, %v11059_v5  ;;  %v6878_v10 = vpop.f32.mrb[70].mxu0  ;;  %7510 = vmatprep.mubr.bf16.mxu1 %v7184_v36 }
 0x864   : > { %v6879_v11 = vadd.f32 %v6878_v10, %v11055_v37  ;;  %v6880_v0 = vpop.f32.mrb[71].mxu0  ;;  %7511 = vmatmul.mubr.bf16.gmra.mrb[52].mxu1 %v7183_v28  ;;  %v7091_v12 = vmax.f32 %v6875_v44, 0.0 }
 0x865   : > { %v6881_v26 = vadd.f32 %v6880_v0, %v11059_v5  ;;  %v7092_v14 = vmax.f32 %v6877_v8, 0.0 }
 0x866   : > { %v7093_v13 = vmax.f32 %v6879_v11, 0.0 }
 0x867   : > { %v7094_v4 = vmax.f32 %v6881_v26, 0.0 }
 0x868   : > { %v7185_v15 = vpack.c.bf16 %v7093_v13, %v7091_v12 }
 0x869   : > { %v7186_v16 = vpack.c.bf16 %v7094_v4, %v7092_v14  ;;  %v6884_v17 = vpop.f32.mrb[72].mxu0 }
 0x86a   : > { %v6885_v25 = vadd.f32 %v6884_v17, %v11055_v37  ;;  %v6886_v56 = vpop.f32.mrb[73].mxu0 }
 0x86b   : > { %v6887_v18 = vadd.f32 %v6886_v56, %v11059_v5  ;;  %v6888_v27 = vpop.f32.mrb[74].mxu0  ;;  %7518 = vmatprep.mubr.bf16.mxu1 %v7186_v16 }
 0x86c   : > { %v6889_v3 = vadd.f32 %v6888_v27, %v11055_v37  ;;  %v6890_v57 = vpop.f32.mrb[75].mxu0  ;;  %7519 = vmatmul.mubr.bf16.gmra.mrb[56].mxu1 %v7185_v15  ;;  %v7095_v22 = vmax.f32 %v6885_v25, 0.0 }
 0x86d   : > { %v6891_v21 = vadd.f32 %v6890_v57, %v11059_v5  ;;  %v7096_v42 = vmax.f32 %v6887_v18, 0.0 }
 0x86e   : > { %v7097_v23 = vmax.f32 %v6889_v3, 0.0 }
 0x86f   : > { %v7098_v51 = vmax.f32 %v6891_v21, 0.0 }
 0x870   : > { %v7187_v24 = vpack.c.bf16 %v7097_v23, %v7095_v22 }
 0x871   : > { %v7188_v29 = vpack.c.bf16 %v7098_v51, %v7096_v42  ;;  %v6894_v35 = vpop.f32.mrb[76].mxu0 }
 0x872   : > { %v6895_v32 = vadd.f32 %v6894_v35, %v11055_v37  ;;  %v6896_v34 = vpop.f32.mrb[77].mxu0 }
 0x873   : > { %v6897_v40 = vadd.f32 %v6896_v34, %v11059_v5  ;;  %v6898_v6 = vpop.f32.mrb[78].mxu0  ;;  %7526 = vmatprep.mubr.bf16.mxu1 %v7188_v29 }
 0x874   : > { %v6899_v38 = vadd.f32 %v6898_v6, %v11055_v37  ;;  %v6900_v41 = vpop.f32.mrb[79].mxu0  ;;  %7527 = vmatmul.mubr.bf16.gmra.mrb[60].mxu1 %v7187_v24  ;;  %v7099_v45 = vmax.f32 %v6895_v32, 0.0 }
 0x875   : > { %v6901_v43 = vadd.f32 %v6900_v41, %v11059_v5  ;;  %v7100_v48 = vmax.f32 %v6897_v40, 0.0 }
 0x876   : > { %v7101_v46 = vmax.f32 %v6899_v38, 0.0 }
 0x877   : > { %v7102_v33 = vmax.f32 %v6901_v43, 0.0 }
 0x878   : > { %v7189_v49 = vpack.c.bf16 %v7101_v46, %v7099_v45 }
 0x879   : > { %v7190_v9 = vpack.c.bf16 %v7102_v33, %v7100_v48  ;;  %v6904_v63 = vpop.f32.mrb[80].mxu0 }
 0x87a   : > { %v6905_v19 = vadd.f32 %v6904_v63, %v11055_v37  ;;  %v6906_v50 = vpop.f32.mrb[81].mxu0 }
 0x87b   : > { %v6907_v20 = vadd.f32 %v6906_v50, %v11059_v5  ;;  %v6908_v53 = vpop.f32.mrb[82].mxu0  ;;  %7534 = vmatprep.mubr.bf16.mxu1 %v7190_v9 }
 0x87c   : > { %v6909_v1 = vadd.f32 %v6908_v53, %v11055_v37  ;;  %v6910_v54 = vpop.f32.mrb[83].mxu0  ;;  %7535 = vmatmul.mubr.bf16.gmra.mrb[64].mxu1 %v7189_v49  ;;  %v7103_v30 = vmax.f32 %v6905_v19, 0.0 }
 0x87d   : > { %v6911_v47 = vadd.f32 %v6910_v54, %v11059_v5  ;;  %v7104_v31 = vmax.f32 %v6907_v20, 0.0 }
 0x87e   : > { %v7105_v55 = vmax.f32 %v6909_v1, 0.0 }
 0x87f   : > { %v7106_v62 = vmax.f32 %v6911_v47, 0.0 }
 0x880   : > { %v7191_v2 = vpack.c.bf16 %v7105_v55, %v7103_v30 }
 0x881   : > { %v7192_v58 = vpack.c.bf16 %v7106_v62, %v7104_v31  ;;  %v6914_v52 = vpop.f32.mrb[84].mxu0 }
 0x882   : > { %v6915_v59 = vadd.f32 %v6914_v52, %v11055_v37  ;;  %v6916_v60 = vpop.f32.mrb[85].mxu0 }
 0x883   : > { %v6917_v61 = vadd.f32 %v6916_v60, %v11059_v5  ;;  %v6918_v28 = vpop.f32.mrb[86].mxu0  ;;  %7542 = vmatprep.mubr.bf16.mxu1 %v7192_v58 }
 0x884   : > { %v6919_v36 = vadd.f32 %v6918_v28, %v11055_v37  ;;  %v6920_v39 = vpop.f32.mrb[87].mxu0  ;;  %7543 = vmatmul.mubr.bf16.gmra.mrb[68].mxu1 %v7191_v2  ;;  %v7107_v7 = vmax.f32 %v6915_v59, 0.0 }
 0x885   : > { %v6921_v44 = vadd.f32 %v6920_v39, %v11059_v5  ;;  %v7108_v10 = vmax.f32 %v6917_v61, 0.0 }
 0x886   : > { %v7109_v8 = vmax.f32 %v6919_v36, 0.0 }
 0x887   : > { %v7110_v11 = vmax.f32 %v6921_v44, 0.0 }
 0x888   : > { %v7193_v0 = vpack.c.bf16 %v7109_v8, %v7107_v7 }
 0x889   : > { %v7194_v26 = vpack.c.bf16 %v7110_v11, %v7108_v10  ;;  %v6924_v12 = vpop.f32.mrb[88].mxu0 }
 0x88a   : > { %v6925_v13 = vadd.f32 %v6924_v12, %v11055_v37  ;;  %v6926_v14 = vpop.f32.mrb[89].mxu0 }
 0x88b   : > { %v6927_v4 = vadd.f32 %v6926_v14, %v11059_v5  ;;  %v6928_v15 = vpop.f32.mrb[90].mxu0  ;;  %7550 = vmatprep.mubr.bf16.mxu1 %v7194_v26 }
 0x88c   : > { %v6929_v16 = vadd.f32 %v6928_v15, %v11055_v37  ;;  %v6930_v17 = vpop.f32.mrb[91].mxu0  ;;  %7551 = vmatmul.mubr.bf16.gmra.mrb[72].mxu1 %v7193_v0  ;;  %v7111_v56 = vmax.f32 %v6925_v13, 0.0 }
 0x88d   : > { %v6931_v25 = vadd.f32 %v6930_v17, %v11059_v5  ;;  %v7112_v27 = vmax.f32 %v6927_v4, 0.0 }
 0x88e   : > { %v7113_v18 = vmax.f32 %v6929_v16, 0.0 }
 0x88f   : > { %v7114_v3 = vmax.f32 %v6931_v25, 0.0 }
 0x890   : > { %v7195_v57 = vpack.c.bf16 %v7113_v18, %v7111_v56 }
 0x891   : > { %v7196_v21 = vpack.c.bf16 %v7114_v3, %v7112_v27  ;;  %v6934_v22 = vpop.f32.mrb[92].mxu0 }
 0x892   : > { %v6935_v23 = vadd.f32 %v6934_v22, %v11055_v37  ;;  %v6936_v42 = vpop.f32.mrb[93].mxu0 }
 0x893   : > { %v6937_v51 = vadd.f32 %v6936_v42, %v11059_v5  ;;  %v6938_v24 = vpop.f32.mrb[94].mxu0  ;;  %7558 = vmatprep.mubr.bf16.mxu1 %v7196_v21 }
 0x894   : > { %v6939_v29 = vadd.f32 %v6938_v24, %v11055_v37  ;;  %v6940_v35 = vpop.f32.mrb[95].mxu0  ;;  %7559 = vmatmul.mubr.bf16.gmra.mrb[76].mxu1 %v7195_v57  ;;  %v7115_v34 = vmax.f32 %v6935_v23, 0.0 }
 0x895   : > { %v6941_v32 = vadd.f32 %v6940_v35, %v11059_v5  ;;  %v7116_v6 = vmax.f32 %v6937_v51, 0.0 }
 0x896   : > { %v7117_v40 = vmax.f32 %v6939_v29, 0.0 }
 0x897   : > { %v7118_v38 = vmax.f32 %v6941_v32, 0.0 }
 0x898   : > { %v7197_v41 = vpack.c.bf16 %v7117_v40, %v7115_v34 }
 0x899   : > { %v7198_v43 = vpack.c.bf16 %v7118_v38, %v7116_v6  ;;  %v6944_v45 = vpop.f32.mrb[96].mxu0 }
 0x89a   : > { %v6945_v46 = vadd.f32 %v6944_v45, %v11055_v37  ;;  %v6946_v48 = vpop.f32.mrb[97].mxu0 }
 0x89b   : > { %v6947_v33 = vadd.f32 %v6946_v48, %v11059_v5  ;;  %v6948_v49 = vpop.f32.mrb[98].mxu0  ;;  %7566 = vmatprep.mubr.bf16.mxu1 %v7198_v43 }
 0x89c   : > { %v6949_v9 = vadd.f32 %v6948_v49, %v11055_v37  ;;  %v6950_v63 = vpop.f32.mrb[99].mxu0  ;;  %7567 = vmatmul.mubr.bf16.gmra.mrb[80].mxu1 %v7197_v41  ;;  %v7119_v50 = vmax.f32 %v6945_v46, 0.0 }
 0x89d   : > { %v6951_v19 = vadd.f32 %v6950_v63, %v11059_v5  ;;  %v7120_v53 = vmax.f32 %v6947_v33, 0.0 }
 0x89e   : > { %v7121_v20 = vmax.f32 %v6949_v9, 0.0 }
 0x89f   : > { %v7122_v1 = vmax.f32 %v6951_v19, 0.0 }
 0x8a0   : > { %v7199_v54 = vpack.c.bf16 %v7121_v20, %v7119_v50 }
 0x8a1   : > { %v7200_v47 = vpack.c.bf16 %v7122_v1, %v7120_v53  ;;  %v6954_v30 = vpop.f32.mrb[100].mxu0 }
 0x8a2   : > { %v6955_v55 = vadd.f32 %v6954_v30, %v11055_v37  ;;  %v6956_v31 = vpop.f32.mrb[101].mxu0 }
 0x8a3   : > { %v6957_v62 = vadd.f32 %v6956_v31, %v11059_v5  ;;  %v6958_v2 = vpop.f32.mrb[102].mxu0  ;;  %7574 = vmatprep.mubr.bf16.mxu1 %v7200_v47 }
 0x8a4   : > { %v6959_v58 = vadd.f32 %v6958_v2, %v11055_v37  ;;  %v6960_v52 = vpop.f32.mrb[103].mxu0  ;;  %7575 = vmatmul.mubr.bf16.gmra.mrb[84].mxu1 %v7199_v54  ;;  %v7123_v60 = vmax.f32 %v6955_v55, 0.0 }
 0x8a5   : > { %v6961_v59 = vadd.f32 %v6960_v52, %v11059_v5  ;;  %v7124_v28 = vmax.f32 %v6957_v62, 0.0 }
 0x8a6   : > { %v7125_v61 = vmax.f32 %v6959_v58, 0.0 }
 0x8a7   : > { %v7126_v36 = vmax.f32 %v6961_v59, 0.0 }
 0x8a8   : > { %v7201_v39 = vpack.c.bf16 %v7125_v61, %v7123_v60 }
 0x8a9   : > { %v7202_v44 = vpack.c.bf16 %v7126_v36, %v7124_v28  ;;  %v6964_v7 = vpop.f32.mrb[104].mxu0 }
 0x8aa   : > { %v6965_v8 = vadd.f32 %v6964_v7, %v11055_v37  ;;  %v6966_v10 = vpop.f32.mrb[105].mxu0 }
 0x8ab   : > { %v6967_v11 = vadd.f32 %v6966_v10, %v11059_v5  ;;  %v6968_v0 = vpop.f32.mrb[106].mxu0  ;;  %7582 = vmatprep.mubr.bf16.mxu1 %v7202_v44  ;;  %v11222_v10 = vld [vmem:[%s11371_s6] ss:$0 sm:$0xff] }
 0x8ac   : > { %v6969_v26 = vadd.f32 %v6968_v0, %v11055_v37  ;;  %v6970_v12 = vpop.f32.mrb[107].mxu0  ;;  %7583 = vmatmul.mubr.bf16.gmra.mrb[88].mxu1 %v7201_v39  ;;  %v7127_v14 = vmax.f32 %v6965_v8, 0.0 }
 0x8ad   : > { %v6971_v13 = vadd.f32 %v6970_v12, %v11059_v5  ;;  %v7128_v15 = vmax.f32 %v6967_v11, 0.0 }
 0x8ae   : > { %v7129_v4 = vmax.f32 %v6969_v26, 0.0 }
 0x8af   : > { %v7130_v16 = vmax.f32 %v6971_v13, 0.0 }
 0x8b0   : > { %v7203_v17 = vpack.c.bf16 %v7129_v4, %v7127_v14 }
 0x8b1   : > { %v7204_v25 = vpack.c.bf16 %v7130_v16, %v7128_v15  ;;  %v6974_v56 = vpop.f32.mrb[108].mxu0 }
 0x8b2   : > { %v6975_v18 = vadd.f32 %v6974_v56, %v11055_v37  ;;  %v6976_v27 = vpop.f32.mrb[109].mxu0 }
 0x8b3   : > { %v6977_v3 = vadd.f32 %v6976_v27, %v11059_v5  ;;  %v6978_v57 = vpop.f32.mrb[110].mxu0  ;;  %7590 = vmatprep.mubr.bf16.mxu1 %v7204_v25 }
 0x8b4   : > { %v6979_v21 = vadd.f32 %v6978_v57, %v11055_v37  ;;  %v6980_v22 = vpop.f32.mrb[111].mxu0  ;;  %7591 = vmatmul.mubr.bf16.gmra.mrb[92].mxu1 %v7203_v17  ;;  %v7131_v42 = vmax.f32 %v6975_v18, 0.0 }
 0x8b5   : > { %v6981_v23 = vadd.f32 %v6980_v22, %v11059_v5  ;;  %v7132_v24 = vmax.f32 %v6977_v3, 0.0 }
 0x8b6   : > { %v7133_v51 = vmax.f32 %v6979_v21, 0.0 }
 0x8b7   : > { %v7134_v29 = vmax.f32 %v6981_v23, 0.0 }
 0x8b8   : > { %v7205_v35 = vpack.c.bf16 %v7133_v51, %v7131_v42 }
 0x8b9   : > { %v7206_v32 = vpack.c.bf16 %v7134_v29, %v7132_v24  ;;  %v6984_v34 = vpop.f32.mrb[112].mxu0 }
 0x8ba   : > { %v6985_v40 = vadd.f32 %v6984_v34, %v11055_v37  ;;  %v6986_v6 = vpop.f32.mrb[113].mxu0 }
 0x8bb   : > { %v6987_v38 = vadd.f32 %v6986_v6, %v11059_v5  ;;  %v6988_v41 = vpop.f32.mrb[114].mxu0  ;;  %7598 = vmatprep.mubr.bf16.mxu1 %v7206_v32 }
 0x8bc   : > { %v6989_v43 = vadd.f32 %v6988_v41, %v11055_v37  ;;  %v6990_v45 = vpop.f32.mrb[115].mxu0  ;;  %7599 = vmatmul.mubr.bf16.gmra.mrb[96].mxu1 %v7205_v35  ;;  %v7135_v48 = vmax.f32 %v6985_v40, 0.0 }
 0x8bd   : > { %v6991_v46 = vadd.f32 %v6990_v45, %v11059_v5  ;;  %v7136_v49 = vmax.f32 %v6987_v38, 0.0 }
 0x8be   : > { %v7137_v33 = vmax.f32 %v6989_v43, 0.0 }
 0x8bf   : > { %v7138_v9 = vmax.f32 %v6991_v46, 0.0 }
 0x8c0   : > { %v7207_v63 = vpack.c.bf16 %v7137_v33, %v7135_v48 }
 0x8c1   : > { %v7208_v19 = vpack.c.bf16 %v7138_v9, %v7136_v49  ;;  %v6994_v50 = vpop.f32.mrb[116].mxu0 }
 0x8c2   : > { %v6995_v20 = vadd.f32 %v6994_v50, %v11055_v37  ;;  %v6996_v53 = vpop.f32.mrb[117].mxu0 }
 0x8c3   : > { %v6997_v1 = vadd.f32 %v6996_v53, %v11059_v5  ;;  %v6998_v54 = vpop.f32.mrb[118].mxu0  ;;  %7606 = vmatprep.mubr.bf16.mxu1 %v7208_v19 }
 0x8c4   : > { %v6999_v47 = vadd.f32 %v6998_v54, %v11055_v37  ;;  %v7000_v30 = vpop.f32.mrb[119].mxu0  ;;  %7607 = vmatmul.mubr.bf16.gmra.mrb[100].mxu1 %v7207_v63  ;;  %v7139_v31 = vmax.f32 %v6995_v20, 0.0 }
 0x8c5   : > { %v7001_v55 = vadd.f32 %v7000_v30, %v11059_v5  ;;  %v7140_v2 = vmax.f32 %v6997_v1, 0.0 }
 0x8c6   : > { %v7141_v62 = vmax.f32 %v6999_v47, 0.0 }
 0x8c7   : > { %v7142_v58 = vmax.f32 %v7001_v55, 0.0 }
 0x8c8   : > { %v7209_v52 = vpack.c.bf16 %v7141_v62, %v7139_v31 }
 0x8c9   : > { %v7210_v59 = vpack.c.bf16 %v7142_v58, %v7140_v2  ;;  %v7004_v60 = vpop.f32.mrb[120].mxu0 }
 0x8ca   : > { %v7005_v61 = vadd.f32 %v7004_v60, %v11055_v37  ;;  %v7006_v28 = vpop.f32.mrb[121].mxu0 }
 0x8cb   : > { %v7007_v36 = vadd.f32 %v7006_v28, %v11059_v5  ;;  %v7008_v39 = vpop.f32.mrb[122].mxu0  ;;  %7614 = vmatprep.mubr.bf16.mxu1 %v7210_v59 }
 0x8cc   : > { %v7009_v44 = vadd.f32 %v7008_v39, %v11055_v37  ;;  %v7010_v7 = vpop.f32.mrb[123].mxu0  ;;  %7615 = vmatmul.mubr.bf16.gmra.mrb[104].mxu1 %v7209_v52  ;;  %v7143_v11 = vmax.f32 %v7005_v61, 0.0 }
 0x8cd   : > { %v7011_v8 = vadd.f32 %v7010_v7, %v11059_v5  ;;  %v7144_v26 = vmax.f32 %v7007_v36, 0.0 }
 0x8ce   : > { %v7145_v0 = vmax.f32 %v7009_v44, 0.0 }
 0x8cf   : > { %v7146_v12 = vmax.f32 %v7011_v8, 0.0  ;;  %v7408_v13 = vpop.f32.mrb[0].mxu1 }
 0x8d0   : > { %v7211_v14 = vpack.c.bf16 %v7145_v0, %v7143_v11  ;;  %v7409_v4 = vadd.f32 %v11222_v10, %v7408_v13  ;;  %v7410_v15 = vpop.f32.mrb[1].mxu1 }
 0x8d1   : > { %v7212_v16 = vpack.c.bf16 %v7146_v12, %v7144_v26  ;;  %v7014_v17 = vpop.f32.mrb[124].mxu0  ;;  %v7411_v25 = vpop.f32.mrb[2].mxu1 }
 0x8d2   : > { %v7645_v56 = vand.u32 2147483647, %v7409_v4  ;;  %v7015_v18 = vadd.f32 %v7014_v17, %v11055_v37  ;;  %v7412_v27 = vadd.f32 %v11222_v10, %v7411_v25  ;;  %v7016_v3 = vpop.f32.mrb[125].mxu0  ;;  %v7413_v57 = vpop.f32.mrb[3].mxu1 }
 0x8d3   : > { %v7017_v21 = vadd.f32 %v7016_v3, %v11059_v5  ;;  %v7018_v22 = vpop.f32.mrb[126].mxu0  ;;  %7622 = vmatprep.mubr.bf16.mxu1 %v7212_v16 }
 0x8d4   : > { %7709 = vst [vmem:[%s11229_s8 + $0x30] sm:$0xff] %v7645_v56  ;;  %v7646_v23 = vand.u32 2147483647, %v7412_v27  ;;  %v7019_v42 = vadd.f32 %v7018_v22, %v11055_v37  ;;  %v7020_v51 = vpop.f32.mrb[127].mxu0  ;;  %7623 = vmatmul.mubr.bf16.gmra.mrb[108].mxu1 %v7211_v14  ;;  %v7147_v29 = vmax.f32 %v7015_v18, 0.0 }
 0x8d5   : > { %v7021_v24 = vadd.f32 %v7020_v51, %v11059_v5  ;;  %v7148_v32 = vmax.f32 %v7017_v21, 0.0 }
 0x8d6   : > { %7710 = vst [vmem:[%s11229_s8 + $0x38] sm:$0xff] %v7646_v23  ;;  %v7149_v35 = vmax.f32 %v7019_v42, 0.0 }
 0x8d7   : > { %v7150_v34 = vmax.f32 %v7021_v24, 0.0  ;;  %v7416_v40 = vpop.f32.mrb[4].mxu1 }
 0x8d8   : > { %v7213_v6 = vpack.c.bf16 %v7149_v35, %v7147_v29  ;;  %v7417_v38 = vadd.f32 %v11222_v10, %v7416_v40  ;;  %v7418_v41 = vpop.f32.mrb[5].mxu1 }
 0x8d9   : > { %v7214_v43 = vpack.c.bf16 %v7150_v34, %v7148_v32  ;;  %v7384_v45 = vpop.f32.mrb[128].mxu0  ;;  %v7419_v37 = vpop.f32.mrb[6].mxu1 }
 0x8da   : > { %v7647_v46 = vand.u32 2147483647, %v7417_v38  ;;  %v7385_v48 = vadd.f32 %v11222_v10, %v7384_v45  ;;  %v7420_v5 = vadd.f32 %v11222_v10, %v7419_v37  ;;  %v7386_v33 = vpop.f32.mrb[129].mxu0  ;;  %v7421_v49 = vpop.f32.mrb[7].mxu1 }
 0x8db   : > { %v7387_v9 = vpop.f32.mrb[130].mxu0  ;;  %7630 = vmatprep.mubr.bf16.mxu1 %v7214_v43 }
 0x8dc   : > { %7711 = vst [vmem:[%s11229_s8 + $0x40] sm:$0xff] %v7647_v46  ;;  %v7639_v63 = vand.u32 2147483647, %v7385_v48  ;;  %v7648_v19 = vand.u32 2147483647, %v7420_v5  ;;  %v7388_v50 = vadd.f32 %v11222_v10, %v7387_v9  ;;  %v7389_v20 = vpop.f32.mrb[131].mxu0  ;;  %7631 = vmatmul.mubr.bf16.gmra.mrb[112].mxu1 %v7213_v6 }
 0x8de   : > { %7703 = vst [vmem:[%s11229_s8] sm:$0xff] %v7639_v63  ;;  %7712 = vst [vmem:[%s11229_s8 + $0x48] sm:$0xff] %v7648_v19  ;;  %v7640_v53 = vand.u32 2147483647, %v7388_v50 }
 0x8df   : > { %v7424_v1 = vpop.f32.mrb[8].mxu1 }
 0x8e0   : > { %7704 = vst [vmem:[%s11229_s8 + $0x8] sm:$0xff] %v7640_v53  ;;  %v7425_v54 = vadd.f32 %v11222_v10, %v7424_v1  ;;  %v7426_v47 = vpop.f32.mrb[9].mxu1 }
 0x8e1   : > { %v7392_v30 = vpop.f32.mrb[132].mxu0  ;;  %v7427_v55 = vpop.f32.mrb[10].mxu1 }
 0x8e2   : > { %v7649_v31 = vand.u32 2147483647, %v7425_v54  ;;  %v7393_v62 = vadd.f32 %v11222_v10, %v7392_v30  ;;  %v7428_v2 = vadd.f32 %v11222_v10, %v7427_v55  ;;  %v7394_v58 = vpop.f32.mrb[133].mxu0  ;;  %v7429_v52 = vpop.f32.mrb[11].mxu1 }
 0x8e3   : > { %v7395_v59 = vpop.f32.mrb[134].mxu0 }
 0x8e4   : > { %7713 = vst [vmem:[%s11229_s8 + $0x50] sm:$0xff] %v7649_v31  ;;  %v7641_v60 = vand.u32 2147483647, %v7393_v62  ;;  %v7650_v61 = vand.u32 2147483647, %v7428_v2  ;;  %v7396_v28 = vadd.f32 %v11222_v10, %v7395_v59  ;;  %v7397_v36 = vpop.f32.mrb[135].mxu0 }
 0x8e6   : > { %7705 = vst [vmem:[%s11229_s8 + $0x10] sm:$0xff] %v7641_v60  ;;  %7714 = vst [vmem:[%s11229_s8 + $0x58] sm:$0xff] %v7650_v61  ;;  %v7642_v39 = vand.u32 2147483647, %v7396_v28 }
 0x8e7   : > { %v7432_v44 = vpop.f32.mrb[12].mxu1 }
 0x8e8   : > { %7706 = vst [vmem:[%s11229_s8 + $0x18] sm:$0xff] %v7642_v39  ;;  %v7433_v7 = vadd.f32 %v11222_v10, %v7432_v44  ;;  %v7434_v8 = vpop.f32.mrb[13].mxu1 }
 0x8e9   : > { %v7400_v11 = vpop.f32.mrb[136].mxu0  ;;  %v7435_v0 = vpop.f32.mrb[14].mxu1 }
 0x8ea   : > { %v7651_v26 = vand.u32 2147483647, %v7433_v7  ;;  %v7401_v12 = vadd.f32 %v11222_v10, %v7400_v11  ;;  %v7436_v13 = vadd.f32 %v11222_v10, %v7435_v0  ;;  %v7402_v14 = vpop.f32.mrb[137].mxu0  ;;  %v7437_v4 = vpop.f32.mrb[15].mxu1 }
 0x8eb   : > { %v7403_v15 = vpop.f32.mrb[138].mxu0 }
 0x8ec   : > { %7715 = vst [vmem:[%s11229_s8 + $0x60] sm:$0xff] %v7651_v26  ;;  %v7643_v16 = vand.u32 2147483647, %v7401_v12  ;;  %v7652_v17 = vand.u32 2147483647, %v7436_v13  ;;  %v7404_v25 = vadd.f32 %v11222_v10, %v7403_v15  ;;  %v7405_v56 = vpop.f32.mrb[139].mxu0 }
 0x8ee   : > { %7707 = vst [vmem:[%s11229_s8 + $0x20] sm:$0xff] %v7643_v16  ;;  %7716 = vst [vmem:[%s11229_s8 + $0x68] sm:$0xff] %v7652_v17  ;;  %v7644_v18 = vand.u32 2147483647, %v7404_v25 }
 0x8ef   : > { %v7440_v27 = vpop.f32.mrb[16].mxu1 }
 0x8f0   : > { %7708 = vst [vmem:[%s11229_s8 + $0x28] sm:$0xff] %v7644_v18  ;;  %v7441_v3 = vadd.f32 %v11222_v10, %v7440_v27  ;;  %v7442_v57 = vpop.f32.mrb[17].mxu1 }
 0x8f1   : > { %v7443_v21 = vpop.f32.mrb[18].mxu1 }
 0x8f2   : > { %v7653_v22 = vand.u32 2147483647, %v7441_v3  ;;  %v7444_v23 = vadd.f32 %v11222_v10, %v7443_v21  ;;  %v7445_v42 = vpop.f32.mrb[19].mxu1 }
 0x8f4   : > { %7717 = vst [vmem:[%s11229_s8 + $0x70] sm:$0xff] %v7653_v22  ;;  %v7654_v51 = vand.u32 2147483647, %v7444_v23 }
 0x8f6   : > { %7718 = vst [vmem:[%s11229_s8 + $0x78] sm:$0xff] %v7654_v51 }
 0x8f7   : > { %v7448_v24 = vpop.f32.mrb[20].mxu1 }
 0x8f8   : > { %v7449_v29 = vadd.f32 %v11222_v10, %v7448_v24  ;;  %v7450_v35 = vpop.f32.mrb[21].mxu1 }
 0x8f9   : > { %v7451_v32 = vpop.f32.mrb[22].mxu1 }
 0x8fa   : > { %v7655_v34 = vand.u32 2147483647, %v7449_v29  ;;  %v7452_v40 = vadd.f32 %v11222_v10, %v7451_v32  ;;  %v7453_v6 = vpop.f32.mrb[23].mxu1 }
 0x8fc   : > { %7719 = vst [vmem:[%s11229_s8 + $0x80] sm:$0xff] %v7655_v34  ;;  %v7656_v38 = vand.u32 2147483647, %v7452_v40 }
 0x8fe   : > { %7720 = vst [vmem:[%s11229_s8 + $0x88] sm:$0xff] %v7656_v38 }
 0x8ff   : > { %v7456_v41 = vpop.f32.mrb[24].mxu1 }
 0x900   : > { %v7457_v43 = vadd.f32 %v11222_v10, %v7456_v41  ;;  %v7458_v45 = vpop.f32.mrb[25].mxu1 }
 0x901   : > { %v7459_v37 = vpop.f32.mrb[26].mxu1 }
 0x902   : > { %v7657_v46 = vand.u32 2147483647, %v7457_v43  ;;  %v7460_v48 = vadd.f32 %v11222_v10, %v7459_v37  ;;  %v7461_v5 = vpop.f32.mrb[27].mxu1 }
 0x904   : > { %7721 = vst [vmem:[%s11229_s8 + $0x90] sm:$0xff] %v7657_v46  ;;  %v7658_v33 = vand.u32 2147483647, %v7460_v48 }
 0x906   : > { %7722 = vst [vmem:[%s11229_s8 + $0x98] sm:$0xff] %v7658_v33 }
 0x907   : > { %v7464_v49 = vpop.f32.mrb[28].mxu1 }
 0x908   : > { %v7465_v9 = vadd.f32 %v11222_v10, %v7464_v49  ;;  %v7466_v63 = vpop.f32.mrb[29].mxu1 }
 0x909   : > { %v7467_v19 = vpop.f32.mrb[30].mxu1 }
 0x90a   : > { %v7659_v50 = vand.u32 2147483647, %v7465_v9  ;;  %v7468_v20 = vadd.f32 %v11222_v10, %v7467_v19  ;;  %v7469_v53 = vpop.f32.mrb[31].mxu1 }
 0x90c   : > { %7723 = vst [vmem:[%s11229_s8 + $0xa0] sm:$0xff] %v7659_v50  ;;  %v7660_v1 = vand.u32 2147483647, %v7468_v20 }
 0x90e   : > { %7724 = vst [vmem:[%s11229_s8 + $0xa8] sm:$0xff] %v7660_v1 }
 0x90f   : > { %v7472_v54 = vpop.f32.mrb[32].mxu1 }
 0x910   : > { %v7473_v47 = vadd.f32 %v11222_v10, %v7472_v54  ;;  %v7474_v30 = vpop.f32.mrb[33].mxu1 }
 0x911   : > { %v7475_v55 = vpop.f32.mrb[34].mxu1 }
 0x912   : > { %v7661_v31 = vand.u32 2147483647, %v7473_v47  ;;  %v7476_v62 = vadd.f32 %v11222_v10, %v7475_v55  ;;  %v7477_v2 = vpop.f32.mrb[35].mxu1 }
 0x914   : > { %7725 = vst [vmem:[%s11229_s8 + $0xb0] sm:$0xff] %v7661_v31  ;;  %v7662_v58 = vand.u32 2147483647, %v7476_v62 }
 0x916   : > { %7726 = vst [vmem:[%s11229_s8 + $0xb8] sm:$0xff] %v7662_v58 }
 0x917   : > { %v7480_v52 = vpop.f32.mrb[36].mxu1 }
 0x918   : > { %v7481_v59 = vadd.f32 %v11222_v10, %v7480_v52  ;;  %v7482_v60 = vpop.f32.mrb[37].mxu1 }
 0x919   : > { %v7483_v61 = vpop.f32.mrb[38].mxu1 }
 0x91a   : > { %v7663_v28 = vand.u32 2147483647, %v7481_v59  ;;  %v7484_v36 = vadd.f32 %v11222_v10, %v7483_v61  ;;  %v7485_v39 = vpop.f32.mrb[39].mxu1 }
 0x91c   : > { %7727 = vst [vmem:[%s11229_s8 + $0xc0] sm:$0xff] %v7663_v28  ;;  %v7664_v44 = vand.u32 2147483647, %v7484_v36 }
 0x91e   : > { %7728 = vst [vmem:[%s11229_s8 + $0xc8] sm:$0xff] %v7664_v44 }
 0x91f   : > { %v7488_v7 = vpop.f32.mrb[40].mxu1 }
 0x920   : > { %v7489_v8 = vadd.f32 %v11222_v10, %v7488_v7  ;;  %v7490_v11 = vpop.f32.mrb[41].mxu1 }
 0x921   : > { %v7491_v0 = vpop.f32.mrb[42].mxu1 }
 0x922   : > { %v7665_v26 = vand.u32 2147483647, %v7489_v8  ;;  %v7492_v12 = vadd.f32 %v11222_v10, %v7491_v0  ;;  %v7493_v13 = vpop.f32.mrb[43].mxu1 }
 0x924   : > { %7729 = vst [vmem:[%s11229_s8 + $0xd0] sm:$0xff] %v7665_v26  ;;  %v7666_v14 = vand.u32 2147483647, %v7492_v12 }
 0x926   : > { %7730 = vst [vmem:[%s11229_s8 + $0xd8] sm:$0xff] %v7666_v14 }
 0x927   : > { %v7496_v4 = vpop.f32.mrb[44].mxu1 }
 0x928   : > { %v7497_v15 = vadd.f32 %v11222_v10, %v7496_v4  ;;  %v7498_v16 = vpop.f32.mrb[45].mxu1 }
 0x929   : > { %v7499_v17 = vpop.f32.mrb[46].mxu1 }
 0x92a   : > { %v7667_v25 = vand.u32 2147483647, %v7497_v15  ;;  %v7500_v56 = vadd.f32 %v11222_v10, %v7499_v17  ;;  %v7501_v18 = vpop.f32.mrb[47].mxu1 }
 0x92c   : > { %7731 = vst [vmem:[%s11229_s8 + $0xe0] sm:$0xff] %v7667_v25  ;;  %v7668_v27 = vand.u32 2147483647, %v7500_v56 }
 0x92e   : > { %7732 = vst [vmem:[%s11229_s8 + $0xe8] sm:$0xff] %v7668_v27 }
 0x92f   : > { %v7504_v3 = vpop.f32.mrb[48].mxu1 }
 0x930   : > { %v7505_v57 = vadd.f32 %v11222_v10, %v7504_v3  ;;  %v7506_v21 = vpop.f32.mrb[49].mxu1 }
 0x931   : > { %v7507_v22 = vpop.f32.mrb[50].mxu1 }
 0x932   : > { %v7669_v23 = vand.u32 2147483647, %v7505_v57  ;;  %v7508_v42 = vadd.f32 %v11222_v10, %v7507_v22  ;;  %v7509_v51 = vpop.f32.mrb[51].mxu1 }
 0x934   : > { %7733 = vst [vmem:[%s11229_s8 + $0xf0] sm:$0xff] %v7669_v23  ;;  %v7670_v24 = vand.u32 2147483647, %v7508_v42 }
 0x936   : > { %7734 = vst [vmem:[%s11229_s8 + $0xf8] sm:$0xff] %v7670_v24 }
 0x937   : > { %v7512_v29 = vpop.f32.mrb[52].mxu1 }
 0x938   : > { %v7513_v35 = vadd.f32 %v11222_v10, %v7512_v29  ;;  %v7514_v32 = vpop.f32.mrb[53].mxu1 }
 0x939   : > { %v7515_v34 = vpop.f32.mrb[54].mxu1 }
 0x93a   : > { %v7671_v40 = vand.u32 2147483647, %v7513_v35  ;;  %v7516_v6 = vadd.f32 %v11222_v10, %v7515_v34  ;;  %v7517_v38 = vpop.f32.mrb[55].mxu1 }
 0x93c   : > { %7735 = vst [vmem:[%s11229_s8 + $0x100] sm:$0xff] %v7671_v40  ;;  %v7672_v41 = vand.u32 2147483647, %v7516_v6 }
 0x93e   : > { %7736 = vst [vmem:[%s11229_s8 + $0x108] sm:$0xff] %v7672_v41 }
 0x93f   : > { %v7520_v43 = vpop.f32.mrb[56].mxu1 }
 0x940   : > { %v7521_v45 = vadd.f32 %v11222_v10, %v7520_v43  ;;  %v7522_v37 = vpop.f32.mrb[57].mxu1 }
 0x941   : > { %v7523_v46 = vpop.f32.mrb[58].mxu1 }
 0x942   : > { %v7673_v48 = vand.u32 2147483647, %v7521_v45  ;;  %v7524_v5 = vadd.f32 %v11222_v10, %v7523_v46  ;;  %v7525_v33 = vpop.f32.mrb[59].mxu1 }
 0x944   : > { %7737 = vst [vmem:[%s11229_s8 + $0x110] sm:$0xff] %v7673_v48  ;;  %v7674_v49 = vand.u32 2147483647, %v7524_v5 }
 0x946   : > { %7738 = vst [vmem:[%s11229_s8 + $0x118] sm:$0xff] %v7674_v49 }
 0x947   : > { %v7528_v9 = vpop.f32.mrb[60].mxu1 }
 0x948   : > { %v7529_v63 = vadd.f32 %v11222_v10, %v7528_v9  ;;  %v7530_v19 = vpop.f32.mrb[61].mxu1 }
 0x949   : > { %v7531_v50 = vpop.f32.mrb[62].mxu1 }
 0x94a   : > { %v7675_v20 = vand.u32 2147483647, %v7529_v63  ;;  %v7532_v53 = vadd.f32 %v11222_v10, %v7531_v50  ;;  %v7533_v1 = vpop.f32.mrb[63].mxu1 }
 0x94c   : > { %7739 = vst [vmem:[%s11229_s8 + $0x120] sm:$0xff] %v7675_v20  ;;  %v7676_v54 = vand.u32 2147483647, %v7532_v53 }
 0x94e   : > { %7740 = vst [vmem:[%s11229_s8 + $0x128] sm:$0xff] %v7676_v54 }
 0x94f   : > { %v7536_v47 = vpop.f32.mrb[64].mxu1 }
 0x950   : > { %v7537_v30 = vadd.f32 %v11222_v10, %v7536_v47  ;;  %v7538_v55 = vpop.f32.mrb[65].mxu1 }
 0x951   : > { %v7539_v31 = vpop.f32.mrb[66].mxu1 }
 0x952   : > { %v7677_v62 = vand.u32 2147483647, %v7537_v30  ;;  %v7540_v2 = vadd.f32 %v11222_v10, %v7539_v31  ;;  %v7541_v58 = vpop.f32.mrb[67].mxu1 }
 0x954   : > { %7741 = vst [vmem:[%s11229_s8 + $0x130] sm:$0xff] %v7677_v62  ;;  %v7678_v52 = vand.u32 2147483647, %v7540_v2 }
 0x956   : > { %7742 = vst [vmem:[%s11229_s8 + $0x138] sm:$0xff] %v7678_v52 }
 0x957   : > { %v7544_v59 = vpop.f32.mrb[68].mxu1 }
 0x958   : > { %v7545_v60 = vadd.f32 %v11222_v10, %v7544_v59  ;;  %v7546_v61 = vpop.f32.mrb[69].mxu1 }
 0x959   : > { %v7547_v28 = vpop.f32.mrb[70].mxu1 }
 0x95a   : > { %v7679_v36 = vand.u32 2147483647, %v7545_v60  ;;  %v7548_v39 = vadd.f32 %v11222_v10, %v7547_v28  ;;  %v7549_v44 = vpop.f32.mrb[71].mxu1 }
 0x95c   : > { %7743 = vst [vmem:[%s11229_s8 + $0x140] sm:$0xff] %v7679_v36  ;;  %v7680_v7 = vand.u32 2147483647, %v7548_v39 }
 0x95e   : > { %7744 = vst [vmem:[%s11229_s8 + $0x148] sm:$0xff] %v7680_v7 }
 0x95f   : > { %v7552_v8 = vpop.f32.mrb[72].mxu1 }
 0x960   : > { %v7553_v11 = vadd.f32 %v11222_v10, %v7552_v8  ;;  %v7554_v0 = vpop.f32.mrb[73].mxu1 }
 0x961   : > { %v7555_v26 = vpop.f32.mrb[74].mxu1 }
 0x962   : > { %v7681_v12 = vand.u32 2147483647, %v7553_v11  ;;  %v7556_v13 = vadd.f32 %v11222_v10, %v7555_v26  ;;  %v7557_v14 = vpop.f32.mrb[75].mxu1 }
 0x964   : > { %7745 = vst [vmem:[%s11229_s8 + $0x150] sm:$0xff] %v7681_v12  ;;  %v7682_v4 = vand.u32 2147483647, %v7556_v13 }
 0x966   : > { %7746 = vst [vmem:[%s11229_s8 + $0x158] sm:$0xff] %v7682_v4 }
 0x967   : > { %v7560_v15 = vpop.f32.mrb[76].mxu1 }
 0x968   : > { %v7561_v16 = vadd.f32 %v11222_v10, %v7560_v15  ;;  %v7562_v17 = vpop.f32.mrb[77].mxu1 }
 0x969   : > { %v7563_v25 = vpop.f32.mrb[78].mxu1 }
 0x96a   : > { %v7683_v56 = vand.u32 2147483647, %v7561_v16  ;;  %v7564_v18 = vadd.f32 %v11222_v10, %v7563_v25  ;;  %v7565_v27 = vpop.f32.mrb[79].mxu1 }
 0x96c   : > { %7747 = vst [vmem:[%s11229_s8 + $0x160] sm:$0xff] %v7683_v56  ;;  %v7684_v3 = vand.u32 2147483647, %v7564_v18 }
 0x96e   : > { %7748 = vst [vmem:[%s11229_s8 + $0x168] sm:$0xff] %v7684_v3 }
 0x96f   : > { %v7568_v57 = vpop.f32.mrb[80].mxu1 }
 0x970   : > { %v7569_v21 = vadd.f32 %v11222_v10, %v7568_v57  ;;  %v7570_v22 = vpop.f32.mrb[81].mxu1 }
 0x971   : > { %v7571_v23 = vpop.f32.mrb[82].mxu1 }
 0x972   : > { %v7685_v42 = vand.u32 2147483647, %v7569_v21  ;;  %v7572_v51 = vadd.f32 %v11222_v10, %v7571_v23  ;;  %v7573_v24 = vpop.f32.mrb[83].mxu1 }
 0x974   : > { %7749 = vst [vmem:[%s11229_s8 + $0x170] sm:$0xff] %v7685_v42  ;;  %v7686_v29 = vand.u32 2147483647, %v7572_v51 }
 0x976   : > { %7750 = vst [vmem:[%s11229_s8 + $0x178] sm:$0xff] %v7686_v29 }
 0x977   : > { %v7576_v35 = vpop.f32.mrb[84].mxu1 }
 0x978   : > { %v7577_v32 = vadd.f32 %v11222_v10, %v7576_v35  ;;  %v7578_v34 = vpop.f32.mrb[85].mxu1 }
 0x979   : > { %v7579_v40 = vpop.f32.mrb[86].mxu1 }
 0x97a   : > { %v7687_v6 = vand.u32 2147483647, %v7577_v32  ;;  %v7580_v38 = vadd.f32 %v11222_v10, %v7579_v40  ;;  %v7581_v41 = vpop.f32.mrb[87].mxu1 }
 0x97c   : > { %7751 = vst [vmem:[%s11229_s8 + $0x180] sm:$0xff] %v7687_v6  ;;  %v7688_v43 = vand.u32 2147483647, %v7580_v38 }
 0x97e   : > { %7752 = vst [vmem:[%s11229_s8 + $0x188] sm:$0xff] %v7688_v43 }
 0x97f   : > { %v7584_v45 = vpop.f32.mrb[88].mxu1 }
 0x980   : > { %v7585_v37 = vadd.f32 %v11222_v10, %v7584_v45  ;;  %v7586_v46 = vpop.f32.mrb[89].mxu1 }
 0x981   : > { %v7587_v48 = vpop.f32.mrb[90].mxu1 }
 0x982   : > { %v7689_v5 = vand.u32 2147483647, %v7585_v37  ;;  %v7588_v33 = vadd.f32 %v11222_v10, %v7587_v48  ;;  %v7589_v49 = vpop.f32.mrb[91].mxu1 }
 0x984   : > { %7753 = vst [vmem:[%s11229_s8 + $0x190] sm:$0xff] %v7689_v5  ;;  %v7690_v9 = vand.u32 2147483647, %v7588_v33 }
 0x986   : > { %7754 = vst [vmem:[%s11229_s8 + $0x198] sm:$0xff] %v7690_v9 }
 0x987   : > { %v7592_v63 = vpop.f32.mrb[92].mxu1 }
 0x988   : > { %v7593_v19 = vadd.f32 %v11222_v10, %v7592_v63  ;;  %v7594_v50 = vpop.f32.mrb[93].mxu1 }
 0x989   : > { %v7595_v20 = vpop.f32.mrb[94].mxu1 }
 0x98a   : > { %v7691_v53 = vand.u32 2147483647, %v7593_v19  ;;  %v7596_v1 = vadd.f32 %v11222_v10, %v7595_v20  ;;  %v7597_v54 = vpop.f32.mrb[95].mxu1 }
 0x98c   : > { %7755 = vst [vmem:[%s11229_s8 + $0x1a0] sm:$0xff] %v7691_v53  ;;  %v7692_v47 = vand.u32 2147483647, %v7596_v1 }
 0x98e   : > { %7756 = vst [vmem:[%s11229_s8 + $0x1a8] sm:$0xff] %v7692_v47 }
 0x98f   : > { %v7600_v30 = vpop.f32.mrb[96].mxu1 }
 0x990   : > { %v7601_v55 = vadd.f32 %v11222_v10, %v7600_v30  ;;  %v7602_v31 = vpop.f32.mrb[97].mxu1 }
 0x991   : > { %v7603_v62 = vpop.f32.mrb[98].mxu1 }
 0x992   : > { %v7693_v2 = vand.u32 2147483647, %v7601_v55  ;;  %v7604_v58 = vadd.f32 %v11222_v10, %v7603_v62  ;;  %v7605_v52 = vpop.f32.mrb[99].mxu1 }
 0x994   : > { %7757 = vst [vmem:[%s11229_s8 + $0x1b0] sm:$0xff] %v7693_v2  ;;  %v7694_v59 = vand.u32 2147483647, %v7604_v58 }
 0x996   : > { %7758 = vst [vmem:[%s11229_s8 + $0x1b8] sm:$0xff] %v7694_v59 }
 0x997   : > { %v7608_v60 = vpop.f32.mrb[100].mxu1 }
 0x998   : > { %v7609_v61 = vadd.f32 %v11222_v10, %v7608_v60  ;;  %v7610_v28 = vpop.f32.mrb[101].mxu1 }
 0x999   : > { %v7611_v36 = vpop.f32.mrb[102].mxu1 }
 0x99a   : > { %v7695_v39 = vand.u32 2147483647, %v7609_v61  ;;  %v7612_v44 = vadd.f32 %v11222_v10, %v7611_v36  ;;  %v7613_v7 = vpop.f32.mrb[103].mxu1 }
 0x99c   : > { %7759 = vst [vmem:[%s11229_s8 + $0x1c0] sm:$0xff] %v7695_v39  ;;  %v7696_v8 = vand.u32 2147483647, %v7612_v44 }
 0x99e   : > { %7760 = vst [vmem:[%s11229_s8 + $0x1c8] sm:$0xff] %v7696_v8 }
 0x99f   : > { %v7616_v11 = vpop.f32.mrb[104].mxu1 }
 0x9a0   : > { %v7617_v0 = vadd.f32 %v11222_v10, %v7616_v11  ;;  %v7618_v26 = vpop.f32.mrb[105].mxu1 }
 0x9a1   : > { %v7619_v12 = vpop.f32.mrb[106].mxu1 }
 0x9a2   : > { %v7697_v13 = vand.u32 2147483647, %v7617_v0  ;;  %v7620_v14 = vadd.f32 %v11222_v10, %v7619_v12  ;;  %v7621_v4 = vpop.f32.mrb[107].mxu1 }
 0x9a4   : > { %7761 = vst [vmem:[%s11229_s8 + $0x1d0] sm:$0xff] %v7697_v13  ;;  %v7698_v15 = vand.u32 2147483647, %v7620_v14 }
 0x9a6   : > { %7762 = vst [vmem:[%s11229_s8 + $0x1d8] sm:$0xff] %v7698_v15 }
 0x9a7   : > { %v7624_v16 = vpop.f32.mrb[108].mxu1 }
 0x9a8   : > { %v7625_v17 = vadd.f32 %v11222_v10, %v7624_v16  ;;  %v7626_v25 = vpop.f32.mrb[109].mxu1 }
 0x9a9   : > { %v7627_v56 = vpop.f32.mrb[110].mxu1 }
 0x9aa   : > { %v7699_v18 = vand.u32 2147483647, %v7625_v17  ;;  %v7628_v27 = vadd.f32 %v11222_v10, %v7627_v56  ;;  %v7629_v3 = vpop.f32.mrb[111].mxu1 }
 0x9ac   : > { %7763 = vst [vmem:[%s11229_s8 + $0x1e0] sm:$0xff] %v7699_v18  ;;  %v7700_v57 = vand.u32 2147483647, %v7628_v27 }
 0x9ae   : > { %7764 = vst [vmem:[%s11229_s8 + $0x1e8] sm:$0xff] %v7700_v57 }
 0x9af   : > { %v7632_v21 = vpop.f32.mrb[112].mxu1 }
 0x9b0   : > { %v7633_v22 = vadd.f32 %v11222_v10, %v7632_v21  ;;  %v7634_v23 = vpop.f32.mrb[113].mxu1 }
 0x9b1   : > { %v7635_v42 = vpop.f32.mrb[114].mxu1 }
 0x9b2   : > { %v7701_v51 = vand.u32 2147483647, %v7633_v22  ;;  %v7636_v24 = vadd.f32 %v11222_v10, %v7635_v42  ;;  %v7637_v29 = vpop.f32.mrb[115].mxu1 }
 0x9b4   : > { %7765 = vst [vmem:[%s11229_s8 + $0x1f0] sm:$0xff] %v7701_v51  ;;  %v7702_v35 = vand.u32 2147483647, %v7636_v24 }
 0x9b6   : > { %7766 = vst [vmem:[%s11229_s8 + $0x1f8] sm:$0xff] %v7702_v35 }
 0x9b7 PF: > { %s17_s24 = sadd.s32 1, %s8901_s24  }
 0x9b8   : > { %p14_p4 = scmp.ge.s32.totalorder %s17_s24, 4  }
 0x9ba   :  { %16 = sbr.rel (!%p14_p4) target bundleno = 1 (0x1), region = 92 }

</bundles_post_ra>
